<compile_context>
chip_gen: v5e
topology: v5e:2x2
jax: 0.10.0
libtpu: 0.0.40
codegen_flags: <defaults>
</compile_context>

<pallas_src>
import functools
import math

import jax
import jax.numpy as jnp
from jax.experimental import pallas as pl
from jax.experimental.pallas import tpu as pltpu


# ------------------------------- small helpers ------------------------------

def _nbytes(shape, dtype):
    return math.prod(shape) * jnp.dtype(dtype).itemsize


def _vmem_limit(*block_bytes):
    """Explicit scoped-VMEM limit derived from the actual (double-buffered)
    block sizes, with slack for compiler scratch/relayouts."""
    need = 2 * sum(block_bytes) + (8 << 20)
    return int(min(max(need, 16 << 20), 48 << 20))


# ----------------------------- Pallas kernels ------------------------------

def _conv_relu_kernel(xp_ref, w_ref, b_ref, o_ref, *, ksize, tile_oh, pool):
    """Fused KxK 'same' conv + bias + ReLU (+ optional fused 2x2 max-pool).

    Grid: (B, Cout_tiles, row_tiles). The padded image stays resident in VMEM
    per batch index (constant block index across the other grid axes); the
    kernel slices only the row window it needs.

    xp_ref : (1, H + ksize-1, W + ksize-1, Cin)  bf16 padded image
    w_ref  : (ksize, ksize*Cin, tile_c)          bf16; per-dy weights with the
                                                 dx taps folded into K
    b_ref  : (1, tile_c)                         f32
    o_ref  : (1, tile_oh,    W,    tile_c) bf16  if not pool
             (1, tile_oh//2, W//2, tile_c) bf16  if pool
    """
    _, _, wp, cin = xp_ref.shape
    w_out = wp - (ksize - 1)
    tile_c = o_ref.shape[3]

    ht = pl.program_id(2)
    row0 = pl.multiple_of(ht * tile_oh, tile_oh)
    # rows [row0, row0 + tile_oh + ksize - 1) of the padded image feed this tile
    xrows = xp_ref[0, pl.ds(row0, tile_oh + ksize - 1), :, :]

    if ksize == 1:
        patch = xrows.reshape(tile_oh * w_out, cin)
        acc = jnp.dot(patch, w_ref[0], preferred_element_type=jnp.float32)
    else:
        # Fold the dx taps into the contraction: build the ksize dx-shifted
        # windows ONCE per row tile (lane concat) and reuse them across all dy
        # taps -> ksize matmuls with K = ksize*Cin instead of ksize^2 matmuls
        # with K = Cin (fills the 256-deep v6e/v7x MXU, 3x fewer re-layouts).
        xcat = jnp.concatenate(
            [xrows[:, dx:dx + w_out, :] for dx in range(ksize)], axis=-1)
        acc = jnp.zeros((tile_oh * w_out, tile_c), jnp.float32)
        for dy in range(ksize):                      # static unroll
            patch = xcat[dy:dy + tile_oh].reshape(tile_oh * w_out, ksize * cin)
            acc = acc + jnp.dot(patch, w_ref[dy],
                                preferred_element_type=jnp.float32)

    y = jnp.maximum(acc + b_ref[...], 0.0)           # f32 epilogue

    if not pool:
        o_ref[0] = y.reshape(tile_oh, w_out, tile_c).astype(o_ref.dtype)
        return

    # ---- fused 2x2 max-pool epilogue: lane-preserving pair-max (VPU/XLU),
    # ---- no 0/1 selection-matrix MXU matmuls and no O((tile_oh*W)^2) temps.
    th2, w2 = tile_oh // 2, w_out // 2
    y4 = y.reshape(th2, 2, w_out, tile_c)                       # H pooling
    z = jnp.maximum(y4[:, 0], y4[:, 1])                         # (th2, W, tile_c)
    z4 = z.reshape(th2, w2, 2, tile_c)                          # W pooling
    pooled = jnp.maximum(z4[:, :, 0, :], z4[:, :, 1, :])        # (th2, W/2, tile_c)
    o_ref[0] = pooled.astype(o_ref.dtype)


def _roi_head_kernel(p_ref, w1_ref, b1_ref, w2_ref, b2_ref,
                     wc_ref, bc_ref, wd_ref, bd_ref,
                     roi_scores_ref, img_scores_ref):
    """WSDDN-style two-stream weak-detection head, one image per grid step.

    Gridding over images makes the detection softmax a plain per-image
    (axis-0) reduction and the image score a plain sum -- no (N,N) segment
    mask or (B,N) summation-matrix matmuls.

    p_ref   : (1, R, F)    bf16 pooled roi features of this image
    wc/bc, wd/bd : class dimension padded to a 128-lane slab; the padded
                   classification biases are -1e30 so they vanish from the
                   class softmax.
    outputs : roi_scores (1, R, 128) f32, img_scores (1, 1, 128) f32
    """
    x = p_ref[0]                                               # (R, F)
    h1 = jnp.maximum(
        jnp.dot(x, w1_ref[...], preferred_element_type=jnp.float32)
        + b1_ref[...], 0.0)
    h2 = jnp.maximum(
        jnp.dot(h1.astype(jnp.bfloat16), w2_ref[...],
                preferred_element_type=jnp.float32) + b2_ref[...], 0.0)
    h2b = h2.astype(jnp.bfloat16)
    sc = jnp.dot(h2b, wc_ref[...], preferred_element_type=jnp.float32) + bc_ref[...]
    sd = jnp.dot(h2b, wd_ref[...], preferred_element_type=jnp.float32) + bd_ref[...]

    # classification stream: softmax over classes (lane axis); exact division.
    pc = jnp.exp(sc - jnp.max(sc, axis=-1, keepdims=True))
    pc = pc / jnp.sum(pc, axis=-1, keepdims=True)

    # detection stream: softmax over THIS image's proposals with a per-image
    # max (numerically safe segmented softmax); exact division.
    e = jnp.exp(sd - jnp.max(sd, axis=0, keepdims=True))
    pd = e / jnp.sum(e, axis=0, keepdims=True)

    scores = pc * pd                                           # (R, 128)
    roi_scores_ref[0] = scores
    img_scores_ref[0] = jnp.sum(scores, axis=0, keepdims=True)


# ------------------------------ kernel wrappers -----------------------------

def conv_relu(x, w_fold, b, *, ksize, pool, tile_oh=8, tile_c_max=128):
    """x: (B, H, W, Cin) NHWC; w_fold: (ksize, ksize*Cin, Cout); b: (Cout,)."""
    B, H, W, Cin = x.shape
    kd, K, Cout = w_fold.shape
    assert kd == ksize and K == ksize * Cin
    tile_oh = min(tile_oh, H)
    assert H % tile_oh == 0
    if pool:
        assert tile_oh % 2 == 0 and W % 2 == 0
    # tile_c <= 128 bounds the live f32 accumulator (<= ~32 vregs at this W)
    # and keeps the parallel grid axes fine-grained for megacore sharding.
    tile_c = min(Cout, tile_c_max)
    assert Cout % tile_c == 0

    xk = x
    if ksize > 1:
        p = ksize // 2
        # TODO(synk): drop this full-tensor HBM pad round trip: row-block the
        #             unpadded image with a ksize-1 halo (element-indexed
        #             overlapping windows or a manual DMA) and mask the 1-px
        #             W halo in-kernel.
        xk = jnp.pad(x, ((0, 0), (p, p), (p, p), (0, 0)))
    Hp, Wp = xk.shape[1], xk.shape[2]

    if pool:
        out_shape = (B, H // 2, W // 2, Cout)
        o_block = (1, tile_oh // 2, W // 2, tile_c)
    else:
        out_shape = (B, H, W, Cout)
        o_block = (1, tile_oh, W, tile_c)

    x_block = (1, Hp, Wp, Cin)
    w_block = (kd, K, tile_c)
    b_block = (1, tile_c)
    vmem = _vmem_limit(_nbytes(x_block, jnp.bfloat16),
                       _nbytes(w_block, jnp.bfloat16),
                       _nbytes(b_block, jnp.float32),
                       _nbytes(o_block, jnp.bfloat16))

    kernel = functools.partial(_conv_relu_kernel, ksize=ksize,
                               tile_oh=tile_oh, pool=pool)
    return pl.pallas_call(
        kernel,
        out_shape=jax.ShapeDtypeStruct(out_shape, jnp.bfloat16),
        grid=(B, Cout // tile_c, H // tile_oh),
        in_specs=[
            # TODO(synk): at realistic image sizes replace this whole-image
            #             resident block with halo'd row blocks so VMEM stays
            #             bounded on v7x (64 MiB) and is not double-buffered.
            pl.BlockSpec(x_block, lambda bi, ct, ht: (bi, 0, 0, 0)),
            pl.BlockSpec(w_block, lambda bi, ct, ht: (0, 0, ct)),
            pl.BlockSpec(b_block, lambda bi, ct, ht: (0, ct)),
        ],
        out_specs=pl.BlockSpec(o_block, lambda bi, ct, ht: (bi, ht, 0, ct)),
        compiler_params=pltpu.CompilerParams(
            dimension_semantics=("parallel", "parallel", "parallel"),
            vmem_limit_bytes=vmem),
    )(xk.astype(jnp.bfloat16), w_fold.astype(jnp.bfloat16),
      b.reshape(1, Cout).astype(jnp.float32))


def roi_pool_nearest(feat, rois, pool_size, spatial_scale):
    """feat: (B, Hf, Wf, C) NHWC; rois: (B, R, 4) as (y0, x0, y1, x1) in IMAGE
    coordinates; `spatial_scale` maps image coords to feature coords.
    Returns (B, R, pool_size, pool_size, C)."""
    # TODO(synk): exact ROIAlign bilinear multi-sample pooling and a Pallas
    #             scalar-prefetch DMA gather for large R; nearest-neighbour bin
    #             centers via an XLA gather is used here (R is tiny).
    B, Hf, Wf, C = feat.shape
    P = pool_size
    rf = rois.astype(jnp.float32) * spatial_scale
    grid = (jnp.arange(P, dtype=jnp.float32) + 0.5) / P
    ys = rf[..., 0:1] + grid * (rf[..., 2:3] - rf[..., 0:1])      # (B, R, P)
    xs = rf[..., 1:2] + grid * (rf[..., 3:4] - rf[..., 1:2])      # (B, R, P)
    yi = jnp.clip(jnp.floor(ys).astype(jnp.int32), 0, Hf - 1)
    xi = jnp.clip(jnp.floor(xs).astype(jnp.int32), 0, Wf - 1)
    bidx = jnp.arange(B)[:, None, None, None]
    pooled = feat[bidx, yi[:, :, :, None], xi[:, :, None, :], :]  # (B, R, P, P, C)
    return pooled


def roi_weak_reg_head(pooled, params):
    """ROIWeakRegHead approximated as a WSDDN-style two-stream head.

    Gridded per image (grid=(B,)) so the detection-stream softmax is a plain
    per-image reduction; FC weights use constant index maps so they stay
    resident in VMEM across grid steps.  The class dim is computed on a
    lane-dense 128-wide slab and sliced back to C outside the kernel."""
    B, R, P, _, Cf = pooled.shape
    F = P * P * Cf
    D = params["w1"].shape[1]
    C = params["wc"].shape[1]
    CP = 128
    assert C <= CP

    p = pooled.reshape(B, R, F).astype(jnp.bfloat16)
    wc = jnp.zeros((D, CP), jnp.float32).at[:, :C].set(params["wc"]).astype(jnp.bfloat16)
    wd = jnp.zeros((D, CP), jnp.float32).at[:, :C].set(params["wd"]).astype(jnp.bfloat16)
    bc = jnp.full((1, CP), -1e30, jnp.float32).at[:, :C].set(params["bc"])
    bd = jnp.zeros((1, CP), jnp.float32).at[:, :C].set(params["bd"])

    def _const(shape):
        return pl.BlockSpec(shape, lambda b: (0,) * len(shape))

    vmem = _vmem_limit(
        _nbytes((1, R, F), jnp.bfloat16),
        _nbytes((F, D), jnp.bfloat16), _nbytes((1, D), jnp.float32),
        _nbytes((D, D), jnp.bfloat16), _nbytes((1, D), jnp.float32),
        2 * _nbytes((D, CP), jnp.bfloat16), 2 * _nbytes((1, CP), jnp.float32),
        _nbytes((1, R, CP), jnp.float32), _nbytes((1, 1, CP), jnp.float32))

    roi_scores, img_scores = pl.pallas_call(
        _roi_head_kernel,
        out_shape=(jax.ShapeDtypeStruct((B, R, CP), jnp.float32),
                   jax.ShapeDtypeStruct((B, 1, CP), jnp.float32)),
        grid=(B,),
        in_specs=[
            pl.BlockSpec((1, R, F), lambda b: (b, 0, 0)),
            _const((F, D)), _const((1, D)),
            _const((D, D)), _const((1, D)),
            _const((D, CP)), _const((1, CP)),
            _const((D, CP)), _const((1, CP)),
        ],
        out_specs=(pl.BlockSpec((1, R, CP), lambda b: (b, 0, 0)),
                   pl.BlockSpec((1, 1, CP), lambda b: (b, 0, 0))),
        compiler_params=pltpu.CompilerParams(
            dimension_semantics=("parallel",),
            vmem_limit_bytes=vmem),
    )(p,
      params["w1"].astype(jnp.bfloat16), params["b1"],
      params["w2"].astype(jnp.bfloat16), params["b2"],
      wc, bc, wd, bd)
    # slice the lane-dense class slab back to the real class count
    return roi_scores[:, :, :C], img_scores[:, :, :C]


# ------------------------------- model forward ------------------------------

def backbone_forward(images_nchw, params):
    """VGG_Base backbone; ends with 512 channels (model.out_channels = 512).

    TODO(synk): full VGG16 13-conv stack; reduced to 3 synthetic conv stages
                that keep the 512-channel / stride-4 output contract.
    """
    x = jnp.transpose(images_nchw, (0, 2, 3, 1)).astype(jnp.bfloat16)  # NCHW -> NHWC
    B, H, W, _ = x.shape

    # RGB stem: im2col the 3x3x3 window in XLA glue (tiny tensor) so the Pallas
    # kernel sees a single K=27 contraction instead of nine K=3 matmuls.
    xp = jnp.pad(x, ((0, 0), (1, 1), (1, 1), (0, 0)))
    x27 = jnp.concatenate(
        [xp[:, dy:dy + H, dx:dx + W, :] for dy in range(3) for dx in range(3)],
        axis=-1)                                                        # (B, H, W, 27)

    # weights pre-folded to (ksize, ksize*Cin, Cout): per-dy rows, dx folded
    # into the contraction dimension.
    x = conv_relu(x27, params["conv1_w"].reshape(1, 27, -1), params["conv1_b"],
                  ksize=1, pool=True)                                   # (B, H/2, W/2, 64)
    x = conv_relu(x, params["conv2_w"].reshape(3, 3 * 64, -1), params["conv2_b"],
                  ksize=3, pool=True)                                   # (B, H/4, W/4, 128)
    x = conv_relu(x, params["conv3_w"].reshape(3, 3 * 128, -1), params["conv3_b"],
                  ksize=3, pool=False)                                  # (B, H/4, W/4, 512)
    return x


@functools.partial(jax.jit, static_argnames=("pool_size",))
def generalized_rcnn_forward(images, rois, params, pool_size=4, spatial_scale=0.25):
    """Inference path of GeneralizedRCNN.forward with external `rois`:
    proposals = rois, proposal_losses = {}, CAM off, eval mode -> return result.

    TODO(synk): RPNModule / RetinaNetModule proposal generation + NMS and
                BoxList box-decoding post-processing (external-rois branch).
    """
    features = backbone_forward(images, params)
    pooled = roi_pool_nearest(features, rois, pool_size, spatial_scale)
    roi_scores, img_scores = roi_weak_reg_head(pooled, params)
    return {"roi_scores": roi_scores, "img_scores": img_scores}


# -------------------------------- parameters --------------------------------

def init_params(key, num_classes=8, pool_size=4, head_dim=128):
    ks = jax.random.split(key, 8)

    def conv_init(k, cin, cout):
        return jax.random.normal(k, (3, 3, cin, cout), jnp.float32) * (2.0 / (9 * cin)) ** 0.5

    def fc_init(k, din, dout):
        return jax.random.normal(k, (din, dout), jnp.float32) * (1.0 / din) ** 0.5

    F = pool_size * pool_size * 512
    return {
        "conv1_w": conv_init(ks[0], 3, 64),    "conv1_b": jnp.zeros((64,), jnp.float32),
        "conv2_w": conv_init(ks[1], 64, 128),  "conv2_b": jnp.zeros((128,), jnp.float32),
        "conv3_w": conv_init(ks[2], 128, 512), "conv3_b": jnp.zeros((512,), jnp.float32),
        "w1": fc_init(ks[3], F, head_dim),        "b1": jnp.zeros((1, head_dim), jnp.float32),
        "w2": fc_init(ks[4], head_dim, head_dim), "b2": jnp.zeros((1, head_dim), jnp.float32),
        "wc": fc_init(ks[5], head_dim, num_classes), "bc": jnp.zeros((1, num_classes), jnp.float32),
        "wd": fc_init(ks[6], head_dim, num_classes), "bd": jnp.zeros((1, num_classes), jnp.float32),
    }


# ----------------------------------- main ------------------------------------

if __name__ == "__main__":
    key = jax.random.PRNGKey(0)
    k_img, k_roi1, k_roi2, k_par = jax.random.split(key, 4)

    B, R, NUM_CLASSES = 2, 4, 8
    IMG = 32
    images = jax.random.normal(k_img, (B, 3, IMG, IMG), jnp.float32)   # PyTorch NCHW input
    # rois in IMAGE coordinates (y0, x0, y1, x1); backbone stride 4 -> spatial_scale 0.25
    yx0 = jax.random.uniform(k_roi1, (B, R, 2), minval=0.0, maxval=IMG / 2)
    hw = jax.random.uniform(k_roi2, (B, R, 2), minval=8.0, maxval=IMG / 2)
    rois = jnp.concatenate([yx0, jnp.minimum(yx0 + hw, float(IMG))], axis=-1)

    params = init_params(k_par, num_classes=NUM_CLASSES)

    result = generalized_rcnn_forward(images, rois, params)
    jax.block_until_ready(result)

    assert result["roi_scores"].shape == (B, R, NUM_CLASSES)
    assert result["img_scores"].shape == (B, 1, NUM_CLASSES)
    assert bool(jnp.all(jnp.isfinite(result["roi_scores"])))
    assert bool(jnp.all(jnp.isfinite(result["img_scores"])))
    assert bool(jnp.all(result["roi_scores"] >= 0.0))
    print("KERNEL_OK")
</pallas_src>

<mosaic_0001>
module attributes {stable_mosaic.version = 11 : i64} {
  func.func @_conv_relu_kernel(%arg0: i32, %arg1: i32, %arg2: i32, %arg3: memref<1x32x32x27xbf16, #tpu.memory_space<vmem>>, %arg4: memref<1x27x64xbf16, #tpu.memory_space<vmem>>, %arg5: memref<1x64xf32, #tpu.memory_space<vmem>>, %arg6: memref<1x4x16x64xbf16, #tpu.memory_space<vmem>>) attributes {dimension_semantics = [#tpu.dimension_semantics<parallel>, #tpu.dimension_semantics<parallel>, #tpu.dimension_semantics<parallel>], iteration_bounds = array<i64: 2, 1, 4>, scalar_prefetch = 0 : i64, scratch_operands = 0 : i64, tpu.core_type = #tpu.core_type<tc>, window_params = [{transform_indices = @transform_0, window_bounds = array<i64: 1, 32, 32, 27>}, {transform_indices = @transform_1, window_bounds = array<i64: 1, 27, 64>}, {transform_indices = @transform_2, window_bounds = array<i64: 1, 64>}, {transform_indices = @transform_3, window_bounds = array<i64: 1, 4, 16, 64>}]} {
    %c8_i32 = arith.constant 8 : i32
    %0 = arith.muli %arg2, %c8_i32 : i32
    %1 = tpu.assume_multiple %0, 8 : i32
    %c0 = arith.constant 0 : index
    %2 = arith.index_cast %1 : i32 to index
    %c0_0 = arith.constant 0 : index
    %c0_1 = arith.constant 0 : index
    %3 = vector.load %arg3[%c0, %2, %c0_0, %c0_1] : memref<1x32x32x27xbf16, #tpu.memory_space<vmem>>, vector<1x8x32x27xbf16>
    %4 = vector.shape_cast %3 : vector<1x8x32x27xbf16> to vector<8x32x27xbf16>
    %5 = vector.shape_cast %4 : vector<8x32x27xbf16> to vector<256x27xbf16>
    %c0_2 = arith.constant 0 : index
    %c0_3 = arith.constant 0 : index
    %c0_4 = arith.constant 0 : index
    %6 = vector.load %arg4[%c0_2, %c0_3, %c0_4] : memref<1x27x64xbf16, #tpu.memory_space<vmem>>, vector<1x27x64xbf16>
    %7 = vector.shape_cast %6 : vector<1x27x64xbf16> to vector<27x64xbf16>
    %cst = arith.constant dense<0.000000e+00> : vector<256x64xf32>
    %8 = tpu.matmul %5, %7, %cst {dimension_numbers = #tpu.dot_dimension_numbers<[1], [0], [0], [1], [0, 0, 1, 1], [], []>} : vector<256x27xbf16>, vector<27x64xbf16>, vector<256x64xf32> -> vector<256x64xf32>
    %c0_5 = arith.constant 0 : index
    %c0_6 = arith.constant 0 : index
    %9 = vector.load %arg5[%c0_5, %c0_6] : memref<1x64xf32, #tpu.memory_space<vmem>>, vector<1x64xf32>
    %10 = vector.broadcast %9 : vector<1x64xf32> to vector<256x64xf32>
    %11 = arith.addf %8, %10 : vector<256x64xf32>
    %cst_7 = arith.constant 0.000000e+00 : f32
    %12 = vector.broadcast %cst_7 : f32 to vector<256x64xf32>
    %13 = arith.maximumf %11, %12 : vector<256x64xf32>
    %14 = vector.shape_cast %13 : vector<256x64xf32> to vector<4x2x32x64xf32>
    %15 = vector.extract_strided_slice %14 {offsets = [0, 0, 0, 0], sizes = [4, 1, 32, 64], strides = [1, 1, 1, 1]} : vector<4x2x32x64xf32> to vector<4x1x32x64xf32>
    %16 = vector.shape_cast %15 : vector<4x1x32x64xf32> to vector<4x32x64xf32>
    %17 = vector.extract_strided_slice %14 {offsets = [0, 1, 0, 0], sizes = [4, 1, 32, 64], strides = [1, 1, 1, 1]} : vector<4x2x32x64xf32> to vector<4x1x32x64xf32>
    %18 = vector.shape_cast %17 : vector<4x1x32x64xf32> to vector<4x32x64xf32>
    %19 = arith.maximumf %16, %18 : vector<4x32x64xf32>
    %20 = vector.shape_cast %19 : vector<4x32x64xf32> to vector<4x16x2x64xf32>
    %21 = vector.extract_strided_slice %20 {offsets = [0, 0, 0, 0], sizes = [4, 16, 1, 64], strides = [1, 1, 1, 1]} : vector<4x16x2x64xf32> to vector<4x16x1x64xf32>
    %22 = vector.shape_cast %21 : vector<4x16x1x64xf32> to vector<4x16x64xf32>
    %23 = vector.extract_strided_slice %20 {offsets = [0, 0, 1, 0], sizes = [4, 16, 1, 64], strides = [1, 1, 1, 1]} : vector<4x16x2x64xf32> to vector<4x16x1x64xf32>
    %24 = vector.shape_cast %23 : vector<4x16x1x64xf32> to vector<4x16x64xf32>
    %25 = arith.maximumf %22, %24 : vector<4x16x64xf32>
    %26 = arith.truncf %25 : vector<4x16x64xf32> to vector<4x16x64xbf16>
    %c0_8 = arith.constant 0 : index
    %c0_9 = arith.constant 0 : index
    %c0_10 = arith.constant 0 : index
    %c0_11 = arith.constant 0 : index
    %27 = vector.load %arg6[%c0_8, %c0_9, %c0_10, %c0_11] : memref<1x4x16x64xbf16, #tpu.memory_space<vmem>>, vector<1x4x16x64xbf16>
    %28 = vector.shape_cast %27 : vector<1x4x16x64xbf16> to vector<4x16x64xbf16>
    %29 = vector.shape_cast %26 : vector<4x16x64xbf16> to vector<1x4x16x64xbf16>
    tpu.vector_store %arg6[%c0_8, %c0_9, %c0_10, %c0_11], %29 {strides = array<i32>} : memref<1x4x16x64xbf16, #tpu.memory_space<vmem>>, vector<1x4x16x64xbf16>,
    return
  }
  func.func @transform_0(%arg0: i32, %arg1: i32, %arg2: i32) -> (i32, i32, i32, i32) {
    %c0_i32 = arith.constant 0 : i32
    %c0_i32_0 = arith.constant 0 : i32
    %c0_i32_1 = arith.constant 0 : i32
    %c0_i32_2 = arith.constant 0 : i32
    return %arg0, %c0_i32, %c0_i32_0, %c0_i32_1 : i32, i32, i32, i32
  }
  func.func @transform_1(%arg0: i32, %arg1: i32, %arg2: i32) -> (i32, i32, i32) {
    %c0_i32 = arith.constant 0 : i32
    %c0_i32_0 = arith.constant 0 : i32
    %c0_i32_1 = arith.constant 0 : i32
    return %c0_i32, %c0_i32_0, %arg1 : i32, i32, i32
  }
  func.func @transform_2(%arg0: i32, %arg1: i32, %arg2: i32) -> (i32, i32) {
    %c0_i32 = arith.constant 0 : i32
    %c0_i32_0 = arith.constant 0 : i32
    return %c0_i32, %arg1 : i32, i32
  }
  func.func @transform_3(%arg0: i32, %arg1: i32, %arg2: i32) -> (i32, i32, i32, i32) {
    %c0_i32 = arith.constant 0 : i32
    %c0_i32_0 = arith.constant 0 : i32
    return %arg0, %arg2, %c0_i32, %arg1 : i32, i32, i32, i32
  }
}

module attributes {stable_mosaic.version = 11 : i64} {
  func.func @_conv_relu_kernel(%arg0: i32, %arg1: i32, %arg2: i32, %arg3: memref<1x18x18x64xbf16, #tpu.memory_space<vmem>>, %arg4: memref<3x192x128xbf16, #tpu.memory_space<vmem>>, %arg5: memref<1x128xf32, #tpu.memory_space<vmem>>, %arg6: memref<1x4x8x128xbf16, #tpu.memory_space<vmem>>) attributes {dimension_semantics = [#tpu.dimension_semantics<parallel>, #tpu.dimension_semantics<parallel>, #tpu.dimension_semantics<parallel>], iteration_bounds = array<i64: 2, 1, 2>, scalar_prefetch = 0 : i64, scratch_operands = 0 : i64, tpu.core_type = #tpu.core_type<tc>, window_params = [{transform_indices = @transform_0, window_bounds = array<i64: 1, 18, 18, 64>}, {transform_indices = @transform_1, window_bounds = array<i64: 3, 192, 128>}, {transform_indices = @transform_2, window_bounds = array<i64: 1, 128>}, {transform_indices = @transform_3, window_bounds = array<i64: 1, 4, 8, 128>}]} {
    %c8_i32 = arith.constant 8 : i32
    %0 = arith.muli %arg2, %c8_i32 : i32
    %1 = tpu.assume_multiple %0, 8 : i32
    %c0 = arith.constant 0 : index
    %2 = arith.index_cast %1 : i32 to index
    %c0_0 = arith.constant 0 : index
    %c0_1 = arith.constant 0 : index
    %3 = vector.load %arg3[%c0, %2, %c0_0, %c0_1] : memref<1x18x18x64xbf16, #tpu.memory_space<vmem>>, vector<1x10x18x64xbf16>
    %4 = vector.shape_cast %3 : vector<1x10x18x64xbf16> to vector<10x18x64xbf16>
    %5 = vector.extract_strided_slice %4 {offsets = [0, 0, 0], sizes = [10, 16, 64], strides = [1, 1, 1]} : vector<10x18x64xbf16> to vector<10x16x64xbf16>
    %6 = vector.extract_strided_slice %4 {offsets = [0, 1, 0], sizes = [10, 16, 64], strides = [1, 1, 1]} : vector<10x18x64xbf16> to vector<10x16x64xbf16>
    %7 = vector.extract_strided_slice %4 {offsets = [0, 2, 0], sizes = [10, 16, 64], strides = [1, 1, 1]} : vector<10x18x64xbf16> to vector<10x16x64xbf16>
    %8 = tpu.concatenate %5, %6, %7 in 2 : vector<10x16x64xbf16>, vector<10x16x64xbf16>, vector<10x16x64xbf16> -> vector<10x16x192xbf16>
    %cst = arith.constant 0.000000e+00 : f32
    %9 = vector.broadcast %cst : f32 to vector<128x128xf32>
    %10 = vector.extract_strided_slice %8 {offsets = [0, 0, 0], sizes = [8, 16, 192], strides = [1, 1, 1]} : vector<10x16x192xbf16> to vector<8x16x192xbf16>
    %11 = vector.shape_cast %10 : vector<8x16x192xbf16> to vector<128x192xbf16>
    %c0_2 = arith.constant 0 : index
    %c0_3 = arith.constant 0 : index
    %c0_4 = arith.constant 0 : index
    %12 = vector.load %arg4[%c0_2, %c0_3, %c0_4] : memref<3x192x128xbf16, #tpu.memory_space<vmem>>, vector<1x192x128xbf16>
    %13 = vector.shape_cast %12 : vector<1x192x128xbf16> to vector<192x128xbf16>
    %cst_5 = arith.constant dense<0.000000e+00> : vector<128x128xf32>
    %14 = tpu.matmul %11, %13, %cst_5 {dimension_numbers = #tpu.dot_dimension_numbers<[1], [0], [0], [1], [0, 0, 1, 1], [], []>} : vector<128x192xbf16>, vector<192x128xbf16>, vector<128x128xf32> -> vector<128x128xf32>
    %15 = arith.addf %9, %14 : vector<128x128xf32>
    %16 = vector.extract_strided_slice %8 {offsets = [1, 0, 0], sizes = [8, 16, 192], strides = [1, 1, 1]} : vector<10x16x192xbf16> to vector<8x16x192xbf16>
    %17 = vector.shape_cast %16 : vector<8x16x192xbf16> to vector<128x192xbf16>
    %c1 = arith.constant 1 : index
    %c0_6 = arith.constant 0 : index
    %c0_7 = arith.constant 0 : index
    %18 = vector.load %arg4[%c1, %c0_6, %c0_7] : memref<3x192x128xbf16, #tpu.memory_space<vmem>>, vector<1x192x128xbf16>
    %19 = vector.shape_cast %18 : vector<1x192x128xbf16> to vector<192x128xbf16>
    %cst_8 = arith.constant dense<0.000000e+00> : vector<128x128xf32>
    %20 = tpu.matmul %17, %19, %cst_8 {dimension_numbers = #tpu.dot_dimension_numbers<[1], [0], [0], [1], [0, 0, 1, 1], [], []>} : vector<128x192xbf16>, vector<192x128xbf16>, vector<128x128xf32> -> vector<128x128xf32>
    %21 = arith.addf %15, %20 : vector<128x128xf32>
    %22 = vector.extract_strided_slice %8 {offsets = [2, 0, 0], sizes = [8, 16, 192], strides = [1, 1, 1]} : vector<10x16x192xbf16> to vector<8x16x192xbf16>
    %23 = vector.shape_cast %22 : vector<8x16x192xbf16> to vector<128x192xbf16>
    %c2 = arith.constant 2 : index
    %c0_9 = arith.constant 0 : index
    %c0_10 = arith.constant 0 : index
    %24 = vector.load %arg4[%c2, %c0_9, %c0_10] : memref<3x192x128xbf16, #tpu.memory_space<vmem>>, vector<1x192x128xbf16>
    %25 = vector.shape_cast %24 : vector<1x192x128xbf16> to vector<192x128xbf16>
    %cst_11 = arith.constant dense<0.000000e+00> : vector<128x128xf32>
    %26 = tpu.matmul %23, %25, %cst_11 {dimension_numbers = #tpu.dot_dimension_numbers<[1], [0], [0], [1], [0, 0, 1, 1], [], []>} : vector<128x192xbf16>, vector<192x128xbf16>, vector<128x128xf32> -> vector<128x128xf32>
    %27 = arith.addf %21, %26 : vector<128x128xf32>
    %c0_12 = arith.constant 0 : index
    %c0_13 = arith.constant 0 : index
    %28 = vector.load %arg5[%c0_12, %c0_13] : memref<1x128xf32, #tpu.memory_space<vmem>>, vector<1x128xf32>
    %29 = vector.broadcast %28 : vector<1x128xf32> to vector<128x128xf32>
    %30 = arith.addf %27, %29 : vector<128x128xf32>
    %cst_14 = arith.constant 0.000000e+00 : f32
    %31 = vector.broadcast %cst_14 : f32 to vector<128x128xf32>
    %32 = arith.maximumf %30, %31 : vector<128x128xf32>
    %33 = vector.shape_cast %32 : vector<128x128xf32> to vector<4x2x16x128xf32>
    %34 = vector.extract_strided_slice %33 {offsets = [0, 0, 0, 0], sizes = [4, 1, 16, 128], strides = [1, 1, 1, 1]} : vector<4x2x16x128xf32> to vector<4x1x16x128xf32>
    %35 = vector.shape_cast %34 : vector<4x1x16x128xf32> to vector<4x16x128xf32>
    %36 = vector.extract_strided_slice %33 {offsets = [0, 1, 0, 0], sizes = [4, 1, 16, 128], strides = [1, 1, 1, 1]} : vector<4x2x16x128xf32> to vector<4x1x16x128xf32>
    %37 = vector.shape_cast %36 : vector<4x1x16x128xf32> to vector<4x16x128xf32>
    %38 = arith.maximumf %35, %37 : vector<4x16x128xf32>
    %39 = vector.shape_cast %38 : vector<4x16x128xf32> to vector<4x8x2x128xf32>
    %40 = vector.extract_strided_slice %39 {offsets = [0, 0, 0, 0], sizes = [4, 8, 1, 128], strides = [1, 1, 1, 1]} : vector<4x8x2x128xf32> to vector<4x8x1x128xf32>
    %41 = vector.shape_cast %40 : vector<4x8x1x128xf32> to vector<4x8x128xf32>
    %42 = vector.extract_strided_slice %39 {offsets = [0, 0, 1, 0], sizes = [4, 8, 1, 128], strides = [1, 1, 1, 1]} : vector<4x8x2x128xf32> to vector<4x8x1x128xf32>
    %43 = vector.shape_cast %42 : vector<4x8x1x128xf32> to vector<4x8x128xf32>
    %44 = arith.maximumf %41, %43 : vector<4x8x128xf32>
    %45 = arith.truncf %44 : vector<4x8x128xf32> to vector<4x8x128xbf16>
    %c0_15 = arith.constant 0 : index
    %c0_16 = arith.constant 0 : index
    %c0_17 = arith.constant 0 : index
    %c0_18 = arith.constant 0 : index
    %46 = vector.load %arg6[%c0_15, %c0_16, %c0_17, %c0_18] : memref<1x4x8x128xbf16, #tpu.memory_space<vmem>>, vector<1x4x8x128xbf16>
    %47 = vector.shape_cast %46 : vector<1x4x8x128xbf16> to vector<4x8x128xbf16>
    %48 = vector.shape_cast %45 : vector<4x8x128xbf16> to vector<1x4x8x128xbf16>
    tpu.vector_store %arg6[%c0_15, %c0_16, %c0_17, %c0_18], %48 {strides = array<i32>} : memref<1x4x8x128xbf16, #tpu.memory_space<vmem>>, vector<1x4x8x128xbf16>,
    return
  }
  func.func @transform_0(%arg0: i32, %arg1: i32, %arg2: i32) -> (i32, i32, i32, i32) {
    %c0_i32 = arith.constant 0 : i32
    %c0_i32_0 = arith.constant 0 : i32
    %c0_i32_1 = arith.constant 0 : i32
    %c0_i32_2 = arith.constant 0 : i32
    return %arg0, %c0_i32, %c0_i32_0, %c0_i32_1 : i32, i32, i32, i32
  }
  func.func @transform_1(%arg0: i32, %arg1: i32, %arg2: i32) -> (i32, i32, i32) {
    %c0_i32 = arith.constant 0 : i32
    %c0_i32_0 = arith.constant 0 : i32
    %c0_i32_1 = arith.constant 0 : i32
    return %c0_i32, %c0_i32_0, %arg1 : i32, i32, i32
  }
  func.func @transform_2(%arg0: i32, %arg1: i32, %arg2: i32) -> (i32, i32) {
    %c0_i32 = arith.constant 0 : i32
    %c0_i32_0 = arith.constant 0 : i32
    return %c0_i32, %arg1 : i32, i32
  }
  func.func @transform_3(%arg0: i32, %arg1: i32, %arg2: i32) -> (i32, i32, i32, i32) {
    %c0_i32 = arith.constant 0 : i32
    %c0_i32_0 = arith.constant 0 : i32
    return %arg0, %arg2, %c0_i32, %arg1 : i32, i32, i32, i32
  }
}

module attributes {stable_mosaic.version = 11 : i64} {
  func.func @_conv_relu_kernel(%arg0: i32, %arg1: i32, %arg2: i32, %arg3: memref<1x10x10x128xbf16, #tpu.memory_space<vmem>>, %arg4: memref<3x384x128xbf16, #tpu.memory_space<vmem>>, %arg5: memref<1x128xf32, #tpu.memory_space<vmem>>, %arg6: memref<1x8x8x128xbf16, #tpu.memory_space<vmem>>) attributes {dimension_semantics = [#tpu.dimension_semantics<parallel>, #tpu.dimension_semantics<parallel>, #tpu.dimension_semantics<parallel>], iteration_bounds = array<i64: 2, 4, 1>, scalar_prefetch = 0 : i64, scratch_operands = 0 : i64, tpu.core_type = #tpu.core_type<tc>, window_params = [{transform_indices = @transform_0, window_bounds = array<i64: 1, 10, 10, 128>}, {transform_indices = @transform_1, window_bounds = array<i64: 3, 384, 128>}, {transform_indices = @transform_2, window_bounds = array<i64: 1, 128>}, {transform_indices = @transform_3, window_bounds = array<i64: 1, 8, 8, 128>}]} {
    %c8_i32 = arith.constant 8 : i32
    %0 = arith.muli %arg2, %c8_i32 : i32
    %1 = tpu.assume_multiple %0, 8 : i32
    %c0 = arith.constant 0 : index
    %2 = arith.index_cast %1 : i32 to index
    %c0_0 = arith.constant 0 : index
    %c0_1 = arith.constant 0 : index
    %3 = vector.load %arg3[%c0, %2, %c0_0, %c0_1] : memref<1x10x10x128xbf16, #tpu.memory_space<vmem>>, vector<1x10x10x128xbf16>
    %4 = vector.shape_cast %3 : vector<1x10x10x128xbf16> to vector<10x10x128xbf16>
    %5 = vector.extract_strided_slice %4 {offsets = [0, 0, 0], sizes = [10, 8, 128], strides = [1, 1, 1]} : vector<10x10x128xbf16> to vector<10x8x128xbf16>
    %6 = vector.extract_strided_slice %4 {offsets = [0, 1, 0], sizes = [10, 8, 128], strides = [1, 1, 1]} : vector<10x10x128xbf16> to vector<10x8x128xbf16>
    %7 = vector.extract_strided_slice %4 {offsets = [0, 2, 0], sizes = [10, 8, 128], strides = [1, 1, 1]} : vector<10x10x128xbf16> to vector<10x8x128xbf16>
    %8 = tpu.concatenate %5, %6, %7 in 2 : vector<10x8x128xbf16>, vector<10x8x128xbf16>, vector<10x8x128xbf16> -> vector<10x8x384xbf16>
    %cst = arith.constant 0.000000e+00 : f32
    %9 = vector.broadcast %cst : f32 to vector<64x128xf32>
    %10 = vector.extract_strided_slice %8 {offsets = [0, 0, 0], sizes = [8, 8, 384], strides = [1, 1, 1]} : vector<10x8x384xbf16> to vector<8x8x384xbf16>
    %11 = vector.shape_cast %10 : vector<8x8x384xbf16> to vector<64x384xbf16>
    %c0_2 = arith.constant 0 : index
    %c0_3 = arith.constant 0 : index
    %c0_4 = arith.constant 0 : index
    %12 = vector.load %arg4[%c0_2, %c0_3, %c0_4] : memref<3x384x128xbf16, #tpu.memory_space<vmem>>, vector<1x384x128xbf16>
    %13 = vector.shape_cast %12 : vector<1x384x128xbf16> to vector<384x128xbf16>
    %cst_5 = arith.constant dense<0.000000e+00> : vector<64x128xf32>
    %14 = tpu.matmul %11, %13, %cst_5 {dimension_numbers = #tpu.dot_dimension_numbers<[1], [0], [0], [1], [0, 0, 1, 1], [], []>} : vector<64x384xbf16>, vector<384x128xbf16>, vector<64x128xf32> -> vector<64x128xf32>
    %15 = arith.addf %9, %14 : vector<64x128xf32>
    %16 = vector.extract_strided_slice %8 {offsets = [1, 0, 0], sizes = [8, 8, 384], strides = [1, 1, 1]} : vector<10x8x384xbf16> to vector<8x8x384xbf16>
    %17 = vector.shape_cast %16 : vector<8x8x384xbf16> to vector<64x384xbf16>
    %c1 = arith.constant 1 : index
    %c0_6 = arith.constant 0 : index
    %c0_7 = arith.constant 0 : index
    %18 = vector.load %arg4[%c1, %c0_6, %c0_7] : memref<3x384x128xbf16, #tpu.memory_space<vmem>>, vector<1x384x128xbf16>
    %19 = vector.shape_cast %18 : vector<1x384x128xbf16> to vector<384x128xbf16>
    %cst_8 = arith.constant dense<0.000000e+00> : vector<64x128xf32>
    %20 = tpu.matmul %17, %19, %cst_8 {dimension_numbers = #tpu.dot_dimension_numbers<[1], [0], [0], [1], [0, 0, 1, 1], [], []>} : vector<64x384xbf16>, vector<384x128xbf16>, vector<64x128xf32> -> vector<64x128xf32>
    %21 = arith.addf %15, %20 : vector<64x128xf32>
    %22 = vector.extract_strided_slice %8 {offsets = [2, 0, 0], sizes = [8, 8, 384], strides = [1, 1, 1]} : vector<10x8x384xbf16> to vector<8x8x384xbf16>
    %23 = vector.shape_cast %22 : vector<8x8x384xbf16> to vector<64x384xbf16>
    %c2 = arith.constant 2 : index
    %c0_9 = arith.constant 0 : index
    %c0_10 = arith.constant 0 : index
    %24 = vector.load %arg4[%c2, %c0_9, %c0_10] : memref<3x384x128xbf16, #tpu.memory_space<vmem>>, vector<1x384x128xbf16>
    %25 = vector.shape_cast %24 : vector<1x384x128xbf16> to vector<384x128xbf16>
    %cst_11 = arith.constant dense<0.000000e+00> : vector<64x128xf32>
    %26 = tpu.matmul %23, %25, %cst_11 {dimension_numbers = #tpu.dot_dimension_numbers<[1], [0], [0], [1], [0, 0, 1, 1], [], []>} : vector<64x384xbf16>, vector<384x128xbf16>, vector<64x128xf32> -> vector<64x128xf32>
    %27 = arith.addf %21, %26 : vector<64x128xf32>
    %c0_12 = arith.constant 0 : index
    %c0_13 = arith.constant 0 : index
    %28 = vector.load %arg5[%c0_12, %c0_13] : memref<1x128xf32, #tpu.memory_space<vmem>>, vector<1x128xf32>
    %29 = vector.broadcast %28 : vector<1x128xf32> to vector<64x128xf32>
    %30 = arith.addf %27, %29 : vector<64x128xf32>
    %cst_14 = arith.constant 0.000000e+00 : f32
    %31 = vector.broadcast %cst_14 : f32 to vector<64x128xf32>
    %32 = arith.maximumf %30, %31 : vector<64x128xf32>
    %33 = vector.shape_cast %32 : vector<64x128xf32> to vector<8x8x128xf32>
    %34 = arith.truncf %33 : vector<8x8x128xf32> to vector<8x8x128xbf16>
    %c0_15 = arith.constant 0 : index
    %c0_16 = arith.constant 0 : index
    %c0_17 = arith.constant 0 : index
    %c0_18 = arith.constant 0 : index
    %35 = vector.load %arg6[%c0_15, %c0_16, %c0_17, %c0_18] : memref<1x8x8x128xbf16, #tpu.memory_space<vmem>>, vector<1x8x8x128xbf16>
    %36 = vector.shape_cast %35 : vector<1x8x8x128xbf16> to vector<8x8x128xbf16>
    %37 = vector.shape_cast %34 : vector<8x8x128xbf16> to vector<1x8x8x128xbf16>
    tpu.vector_store %arg6[%c0_15, %c0_16, %c0_17, %c0_18], %37 {strides = array<i32>} : memref<1x8x8x128xbf16, #tpu.memory_space<vmem>>, vector<1x8x8x128xbf16>,
    return
  }
  func.func @transform_0(%arg0: i32, %arg1: i32, %arg2: i32) -> (i32, i32, i32, i32) {
    %c0_i32 = arith.constant 0 : i32
    %c0_i32_0 = arith.constant 0 : i32
    %c0_i32_1 = arith.constant 0 : i32
    %c0_i32_2 = arith.constant 0 : i32
    return %arg0, %c0_i32, %c0_i32_0, %c0_i32_1 : i32, i32, i32, i32
  }
  func.func @transform_1(%arg0: i32, %arg1: i32, %arg2: i32) -> (i32, i32, i32) {
    %c0_i32 = arith.constant 0 : i32
    %c0_i32_0 = arith.constant 0 : i32
    %c0_i32_1 = arith.constant 0 : i32
    return %c0_i32, %c0_i32_0, %arg1 : i32, i32, i32
  }
  func.func @transform_2(%arg0: i32, %arg1: i32, %arg2: i32) -> (i32, i32) {
    %c0_i32 = arith.constant 0 : i32
    %c0_i32_0 = arith.constant 0 : i32
    return %c0_i32, %arg1 : i32, i32
  }
  func.func @transform_3(%arg0: i32, %arg1: i32, %arg2: i32) -> (i32, i32, i32, i32) {
    %c0_i32 = arith.constant 0 : i32
    %c0_i32_0 = arith.constant 0 : i32
    return %arg0, %arg2, %c0_i32, %arg1 : i32, i32, i32, i32
  }
}

module attributes {stable_mosaic.version = 11 : i64} {
  func.func @_roi_head_kernel(%arg0: i32, %arg1: memref<1x4x8192xbf16, #tpu.memory_space<vmem>>, %arg2: memref<8192x128xbf16, #tpu.memory_space<vmem>>, %arg3: memref<1x128xf32, #tpu.memory_space<vmem>>, %arg4: memref<128x128xbf16, #tpu.memory_space<vmem>>, %arg5: memref<1x128xf32, #tpu.memory_space<vmem>>, %arg6: memref<128x128xbf16, #tpu.memory_space<vmem>>, %arg7: memref<1x128xf32, #tpu.memory_space<vmem>>, %arg8: memref<128x128xbf16, #tpu.memory_space<vmem>>, %arg9: memref<1x128xf32, #tpu.memory_space<vmem>>, %arg10: memref<1x4x128xf32, #tpu.memory_space<vmem>>, %arg11: memref<1x1x128xf32, #tpu.memory_space<vmem>>) attributes {dimension_semantics = [#tpu.dimension_semantics<parallel>], iteration_bounds = array<i64: 2>, scalar_prefetch = 0 : i64, scratch_operands = 0 : i64, tpu.core_type = #tpu.core_type<tc>, window_params = [{transform_indices = @transform_0, window_bounds = array<i64: 1, 4, 8192>}, {pipeline_mode = #tpu.pipeline_mode<synchronous>, transform_indices = @transform_1, window_bounds = array<i64: 8192, 128>}, {pipeline_mode = #tpu.pipeline_mode<synchronous>, transform_indices = @transform_2, window_bounds = array<i64: 1, 128>}, {pipeline_mode = #tpu.pipeline_mode<synchronous>, transform_indices = @transform_3, window_bounds = array<i64: 128, 128>}, {pipeline_mode = #tpu.pipeline_mode<synchronous>, transform_indices = @transform_4, window_bounds = array<i64: 1, 128>}, {pipeline_mode = #tpu.pipeline_mode<synchronous>, transform_indices = @transform_5, window_bounds = array<i64: 128, 128>}, {pipeline_mode = #tpu.pipeline_mode<synchronous>, transform_indices = @transform_6, window_bounds = array<i64: 1, 128>}, {pipeline_mode = #tpu.pipeline_mode<synchronous>, transform_indices = @transform_7, window_bounds = array<i64: 128, 128>}, {pipeline_mode = #tpu.pipeline_mode<synchronous>, transform_indices = @transform_8, window_bounds = array<i64: 1, 128>}, {transform_indices = @transform_9, window_bounds = array<i64: 1, 4, 128>}, {transform_indices = @transform_10, window_bounds = array<i64: 1, 1, 128>}]} {
    %c0 = arith.constant 0 : index
    %c0_0 = arith.constant 0 : index
    %c0_1 = arith.constant 0 : index
    %0 = vector.load %arg1[%c0, %c0_0, %c0_1] : memref<1x4x8192xbf16, #tpu.memory_space<vmem>>, vector<1x4x8192xbf16>
    %1 = vector.shape_cast %0 : vector<1x4x8192xbf16> to vector<4x8192xbf16>
    %c0_2 = arith.constant 0 : index
    %c0_3 = arith.constant 0 : index
    %2 = vector.load %arg2[%c0_2, %c0_3] : memref<8192x128xbf16, #tpu.memory_space<vmem>>, vector<8192x128xbf16>
    %cst = arith.constant dense<0.000000e+00> : vector<4x128xf32>
    %3 = tpu.matmul %1, %2, %cst {dimension_numbers = #tpu.dot_dimension_numbers<[1], [0], [0], [1], [0, 0, 1, 1], [], []>} : vector<4x8192xbf16>, vector<8192x128xbf16>, vector<4x128xf32> -> vector<4x128xf32>
    %c0_4 = arith.constant 0 : index
    %c0_5 = arith.constant 0 : index
    %4 = vector.load %arg3[%c0_4, %c0_5] : memref<1x128xf32, #tpu.memory_space<vmem>>, vector<1x128xf32>
    %5 = vector.broadcast %4 : vector<1x128xf32> to vector<4x128xf32>
    %6 = arith.addf %3, %5 : vector<4x128xf32>
    %cst_6 = arith.constant 0.000000e+00 : f32
    %7 = vector.broadcast %cst_6 : f32 to vector<4x128xf32>
    %8 = arith.maximumf %6, %7 : vector<4x128xf32>
    %9 = arith.truncf %8 : vector<4x128xf32> to vector<4x128xbf16>
    %c0_7 = arith.constant 0 : index
    %c0_8 = arith.constant 0 : index
    %10 = vector.load %arg4[%c0_7, %c0_8] : memref<128x128xbf16, #tpu.memory_space<vmem>>, vector<128x128xbf16>
    %cst_9 = arith.constant dense<0.000000e+00> : vector<4x128xf32>
    %11 = tpu.matmul %9, %10, %cst_9 {dimension_numbers = #tpu.dot_dimension_numbers<[1], [0], [0], [1], [0, 0, 1, 1], [], []>} : vector<4x128xbf16>, vector<128x128xbf16>, vector<4x128xf32> -> vector<4x128xf32>
    %c0_10 = arith.constant 0 : index
    %c0_11 = arith.constant 0 : index
    %12 = vector.load %arg5[%c0_10, %c0_11] : memref<1x128xf32, #tpu.memory_space<vmem>>, vector<1x128xf32>
    %13 = vector.broadcast %12 : vector<1x128xf32> to vector<4x128xf32>
    %14 = arith.addf %11, %13 : vector<4x128xf32>
    %cst_12 = arith.constant 0.000000e+00 : f32
    %15 = vector.broadcast %cst_12 : f32 to vector<4x128xf32>
    %16 = arith.maximumf %14, %15 : vector<4x128xf32>
    %17 = arith.truncf %16 : vector<4x128xf32> to vector<4x128xbf16>
    %c0_13 = arith.constant 0 : index
    %c0_14 = arith.constant 0 : index
    %18 = vector.load %arg6[%c0_13, %c0_14] : memref<128x128xbf16, #tpu.memory_space<vmem>>, vector<128x128xbf16>
    %cst_15 = arith.constant dense<0.000000e+00> : vector<4x128xf32>
    %19 = tpu.matmul %17, %18, %cst_15 {dimension_numbers = #tpu.dot_dimension_numbers<[1], [0], [0], [1], [0, 0, 1, 1], [], []>} : vector<4x128xbf16>, vector<128x128xbf16>, vector<4x128xf32> -> vector<4x128xf32>
    %c0_16 = arith.constant 0 : index
    %c0_17 = arith.constant 0 : index
    %20 = vector.load %arg7[%c0_16, %c0_17] : memref<1x128xf32, #tpu.memory_space<vmem>>, vector<1x128xf32>
    %21 = vector.broadcast %20 : vector<1x128xf32> to vector<4x128xf32>
    %22 = arith.addf %19, %21 : vector<4x128xf32>
    %c0_18 = arith.constant 0 : index
    %c0_19 = arith.constant 0 : index
    %23 = vector.load %arg8[%c0_18, %c0_19] : memref<128x128xbf16, #tpu.memory_space<vmem>>, vector<128x128xbf16>
    %cst_20 = arith.constant dense<0.000000e+00> : vector<4x128xf32>
    %24 = tpu.matmul %17, %23, %cst_20 {dimension_numbers = #tpu.dot_dimension_numbers<[1], [0], [0], [1], [0, 0, 1, 1], [], []>} : vector<4x128xbf16>, vector<128x128xbf16>, vector<4x128xf32> -> vector<4x128xf32>
    %c0_21 = arith.constant 0 : index
    %c0_22 = arith.constant 0 : index
    %25 = vector.load %arg9[%c0_21, %c0_22] : memref<1x128xf32, #tpu.memory_space<vmem>>, vector<1x128xf32>
    %26 = vector.broadcast %25 : vector<1x128xf32> to vector<4x128xf32>
    %27 = arith.addf %24, %26 : vector<4x128xf32>
    %cst_23 = arith.constant dense<0xFF800000> : vector<4xf32>
    %28 = vector.multi_reduction <maximumf>, %22, %cst_23 [1] : vector<4x128xf32> to vector<4xf32>
    %29 = vector.shape_cast %28 : vector<4xf32> to vector<4x1xf32>
    %30 = vector.broadcast %29 : vector<4x1xf32> to vector<4x128xf32>
    %31 = arith.subf %22, %30 : vector<4x128xf32>
    %32 = math.exp %31 : vector<4x128xf32>
    %cst_24 = arith.constant dense<0.000000e+00> : vector<4xf32>
    %33 = vector.multi_reduction <add>, %32, %cst_24 [1] : vector<4x128xf32> to vector<4xf32>
    %34 = vector.shape_cast %33 : vector<4xf32> to vector<4x1xf32>
    %35 = vector.broadcast %34 : vector<4x1xf32> to vector<4x128xf32>
    %36 = arith.divf %32, %35 : vector<4x128xf32>
    %cst_25 = arith.constant dense<0xFF800000> : vector<128xf32>
    %37 = vector.multi_reduction <maximumf>, %27, %cst_25 [0] : vector<4x128xf32> to vector<128xf32>
    %38 = vector.shape_cast %37 : vector<128xf32> to vector<1x128xf32>
    %39 = vector.broadcast %38 : vector<1x128xf32> to vector<4x128xf32>
    %40 = arith.subf %27, %39 : vector<4x128xf32>
    %41 = math.exp %40 : vector<4x128xf32>
    %cst_26 = arith.constant dense<0.000000e+00> : vector<128xf32>
    %42 = vector.multi_reduction <add>, %41, %cst_26 [0] : vector<4x128xf32> to vector<128xf32>
    %43 = vector.shape_cast %42 : vector<128xf32> to vector<1x128xf32>
    %44 = vector.broadcast %43 : vector<1x128xf32> to vector<4x128xf32>
    %45 = arith.divf %41, %44 : vector<4x128xf32>
    %46 = arith.mulf %36, %45 : vector<4x128xf32>
    %c0_27 = arith.constant 0 : index
    %c0_28 = arith.constant 0 : index
    %c0_29 = arith.constant 0 : index
    %47 = vector.load %arg10[%c0_27, %c0_28, %c0_29] : memref<1x4x128xf32, #tpu.memory_space<vmem>>, vector<1x4x128xf32>
    %48 = vector.shape_cast %47 : vector<1x4x128xf32> to vector<4x128xf32>
    %49 = vector.shape_cast %46 : vector<4x128xf32> to vector<1x4x128xf32>
    tpu.vector_store %arg10[%c0_27, %c0_28, %c0_29], %49 {strides = array<i32>} : memref<1x4x128xf32, #tpu.memory_space<vmem>>, vector<1x4x128xf32>,
    %cst_30 = arith.constant dense<0.000000e+00> : vector<128xf32>
    %50 = vector.multi_reduction <add>, %46, %cst_30 [0] : vector<4x128xf32> to vector<128xf32>
    %51 = vector.shape_cast %50 : vector<128xf32> to vector<1x128xf32>
    %c0_31 = arith.constant 0 : index
    %c0_32 = arith.constant 0 : index
    %c0_33 = arith.constant 0 : index
    %52 = vector.load %arg11[%c0_31, %c0_32, %c0_33] : memref<1x1x128xf32, #tpu.memory_space<vmem>>, vector<1x1x128xf32>
    %53 = vector.shape_cast %52 : vector<1x1x128xf32> to vector<1x128xf32>
    %54 = vector.shape_cast %51 : vector<1x128xf32> to vector<1x1x128xf32>
    tpu.vector_store %arg11[%c0_31, %c0_32, %c0_33], %54 {strides = array<i32>} : memref<1x1x128xf32, #tpu.memory_space<vmem>>, vector<1x1x128xf32>,
    return
  }
  func.func @transform_0(%arg0: i32) -> (i32, i32, i32) {
    %c0_i32 = arith.constant 0 : i32
    %c0_i32_0 = arith.constant 0 : i32
    %c0_i32_1 = arith.constant 0 : i32
    return %arg0, %c0_i32, %c0_i32_0 : i32, i32, i32
  }
  func.func @transform_1(%arg0: i32) -> (i32, i32) {
    %c0_i32 = arith.constant 0 : i32
    %c0_i32_0 = arith.constant 0 : i32
    %c0_i32_1 = arith.constant 0 : i32
    return %c0_i32, %c0_i32_0 : i32, i32
  }
  func.func @transform_2(%arg0: i32) -> (i32, i32) {
    %c0_i32 = arith.constant 0 : i32
    %c0_i32_0 = arith.constant 0 : i32
    %c0_i32_1 = arith.constant 0 : i32
    return %c0_i32, %c0_i32_0 : i32, i32
  }
  func.func @transform_3(%arg0: i32) -> (i32, i32) {
    %c0_i32 = arith.constant 0 : i32
    %c0_i32_0 = arith.constant 0 : i32
    %c0_i32_1 = arith.constant 0 : i32
    return %c0_i32, %c0_i32_0 : i32, i32
  }
  func.func @transform_4(%arg0: i32) -> (i32, i32) {
    %c0_i32 = arith.constant 0 : i32
    %c0_i32_0 = arith.constant 0 : i32
    %c0_i32_1 = arith.constant 0 : i32
    return %c0_i32, %c0_i32_0 : i32, i32
  }
  func.func @transform_5(%arg0: i32) -> (i32, i32) {
    %c0_i32 = arith.constant 0 : i32
    %c0_i32_0 = arith.constant 0 : i32
    %c0_i32_1 = arith.constant 0 : i32
    return %c0_i32, %c0_i32_0 : i32, i32
  }
  func.func @transform_6(%arg0: i32) -> (i32, i32) {
    %c0_i32 = arith.constant 0 : i32
    %c0_i32_0 = arith.constant 0 : i32
    %c0_i32_1 = arith.constant 0 : i32
    return %c0_i32, %c0_i32_0 : i32, i32
  }
  func.func @transform_7(%arg0: i32) -> (i32, i32) {
    %c0_i32 = arith.constant 0 : i32
    %c0_i32_0 = arith.constant 0 : i32
    %c0_i32_1 = arith.constant 0 : i32
    return %c0_i32, %c0_i32_0 : i32, i32
  }
  func.func @transform_8(%arg0: i32) -> (i32, i32) {
    %c0_i32 = arith.constant 0 : i32
    %c0_i32_0 = arith.constant 0 : i32
    %c0_i32_1 = arith.constant 0 : i32
    return %c0_i32, %c0_i32_0 : i32, i32
  }
  func.func @transform_9(%arg0: i32) -> (i32, i32, i32) {
    %c0_i32 = arith.constant 0 : i32
    %c0_i32_0 = arith.constant 0 : i32
    %c0_i32_1 = arith.constant 0 : i32
    return %arg0, %c0_i32, %c0_i32_0 : i32, i32, i32
  }
  func.func @transform_10(%arg0: i32) -> (i32, i32, i32) {
    %c0_i32 = arith.constant 0 : i32
    %c0_i32_0 = arith.constant 0 : i32
    %c0_i32_1 = arith.constant 0 : i32
    return %arg0, %c0_i32, %c0_i32_0 : i32, i32, i32
  }
}

</mosaic_0001>

<bundles_post_ra>
// kernel: generalized_rcnn_forward.4
= control target key start
LH: loop header
LB: loop body
LE: loop exit
PB: predicated region body
PF: predicated region fallthrough
CT: control target
= control target key end

     0   :  { %s1707_s12 = smov 0   ;;  %s1709_s13 = smov 0   ;;  %s2086_s0 = inlined_call_operand.vmem [shape: bf16[2,32,32,27], index: 0, kind: input, shape index: {}]   ;;  %s2087_s1 = inlined_call_operand.vmem [shape: bf16[1,27,64], index: 1, kind: input, shape index: {}]   ;;  %s2088_s2 = inlined_call_operand.vmem [shape: f32[1,64], index: 2, kind: input, shape index: {}]   ;;  %s2089_s3 = inlined_call_operand.vmem [shape: bf16[2,16,16,64], index: 3, kind: output, shape index: {}]  }
   0x1   :  { %s1711_s14 = smov 0   ;;  %s1713_s15 = smov 0  }
   0x2   :  { %s1715_s16 = smov 0  }
   0x3 LB: > { %s25_s17 = sadd.s32 1, %s1676_s14  ;;  %s32_s18 = sadd.s32 1, %s1680_s15  ;;  %s1684_s16 = sphi %s1715_s16, %s13_s16   ;;  %s1680_s15 = sphi %s1713_s15, %s2094_s15   ;;  %s1676_s14 = sphi %s1711_s14, %s2093_s14   ;;  %s1672_s13 = sphi %s1709_s13, %s2092_s13   ;;  %s1668_s12 = sphi %s1707_s12, %s2091_s12  }
   0x4   : > { %p26_p0 = scmp.ge.s32.totalorder %s25_s17, 4  ;;  %p1413_p1 = scmp.ge.s32.totalorder %s1684_s16, 1 }
   0x5   : > { %p177_p2 = scmp.lt.s32.totalorder %s1684_s16, 9 }
   0x6   : > { %s2096_s17 = smov (%p26_p0, %s25_s17), 0  ;;  %s2098_s18 = smov (!%p26_p0, %s32_s18), %s1680_s15 }
   0x7   : > { %p178_p3 = pnand %p1413_p1, %p177_p2  ;;  %p34_p4 = scmp.ge.s32.totalorder %s2098_s18, 2 }
   0x8   : > { %p216_p5 = scmp.lt.s32.totalorder (!%p178_p3), %s1672_s13, 1  ;;  %s1579_s23 = sshll.u32 (!%p178_p3), %s1668_s12, 7 }
   0x9   : > { %s2100_s18 = smov (%p34_p4, %s2098_s18), 0  ;;  %181 = sbr.rel (%p178_p3) target bundleno = 317 (0x13d), region = 32 }
   0xa   : > { %s1416_s6 = sshll.u32 (!%p178_p3), %s1668_s12, 2 }
   0xb   : > { %p1879_p6 = scmp.lt.s32.totalorder (!%p178_p3), %s1416_s6, 15 }
   0xe   : > { %v1493_v0 = vld [vmem:[%s2087_s1 + $0x8] sm:$0xf]  ;;  %v1597_v1 = vld [vmem:[%s2087_s1 + $0x8] sm:$0x30]  ;;  %vm427_vm0 = vcmask 1044480   ;;  %vm428_vm1 = vcmask 1045504  }
   0xf   : > { %v1494_v2 = vor.u32 %v1597_v1, %v1493_v0  ;;  %v1686_v3 = vmov 65535   ;;  %s2102_s13 = smov (!%p216_p5, %s1672_s13), 1  ;;  %v1596_v7 = vld [vmem:[%s2087_s1] sm:$0xff]  ;;  %vm378_vm2 = vcmask 220160   ;;  %vm1132_vm3 = vcmask 1041409   ;;  %s2104_s6 = smov (!%p1879_p6, %s1416_s6), 15 }
  0x10   : > { %v429_v4 = vsel %vm427_vm0, 4294967295, %v1686_v3  ;;  %s1577_s24 = sshll.u32 %s2102_s13, 9  ;;  %v1794_v38 = vld [vmem:[%s2088_s2] ss:$0 sm:$0xff]  ;;  %vm1135_vm4 = vcmask 1042434   ;;  %vm1138_vm5 = vcmask 1043459  }
  0x11   : > { %v430_v5 = vsel %vm428_vm1, %v429_v4, 0  ;;  %s220_s29 = scalar_lea.vmem %s2086_s0, %s1577_s24  ;;  %vm1141_vm6 = vcmask 1044484   ;;  %vm1144_vm7 = vcmask 1045509   ;;  %vm1147_vm8 = vcmask 1046534   ;;  %s1417_s8 = sshll.u32 %s2104_s6, 1 }
  0x12   : > { %v432_v6 = vand.u32 %v1494_v2, %v430_v5  ;;  %s1755_s30 = scalar_lea.vmem %s220_s29, %s1579_s23  ;;  %vm1150_vm9 = vcmask 1047559   ;;  %s1418_s9 = sshll.u32 %s2102_s13, 5  ;;  %vm1266_vm10 = vcmask 519168  }
  0x13   : > { %v1580_v8 = vld [vmem:[%s1755_s30] sm:$0xff]  ;;  %v1581_v12 = vld [vmem:[%s1755_s30 + $0x8] sm:$0xff]  ;;  %v1582_v16 = vld [vmem:[%s1755_s30 + $0x10] sm:$0xff]  ;;  %s238_s10 = sadd.s32 %s1418_s9, %s1417_s8 }
  0x14   : > { %440 = vmatpush.bf16.msra.mxu0 %v432_v6  ;;  %1598 = vmatpush.bf16.msra.mxu1 %v432_v6  ;;  %v1584_v9 = vld [vmem:[%s1755_s30 + $0x20] sm:$0xff]  ;;  %v1585_v13 = vld [vmem:[%s1755_s30 + $0x28] sm:$0xff]  ;;  %v1586_v17 = vld [vmem:[%s1755_s30 + $0x30] sm:$0xff]  ;;  %s1419_s11 = sshll.u32 %s238_s10, 2 }
  0x15   : > { %1599 = vmatpush.bf16.msra.mxu2 %v432_v6  ;;  %1600 = vmatpush.bf16.msra.mxu3 %v432_v6  ;;  %v1588_v10 = vld [vmem:[%s1755_s30 + $0x40] sm:$0xff]  ;;  %v1589_v14 = vld [vmem:[%s1755_s30 + $0x48] sm:$0xff]  ;;  %v1590_v18 = vld [vmem:[%s1755_s30 + $0x50] sm:$0xff]  ;;  %s1935_s19 = scalar_lea.vmem %s2089_s3, %s1419_s11 }
  0x16   : > { %v1592_v11 = vld [vmem:[%s1755_s30 + $0x60] sm:$0xff]  ;;  %v1593_v15 = vld [vmem:[%s1755_s30 + $0x68] sm:$0xff]  ;;  %v1594_v19 = vld [vmem:[%s1755_s30 + $0x70] sm:$0xff] }
  0x17   : > { %v1583_v20 = vld [vmem:[%s1755_s30 + $0x18] sm:$0xff] }
  0x18   : > { %441 = vmatpush.bf16.msra.mxu0 %v1596_v7  ;;  %1601 = vmatpush.bf16.msra.mxu1 %v1596_v7  ;;  %v1587_v21 = vld [vmem:[%s1755_s30 + $0x38] sm:$0xff] }
  0x19   : > { %1602 = vmatpush.bf16.msra.mxu2 %v1596_v7  ;;  %1603 = vmatpush.bf16.msra.mxu3 %v1596_v7  ;;  %v1591_v22 = vld [vmem:[%s1755_s30 + $0x58] sm:$0xff] }
  0x1a   : > { %v1595_v23 = vld [vmem:[%s1755_s30 + $0x78] sm:$0xff] }
  0x1b   : > { %1495 = vmatmul.msk.bf16.vlgmr.msra.gmra.mxu0 %vm378_vm2, %v1580_v8  ;;  %1499 = vmatmul.msk.bf16.vlgmr.msra.gmra.mxu1 %vm378_vm2, %v1584_v9 }
  0x1c   : > { %1503 = vmatmul.msk.bf16.vlgmr.msra.gmra.mxu2 %vm378_vm2, %v1588_v10  ;;  %1507 = vmatmul.msk.bf16.vlgmr.msra.gmra.mxu3 %vm378_vm2, %v1592_v11 }
  0x2b   : > { %1496 = vmatmul.msk.bf16.gmra.mxu0 %vm378_vm2, %v1581_v12  ;;  %1500 = vmatmul.msk.bf16.gmra.mxu1 %vm378_vm2, %v1585_v13 }
  0x2c   : > { %1504 = vmatmul.msk.bf16.gmra.mxu2 %vm378_vm2, %v1589_v14  ;;  %1508 = vmatmul.msk.bf16.gmra.mxu3 %vm378_vm2, %v1593_v15 }
  0x3b   : > { %1497 = vmatmul.msk.bf16.gmra.mxu0 %vm378_vm2, %v1582_v16  ;;  %1501 = vmatmul.msk.bf16.gmra.mxu1 %vm378_vm2, %v1586_v17 }
  0x3c   : > { %1505 = vmatmul.msk.bf16.gmra.mxu2 %vm378_vm2, %v1590_v18  ;;  %1509 = vmatmul.msk.bf16.gmra.mxu3 %vm378_vm2, %v1594_v19 }
  0x4b   : > { %1498 = vmatmul.msk.bf16.gmra.mxu0 %vm378_vm2, %v1583_v20  ;;  %1502 = vmatmul.msk.bf16.gmra.mxu1 %vm378_vm2, %v1587_v21 }
  0x4c   : > { %1506 = vmatmul.msk.bf16.gmra.mxu2 %vm378_vm2, %v1591_v22  ;;  %1510 = vmatmul.msk.bf16.gmra.mxu3 %vm378_vm2, %v1595_v23 }
  0x98   : > { %v443_v24 = vpop.f32.mrf.mxu0  ;;  %v463_v25 = vpop.f32.mrf.mxu1 }
  0x99   : > { %v444_v39 = vadd.f32 %v1794_v38, %v443_v24  ;;  %v464_v40 = vadd.f32 %v1794_v38, %v463_v25 }
  0x9b   : > { %v523_v54 = vmax.f32 %v444_v39, 0.0  ;;  %v531_v55 = vmax.f32 %v464_v40, 0.0 }
  0x9f   : > { %v483_v26 = vpop.f32.mrf.mxu2  ;;  %v503_v27 = vpop.f32.mrf.mxu3 }
  0xa0   : > { %v445_v28 = vpop.f32.mrf.mxu0  ;;  %v465_v29 = vpop.f32.mrf.mxu1  ;;  %v1799_v41 = vadd.f32 %v1794_v38, %v483_v26  ;;  %v1802_v42 = vadd.f32 %v1794_v38, %v503_v27 }
  0xa1   : > { %v1805_v43 = vadd.f32 %v1794_v38, %v445_v28  ;;  %v1808_v46 = vadd.f32 %v1794_v38, %v465_v29 }
  0xa2   : > { %v539_v59 = vmax.f32 %v1799_v41, 0.0  ;;  %v547_v60 = vmax.f32 %v1802_v42, 0.0 }
  0xa3   : > { %v524_v61 = vmax.f32 %v1805_v43, 0.0  ;;  %v532_v62 = vmax.f32 %v1808_v46, 0.0 }
  0xa7   : > { %v485_v30 = vpop.f32.mrf.mxu2  ;;  %v505_v31 = vpop.f32.mrf.mxu3 }
  0xa8   : > { %v448_v32 = vpop.f32.mrf.mxu0  ;;  %v468_v33 = vpop.f32.mrf.mxu1  ;;  %v1811_v47 = vadd.f32 %v1794_v38, %v485_v30  ;;  %v1816_v50 = vadd.f32 %v1794_v38, %v505_v31 }
  0xa9   : > { %v1819_v51 = vadd.f32 %v1794_v38, %v448_v32  ;;  %v1822_v52 = vadd.f32 %v1794_v38, %v468_v33 }
  0xaa   : > { %v540_v63 = vmax.f32 %v1811_v47, 0.0  ;;  %v548_v2 = vmax.f32 %v1816_v50, 0.0 }
  0xab   : > { %v525_v3 = vmax.f32 %v1819_v51, 0.0  ;;  %v533_v4 = vmax.f32 %v1822_v52, 0.0 }
  0xaf   : > { %v488_v34 = vpop.f32.mrf.mxu2  ;;  %v508_v37 = vpop.f32.mrf.mxu3 }
  0xb0   : > { %v450_v35 = vpop.f32.mrf.mxu0  ;;  %v1789_v36 = vpop.f32.mrf.mxu1  ;;  %v1837_v5 = vadd.f32 %v1794_v38, %v488_v34  ;;  %v1840_v18 = vadd.f32 %v1794_v38, %v508_v37 }
  0xb1   : > { %v1843_v26 = vadd.f32 %v1794_v38, %v450_v35  ;;  %v1847_v39 = vadd.f32 %v1794_v38, %v1789_v36 }
  0xb7   : > { %v1824_v53 = vpop.f32.mrf.mxu2  ;;  %v1826_v56 = vpop.f32.mrf.mxu3 }
  0xb8   : > { %v453_v44 = vpop.f32.mrf.mxu0  ;;  %v473_v45 = vpop.f32.mrf.mxu1 }
  0xb9   : > { %v454_v48 = vadd.f32 %v1794_v38, %v453_v44  ;;  %v474_v49 = vadd.f32 %v1794_v38, %v473_v45 }
  0xbb   : > { %v527_v57 = vmax.f32 %v454_v48, 0.0  ;;  %v535_v58 = vmax.f32 %v474_v49, 0.0 }
  0xbd   : > { %v555_v0 = vmax.f32 %v523_v54, %v527_v57  ;;  %v559_v1 = vmax.f32 %v531_v55, %v535_v58 }
  0xbf   : > { %v587_v6 = vrot.slane %v555_v0, 2  ;;  %v588_v7 = vrot.slane %v555_v0, 4  ;;  %v589_v8 = vrot.slane %v555_v0, 6  ;;  %v1511_v9 = vrot.slane %v555_v0, 9  ;;  %v493_v30 = vpop.f32.mrf.mxu2  ;;  %v513_v37 = vpop.f32.mrf.mxu3 }
  0xc0   : > { %v599_v10 = vrot.slane %v559_v1, 2  ;;  %v600_v11 = vrot.slane %v559_v1, 4  ;;  %v601_v12 = vrot.slane %v559_v1, 6  ;;  %v1527_v13 = vrot.slane %v559_v1, 9 }
  0xc1   : > { %v1512_v14 = vrot.slane %v587_v6, 9  ;;  %v1513_v15 = vrot.slane %v588_v7, 9  ;;  %v1514_v16 = vrot.slane %v589_v8, 9  ;;  %v875_v17 = vmax.f32 %v555_v0, %v1511_v9 }
  0xc2   : > { %v1528_v19 = vrot.slane %v599_v10, 9  ;;  %v1529_v20 = vrot.slane %v600_v11, 9  ;;  %v1530_v21 = vrot.slane %v601_v12, 9  ;;  %v891_v25 = vmax.f32 %v559_v1, %v1527_v13 }
  0xc3   : > { %v876_v22 = vmax.f32 %v587_v6, %v1512_v14  ;;  %v877_v23 = vmax.f32 %v588_v7, %v1513_v15  ;;  %v878_v24 = vmax.f32 %v589_v8, %v1514_v16  ;;  %v939_v31 = vpack.c.bf16 %v875_v17, %v875_v17 }
  0xc4   : > { %v892_v27 = vmax.f32 %v599_v10, %v1528_v19  ;;  %v893_v28 = vmax.f32 %v600_v11, %v1529_v20  ;;  %v894_v29 = vmax.f32 %v601_v12, %v1530_v21  ;;  %v955_v35 = vpack.c.bf16 %v891_v25, %v891_v25  ;;  %v455_v12 = vpop.f32.mrf.mxu0 }
  0xc5   : > { %v940_v32 = vpack.c.bf16 %v876_v22, %v876_v22  ;;  %v941_v33 = vpack.c.bf16 %v877_v23, %v877_v23  ;;  %v942_v34 = vpack.c.bf16 %v878_v24, %v878_v24  ;;  %v494_v54 = vadd.f32 %v1794_v38, %v493_v30 }
  0xc6   : > { %v956_v40 = vpack.c.bf16 %v892_v27, %v892_v27  ;;  %v957_v44 = vpack.c.bf16 %v893_v28, %v893_v28  ;;  %v958_v45 = vpack.c.bf16 %v894_v29, %v894_v29  ;;  %v514_v0 = vadd.f32 %v1794_v38, %v513_v37 }
  0xc7   : > { %v1068_v48 = vunpack.c.l.b16 %v940_v32  ;;  %v1069_v49 = vunpack.c.l.b16 %v941_v33  ;;  %v1850_v55 = vunpack.c.l.b16 %v942_v34  ;;  %v1067_v1 = vunpack.c.l.b16 %v939_v31 }
  0xc8   : > { %v1084_v57 = vunpack.c.l.b16 %v956_v40  ;;  %v1852_v58 = vunpack.c.l.b16 %v957_v44  ;;  %v1855_v7 = vunpack.c.l.b16 %v958_v45  ;;  %v543_v36 = vmax.f32 %v494_v54, 0.0 }
  0xc9   : > { %v1131_v6 = vrot.slane %v1068_v48, 7  ;;  %v541_v8 = vmax.f32 %v1837_v5, 0.0  ;;  %v549_v9 = vmax.f32 %v1840_v18, 0.0  ;;  %v1134_v10 = vrot.slane %v1069_v49, 6 }
  0xca   : > { %v551_v11 = vmax.f32 %v514_v0, 0.0  ;;  %v1861_v13 = vadd.f32 %v1794_v38, %v1824_v53  ;;  %v1083_v15 = vunpack.c.l.b16 %v955_v35  ;;  %v563_v16 = vmax.f32 %v539_v59, %v543_v36 }
  0xcb   : > { %v1133_v14 = vsel %vm1132_vm3, %v1131_v6, %v1067_v1  ;;  %v1137_v17 = vrot.slane %v1850_v55, 5  ;;  %v1166_v19 = vrot.slane %v1084_v57, 7  ;;  %v1168_v20 = vrot.slane %v1852_v58, 6 }
  0xcc   : > { %v567_v21 = vmax.f32 %v547_v60, %v551_v11  ;;  %v1170_v22 = vrot.slane %v1855_v7, 5  ;;  %v611_v23 = vrot.slane %v563_v16, 2  ;;  %v612_v24 = vrot.slane %v563_v16, 4 }
  0xcd   : > { %v456_v53 = vadd.f32 %v1794_v38, %v455_v12  ;;  %v1136_v25 = vsel %vm1135_vm4, %v1134_v10, %v1133_v14  ;;  %v613_v27 = vrot.slane %v563_v16, 6  ;;  %v1543_v41 = vrot.slane %v563_v16, 9 }
  0xce   : > { %v623_v59 = vrot.slane %v567_v21, 2  ;;  %v1544_v28 = vrot.slane %v611_v23, 9  ;;  %v1545_v29 = vrot.slane %v612_v24, 9  ;;  %v624_v30 = vrot.slane %v567_v21, 4 }
  0xcf   : > { %v625_v31 = vrot.slane %v567_v21, 6  ;;  %v1546_v32 = vrot.slane %v613_v27, 9  ;;  %v907_v33 = vmax.f32 %v563_v16, %v1543_v41  ;;  %v1559_v42 = vrot.slane %v567_v21, 9 }
  0xd0   : > { %v1560_v60 = vrot.slane %v623_v59, 9  ;;  %v908_v34 = vmax.f32 %v611_v23, %v1544_v28  ;;  %v909_v37 = vmax.f32 %v612_v24, %v1545_v29  ;;  %v1561_v40 = vrot.slane %v624_v30, 9 }
  0xd1   : > { %v1562_v44 = vrot.slane %v625_v31, 9  ;;  %v910_v45 = vmax.f32 %v613_v27, %v1546_v32  ;;  %v971_v48 = vpack.c.bf16 %v907_v33, %v907_v33  ;;  %v923_v49 = vmax.f32 %v567_v21, %v1559_v42 }
  0xd2   : > { %v924_v35 = vmax.f32 %v623_v59, %v1560_v60  ;;  %v972_v54 = vpack.c.bf16 %v908_v34, %v908_v34  ;;  %v973_v55 = vpack.c.bf16 %v909_v37, %v909_v37  ;;  %v925_v57 = vmax.f32 %v624_v30, %v1561_v40  ;;  %v475_v37 = vpop.f32.mrf.mxu1  ;;  %v495_v40 = vpop.f32.mrf.mxu2 }
  0xd3   : > { %v926_v58 = vmax.f32 %v625_v31, %v1562_v44  ;;  %v1167_v0 = vsel %vm1132_vm3, %v1166_v19, %v1083_v15  ;;  %v974_v1 = vpack.c.bf16 %v910_v45, %v910_v45  ;;  %v987_v6 = vpack.c.bf16 %v923_v49, %v923_v49  ;;  %v515_v44 = vpop.f32.mrf.mxu3  ;;  %v458_v45 = vpop.f32.mrf.mxu0 }
  0xd4   : > { %v988_v36 = vpack.c.bf16 %v924_v35, %v924_v35  ;;  %v1100_v10 = vunpack.c.l.b16 %v972_v54  ;;  %v1101_v11 = vunpack.c.l.b16 %v973_v55  ;;  %v989_v12 = vpack.c.bf16 %v925_v57, %v925_v57 }
  0xd5   : > { %v990_v14 = vpack.c.bf16 %v926_v58, %v926_v58  ;;  %v1099_v16 = vunpack.c.l.b16 %v971_v48  ;;  %v1102_v23 = vunpack.c.l.b16 %v974_v1  ;;  %v528_v21 = vmax.f32 %v456_v53, 0.0 }
  0xd6   : > { %v1116_v24 = vunpack.c.l.b16 %v988_v36  ;;  %v1194_v27 = vrot.slane %v1100_v10, 7  ;;  %v1196_v41 = vrot.slane %v1101_v11, 6  ;;  %v1117_v59 = vunpack.c.l.b16 %v989_v12 }
  0xd7   : > { %v1875_v28 = vunpack.c.l.b16 %v990_v14  ;;  %v1169_v15 = vsel %vm1135_vm4, %v1168_v20, %v1167_v0  ;;  %v1115_v19 = vunpack.c.l.b16 %v987_v6  ;;  %v556_v30 = vmax.f32 %v524_v61, %v528_v21 }
  0xd8   : > { %v1222_v29 = vrot.slane %v1116_v24, 7  ;;  %v1887_v53 = vsel %vm1138_vm5, %v1137_v17, %v1136_v25  ;;  %v1195_v31 = vsel %vm1132_vm3, %v1194_v27, %v1099_v16  ;;  %v1198_v32 = vrot.slane %v1102_v23, 5 }
  0xd9   : > { %v1224_v33 = vrot.slane %v1117_v59, 6  ;;  %v1197_v42 = vsel %vm1135_vm4, %v1196_v41, %v1195_v31  ;;  %v590_v34 = vrot.slane %v556_v30, 2  ;;  %v591_v20 = vrot.slane %v556_v30, 4 }
  0xda   : > { %v1223_v60 = vsel %vm1132_vm3, %v1222_v29, %v1115_v19  ;;  %v1895_v43 = vsel %vm1138_vm5, %v1170_v22, %v1169_v15  ;;  %v1226_v61 = vrot.slane %v1875_v28, 5  ;;  %v592_v17 = vrot.slane %v556_v30, 6 }
  0xdb   : > { %v1515_v25 = vrot.slane %v556_v30, 9  ;;  %v1905_v48 = vsel %vm1138_vm5, %v1198_v32, %v1197_v42  ;;  %v1908_v7 = vsel %vm1135_vm4, %v1224_v33, %v1223_v60  ;;  %v1516_v22 = vrot.slane %v590_v34, 9 }
  0xdc   : > { %v1517_v49 = vrot.slane %v591_v20, 9  ;;  %v1518_v35 = vrot.slane %v592_v17, 9  ;;  %v476_v55 = vadd.f32 %v1794_v38, %v475_v37  ;;  %v496_v57 = vadd.f32 %v1794_v38, %v495_v40 }
  0xdd   : > { %v879_v54 = vmax.f32 %v556_v30, %v1515_v25  ;;  %v880_v58 = vmax.f32 %v590_v34, %v1516_v22  ;;  %v516_v1 = vadd.f32 %v1794_v38, %v515_v44  ;;  %v459_v6 = vadd.f32 %v1794_v38, %v458_v45 }
  0xde   : > { %v881_v0 = vmax.f32 %v591_v20, %v1517_v49  ;;  %v882_v36 = vmax.f32 %v592_v17, %v1518_v35  ;;  %v536_v11 = vmax.f32 %v476_v55, 0.0  ;;  %v544_v12 = vmax.f32 %v496_v57, 0.0 }
  0xdf   : > { %v943_v10 = vpack.c.bf16 %v879_v54, %v879_v54  ;;  %v944_v14 = vpack.c.bf16 %v880_v58, %v880_v58  ;;  %v552_v23 = vmax.f32 %v516_v1, 0.0  ;;  %v529_v24 = vmax.f32 %v459_v6, 0.0 }
  0xe0   : > { %v945_v16 = vpack.c.bf16 %v881_v0, %v881_v0  ;;  %v946_v21 = vpack.c.bf16 %v882_v36, %v882_v36  ;;  %v560_v41 = vmax.f32 %v532_v62, %v536_v11  ;;  %v564_v59 = vmax.f32 %v540_v63, %v544_v12 }
  0xe1   : > { %v1071_v27 = vunpack.c.l.b16 %v943_v10  ;;  %v1072_v15 = vunpack.c.l.b16 %v944_v14  ;;  %v1922_v29 = vmax.f32 %v548_v2, %v552_v23  ;;  %v1926_v30 = vmax.f32 %v525_v3, %v529_v24 }
  0xe2   : > { %v1073_v19 = vunpack.c.l.b16 %v945_v16  ;;  %v1074_v31 = vunpack.c.l.b16 %v946_v21  ;;  %v602_v33 = vrot.slane %v560_v41, 2  ;;  %v603_v42 = vrot.slane %v560_v41, 4 }
  0xe3   : > { %v1140_v32 = vrot.slane %v1071_v27, 4  ;;  %v1143_v46 = vrot.slane %v1072_v15, 3  ;;  %v604_v60 = vrot.slane %v560_v41, 6  ;;  %v1531_v47 = vrot.slane %v560_v41, 9 }
  0xe4   : > { %v1146_v62 = vrot.slane %v1073_v19, 2  ;;  %v1149_v34 = vrot.slane %v1074_v31, 1  ;;  %v1532_v50 = vrot.slane %v602_v33, 9  ;;  %v1533_v2 = vrot.slane %v603_v42, 9 }
  0xe5   : > { %v1142_v63 = vsel %vm1141_vm6, %v1140_v32, %v1887_v53  ;;  %v1534_v51 = vrot.slane %v604_v60, 9  ;;  %v895_v3 = vmax.f32 %v560_v41, %v1531_v47  ;;  %v614_v37 = vrot.slane %v564_v59, 2 }
  0xe6   : > { %v1145_v20 = vsel %vm1144_vm7, %v1143_v46, %v1142_v63  ;;  %v896_v17 = vmax.f32 %v602_v33, %v1532_v50  ;;  %v897_v25 = vmax.f32 %v603_v42, %v1533_v2  ;;  %v615_v44 = vrot.slane %v564_v59, 4 }
  0xe7   : > { %v1148_v40 = vsel %vm1147_vm8, %v1146_v62, %v1145_v20  ;;  %v898_v45 = vmax.f32 %v604_v60, %v1534_v51  ;;  %v959_v22 = vpack.c.bf16 %v895_v3, %v895_v3  ;;  %v616_v49 = vrot.slane %v564_v59, 6 }
  0xe8   : > { %v1151_v53 = vsel %vm1150_vm9, %v1149_v34, %v1148_v40  ;;  %v960_v54 = vpack.c.bf16 %v896_v17, %v896_v17  ;;  %v961_v55 = vpack.c.bf16 %v897_v25, %v897_v25  ;;  %v1547_v57 = vrot.slane %v564_v59, 9 }
  0xe9   : > { %v1250_v35 = vpack.c.b16 %v1151_v53, %v1151_v53  ;;  %v962_v58 = vpack.c.bf16 %v898_v45, %v898_v45  ;;  %v1087_v0 = vunpack.c.l.b16 %v959_v22  ;;  %v1548_v1 = vrot.slane %v614_v37, 9 }
  0xea   : > { %v1549_v6 = vrot.slane %v615_v44, 9  ;;  %v1088_v36 = vunpack.c.l.b16 %v960_v54  ;;  %v1089_v10 = vunpack.c.l.b16 %v961_v55  ;;  %v1550_v11 = vrot.slane %v616_v49, 9 }
  0xeb   : > { %1267 = vst.msk [vmem:[%s1935_s19] sm:$0xf] %vm1266_vm10, %v1250_v35  ;;  %v911_v12 = vmax.f32 %v564_v59, %v1547_v57  ;;  %v1090_v14 = vunpack.c.l.b16 %v962_v58  ;;  %v1172_v16 = vrot.slane %v1087_v0, 4  ;;  %v912_v23 = vmax.f32 %v614_v37, %v1548_v1 }
  0xec   : > { %v913_v24 = vmax.f32 %v615_v44, %v1549_v6  ;;  %v1174_v21 = vrot.slane %v1088_v36, 3  ;;  %v1176_v27 = vrot.slane %v1089_v10, 2  ;;  %v914_v41 = vmax.f32 %v616_v49, %v1550_v11 }
  0xed   : > { %v975_v15 = vpack.c.bf16 %v911_v12, %v911_v12  ;;  %v1173_v19 = vsel %vm1141_vm6, %v1172_v16, %v1895_v43  ;;  %v1178_v31 = vrot.slane %v1090_v14, 1  ;;  %v976_v32 = vpack.c.bf16 %v912_v23, %v912_v23 }
  0xee   : > { %v977_v33 = vpack.c.bf16 %v913_v24, %v913_v24  ;;  %v1175_v42 = vsel %vm1144_vm7, %v1174_v21, %v1173_v19  ;;  %v978_v46 = vpack.c.bf16 %v914_v41, %v914_v41  ;;  %v626_v59 = vrot.slane %v1922_v29, 2 }
  0xef   : > { %v1103_v62 = vunpack.c.l.b16 %v975_v15  ;;  %v1177_v60 = vsel %vm1147_vm8, %v1176_v27, %v1175_v42  ;;  %v1104_v47 = vunpack.c.l.b16 %v976_v32  ;;  %v627_v34 = vrot.slane %v1922_v29, 4 }
  0xf0   : > { %v1105_v63 = vunpack.c.l.b16 %v977_v33  ;;  %v1179_v50 = vsel %vm1150_vm9, %v1178_v31, %v1177_v60  ;;  %v1106_v2 = vunpack.c.l.b16 %v978_v46  ;;  %v628_v20 = vrot.slane %v1922_v29, 6  ;;  %v478_v33 = vpop.f32.mrf.mxu1  ;;  %v498_v60 = vpop.f32.mrf.mxu2 }
  0xf1   : > { %v1200_v43 = vrot.slane %v1103_v62, 4  ;;  %v1252_v51 = vpack.c.b16 %v1179_v50, %v1179_v50  ;;  %v1202_v3 = vrot.slane %v1104_v47, 3  ;;  %v1563_v40 = vrot.slane %v1922_v29, 9 }
  0xf2   : > { %v1204_v37 = vrot.slane %v1105_v63, 2  ;;  %v1206_v25 = vrot.slane %v1106_v2, 1  ;;  %v1564_v44 = vrot.slane %v626_v59, 9  ;;  %v1565_v53 = vrot.slane %v627_v34, 9 }
  0xf3   : > { %v1201_v17 = vsel %vm1141_vm6, %v1200_v43, %v1905_v48  ;;  %1269 = vst.msk [vmem:[%s1935_s19 + $0x8] sm:$0xf] %vm1266_vm10, %v1252_v51  ;;  %v1566_v22 = vrot.slane %v628_v20, 9  ;;  %v927_v49 = vmax.f32 %v1922_v29, %v1563_v40  ;;  %v593_v35 = vrot.slane %v1926_v30, 2 }
  0xf4   : > { %v1203_v45 = vsel %vm1144_vm7, %v1202_v3, %v1201_v17  ;;  %v928_v55 = vmax.f32 %v626_v59, %v1564_v44  ;;  %v929_v57 = vmax.f32 %v627_v34, %v1565_v53  ;;  %v594_v58 = vrot.slane %v1926_v30, 4 }
  0xf5   : > { %v1205_v54 = vsel %vm1147_vm8, %v1204_v37, %v1203_v45  ;;  %v930_v0 = vmax.f32 %v628_v20, %v1566_v22  ;;  %v991_v1 = vpack.c.bf16 %v927_v49, %v927_v49  ;;  %v595_v6 = vrot.slane %v1926_v30, 6 }
  0xf6   : > { %v1207_v48 = vsel %vm1150_vm9, %v1206_v25, %v1205_v54  ;;  %v992_v10 = vpack.c.bf16 %v928_v55, %v928_v55  ;;  %v993_v11 = vpack.c.bf16 %v929_v57, %v929_v57  ;;  %v1519_v29 = vrot.slane %v1926_v30, 9  ;;  %v460_v57 = vpop.f32.mrf.mxu0 }
  0xf7   : > { %v1254_v36 = vpack.c.b16 %v1207_v48, %v1207_v48  ;;  %v994_v12 = vpack.c.bf16 %v930_v0, %v930_v0  ;;  %v1119_v14 = vunpack.c.l.b16 %v991_v1  ;;  %v1520_v16 = vrot.slane %v593_v35, 9 }
  0xf8   : > { %v1521_v23 = vrot.slane %v594_v58, 9  ;;  %v1120_v24 = vunpack.c.l.b16 %v992_v10  ;;  %v1121_v21 = vunpack.c.l.b16 %v993_v11  ;;  %v1522_v27 = vrot.slane %v595_v6, 9 }
  0xf9   : > { %1271 = vst.msk [vmem:[%s1935_s19 + $0x10] sm:$0xf] %vm1266_vm10, %v1254_v36  ;;  %v883_v41 = vmax.f32 %v1926_v30, %v1519_v29  ;;  %v1122_v15 = vunpack.c.l.b16 %v994_v12  ;;  %v1228_v19 = vrot.slane %v1119_v14, 4  ;;  %v884_v31 = vmax.f32 %v593_v35, %v1520_v16  ;;  %v518_v30 = vpop.f32.mrf.mxu3 }
  0xfa   : > { %v885_v32 = vmax.f32 %v594_v58, %v1521_v23  ;;  %v1227_v42 = vsel %vm1138_vm5, %v1226_v61, %v1908_v7  ;;  %v1230_v46 = vrot.slane %v1120_v24, 3  ;;  %v1232_v62 = vrot.slane %v1121_v21, 2 }
  0xfb   : > { %v886_v59 = vmax.f32 %v595_v6, %v1522_v27  ;;  %v1229_v47 = vsel %vm1141_vm6, %v1228_v19, %v1227_v42  ;;  %v947_v63 = vpack.c.bf16 %v883_v41, %v883_v41  ;;  %v948_v34 = vpack.c.bf16 %v884_v31, %v884_v31 }
  0xfc   : > { %v949_v50 = vpack.c.bf16 %v885_v32, %v885_v32  ;;  %v1231_v2 = vsel %vm1144_vm7, %v1230_v46, %v1229_v47  ;;  %v1234_v43 = vrot.slane %v1122_v15, 1  ;;  %v479_v51 = vadd.f32 %v1794_v38, %v478_v33  ;;  %v480_v46 = vpop.f32.mrf.mxu1 }
  0xfd   : > { %v950_v20 = vpack.c.bf16 %v886_v59, %v886_v59  ;;  %v1233_v28 = vsel %vm1147_vm8, %v1232_v62, %v1231_v2  ;;  %v1076_v3 = vunpack.c.l.b16 %v948_v34  ;;  %v499_v7 = vadd.f32 %v1794_v38, %v498_v60 }
  0xfe   : > { %v1972_v61 = vunpack.c.l.b16 %v949_v50  ;;  %v1235_v37 = vsel %vm1150_vm9, %v1234_v43, %v1233_v28  ;;  %v537_v17 = vmax.f32 %v479_v51, 0.0  ;;  %v519_v25 = vadd.f32 %v1794_v38, %v518_v30 }
  0xff   : > { %v1976_v40 = vunpack.c.l.b16 %v950_v20  ;;  %v526_v44 = vmax.f32 %v1843_v26, 0.0  ;;  %v534_v53 = vmax.f32 %v1847_v39, 0.0  ;;  %v1256_v45 = vpack.c.b16 %v1235_v37, %v1235_v37 }
 0x100   : > { %v545_v22 = vmax.f32 %v499_v7, 0.0  ;;  %v542_v49 = vmax.f32 %v1861_v13, 0.0  ;;  %v1984_v35 = vadd.f32 %v1794_v38, %v1826_v56  ;;  %v1075_v54 = vunpack.c.l.b16 %v947_v63 }
 0x101   : > { %v561_v55 = vmax.f32 %v533_v4, %v537_v17  ;;  %1273 = vst.msk [vmem:[%s1935_s19 + $0x18] sm:$0xf] %vm1266_vm10, %v1256_v45  ;;  %v1152_v58 = vrot.slane %v1076_v3, 7  ;;  %v1154_v48 = vrot.slane %v1972_v61, 6  ;;  %v1156_v0 = vrot.slane %v1976_v40, 5 }
 0x102   : > { %v565_v1 = vmax.f32 %v541_v8, %v545_v22  ;;  %v553_v56 = vmax.f32 %v519_v25, 0.0  ;;  %v1995_v52 = vadd.f32 %v1794_v38, %v460_v57  ;;  %v481_v51 = vadd.f32 %v1794_v38, %v480_v46  ;;  %v500_v22 = vpop.f32.mrf.mxu2 }
 0x103   : > { %v605_v6 = vrot.slane %v561_v55, 2  ;;  %v606_v36 = vrot.slane %v561_v55, 4  ;;  %v607_v10 = vrot.slane %v561_v55, 6  ;;  %v1535_v11 = vrot.slane %v561_v55, 9 }
 0x104   : > { %v617_v29 = vrot.slane %v565_v1, 2  ;;  %v618_v12 = vrot.slane %v565_v1, 4  ;;  %v619_v23 = vrot.slane %v565_v1, 6  ;;  %v1551_v21 = vrot.slane %v565_v1, 9 }
 0x105   : > { %v1536_v4 = vrot.slane %v605_v6, 9  ;;  %v1537_v14 = vrot.slane %v606_v36, 9  ;;  %v1538_v16 = vrot.slane %v607_v10, 9  ;;  %v899_v24 = vmax.f32 %v561_v55, %v1535_v11 }
 0x106   : > { %v1552_v27 = vrot.slane %v617_v29, 9  ;;  %v1553_v41 = vrot.slane %v618_v12, 9  ;;  %v1554_v19 = vrot.slane %v619_v23, 9  ;;  %v915_v32 = vmax.f32 %v565_v1, %v1551_v21 }
 0x107   : > { %v900_v5 = vmax.f32 %v605_v6, %v1536_v4  ;;  %v901_v8 = vmax.f32 %v606_v36, %v1537_v14  ;;  %v902_v15 = vmax.f32 %v607_v10, %v1538_v16  ;;  %v963_v31 = vpack.c.bf16 %v899_v24, %v899_v24 }
 0x108   : > { %v916_v33 = vmax.f32 %v617_v29, %v1552_v27  ;;  %v917_v42 = vmax.f32 %v618_v12, %v1553_v41  ;;  %v918_v47 = vmax.f32 %v619_v23, %v1554_v19  ;;  %v1153_v63 = vsel %vm1132_vm3, %v1152_v58, %v1075_v54 }
 0x109   : > { %v964_v62 = vpack.c.bf16 %v900_v5, %v900_v5  ;;  %v965_v59 = vpack.c.bf16 %v901_v8, %v901_v8  ;;  %v966_v60 = vpack.c.bf16 %v902_v15, %v902_v15  ;;  %v979_v34 = vpack.c.bf16 %v915_v32, %v915_v32  ;;  %v520_v32 = vpop.f32.mrf.mxu3 }
 0x10a   : > { %v980_v50 = vpack.c.bf16 %v916_v33, %v916_v33  ;;  %v981_v30 = vpack.c.bf16 %v917_v42, %v917_v42  ;;  %v982_v20 = vpack.c.bf16 %v918_v47, %v918_v47  ;;  %v1091_v28 = vunpack.c.l.b16 %v963_v31 }
 0x10b   : > { %v1092_v2 = vunpack.c.l.b16 %v964_v62  ;;  %v1093_v43 = vunpack.c.l.b16 %v965_v59  ;;  %v569_v7 = vmax.f32 %v549_v9, %v553_v56  ;;  %v1094_v37 = vunpack.c.l.b16 %v966_v60 }
 0x10c   : > { %v1108_v3 = vunpack.c.l.b16 %v980_v50  ;;  %v1109_v61 = vunpack.c.l.b16 %v981_v30  ;;  %v1107_v45 = vunpack.c.l.b16 %v979_v34  ;;  %v1110_v6 = vunpack.c.l.b16 %v982_v20 }
 0x10d   : > { %v1180_v17 = vrot.slane %v1092_v2, 7  ;;  %v1182_v25 = vrot.slane %v1093_v43, 6  ;;  %v629_v57 = vrot.slane %v569_v7, 2  ;;  %v630_v58 = vrot.slane %v569_v7, 4 }
 0x10e   : > { %v1208_v54 = vrot.slane %v1108_v3, 7  ;;  %v1210_v55 = vrot.slane %v1109_v61, 6  ;;  %v631_v36 = vrot.slane %v569_v7, 6  ;;  %v1567_v10 = vrot.slane %v569_v7, 9 }
 0x10f   : > { %v1181_v1 = vsel %vm1132_vm3, %v1180_v17, %v1091_v28  ;;  %v1568_v29 = vrot.slane %v629_v57, 9  ;;  %v1569_v12 = vrot.slane %v630_v58, 9  ;;  %v501_v18 = vadd.f32 %v1794_v38, %v500_v22 }
 0x110   : > { %v1209_v11 = vsel %vm1132_vm3, %v1208_v54, %v1107_v45  ;;  %v1155_v9 = vsel %vm1135_vm4, %v1154_v48, %v1153_v63  ;;  %v1183_v56 = vsel %vm1135_vm4, %v1182_v25, %v1181_v1  ;;  %v1570_v4 = vrot.slane %v631_v36, 9 }
 0x111   : > { %v931_v14 = vmax.f32 %v569_v7, %v1567_v10  ;;  %v1211_v16 = vsel %vm1135_vm4, %v1210_v55, %v1209_v11  ;;  %v932_v23 = vmax.f32 %v629_v57, %v1568_v29  ;;  %v933_v24 = vmax.f32 %v630_v58, %v1569_v12 }
 0x112   : > { %v530_v21 = vmax.f32 %v1995_v52, 0.0  ;;  %v1184_v27 = vrot.slane %v1094_v37, 5  ;;  %v1212_v41 = vrot.slane %v1110_v6, 5  ;;  %v934_v5 = vmax.f32 %v631_v36, %v1570_v4 }
 0x113   : > { %v538_v8 = vmax.f32 %v481_v51, 0.0  ;;  %v550_v15 = vmax.f32 %v1984_v35, 0.0  ;;  %v1157_v48 = vsel %vm1138_vm5, %v1156_v0, %v1155_v9  ;;  %v995_v19 = vpack.c.bf16 %v931_v14, %v931_v14 }
 0x114   : > { %v558_v31 = vmax.f32 %v526_v44, %v530_v21  ;;  %v2015_v33 = vsel %vm1138_vm5, %v1184_v27, %v1183_v56  ;;  %v2018_v52 = vsel %vm1138_vm5, %v1212_v41, %v1211_v16  ;;  %v546_v46 = vmax.f32 %v501_v18, 0.0 }
 0x115   : > { %v562_v42 = vmax.f32 %v534_v53, %v538_v8  ;;  %v996_v62 = vpack.c.bf16 %v932_v23, %v932_v23  ;;  %v997_v59 = vpack.c.bf16 %v933_v24, %v933_v24  ;;  %v998_v0 = vpack.c.bf16 %v934_v5, %v934_v5 }
 0x116   : > { %v596_v40 = vrot.slane %v558_v31, 2  ;;  %v597_v60 = vrot.slane %v558_v31, 4  ;;  %v598_v47 = vrot.slane %v558_v31, 6  ;;  %v1523_v63 = vrot.slane %v558_v31, 9 }
 0x117   : > { %v2023_v26 = vadd.f32 %v1794_v38, %v520_v32  ;;  %v2025_v44 = vunpack.c.l.b16 %v995_v19  ;;  %v608_v30 = vrot.slane %v562_v42, 2  ;;  %v609_v39 = vrot.slane %v562_v42, 4 }
 0x118   : > { %v1524_v34 = vrot.slane %v596_v40, 9  ;;  %v1525_v50 = vrot.slane %v597_v60, 9  ;;  %v1526_v2 = vrot.slane %v598_v47, 9  ;;  %v887_v43 = vmax.f32 %v558_v31, %v1523_v63 }
 0x119   : > { %v566_v53 = vmax.f32 %v542_v49, %v546_v46  ;;  %v2029_v20 = vunpack.c.l.b16 %v996_v62  ;;  %v610_v3 = vrot.slane %v562_v42, 6  ;;  %v2031_v61 = vunpack.c.l.b16 %v997_v59 }
 0x11a   : > { %v888_v51 = vmax.f32 %v596_v40, %v1524_v34  ;;  %v889_v28 = vmax.f32 %v597_v60, %v1525_v50  ;;  %v890_v38 = vmax.f32 %v598_v47, %v1526_v2  ;;  %v951_v7 = vpack.c.bf16 %v887_v43, %v887_v43 }
 0x11b   : > { %v1539_v37 = vrot.slane %v562_v42, 9  ;;  %v2033_v17 = vunpack.c.l.b16 %v998_v0  ;;  %v1540_v22 = vrot.slane %v608_v30, 9  ;;  %v1541_v57 = vrot.slane %v609_v39, 9 }
 0x11c   : > { %v952_v25 = vpack.c.bf16 %v888_v51, %v888_v51  ;;  %v953_v45 = vpack.c.bf16 %v889_v28, %v889_v28  ;;  %v954_v54 = vpack.c.bf16 %v890_v38, %v890_v38  ;;  %v1079_v55 = vunpack.c.l.b16 %v951_v7 }
 0x11d   : > { %v1542_v13 = vrot.slane %v610_v3, 9  ;;  %v903_v1 = vmax.f32 %v562_v42, %v1539_v37  ;;  %v904_v6 = vmax.f32 %v608_v30, %v1540_v22  ;;  %v905_v11 = vmax.f32 %v609_v39, %v1541_v57 }
 0x11e   : > { %v1080_v49 = vunpack.c.l.b16 %v952_v25  ;;  %v1081_v58 = vunpack.c.l.b16 %v953_v45  ;;  %v1082_v36 = vunpack.c.l.b16 %v954_v54  ;;  %v1158_v10 = vrot.slane %v1079_v55, 4 }
 0x11f   : > { %v906_v29 = vmax.f32 %v610_v3, %v1542_v13  ;;  %v967_v9 = vpack.c.bf16 %v903_v1, %v903_v1  ;;  %v968_v56 = vpack.c.bf16 %v904_v6, %v904_v6  ;;  %v969_v16 = vpack.c.bf16 %v905_v11, %v905_v11 }
 0x120   : > { %v1160_v12 = vrot.slane %v1080_v49, 3  ;;  %v1162_v18 = vrot.slane %v1081_v58, 2  ;;  %v1159_v4 = vsel %vm1141_vm6, %v1158_v10, %v1157_v48  ;;  %v1164_v14 = vrot.slane %v1082_v36, 1 }
 0x121   : > { %v970_v23 = vpack.c.bf16 %v906_v29, %v906_v29  ;;  %v1095_v21 = vunpack.c.l.b16 %v967_v9  ;;  %v1096_v27 = vunpack.c.l.b16 %v968_v56  ;;  %v620_v41 = vrot.slane %v566_v53, 2 }
 0x122   : > { %v1161_v24 = vsel %vm1144_vm7, %v1160_v12, %v1159_v4  ;;  %v1097_v8 = vunpack.c.l.b16 %v969_v16  ;;  %v621_v31 = vrot.slane %v566_v53, 4  ;;  %v622_v62 = vrot.slane %v566_v53, 6 }
 0x123   : > { %v1163_v5 = vsel %vm1147_vm8, %v1162_v18, %v1161_v24  ;;  %v1098_v19 = vunpack.c.l.b16 %v970_v23  ;;  %v1186_v42 = vrot.slane %v1095_v21, 4  ;;  %v1188_v46 = vrot.slane %v1096_v27, 3 }
 0x124   : > { %v1165_v32 = vsel %vm1150_vm9, %v1164_v14, %v1163_v5  ;;  %v1236_v48 = vrot.slane %v2029_v20, 7  ;;  %v1190_v40 = vrot.slane %v1097_v8, 2  ;;  %v1555_v60 = vrot.slane %v566_v53, 9 }
 0x125   : > { %v1251_v59 = vpack.c.b16 %v1165_v32, %v1165_v32  ;;  %v1187_v0 = vsel %vm1141_vm6, %v1186_v42, %v2015_v33  ;;  %v1556_v47 = vrot.slane %v620_v41, 9  ;;  %v1557_v63 = vrot.slane %v621_v31, 9 }
 0x126   : > { %v1558_v34 = vrot.slane %v622_v62, 9  ;;  %v1189_v50 = vsel %vm1144_vm7, %v1188_v46, %v1187_v0  ;;  %v1192_v30 = vrot.slane %v1098_v19, 1  ;;  %v919_v2 = vmax.f32 %v566_v53, %v1555_v60 }
 0x127   : > { %1268 = vst.msk [vmem:[%s1935_s19 + $0x4] sm:$0xf] %vm1266_vm10, %v1251_v59  ;;  %v554_v43 = vmax.f32 %v2023_v26, 0.0  ;;  %v1191_v39 = vsel %vm1147_vm8, %v1190_v40, %v1189_v50  ;;  %v920_v20 = vmax.f32 %v620_v41, %v1556_v47  ;;  %v921_v51 = vmax.f32 %v621_v31, %v1557_v63 }
 0x128   : > { %v922_v28 = vmax.f32 %v622_v62, %v1558_v34  ;;  %v1238_v3 = vrot.slane %v2031_v61, 6  ;;  %v1193_v33 = vsel %vm1150_vm9, %v1192_v30, %v1191_v39  ;;  %v983_v38 = vpack.c.bf16 %v919_v2, %v919_v2 }
 0x129   : > { %v570_v7 = vmax.f32 %v550_v15, %v554_v43  ;;  %v1253_v37 = vpack.c.b16 %v1193_v33, %v1193_v33  ;;  %v984_v25 = vpack.c.bf16 %v920_v20, %v920_v20  ;;  %v985_v45 = vpack.c.bf16 %v921_v51, %v921_v51 }
 0x12a   : > { %v986_v53 = vpack.c.bf16 %v922_v28, %v922_v28  ;;  %v1111_v22 = vunpack.c.l.b16 %v983_v38  ;;  %v1237_v35 = vsel %vm1132_vm3, %v1236_v48, %v2025_v44  ;;  %v1240_v27 = vrot.slane %v2033_v17, 5 }
 0x12b   : > { %v632_v26 = vrot.slane %v570_v7, 2  ;;  %v633_v54 = vrot.slane %v570_v7, 4  ;;  %v634_v55 = vrot.slane %v570_v7, 6  ;;  %1270 = vst.msk [vmem:[%s1935_s19 + $0xc] sm:$0xf] %vm1266_vm10, %v1253_v37  ;;  %v1112_v57 = vunpack.c.l.b16 %v984_v25 }
 0x12c   : > { %v1113_v13 = vunpack.c.l.b16 %v985_v45  ;;  %v1114_v49 = vunpack.c.l.b16 %v986_v53  ;;  %v1571_v61 = vrot.slane %v570_v7, 9  ;;  %v1214_v58 = vrot.slane %v1111_v22, 4 }
 0x12d   : > { %v1572_v1 = vrot.slane %v632_v26, 9  ;;  %v1573_v6 = vrot.slane %v633_v54, 9  ;;  %v1574_v36 = vrot.slane %v634_v55, 9  ;;  %v1216_v15 = vrot.slane %v1112_v57, 3 }
 0x12e   : > { %v1218_v10 = vrot.slane %v1113_v13, 2  ;;  %v935_v11 = vmax.f32 %v570_v7, %v1571_v61  ;;  %v1215_v29 = vsel %vm1141_vm6, %v1214_v58, %v2018_v52  ;;  %v1220_v4 = vrot.slane %v1114_v49, 1 }
 0x12f   : > { %v936_v12 = vmax.f32 %v632_v26, %v1572_v1  ;;  %v937_v18 = vmax.f32 %v633_v54, %v1573_v6  ;;  %v938_v9 = vmax.f32 %v634_v55, %v1574_v36  ;;  %v1217_v56 = vsel %vm1144_vm7, %v1216_v15, %v1215_v29 }
 0x130   : > { %v999_v14 = vpack.c.bf16 %v935_v11, %v935_v11  ;;  %v1219_v16 = vsel %vm1147_vm8, %v1218_v10, %v1217_v56  ;;  %v1239_v44 = vsel %vm1135_vm4, %v1238_v3, %v1237_v35 }
 0x131   : > { %v1000_v23 = vpack.c.bf16 %v936_v12, %v936_v12  ;;  %v1001_v24 = vpack.c.bf16 %v937_v18, %v937_v18  ;;  %v1002_v21 = vpack.c.bf16 %v938_v9, %v938_v9  ;;  %v1221_v41 = vsel %vm1150_vm9, %v1220_v4, %v1219_v16 }
 0x132   : > { %v1127_v52 = vunpack.c.l.b16 %v999_v14  ;;  %v1255_v5 = vpack.c.b16 %v1221_v41, %v1221_v41  ;;  %v1241_v42 = vsel %vm1138_vm5, %v1240_v27, %v1239_v44 }
 0x133   : > { %v1128_v8 = vunpack.c.l.b16 %v1000_v23  ;;  %v1129_v19 = vunpack.c.l.b16 %v1001_v24  ;;  %v1130_v31 = vunpack.c.l.b16 %v1002_v21 }
 0x134   : > { %v1242_v32 = vrot.slane %v1127_v52, 4  ;;  %1272 = vst.msk [vmem:[%s1935_s19 + $0x14] sm:$0xf] %vm1266_vm10, %v1255_v5 }
 0x135   : > { %v1244_v46 = vrot.slane %v1128_v8, 3  ;;  %v1246_v62 = vrot.slane %v1129_v19, 2  ;;  %v1248_v17 = vrot.slane %v1130_v31, 1 }
 0x136   : > { %v1243_v48 = vsel %vm1141_vm6, %v1242_v32, %v1241_v42 }
 0x137   : > { %v1245_v59 = vsel %vm1144_vm7, %v1244_v46, %v1243_v48 }
 0x138   : > { %v1247_v40 = vsel %vm1147_vm8, %v1246_v62, %v1245_v59 }
 0x139   : > { %v1249_v60 = vsel %vm1150_vm9, %v1248_v17, %v1247_v40 }
 0x13a   : > { %v1257_v0 = vpack.c.b16 %v1249_v60, %v1249_v60 }
 0x13c   : > { %1274 = vst.msk [vmem:[%s1935_s19 + $0x1c] sm:$0xf] %vm1266_vm10, %v1257_v0 }
 0x13d PF: > { %s13_s16 = sadd.s32 1, %s1684_s16   ;;  %s2091_s12 = smov %s1676_s14 }
 0x13e   : > { %p10_p7 = scmp.ge.s32.totalorder %s13_s16, 10   ;;  %s2092_s13 = smov %s1680_s15 }
 0x13f   : > { %s2093_s14 = smov %s2096_s17  ;;  %s2094_s15 = smov %s2100_s18 }
 0x140   :  { %12 = sbr.rel (!%p10_p7) target bundleno = 3 (0x3), region = 69 }

// kernel: generalized_rcnn_forward.5
= control target key start
LH: loop header
LB: loop body
LE: loop exit
PB: predicated region body
PF: predicated region fallthrough
CT: control target
= control target key end

     0   :  { %s2176_s12 = smov 0   ;;  %s2178_s13 = smov 0   ;;  %s2771_s0 = inlined_call_operand.vmem [shape: bf16[2,18,18,64], index: 0, kind: input, shape index: {}]   ;;  %s2772_s1 = inlined_call_operand.vmem [shape: bf16[3,192,128], index: 1, kind: input, shape index: {}]   ;;  %s2773_s2 = inlined_call_operand.vmem [shape: f32[1,128], index: 2, kind: input, shape index: {}]   ;;  %s2774_s3 = inlined_call_operand.vmem [shape: bf16[2,8,8,128], index: 3, kind: output, shape index: {}]  }
   0x1   :  { %s2180_s14 = smov 0   ;;  %s2182_s15 = smov 0  }
   0x2   :  { %s2184_s16 = smov 0  }
   0x3 LB: > { %s25_s17 = sadd.s32 1, %s2145_s14  ;;  %s32_s18 = sadd.s32 1, %s2149_s15  ;;  %s2153_s16 = sphi %s2184_s16, %s13_s16   ;;  %s2149_s15 = sphi %s2182_s15, %s2779_s15   ;;  %s2145_s14 = sphi %s2180_s14, %s2778_s14   ;;  %s2141_s13 = sphi %s2178_s13, %s2777_s13   ;;  %s2137_s12 = sphi %s2176_s12, %s2776_s12  }
   0x4   : > { %p26_p0 = scmp.ge.s32.totalorder %s25_s17, 2  ;;  %p1719_p1 = scmp.ge.s32.totalorder %s2153_s16, 1 }
   0x5   : > { %p177_p2 = scmp.lt.s32.totalorder %s2153_s16, 5 }
   0x6   : > { %s2781_s17 = smov (%p26_p0, %s25_s17), 0  ;;  %s2783_s18 = smov (!%p26_p0, %s32_s18), %s2149_s15 }
   0x7   : > { %p178_p3 = pnand %p1719_p1, %p177_p2  ;;  %p34_p4 = scmp.ge.s32.totalorder %s2783_s18, 2 }
   0x8   : > { %p215_p5 = scmp.lt.s32.totalorder (!%p178_p3), %s2141_s13, 1  ;;  %s2017_s25 = smul.u32 (!%p178_p3), 96, %s2137_s12 }
   0x9   : > { %s2785_s18 = smov (%p34_p4, %s2783_s18), 0  ;;  %181 = sbr.rel (%p178_p3) target bundleno = 482 (0x1e2), region = 32 }
   0xa   : > { %s2155_s21 = smov (!%p178_p3), 64   ;;  %s1721_s24 = sshll.u32 (!%p178_p3), %s2137_s12, 2 }
   0xb   : > { %p2668_p6 = scmp.lt.s32.totalorder (!%p178_p3), %s1721_s24, 7 }
   0xe   : > { %v2211_v0 = vld [vmem:[%s2772_s1 + $0x58] sm:$0xff]  ;;  %s2787_s13 = smov (!%p215_p5, %s2141_s13), 1  ;;  %v2224_v2 = vld [vmem:[%s2772_s1 + $0x50] sm:$0xff]  ;;  %v2241_v4 = vld [vmem:[%s2772_s1 + $0x48] sm:$0xff]  ;;  %vm355_vm0 = vsmask.f32 7424 }
   0xf   : > { %v2216_v1 = vld [vmem:[%s2772_s1 + $0xb8] sm:$0xff]  ;;  %2068 = vmatpush.bf16.msra.mxu3 %v2211_v0  ;;  %v2231_v3 = vld [vmem:[%s2772_s1 + $0xb0] sm:$0xff]  ;;  %s2072_s28 = smul.u32 216, %s2787_s13  ;;  %v2249_v5 = vld [vmem:[%s2772_s1 + $0xa8] sm:$0xff]  ;;  %vm496_vm1 = vcmask 1046528   ;;  %vm527_vm2 = vcmask 523264  }
  0x10   : > { %2064 = vmatpush.bf16.msra.mxu1 %v2216_v1  ;;  %v2270_v17 = vld [vmem:[%s2772_s1 + $0x40] sm:$0xff]  ;;  %vm1513_vm3 = vcmask 1041409   ;;  %vm1516_vm4 = vcmask 1042434   ;;  %s2789_s24 = smov (!%p2668_p6, %s1721_s24), 7  ;;  %vm1519_vm5 = vcmask 1043459   ;;  %s1722_s12 = sshll.u32 %s2787_s13, 3 }
  0x11   : > { %s219_s4 = scalar_lea.vmem %s2771_s0, %s2072_s28  ;;  %v2283_v23 = vld [vmem:[%s2772_s1 + $0xa0] sm:$0xff]  ;;  %vm1522_vm6 = vcmask 1044484   ;;  %s236_s26 = sadd.s32 %s1722_s12, %s2789_s24  ;;  %vm1525_vm7 = vcmask 1045509   ;;  %vm1528_vm8 = vcmask 1046534   ;;  %vm1531_vm9 = vcmask 1047559  }
  0x12   : > { %s2243_s7 = scalar_lea.vmem %s219_s4, %s2017_s25  ;;  %s1723_s13 = sshll.u32 %s236_s26, 2 }
  0x13   : > { %2069 = vmatpush.bf16.msra.mxu3 %v2224_v2  ;;  %v2252_v6 = vld [vmem:[%s2243_s7] sm:$0xff]  ;;  %v247_v7 = vld [vmem:[%s2243_s7 + $0x8] sm:$0x1]  ;;  %v2256_v8 = vld [vmem:[%s2243_s7 + $0xc] sm:$0xff]  ;;  %s2691_s29 = scalar_lea.vmem %s2774_s3, %s1723_s13 }
  0x14   : > { %2065 = vmatpush.bf16.msra.mxu1 %v2231_v3  ;;  %v335_v9 = vunpack.c.l.b16 %v247_v7  ;;  %v250_v10 = vld [vmem:[%s2243_s7 + $0x14] sm:$0x1]  ;;  %v2260_v11 = vld [vmem:[%s2243_s7 + $0x18] sm:$0xff]  ;;  %v253_v12 = vld [vmem:[%s2243_s7 + $0x20] sm:$0x1]  ;;  %v357_v13 = vshrl.u32 %v2252_v6, 16 }
  0x15   : > { %v359_v14 = vshll.u32 %v2252_v6, 16  ;;  %v336_v15 = vunpack.c.l.b16 %v250_v10  ;;  %v256_v16 = vld [vmem:[%s2243_s7 + $0x2c] sm:$0x1]  ;;  %v371_v19 = vshll.u32 %v2256_v8, 16  ;;  %v337_v20 = vunpack.c.l.b16 %v253_v12  ;;  %v2277_v22 = vld [vmem:[%s2243_s7 + $0x24] sm:$0xff]  ;;  %v2294_v35 = vld [vmem:[%s2243_s7 + $0x30] sm:$0xff] }
  0x16   : > { %v2272_v18 = vpack.c.b16 %v335_v9, %v335_v9  ;;  %v381_v21 = vshrl.u32 %v2260_v11, 16  ;;  %v383_v26 = vshll.u32 %v2260_v11, 16  ;;  %v338_v27 = vunpack.c.l.b16 %v256_v16  ;;  %v259_v40 = vld [vmem:[%s2243_s7 + $0x38] sm:$0x1]  ;;  %v262_v49 = vld [vmem:[%s2243_s7 + $0x44] sm:$0x1] }
  0x17   : > { %2070 = vmatpush.bf16.msra.mxu3 %v2241_v4  ;;  %v361_v24 = vrot.slane %v359_v14, 1  ;;  %v2285_v25 = vpack.c.b16 %v336_v15, %v336_v15  ;;  %v369_v29 = vshrl.u32 %v2256_v8, 16  ;;  %v2290_v30 = vpack.c.b16 %v337_v20, %v337_v20  ;;  %v2317_v60 = vld [vmem:[%s2243_s7 + $0x48] sm:$0xff]  ;;  %v265_v61 = vld [vmem:[%s2243_s7 + $0x50] sm:$0x1]  ;;  %v2329_v20 = vld [vmem:[%s2243_s7 + $0x3c] sm:$0xff] }
  0x18   : > { %2066 = vmatpush.bf16.msra.mxu1 %v2249_v5  ;;  %v364_v28 = vshll.u32 %v2272_v18, 16  ;;  %v373_v32 = vrot.slane %v371_v19, 1  ;;  %v385_v33 = vrot.slane %v383_v26, 1  ;;  %v348_v34 = vpack.c.b16 %v338_v27, %v338_v27 }
  0x19   : > { %v362_v31 = vor.u32 %v361_v24, %v357_v13  ;;  %v376_v37 = vshll.u32 %v2285_v25, 16  ;;  %v388_v38 = vshll.u32 %v2290_v30, 16  ;;  %v395_v39 = vshll.u32 %v2277_v22, 16 }
  0x1a   : > { %v366_v36 = vrot.slane %v364_v28, 1  ;;  %v386_v41 = vor.u32 %v385_v33, %v381_v21  ;;  %v393_v42 = vshrl.u32 %v2277_v22, 16  ;;  %v400_v43 = vshll.u32 %v348_v34, 16 }
  0x1b   : > { %2071 = vmatpush.bf16.msra.mxu3 %v2270_v17  ;;  %v506_v44 = vrot.slane %v2277_v22, 1  ;;  %v390_v46 = vrot.slane %v388_v38, 1  ;;  %v397_v47 = vrot.slane %v395_v39, 1  ;;  %v507_v48 = vrot.slane %v348_v34, 1  ;;  %v2034_v39 = vld [vmem:[%s2772_s1 + $0x30] sm:$0xff] }
  0x1c   : > { %2067 = vmatpush.bf16.msra.mxu1 %v2283_v23  ;;  %v367_v45 = vsel %vm355_vm0, %v362_v31, %v366_v36  ;;  %v374_v50 = vor.u32 %v373_v32, %v369_v29  ;;  %v339_v51 = vunpack.c.l.b16 %v259_v40  ;;  %v378_v52 = vrot.slane %v376_v37, 1  ;;  %v2035_v31 = vld [vmem:[%s2772_s1 + $0x38] sm:$0xff] }
  0x1d   : > { %476 = vrot.lane.b32.xlu0 %v367_v45, %s2155_s21  ;;  %v391_v53 = vsel %vm355_vm0, %v386_v41, %v390_v46  ;;  %v2308_v54 = vsel %vm496_vm1, %v506_v44, %v507_v48  ;;  %v509_v55 = vrot.slane %v2294_v35, 1  ;;  %v340_v57 = vunpack.c.l.b16 %v262_v49  ;;  %876 = vmatpush.bf16.msra.mxu2 %v2035_v31  ;;  %v2358_v48 = vld [vmem:[%s2243_s7 + $0x54] sm:$0xff]  ;;  %v268_v49 = vld [vmem:[%s2243_s7 + $0x5c] sm:$0x1]  ;;  %v2056_v31 = vld [vmem:[%s2772_s1 + $0xe0] sm:$0xff] }
  0x1e   : > { %480 = vrot.lane.b32.xlu1 %v391_v53, %s2155_s21  ;;  %1898 = vmatmul.msk.bf16.vlgmr.msra.gmra.mxu3 %vm527_vm2, %v2308_v54  ;;  %v349_v56 = vpack.c.b16 %v339_v51, %v339_v51  ;;  %v405_v58 = vshrl.u32 %v2294_v35, 16  ;;  %v407_v59 = vshll.u32 %v2294_v35, 16  ;;  %v398_v62 = vor.u32 %v397_v47, %v393_v42  ;;  %v2063_v47 = vld [vmem:[%s2772_s1 + $0x118] sm:$0xff] }
  0x1f   : > { %v402_v63 = vrot.slane %v400_v43, 1  ;;  %v341_v7 = vunpack.c.l.b16 %v265_v61  ;;  %v379_v13 = vsel %vm355_vm0, %v374_v50, %v378_v52  ;;  %v429_v15 = vshrl.u32 %v2317_v60, 16  ;;  %v2047_v51 = vld [vmem:[%s2772_s1 + $0x98] sm:$0xff]  ;;  %v2033_v52 = vld [vmem:[%s2772_s1 + $0x28] sm:$0xff]  ;;  %1127 = vmatpush.bf16.msrb.mxu3 %v2063_v47 }
  0x20   : > { %v510_v9 = vrot.slane %v349_v56, 1  ;;  %v409_v10 = vrot.slane %v407_v59, 1  ;;  %v412_v12 = vshll.u32 %v349_v56, 16  ;;  %v431_v16 = vshll.u32 %v2317_v60, 16  ;;  %703 = vmatpush.bf16.msra.mxu0 %v2047_v51  ;;  %v2059_v61 = vld [vmem:[%s2772_s1 + $0xf8] sm:$0xff]  ;;  %v2468_v47 = vld [vmem:[%s2243_s7 + $0x6c] sm:$0xff] }
  0x21   : > { %v2321_v14 = vpack.c.b16 %v341_v7, %v341_v7  ;;  %v350_v21 = vpack.c.b16 %v340_v57, %v340_v57  ;;  %v403_v27 = vsel %vm355_vm0, %v398_v62, %v402_v63  ;;  %v417_v33 = vshrl.u32 %v2329_v20, 16  ;;  %877 = vmatpush.bf16.msra.mxu2 %v2034_v39  ;;  %v2046_v62 = vld [vmem:[%s2772_s1 + $0x90] sm:$0xff]  ;;  %v2032_v63 = vld [vmem:[%s2772_s1 + $0x20] sm:$0xff]  ;;  %1074 = vmatpush.bf16.msrb.mxu1 %v2059_v61 }
  0x22   : > { %v2326_v19 = vsel %vm496_vm1, %v509_v55, %v510_v9  ;;  %v410_v24 = vor.u32 %v409_v10, %v405_v58  ;;  %v414_v26 = vrot.slane %v412_v12, 1  ;;  %v433_v28 = vrot.slane %v431_v16, 1  ;;  %v2045_v10 = vld [vmem:[%s2772_s1 + $0x88] sm:$0xff]  ;;  %v2058_v12 = vld [vmem:[%s2772_s1 + $0xf0] sm:$0xff]  ;;  %v2044_v16 = vld [vmem:[%s2772_s1 + $0x80] sm:$0xff] }
  0x23   : > { %1842 = vmatmul.msk.bf16.vlgmr.msra.gmra.mxu1 %vm527_vm2, %v2326_v19  ;;  %v436_v29 = vshll.u32 %v2321_v14, 16  ;;  %v419_v34 = vshll.u32 %v2329_v20, 16  ;;  %v424_v36 = vshll.u32 %v350_v21, 16  ;;  %v512_v45 = vrot.slane %v2329_v20, 1 }
  0x24   : > { %v415_v32 = vsel %vm355_vm0, %v410_v24, %v414_v26  ;;  %v434_v37 = vor.u32 %v433_v28, %v429_v15  ;;  %v513_v46 = vrot.slane %v350_v21, 1  ;;  %v342_v50 = vunpack.c.l.b16 %v268_v49  ;;  %704 = vmatpush.bf16.msra.mxu0 %v2046_v62  ;;  %v2057_v21 = vld [vmem:[%s2772_s1 + $0xe8] sm:$0xff]  ;;  %v2030_v24 = vld [vmem:[%s2772_s1 + $0x10] sm:$0xff]  ;;  %v2043_v28 = vld [vmem:[%s2772_s1 + $0x78] sm:$0xff] }
  0x25   : > { %478 = vrot.lane.b32.xlu0 %v379_v13, %s2155_s21  ;;  %484 = vrot.lane.b32.xlu2 %v415_v32, %s2155_s21  ;;  %v438_v38 = vrot.slane %v436_v29, 1  ;;  %v421_v40 = vrot.slane %v419_v34, 1  ;;  %v426_v41 = vrot.slane %v424_v36, 1  ;;  %v441_v55 = vshrl.u32 %v2358_v48, 16  ;;  %v2031_v13 = vld [vmem:[%s2772_s1 + $0x18] sm:$0xff]  ;;  %v2029_v29 = vld [vmem:[%s2772_s1 + $0x8] sm:$0xff] }
  0x26   : > { %482 = vrot.lane.b32.xlu1 %v403_v27, %s2155_s21  ;;  %v2368_v53 = vsel %vm496_vm1, %v512_v45, %v513_v46  ;;  %v443_v56 = vshll.u32 %v2358_v48, 16  ;;  %v352_v57 = vpack.c.b16 %v342_v50, %v342_v50  ;;  %878 = vmatpush.bf16.msra.mxu2 %v2033_v52  ;;  %v515_v26 = vrot.slane %v2317_v60, 1  ;;  %v2028_v34 = vld [vmem:[%s2772_s1] sm:$0xff]  ;;  %v2055_v36 = vld [vmem:[%s2772_s1 + $0xd8] sm:$0xff]  ;;  %v2041_v45 = vld [vmem:[%s2772_s1 + $0x68] sm:$0xff] }
  0x27   : > { %v422_v42 = vor.u32 %v421_v40, %v417_v33  ;;  %v439_v43 = vsel %vm355_vm0, %v434_v37, %v438_v38  ;;  %1075 = vmatpush.bf16.msrb.mxu1 %v2058_v12  ;;  %v516_v27 = vrot.slane %v2321_v14, 1  ;;  %v2062_v14 = vld [vmem:[%s2772_s1 + $0x110] sm:$0xff]  ;;  %v518_v37 = vrot.slane %v2358_v48, 1  ;;  %v271_v40 = vld [vmem:[%s2243_s7 + $0x68] sm:$0x1]  ;;  %v2060_v50 = vld [vmem:[%s2772_s1 + $0x100] sm:$0xff] }
  0x28   : > { %v445_v58 = vrot.slane %v443_v56, 1  ;;  %v448_v59 = vshll.u32 %v352_v57, 16  ;;  %705 = vmatpush.bf16.msra.mxu0 %v2045_v10  ;;  %1128 = vmatpush.bf16.msrb.mxu3 %v2062_v14  ;;  %v2042_v33 = vld [vmem:[%s2772_s1 + $0x70] sm:$0xff]  ;;  %v519_v38 = vrot.slane %v352_v57, 1  ;;  %v503_v51 = vrot.slane %v2260_v11, 1  ;;  %v2053_v56 = vld [vmem:[%s2772_s1 + $0xc8] sm:$0xff] }
  0x29   : > { %v427_v44 = vsel %vm355_vm0, %v422_v42, %v426_v41  ;;  %v2420_v32 = vsel %vm496_vm1, %v515_v26, %v516_v27  ;;  %v2054_v46 = vld [vmem:[%s2772_s1 + $0xd0] sm:$0xff]  ;;  %v504_v52 = vrot.slane %v2290_v30, 1  ;;  %v465_v30 = vshrl.u32 %v2468_v47, 16  ;;  %v2052_v10 = vld [vmem:[%s2772_s1 + $0xc0] sm:$0xff] }
  0x2a   : > { %v446_v7 = vor.u32 %v445_v58, %v441_v55  ;;  %v450_v9 = vrot.slane %v448_v59, 1  ;;  %879 = vmatpush.bf16.msra.mxu2 %v2032_v63  ;;  %v2440_v39 = vsel %vm496_vm1, %v518_v37, %v519_v38  ;;  %v2040_v55 = vld [vmem:[%s2772_s1 + $0x60] sm:$0xff]  ;;  %v467_v58 = vshll.u32 %v2468_v47, 16 }
  0x2b   : > { %1076 = vmatpush.bf16.msrb.mxu1 %v2057_v21  ;;  %v2485_v59 = vsel %vm496_vm1, %v503_v51, %v504_v52 }
  0x2c   : > { %v451_v15 = vsel %vm355_vm0, %v446_v7, %v450_v9  ;;  %706 = vmatpush.bf16.msra.mxu0 %v2044_v16  ;;  %v469_v61 = vrot.slane %v467_v58, 1 }
  0x2d   : > { %488 = vrot.lane.b32.xlu0 %v439_v43, %s2155_s21  ;;  %486 = vrot.lane.b32.xlu2 %v427_v44, %s2155_s21  ;;  %v274_v44 = vld [vmem:[%s2243_s7 + $0x74] sm:$0x1] }
  0x2e   : > { %1899 = vmatmul.msk.bf16.gmra.mxu3 %vm527_vm2, %v2326_v19  ;;  %490 = vrot.lane.b32.xlu1 %v451_v15, %s2155_s21  ;;  %v344_v49 = vunpack.c.l.b16 %v274_v44  ;;  %v470_v63 = vor.u32 %v469_v61, %v465_v30 }
  0x2f   : > { %880 = vmatpush.bf16.msra.mxu2 %v2031_v13  ;;  %1077 = vmatpush.bf16.msrb.mxu1 %v2056_v31 }
  0x30   : > { %707 = vmatpush.bf16.msra.mxu0 %v2043_v28  ;;  %v2481_v57 = vpack.c.b16 %v344_v49, %v344_v49 }
  0x32   : > { %v472_v62 = vshll.u32 %v2481_v57, 16 }
  0x33   : > { %1843 = vmatmul.msk.bf16.gmra.mxu1 %vm527_vm2, %v2368_v53  ;;  %881 = vmatpush.bf16.msra.mxu2 %v2030_v24 }
  0x34   : > { %708 = vmatpush.bf16.msra.mxu0 %v2042_v33  ;;  %1078 = vmatpush.bf16.msrb.mxu1 %v2055_v36  ;;  %v474_v7 = vrot.slane %v472_v62, 1 }
  0x36   : > { %v475_v9 = vsel %vm355_vm0, %v470_v63, %v474_v7  ;;  %v498_v63 = vrot.slane %v2272_v18, 1 }
  0x37   : > { %882 = vmatpush.bf16.msra.mxu2 %v2029_v29  ;;  %494 = vrot.lane.b32.xlu0 %v475_v9, %s2155_s21 }
  0x38   : > { %709 = vmatpush.bf16.msra.mxu0 %v2041_v45  ;;  %1079 = vmatpush.bf16.msrb.mxu1 %v2054_v46  ;;  %v524_v45 = vrot.slane %v2468_v47, 1  ;;  %v525_v46 = vrot.slane %v2481_v57, 1 }
  0x3a   : > { %v526_v49 = vsel %vm496_vm1, %v524_v45, %v525_v46 }
  0x3b   : > { %883 = vmatpush.bf16.msra.mxu2 %v2028_v34 }
  0x3c   : > { %710 = vmatpush.bf16.msra.mxu0 %v2040_v55  ;;  %1080 = vmatpush.bf16.msrb.mxu1 %v2053_v56 }
  0x3e   : > { %1900 = vmatmul.msk.bf16.gmra.mxu3 %vm527_vm2, %v2368_v53 }
  0x3f   : > { %929 = vmatpush.bf16.msrb.mxu2 %v2211_v0  ;;  %v343_v0 = vunpack.c.l.b16 %v271_v40 }
  0x40   : > { %756 = vmatpush.bf16.msrb.mxu0 %v2216_v1  ;;  %1081 = vmatpush.bf16.msrb.mxu1 %v2052_v10 }
  0x41   : > { %v353_v41 = vpack.c.b16 %v343_v0, %v343_v0 }
  0x43   : > { %1844 = vmatmul.msk.bf16.gmra.mxu1 %vm527_vm2, %v2420_v32  ;;  %930 = vmatpush.bf16.msrb.mxu2 %v2224_v2  ;;  %v2447_v2 = vld [vmem:[%s2243_s7 + $0x60] sm:$0xff]  ;;  %v522_v43 = vrot.slane %v353_v41, 1  ;;  %v460_v15 = vshll.u32 %v353_v41, 16 }
  0x44   : > { %v521_v42 = vrot.slane %v2447_v2, 1  ;;  %v453_v12 = vshrl.u32 %v2447_v2, 16  ;;  %v455_v13 = vshll.u32 %v2447_v2, 16  ;;  %757 = vmatpush.bf16.msrb.mxu0 %v2231_v3 }
  0x45   : > { %v462_v21 = vrot.slane %v460_v15, 1 }
  0x46   : > { %v457_v16 = vrot.slane %v455_v13, 1  ;;  %v501_v13 = vrot.slane %v2285_v25, 1 }
  0x47   : > { %931 = vmatpush.bf16.msrb.mxu2 %v2241_v4  ;;  %v2453_v4 = vsel %vm496_vm1, %v521_v42, %v522_v43 }
  0x48   : > { %v458_v24 = vor.u32 %v457_v16, %v453_v12  ;;  %758 = vmatpush.bf16.msrb.mxu0 %v2249_v5 }
  0x4a   : > { %v463_v1 = vsel %vm355_vm0, %v458_v24, %v462_v21 }
  0x4b   : > { %932 = vmatpush.bf16.msrb.mxu2 %v2270_v17  ;;  %v2061_v17 = vld [vmem:[%s2772_s1 + $0x108] sm:$0xff]  ;;  %492 = vrot.lane.b32.xlu2 %v463_v1, %s2155_s21 }
  0x4c   : > { %1129 = vmatpush.bf16.msrb.mxu3 %v2061_v17  ;;  %759 = vmatpush.bf16.msrb.mxu0 %v2283_v23 }
  0x4e   : > { %1901 = vmatmul.msk.bf16.gmra.mxu3 %vm527_vm2, %v2420_v32 }
  0x50   : > { %1130 = vmatpush.bf16.msrb.mxu3 %v2060_v50 }
  0x53   : > { %1845 = vmatmul.msk.bf16.gmra.mxu1 %vm527_vm2, %v2440_v39 }
  0x5e   : > { %1902 = vmatmul.msk.bf16.gmra.mxu3 %vm527_vm2, %v2440_v39 }
  0x63   : > { %1846 = vmatmul.msk.bf16.gmra.mxu1 %vm527_vm2, %v2453_v4 }
  0x6e   : > { %1975 = vmatmul.msk.bf16.vlgmr.msrb.gmra.mxu3 %vm527_vm2, %v2485_v59 }
  0x7e   : > { %1976 = vmatmul.msk.bf16.gmra.mxu3 %vm527_vm2, %v2308_v54 }
  0x7f   : > { %v485_v33 = vpop.permute.xlu2 %484 }
  0x8e   : > { %1977 = vmatmul.msk.bf16.gmra.mxu3 %vm527_vm2, %v2326_v19  ;;  %v541_v19 = vsel %vm527_vm2, %v2294_v35, %v485_v33 }
  0x8f   : > { %v477_v26 = vpop.permute.xlu0 %476 }
  0x90   : > { %v529_v27 = vsel %vm527_vm2, %v2252_v6, %v477_v26  ;;  %v481_v28 = vpop.permute.xlu1 %480 }
  0x91   : > { %884 = vmatmul.bf16.vlgmr.msra.gmra.mxu2 %v529_v27  ;;  %v535_v3 = vsel %vm527_vm2, %v2260_v11, %v481_v28 }
  0x92   : > { %1082 = vmatmul.bf16.vlgmr.msrb.gmra.mxu1 %v535_v3 }
  0x97   : > { %v479_v29 = vpop.permute.xlu0 %478 }
  0x98   : > { %v532_v5 = vsel %vm527_vm2, %v2256_v8, %v479_v29  ;;  %v483_v23 = vpop.permute.xlu1 %482 }
  0x99   : > { %711 = vmatmul.bf16.vlgmr.msra.gmra.mxu0 %v532_v5  ;;  %v538_v31 = vsel %vm527_vm2, %v2277_v22, %v483_v23 }
  0x9e   : > { %1978 = vmatmul.msk.bf16.gmra.mxu3 %vm527_vm2, %v2368_v53  ;;  %v487_v53 = vpop.permute.xlu2 %486 }
  0x9f   : > { %v544_v37 = vsel %vm527_vm2, %v2329_v20, %v487_v53  ;;  %v489_v0 = vpop.permute.xlu0 %488 }
  0xa0   : > { %v2520_v14 = vpop.f32.mrf.mxu1  ;;  %v547_v41 = vsel %vm527_vm2, %v2317_v60, %v489_v0  ;;  %v491_v43 = vpop.permute.xlu1 %490 }
  0xa1   : > { %889 = vmatmul.bf16.gmra.mxu2 %v532_v5  ;;  %v2518_v11 = vpop.f32.mrf.mxu3  ;;  %v550_v44 = vsel %vm527_vm2, %v2358_v48, %v491_v43 }
  0xa2   : > { %1087 = vmatmul.bf16.gmra.mxu1 %v538_v31 }
  0xa6   : > { %v493_v51 = vpop.permute.xlu2 %492 }
  0xa7   : > { %v553_v48 = vsel %vm527_vm2, %v2447_v2, %v493_v51  ;;  %v497_v2 = vrot.slane %v2252_v6, 1 }
  0xa8   : > { %v2526_v36 = vpop.f32.mrf.mxu1 }
  0xa9   : > { %716 = vmatmul.bf16.gmra.mxu0 %v535_v3  ;;  %v2524_v34 = vpop.f32.mrf.mxu3  ;;  %v495_v58 = vpop.permute.xlu0 %494  ;;  %v499_v9 = vsel %vm496_vm1, %v497_v2, %v498_v63 }
  0xaa   : > { %v556_v30 = vsel %vm527_vm2, %v2468_v47, %v495_v58  ;;  %v500_v47 = vrot.slane %v2256_v8, 1 }
  0xac   : > { %v502_v6 = vsel %vm496_vm1, %v500_v47, %v501_v13 }
  0xae   : > { %1979 = vmatmul.msk.bf16.gmra.mxu3 %vm527_vm2, %v2420_v32 }
  0xb0   : > { %v2534_v38 = vpop.f32.mrf.mxu1 }
  0xb1   : > { %894 = vmatmul.bf16.gmra.mxu2 %v535_v3  ;;  %v2530_v22 = vpop.f32.mrf.mxu3 }
  0xb2   : > { %1092 = vmatmul.bf16.gmra.mxu1 %v541_v19 }
  0xb8   : > { %v2542_v32 = vpop.f32.mrf.mxu1 }
  0xb9   : > { %721 = vmatmul.bf16.gmra.mxu0 %v538_v31  ;;  %v2536_v35 = vpop.f32.mrf.mxu3 }
  0xbe   : > { %1980 = vmatmul.msk.bf16.gmra.mxu3 %vm527_vm2, %v2440_v39 }
  0xc0   : > { %v2548_v42 = vpop.f32.mrf.mxu1 }
  0xc1   : > { %899 = vmatmul.bf16.gmra.mxu2 %v538_v31  ;;  %v2540_v40 = vpop.f32.mrf.mxu3 }
  0xc2   : > { %1097 = vmatmul.bf16.gmra.mxu1 %v544_v37 }
  0xc8   : > { %v2554_v17 = vpop.f32.mrf.mxu1 }
  0xc9   : > { %726 = vmatmul.bf16.gmra.mxu0 %v541_v19  ;;  %v2546_v20 = vpop.f32.mrf.mxu3 }
  0xce   : > { %1981 = vmatmul.msk.bf16.gmra.mxu3 %vm527_vm2, %v2453_v4 }
  0xd0   : > { %v2564_v4 = vpop.f32.mrf.mxu1 }
  0xd1   : > { %904 = vmatmul.bf16.gmra.mxu2 %v541_v19  ;;  %v2552_v39 = vpop.f32.mrf.mxu3 }
  0xd2   : > { %1102 = vmatmul.bf16.gmra.mxu1 %v547_v41 }
  0xd8   : > { %v2572_v55 = vpop.f32.mrf.mxu1 }
  0xd9   : > { %731 = vmatmul.bf16.gmra.mxu0 %v544_v37  ;;  %v2558_v60 = vpop.f32.mrf.mxu3 }
  0xde   : > { %1982 = vmatmul.msk.bf16.gmra.mxu3 %vm527_vm2, %v526_v49 }
  0xe0   : > { %v2574_v57 = vpop.f32.mrf.mxu1 }
  0xe1   : > { %909 = vmatmul.bf16.gmra.mxu2 %v544_v37  ;;  %v2566_v50 = vpop.f32.mrf.mxu3 }
  0xe2   : > { %1107 = vmatmul.bf16.gmra.mxu1 %v550_v44 }
  0xe8   : > { %v2578_v62 = vpop.f32.mrf.mxu1 }
  0xe9   : > { %736 = vmatmul.bf16.gmra.mxu0 %v547_v41  ;;  %v2570_v52 = vpop.f32.mrf.mxu3 }
  0xf1   : > { %914 = vmatmul.bf16.gmra.mxu2 %v547_v41  ;;  %v1132_v56 = vpop.f32.mrf.mxu3 }
  0xf2   : > { %1112 = vmatmul.bf16.gmra.mxu1 %v553_v48 }
  0xf9   : > { %741 = vmatmul.bf16.gmra.mxu0 %v550_v44  ;;  %v1134_v61 = vpop.f32.mrf.mxu3 }
 0x101   : > { %919 = vmatmul.bf16.gmra.mxu2 %v550_v44  ;;  %v1137_v7 = vpop.f32.mrf.mxu3 }
 0x102   : > { %1117 = vmatmul.bf16.gmra.mxu1 %v556_v30 }
 0x109   : > { %746 = vmatmul.bf16.gmra.mxu0 %v553_v48  ;;  %v1139_v21 = vpop.f32.mrf.mxu3 }
 0x10f   : > { %v1083_v10 = vpop.f32.mrf.mxu1 }
 0x110   : > { %v2584_v12 = vadd.f32 %v1132_v56, %v1083_v10 }
 0x111   : > { %1895 = vmatmul.msk.bf16.vlgmr.msrb.gmra.mxu2 %vm527_vm2, %v499_v9  ;;  %v1142_v25 = vpop.f32.mrf.mxu3 }
 0x114   : > { %v2588_v15 = vpop.f32.mrf.mxu2 }
 0x116   : > { %v2590_v16 = vpop.f32.mrf.mxu0 }
 0x117   : > { %v1085_v18 = vpop.f32.mrf.mxu1 }
 0x118   : > { %v2594_v24 = vadd.f32 %v1134_v61, %v1085_v18 }
 0x119   : > { %1839 = vmatmul.msk.bf16.vlgmr.msrb.gmra.mxu0 %vm527_vm2, %v502_v6  ;;  %v1144_v23 = vpop.f32.mrf.mxu3 }
 0x11c   : > { %v2596_v1 = vpop.f32.mrf.mxu2 }
 0x11e   : > { %v2598_v26 = vpop.f32.mrf.mxu0 }
 0x11f   : > { %v1088_v27 = vpop.f32.mrf.mxu1 }
 0x120   : > { %v2601_v8 = vadd.f32 %v1137_v7, %v1088_v27 }
 0x121   : > { %1896 = vmatmul.msk.bf16.gmra.mxu2 %vm527_vm2, %v502_v6  ;;  %v1147_v0 = vpop.f32.mrf.mxu3 }
 0x124   : > { %v2603_v28 = vpop.f32.mrf.mxu2 }
 0x126   : > { %v2605_v3 = vpop.f32.mrf.mxu0 }
 0x127   : > { %v1090_v29 = vpop.f32.mrf.mxu1 }
 0x128   : > { %v2609_v5 = vadd.f32 %v1139_v21, %v1090_v29 }
 0x129   : > { %1840 = vmatmul.msk.bf16.gmra.mxu0 %vm527_vm2, %v2485_v59  ;;  %v1149_v49 = vpop.f32.mrf.mxu3 }
 0x12c   : > { %v2611_v31 = vpop.f32.mrf.mxu2 }
 0x12e   : > { %v2613_v33 = vpop.f32.mrf.mxu0 }
 0x12f   : > { %v1093_v19 = vpop.f32.mrf.mxu1 }
 0x130   : > { %v2617_v53 = vadd.f32 %v1142_v25, %v1093_v19 }
 0x131   : > { %1897 = vmatmul.msk.bf16.gmra.mxu2 %vm527_vm2, %v2485_v59  ;;  %v1152_v63 = vpop.f32.mrf.mxu3 }
 0x134   : > { %v2619_v37 = vpop.f32.mrf.mxu2 }
 0x136   : > { %v2621_v41 = vpop.f32.mrf.mxu0 }
 0x137   : > { %v1095_v43 = vpop.f32.mrf.mxu1 }
 0x138   : > { %v2625_v44 = vadd.f32 %v1144_v23, %v1095_v43 }
 0x139   : > { %1841 = vmatmul.msk.bf16.gmra.mxu0 %vm527_vm2, %v2308_v54  ;;  %v1154_v18 = vpop.f32.mrf.mxu3 }
 0x13c   : > { %v2627_v45 = vpop.f32.mrf.mxu2 }
 0x13e   : > { %v2629_v46 = vpop.f32.mrf.mxu0 }
 0x13f   : > { %v1098_v51 = vpop.f32.mrf.mxu1 }
 0x140   : > { %v1148_v59 = vadd.f32 %v1147_v0, %v1098_v51 }
 0x144   : > { %v900_v48 = vpop.f32.mrf.mxu2 }
 0x146   : > { %v727_v56 = vpop.f32.mrf.mxu0 }
 0x147   : > { %v777_v58 = vadd.f32 %v2520_v14, %v727_v56  ;;  %v1100_v30 = vpop.f32.mrf.mxu1 }
 0x148   : > { %v1150_v2 = vadd.f32 %v1149_v49, %v1100_v30 }
 0x149   : > { %v901_v61 = vadd.f32 %v900_v48, %v777_v58 }
 0x14b   : > { %v950_v7 = vadd.f32 %v2518_v11, %v901_v61  ;;  %v1157_v11 = vpop.f32.mrf.mxu3 }
 0x14c   : > { %v902_v54 = vpop.f32.mrf.mxu2 }
 0x14d   : > { %v2633_v9 = vadd.f32 %v1148_v59, %v950_v7 }
 0x14e   : > { %v729_v10 = vpop.f32.mrf.mxu0 }
 0x14f   : > { %v779_v47 = vadd.f32 %v2526_v36, %v729_v10  ;;  %v1103_v13 = vpop.f32.mrf.mxu1 }
 0x150   : > { %v1153_v59 = vadd.f32 %v1152_v63, %v1103_v13 }
 0x151   : > { %v903_v6 = vadd.f32 %v902_v54, %v779_v47 }
 0x153   : > { %v952_v21 = vadd.f32 %v2524_v34, %v903_v6  ;;  %v1159_v58 = vpop.f32.mrf.mxu3 }
 0x154   : > { %v905_v27 = vpop.f32.mrf.mxu2 }
 0x155   : > { %v2637_v25 = vadd.f32 %v1150_v2, %v952_v21 }
 0x156   : > { %v732_v14 = vpop.f32.mrf.mxu0 }
 0x157   : > { %v1105_v29 = vpop.f32.mrf.mxu1  ;;  %v782_v19 = vadd.f32 %v2534_v38, %v732_v14  ;;  %v2646_v38 = vld [vmem:[%s2773_s2] ss:$0 sm:$0xff] }
 0x159   : > { %v906_v49 = vadd.f32 %v905_v27, %v782_v19 }
 0x15b   : > { %v955_v36 = vadd.f32 %v2530_v22, %v906_v49 }
 0x15c   : > { %v907_v23 = vpop.f32.mrf.mxu2 }
 0x15d   : > { %v1180_v61 = vadd.f32 %v1153_v59, %v955_v36 }
 0x15e   : > { %v734_v0 = vpop.f32.mrf.mxu0 }
 0x15f   : > { %v1108_v43 = vpop.f32.mrf.mxu1  ;;  %v784_v48 = vadd.f32 %v2542_v32, %v734_v0  ;;  %v1200_v63 = vadd.f32 %v2646_v38, %v1180_v61 }
 0x160   : > { %v1158_v7 = vadd.f32 %v1157_v11, %v1108_v43  ;;  %v2655_v11 = vpop.f32.mrf.mxu3 }
 0x161   : > { %v908_v54 = vadd.f32 %v907_v23, %v784_v48  ;;  %v1216_v27 = vmax.f32 %v1200_v63, 0.0 }
 0x163   : > { %v957_v47 = vadd.f32 %v2536_v35, %v908_v54 }
 0x164   : > { %v910_v51 = vpop.f32.mrf.mxu2 }
 0x166   : > { %v737_v34 = vpop.f32.mrf.mxu0 }
 0x167   : > { %v787_v56 = vadd.f32 %v2548_v42, %v737_v34  ;;  %v1110_v30 = vpop.f32.mrf.mxu1  ;;  %v1155_v42 = vadd.f32 %v1154_v18, %v1105_v29 }
 0x168   : > { %v1160_v0 = vadd.f32 %v1159_v58, %v1110_v30 }
 0x169   : > { %v911_v2 = vadd.f32 %v910_v51, %v787_v56 }
 0x16b   : > { %v960_v10 = vadd.f32 %v2540_v40, %v911_v2  ;;  %v1181_v40 = vadd.f32 %v1155_v42, %v957_v47  ;;  %v2663_v42 = vpop.f32.mrf.mxu3 }
 0x16c   : > { %v912_v22 = vpop.f32.mrf.mxu2 }
 0x16d   : > { %v1182_v32 = vadd.f32 %v1158_v7, %v960_v10  ;;  %v1201_v59 = vadd.f32 %v2646_v38, %v1181_v40 }
 0x16e   : > { %v739_v13 = vpop.f32.mrf.mxu0 }
 0x16f   : > { %v1202_v6 = vadd.f32 %v2646_v38, %v1182_v32  ;;  %v789_v21 = vadd.f32 %v2554_v17, %v739_v13  ;;  %v2653_v19 = vpop.f32.mrf.mxu1 }
 0x171   : > { %v1218_v14 = vmax.f32 %v1202_v6, 0.0  ;;  %v913_v23 = vadd.f32 %v912_v22, %v789_v21 }
 0x173   : > { %v1228_v43 = vmax.f32 %v1216_v27, %v1218_v14  ;;  %v962_v49 = vadd.f32 %v2546_v20, %v913_v23  ;;  %v1217_v20 = vmax.f32 %v1201_v59, 0.0 }
 0x174   : > { %v915_v51 = vpop.f32.mrf.mxu2 }
 0x175   : > { %v1252_v35 = vrot.slane %v1228_v43, 2  ;;  %v1253_v18 = vrot.slane %v1228_v43, 4  ;;  %v1254_v29 = vrot.slane %v1228_v43, 6  ;;  %v1999_v36 = vrot.slane %v1228_v43, 9 }
 0x176   : > { %v1183_v17 = vadd.f32 %v1160_v0, %v962_v49  ;;  %v742_v48 = vpop.f32.mrf.mxu0 }
 0x177   : > { %v2000_v34 = vrot.slane %v1252_v35, 9  ;;  %v2001_v56 = vrot.slane %v1253_v18, 9  ;;  %v2002_v61 = vrot.slane %v1254_v29, 9  ;;  %v1400_v2 = vmax.f32 %v1228_v43, %v1999_v36  ;;  %v2661_v47 = vpop.f32.mrf.mxu1 }
 0x178   : > { %v1203_v7 = vadd.f32 %v2646_v38, %v1183_v17  ;;  %v792_v23 = vadd.f32 %v2564_v4, %v742_v48 }
 0x179   : > { %v1401_v58 = vmax.f32 %v1252_v35, %v2000_v34  ;;  %v1402_v30 = vmax.f32 %v1253_v18, %v2001_v56  ;;  %v1403_v54 = vmax.f32 %v1254_v29, %v2002_v61  ;;  %v1432_v22 = vpack.c.bf16 %v1400_v2, %v1400_v2 }
 0x17a   : > { %v1219_v10 = vmax.f32 %v1203_v7, 0.0  ;;  %v916_v48 = vadd.f32 %v915_v51, %v792_v23 }
 0x17b   : > { %v1433_v63 = vpack.c.bf16 %v1401_v58, %v1401_v58  ;;  %v1434_v32 = vpack.c.bf16 %v1402_v30, %v1402_v30  ;;  %v1435_v21 = vpack.c.bf16 %v1403_v54, %v1403_v54  ;;  %v1496_v18 = vunpack.c.l.b16 %v1432_v22 }
 0x17c   : > { %v1229_v13 = vmax.f32 %v1217_v20, %v1219_v10  ;;  %v2665_v6 = vpop.f32.mrf.mxu2  ;;  %v1163_v22 = vadd.f32 %v2655_v11, %v2653_v19 }
 0x17d   : > { %v1497_v27 = vunpack.c.l.b16 %v1433_v63  ;;  %v1498_v14 = vunpack.c.l.b16 %v1434_v32  ;;  %v1499_v56 = vunpack.c.l.b16 %v1435_v21  ;;  %v965_v21 = vadd.f32 %v2552_v39, %v916_v48 }
 0x17e   : > { %v1255_v40 = vrot.slane %v1229_v13, 2  ;;  %v1256_v0 = vrot.slane %v1229_v13, 4  ;;  %v1257_v43 = vrot.slane %v1229_v13, 6  ;;  %v2003_v49 = vrot.slane %v1229_v13, 9  ;;  %v744_v35 = vpop.f32.mrf.mxu0 }
 0x17f   : > { %v1547_v29 = vrot.slane %v1497_v27, 7  ;;  %v1549_v4 = vrot.slane %v1498_v14, 6  ;;  %v1551_v32 = vrot.slane %v1499_v56, 5  ;;  %v1118_v27 = vpop.f32.mrf.mxu1  ;;  %v1167_v14 = vpop.f32.mrf.mxu3 }
 0x180   : > { %v2004_v36 = vrot.slane %v1255_v40, 9  ;;  %v2005_v59 = vrot.slane %v1256_v0, 9  ;;  %v2006_v17 = vrot.slane %v1257_v43, 9  ;;  %v1404_v34 = vmax.f32 %v1229_v13, %v2003_v49 }
 0x181   : > { %v1548_v61 = vsel %vm1513_vm3, %v1547_v29, %v1496_v18 }
 0x182   : > { %v1405_v2 = vmax.f32 %v1255_v40, %v2004_v36  ;;  %v1406_v7 = vmax.f32 %v1256_v0, %v2005_v59  ;;  %v1407_v58 = vmax.f32 %v1257_v43, %v2006_v17  ;;  %v1436_v30 = vpack.c.bf16 %v1404_v34, %v1404_v34 }
 0x183   : > { %v1550_v51 = vsel %vm1516_vm4, %v1549_v4, %v1548_v61  ;;  %v794_v43 = vadd.f32 %v2572_v55, %v744_v35  ;;  %v1184_v59 = vadd.f32 %v1163_v22, %v965_v21  ;;  %v1168_v34 = vadd.f32 %v1167_v14, %v1118_v27 }
 0x184   : > { %v1437_v54 = vpack.c.bf16 %v1405_v2, %v1405_v2  ;;  %v1438_v20 = vpack.c.bf16 %v1406_v7, %v1406_v7  ;;  %v1439_v10 = vpack.c.bf16 %v1407_v58, %v1407_v58  ;;  %v920_v63 = vpop.f32.mrf.mxu2  ;;  %v1500_v13 = vunpack.c.l.b16 %v1436_v30 }
 0x185   : > { %v1552_v11 = vsel %vm1519_vm5, %v1551_v32, %v1550_v51  ;;  %v918_v35 = vadd.f32 %v2665_v6, %v794_v43  ;;  %v1204_v7 = vadd.f32 %v2646_v38, %v1184_v59  ;;  %v1165_v6 = vadd.f32 %v2663_v42, %v2661_v47 }
 0x186   : > { %v1501_v23 = vunpack.c.l.b16 %v1437_v54  ;;  %v1502_v40 = vunpack.c.l.b16 %v1438_v20  ;;  %v1503_v0 = vunpack.c.l.b16 %v1439_v10  ;;  %v747_v49 = vpop.f32.mrf.mxu0  ;;  %v1553_v18 = vrot.slane %v1500_v13, 4 }
 0x187   : > { %v797_v19 = vadd.f32 %v2574_v57, %v747_v49  ;;  %v967_v30 = vadd.f32 %v2558_v60, %v918_v35  ;;  %v1120_v10 = vpop.f32.mrf.mxu1  ;;  %v1169_v22 = vpop.f32.mrf.mxu3 }
 0x188   : > { %v1555_v29 = vrot.slane %v1501_v23, 3  ;;  %v1557_v36 = vrot.slane %v1502_v40, 2  ;;  %v1554_v39 = vsel %vm1522_vm6, %v1553_v18, %v1552_v11  ;;  %v1559_v55 = vrot.slane %v1503_v0, 1 }
 0x189   : > { %v921_v17 = vadd.f32 %v920_v63, %v797_v19  ;;  %v1220_v63 = vmax.f32 %v1204_v7, 0.0  ;;  %v1185_v13 = vadd.f32 %v1165_v6, %v967_v30  ;;  %v1170_v21 = vadd.f32 %v1169_v22, %v1120_v10 }
 0x18a   : > { %v1556_v56 = vsel %vm1525_vm7, %v1555_v29, %v1554_v39 }
 0x18b   : > { %v1558_v4 = vsel %vm1528_vm8, %v1557_v36, %v1556_v56  ;;  %v970_v57 = vadd.f32 %v2566_v50, %v921_v17  ;;  %v1205_v0 = vadd.f32 %v2646_v38, %v1185_v13 }
 0x18c   : > { %v1560_v48 = vsel %vm1531_vm9, %v1559_v55, %v1558_v4  ;;  %v922_v61 = vpop.f32.mrf.mxu2 }
 0x18d   : > { %v1577_v2 = vpack.c.b16 %v1560_v48, %v1560_v48  ;;  %v1186_v58 = vadd.f32 %v1168_v34, %v970_v57  ;;  %v1221_v17 = vmax.f32 %v1205_v0, 0.0 }
 0x18e   : > { %v749_v54 = vpop.f32.mrf.mxu0 }
 0x18f   : > { %1585 = vst [vmem:[%s2691_s29 + $0x8] sm:$0xf] %v1577_v2  ;;  %v1206_v50 = vadd.f32 %v2646_v38, %v1186_v58  ;;  %v799_v20 = vadd.f32 %v2578_v62, %v749_v54 }
 0x191   : > { %v1222_v51 = vmax.f32 %v1206_v50, 0.0  ;;  %v923_v32 = vadd.f32 %v922_v61, %v799_v20 }
 0x193   : > { %v1230_v27 = vmax.f32 %v1220_v63, %v1222_v51  ;;  %v972_v14 = vadd.f32 %v2570_v52, %v923_v32 }
 0x194   : > { %v934_v60 = vpop.f32.mrf.mxu2 }
 0x195   : > { %v1258_v23 = vrot.slane %v1230_v27, 2  ;;  %v1259_v40 = vrot.slane %v1230_v27, 4  ;;  %v1260_v47 = vrot.slane %v1230_v27, 6  ;;  %v2007_v42 = vrot.slane %v1230_v27, 9 }
 0x196   : > { %v1187_v43 = vadd.f32 %v1170_v21, %v972_v14  ;;  %v761_v49 = vpop.f32.mrf.mxu0 }
 0x197   : > { %v2008_v62 = vrot.slane %v1258_v23, 9  ;;  %v2009_v18 = vrot.slane %v1259_v40, 9  ;;  %v2010_v19 = vrot.slane %v1260_v47, 9  ;;  %v1408_v11 = vmax.f32 %v1230_v27, %v2007_v42 }
 0x198   : > { %v1207_v29 = vadd.f32 %v2646_v38, %v1187_v43  ;;  %v762_v61 = vadd.f32 %v761_v49, %v2590_v16 }
 0x199   : > { %v1409_v36 = vmax.f32 %v1258_v23, %v2008_v62  ;;  %v1410_v39 = vmax.f32 %v1259_v40, %v2009_v18  ;;  %v1411_v59 = vmax.f32 %v1260_v47, %v2010_v19  ;;  %v1440_v34 = vpack.c.bf16 %v1408_v11, %v1408_v11 }
 0x19a   : > { %v1223_v52 = vmax.f32 %v1207_v29, 0.0  ;;  %v886_v21 = vadd.f32 %v2588_v15, %v762_v61 }
 0x19b   : > { %v1441_v56 = vpack.c.bf16 %v1409_v36, %v1409_v36  ;;  %v1442_v55 = vpack.c.bf16 %v1410_v39, %v1410_v39  ;;  %v1443_v4 = vpack.c.bf16 %v1411_v59, %v1411_v59  ;;  %v1504_v50 = vunpack.c.l.b16 %v1440_v34 }
 0x19c   : > { %v1231_v35 = vmax.f32 %v1221_v17, %v1223_v52  ;;  %v936_v2 = vpop.f32.mrf.mxu2  ;;  %v935_v18 = vadd.f32 %v934_v60, %v886_v21 }
 0x19d   : > { %v1505_v57 = vunpack.c.l.b16 %v1441_v56  ;;  %v1506_v48 = vunpack.c.l.b16 %v1442_v55  ;;  %v1507_v32 = vunpack.c.l.b16 %v1443_v4 }
 0x19e   : > { %v1261_v7 = vrot.slane %v1231_v35, 2  ;;  %v1262_v58 = vrot.slane %v1231_v35, 4  ;;  %v1263_v30 = vrot.slane %v1231_v35, 6  ;;  %v2011_v6 = vrot.slane %v1231_v35, 9  ;;  %v763_v54 = vpop.f32.mrf.mxu0 }
 0x19f   : > { %v1561_v20 = vrot.slane %v1505_v57, 7  ;;  %v1563_v13 = vrot.slane %v1506_v48, 6  ;;  %v1565_v49 = vrot.slane %v1507_v32, 5  ;;  %v764_v36 = vadd.f32 %v763_v54, %v2598_v26 }
 0x1a0   : > { %v2012_v10 = vrot.slane %v1261_v7, 9  ;;  %v2013_v22 = vrot.slane %v1262_v58, 9  ;;  %v2014_v63 = vrot.slane %v1263_v30, 9  ;;  %v1412_v51 = vmax.f32 %v1231_v35, %v2011_v6 }
 0x1a1   : > { %v1562_v27 = vsel %vm1513_vm3, %v1561_v20, %v1504_v50  ;;  %v1172_v35 = vadd.f32 %v2584_v12, %v935_v18  ;;  %v888_v26 = vadd.f32 %v2596_v1, %v764_v36 }
 0x1a2   : > { %v1413_v14 = vmax.f32 %v1261_v7, %v2012_v10  ;;  %v1414_v16 = vmax.f32 %v1262_v58, %v2013_v22  ;;  %v1415_v23 = vmax.f32 %v1263_v30, %v2014_v63  ;;  %v1444_v40 = vpack.c.bf16 %v1412_v51, %v1412_v51 }
 0x1a3   : > { %v1564_v43 = vsel %vm1516_vm4, %v1563_v13, %v1562_v27  ;;  %v1192_v58 = vadd.f32 %v2646_v38, %v1172_v35  ;;  %v937_v6 = vadd.f32 %v936_v2, %v888_v26 }
 0x1a4   : > { %v1445_v47 = vpack.c.bf16 %v1413_v14, %v1413_v14  ;;  %v1446_v42 = vpack.c.bf16 %v1414_v16, %v1414_v16  ;;  %v1447_v0 = vpack.c.bf16 %v1415_v23, %v1415_v23  ;;  %v1508_v62 = vunpack.c.l.b16 %v1444_v40  ;;  %v939_v59 = vpop.f32.mrf.mxu2 }
 0x1a5   : > { %v1566_v52 = vsel %vm1519_vm5, %v1565_v49, %v1564_v43  ;;  %v1208_v50 = vmax.f32 %v1192_v58, 0.0  ;;  %v1173_v22 = vadd.f32 %v2594_v24, %v937_v6 }
 0x1a6   : > { %v1509_v19 = vunpack.c.l.b16 %v1445_v47  ;;  %v1510_v11 = vunpack.c.l.b16 %v1446_v42  ;;  %v1511_v29 = vunpack.c.l.b16 %v1447_v0  ;;  %v766_v15 = vpop.f32.mrf.mxu0  ;;  %v1567_v39 = vrot.slane %v1508_v62, 4 }
 0x1a7   : > { %v767_v17 = vadd.f32 %v766_v15, %v2605_v3  ;;  %v1193_v2 = vadd.f32 %v2646_v38, %v1173_v22 }
 0x1a8   : > { %v1569_v34 = vrot.slane %v1509_v19, 3  ;;  %v1571_v56 = vrot.slane %v1510_v11, 2  ;;  %v1568_v55 = vsel %vm1522_vm6, %v1567_v39, %v1566_v52  ;;  %v1573_v57 = vrot.slane %v1511_v29, 1 }
 0x1a9   : > { %v891_v60 = vadd.f32 %v2603_v28, %v767_v17  ;;  %v1209_v43 = vmax.f32 %v1193_v2, 0.0 }
 0x1aa   : > { %v1570_v4 = vsel %vm1525_vm7, %v1569_v34, %v1568_v55  ;;  %v1198_v55 = vadd.f32 %v2646_v38, %v2633_v9 }
 0x1ab   : > { %v1572_v48 = vsel %vm1528_vm8, %v1571_v56, %v1570_v4  ;;  %v940_v61 = vadd.f32 %v939_v59, %v891_v60 }
 0x1ac   : > { %v1574_v3 = vsel %vm1531_vm9, %v1573_v57, %v1572_v48  ;;  %v941_v1 = vpop.f32.mrf.mxu2  ;;  %v1214_v9 = vmax.f32 %v1198_v55, 0.0 }
 0x1ad   : > { %v1578_v7 = vpack.c.b16 %v1574_v3, %v1574_v3  ;;  %v1174_v30 = vadd.f32 %v2601_v8, %v940_v61 }
 0x1ae   : > { %v768_v54 = vpop.f32.mrf.mxu0 }
 0x1af   : > { %1586 = vst [vmem:[%s2691_s29 + $0xc] sm:$0xf] %v1578_v7  ;;  %v1194_v12 = vadd.f32 %v2646_v38, %v1174_v30  ;;  %v769_v28 = vadd.f32 %v768_v54, %v2613_v33 }
 0x1b1   : > { %v1210_v20 = vmax.f32 %v1194_v12, 0.0  ;;  %v893_v10 = vadd.f32 %v2611_v31, %v769_v28 }
 0x1b3   : > { %v1224_v63 = vmax.f32 %v1208_v50, %v1210_v20  ;;  %v942_v51 = vadd.f32 %v941_v1, %v893_v10 }
 0x1b5   : > { %v1240_v32 = vrot.slane %v1224_v63, 2  ;;  %v1241_v13 = vrot.slane %v1224_v63, 4  ;;  %v1242_v21 = vrot.slane %v1224_v63, 6  ;;  %v1983_v8 = vrot.slane %v1224_v63, 9 }
 0x1b6   : > { %v1175_v27 = vadd.f32 %v2609_v5, %v942_v51  ;;  %v771_v14 = vpop.f32.mrf.mxu0  ;;  %v944_v5 = vpop.f32.mrf.mxu2 }
 0x1b7   : > { %v1984_v16 = vrot.slane %v1240_v32, 9  ;;  %v1985_v33 = vrot.slane %v1241_v13, 9  ;;  %v1986_v23 = vrot.slane %v1242_v21, 9  ;;  %v1384_v40 = vmax.f32 %v1224_v63, %v1983_v8 }
 0x1b8   : > { %v1195_v47 = vadd.f32 %v2646_v38, %v1175_v27  ;;  %v772_v31 = vadd.f32 %v771_v14, %v2621_v41 }
 0x1b9   : > { %v1385_v24 = vmax.f32 %v1240_v32, %v1984_v16  ;;  %v1386_v42 = vmax.f32 %v1241_v13, %v1985_v33  ;;  %v1387_v0 = vmax.f32 %v1242_v21, %v1986_v23  ;;  %v1416_v18 = vpack.c.bf16 %v1384_v40, %v1384_v40 }
 0x1ba   : > { %v1211_v49 = vmax.f32 %v1195_v47, 0.0  ;;  %v896_v62 = vadd.f32 %v2619_v37, %v772_v31 }
 0x1bb   : > { %v1417_v19 = vpack.c.bf16 %v1385_v24, %v1385_v24  ;;  %v1418_v11 = vpack.c.bf16 %v1386_v42, %v1386_v42  ;;  %v1419_v15 = vpack.c.bf16 %v1387_v0, %v1387_v0  ;;  %v1480_v35 = vunpack.c.l.b16 %v1416_v18 }
 0x1bc   : > { %v1225_v29 = vmax.f32 %v1209_v43, %v1211_v49  ;;  %v945_v36 = vadd.f32 %v944_v5, %v896_v62  ;;  %v1199_v43 = vadd.f32 %v2646_v38, %v2637_v25 }
 0x1bd   : > { %v1481_v39 = vunpack.c.l.b16 %v1417_v19  ;;  %v1482_v59 = vunpack.c.l.b16 %v1418_v11  ;;  %v1483_v61 = vunpack.c.l.b16 %v1419_v15 }
 0x1be   : > { %v1243_v17 = vrot.slane %v1225_v29, 2  ;;  %v1244_v52 = vrot.slane %v1225_v29, 4  ;;  %v1245_v34 = vrot.slane %v1225_v29, 6  ;;  %v1987_v41 = vrot.slane %v1225_v29, 9  ;;  %v773_v56 = vpop.f32.mrf.mxu0  ;;  %v946_v13 = vpop.f32.mrf.mxu2 }
 0x1bf   : > { %v1512_v60 = vrot.slane %v1481_v39, 7  ;;  %v1176_v37 = vadd.f32 %v2617_v53, %v945_v36  ;;  %v1515_v3 = vrot.slane %v1482_v59, 6  ;;  %v774_v58 = vadd.f32 %v773_v56, %v2629_v46 }
 0x1c0   : > { %v1988_v4 = vrot.slane %v1243_v17, 9  ;;  %v1989_v57 = vrot.slane %v1244_v52, 9  ;;  %v1990_v26 = vrot.slane %v1245_v34, 9  ;;  %v1388_v48 = vmax.f32 %v1225_v29, %v1987_v41 }
 0x1c1   : > { %v1196_v7 = vadd.f32 %v2646_v38, %v1176_v37  ;;  %v1514_v30 = vsel %vm1513_vm3, %v1512_v60, %v1480_v35  ;;  %v898_v53 = vadd.f32 %v2627_v45, %v774_v58  ;;  %v1518_v63 = vrot.slane %v1483_v61, 5 }
 0x1c2   : > { %v1389_v6 = vmax.f32 %v1243_v17, %v1988_v4  ;;  %v1390_v54 = vmax.f32 %v1244_v52, %v1989_v57  ;;  %v1391_v12 = vmax.f32 %v1245_v34, %v1990_v26  ;;  %v1420_v28 = vpack.c.bf16 %v1388_v48, %v1388_v48 }
 0x1c3   : > { %v1212_v50 = vmax.f32 %v1196_v7, 0.0  ;;  %v1517_v22 = vsel %vm1516_vm4, %v1515_v3, %v1514_v30  ;;  %v947_v2 = vadd.f32 %v946_v13, %v898_v53  ;;  %v1215_v25 = vmax.f32 %v1199_v43, 0.0 }
 0x1c4   : > { %v1421_v20 = vpack.c.bf16 %v1389_v6, %v1389_v6  ;;  %v1422_v1 = vpack.c.bf16 %v1390_v54, %v1390_v54  ;;  %v1423_v10 = vpack.c.bf16 %v1391_v12, %v1391_v12  ;;  %v1484_v51 = vunpack.c.l.b16 %v1420_v28 }
 0x1c5   : > { %v1226_v32 = vmax.f32 %v1212_v50, %v1214_v9  ;;  %v1520_v23 = vsel %vm1519_vm5, %v1518_v63, %v1517_v22  ;;  %v1177_v18 = vadd.f32 %v2625_v44, %v947_v2 }
 0x1c6   : > { %v1485_v46 = vunpack.c.l.b16 %v1421_v20  ;;  %v1486_v21 = vunpack.c.l.b16 %v1422_v1  ;;  %v1487_v8 = vunpack.c.l.b16 %v1423_v10  ;;  %v1521_v27 = vrot.slane %v1484_v51, 4 }
 0x1c7   : > { %v1246_v14 = vrot.slane %v1226_v32, 2  ;;  %v1247_v16 = vrot.slane %v1226_v32, 4  ;;  %v1248_v33 = vrot.slane %v1226_v32, 6  ;;  %v1991_v47 = vrot.slane %v1226_v32, 9 }
 0x1c8   : > { %v1524_v45 = vrot.slane %v1485_v46, 3  ;;  %v1527_v40 = vrot.slane %v1486_v21, 2  ;;  %v1523_v31 = vsel %vm1522_vm6, %v1521_v27, %v1520_v23  ;;  %v1530_v62 = vrot.slane %v1487_v8, 1 }
 0x1c9   : > { %v1992_v24 = vrot.slane %v1246_v14, 9  ;;  %v1993_v42 = vrot.slane %v1247_v16, 9  ;;  %v1994_v0 = vrot.slane %v1248_v33, 9  ;;  %v1392_v36 = vmax.f32 %v1226_v32, %v1991_v47 }
 0x1ca   : > { %v1526_v49 = vsel %vm1525_vm7, %v1524_v45, %v1523_v31  ;;  %v1197_v15 = vadd.f32 %v2646_v38, %v1177_v18 }
 0x1cb   : > { %v1529_v19 = vsel %vm1528_vm8, %v1527_v40, %v1526_v49  ;;  %v1393_v11 = vmax.f32 %v1246_v14, %v1992_v24  ;;  %v1394_v5 = vmax.f32 %v1247_v16, %v1993_v42  ;;  %v1395_v59 = vmax.f32 %v1248_v33, %v1994_v0 }
 0x1cc   : > { %v1532_v29 = vsel %vm1531_vm9, %v1530_v62, %v1529_v19  ;;  %v1213_v34 = vmax.f32 %v1197_v15, 0.0  ;;  %v1424_v56 = vpack.c.bf16 %v1392_v36, %v1392_v36 }
 0x1cd   : > { %v1575_v39 = vpack.c.b16 %v1532_v29, %v1532_v29  ;;  %v1425_v17 = vpack.c.bf16 %v1393_v11, %v1393_v11  ;;  %v1426_v52 = vpack.c.bf16 %v1394_v5, %v1394_v5  ;;  %v1427_v44 = vpack.c.bf16 %v1395_v59, %v1395_v59 }
 0x1ce   : > { %v1227_v55 = vmax.f32 %v1213_v34, %v1215_v25  ;;  %v1488_v48 = vunpack.c.l.b16 %v1424_v56 }
 0x1cf   : > { %1583 = vst [vmem:[%s2691_s29] sm:$0xf] %v1575_v39  ;;  %v1489_v41 = vunpack.c.l.b16 %v1425_v17  ;;  %v1490_v35 = vunpack.c.l.b16 %v1426_v52  ;;  %v1491_v7 = vunpack.c.l.b16 %v1427_v44 }
 0x1d0   : > { %v1249_v37 = vrot.slane %v1227_v55, 2  ;;  %v1250_v4 = vrot.slane %v1227_v55, 4  ;;  %v1251_v57 = vrot.slane %v1227_v55, 6  ;;  %v1995_v26 = vrot.slane %v1227_v55, 9 }
 0x1d1   : > { %v1533_v60 = vrot.slane %v1489_v41, 7  ;;  %v1535_v58 = vrot.slane %v1490_v35, 6  ;;  %v1537_v22 = vrot.slane %v1491_v7, 5 }
 0x1d2   : > { %v1996_v61 = vrot.slane %v1249_v37, 9  ;;  %v1997_v38 = vrot.slane %v1250_v4, 9  ;;  %v1998_v3 = vrot.slane %v1251_v57, 9  ;;  %v1396_v30 = vmax.f32 %v1227_v55, %v1995_v26 }
 0x1d3   : > { %v1534_v6 = vsel %vm1513_vm3, %v1533_v60, %v1488_v48 }
 0x1d4   : > { %v1397_v54 = vmax.f32 %v1249_v37, %v1996_v61  ;;  %v1398_v12 = vmax.f32 %v1250_v4, %v1997_v38  ;;  %v1399_v9 = vmax.f32 %v1251_v57, %v1998_v3  ;;  %v1428_v28 = vpack.c.bf16 %v1396_v30, %v1396_v30 }
 0x1d5   : > { %v1536_v1 = vsel %vm1516_vm4, %v1535_v58, %v1534_v6 }
 0x1d6   : > { %v1429_v50 = vpack.c.bf16 %v1397_v54, %v1397_v54  ;;  %v1430_v53 = vpack.c.bf16 %v1398_v12, %v1398_v12  ;;  %v1431_v20 = vpack.c.bf16 %v1399_v9, %v1399_v9  ;;  %v1492_v10 = vunpack.c.l.b16 %v1428_v28 }
 0x1d7   : > { %v1538_v46 = vsel %vm1519_vm5, %v1537_v22, %v1536_v1 }
 0x1d8   : > { %v1493_v63 = vunpack.c.l.b16 %v1429_v50  ;;  %v1494_v51 = vunpack.c.l.b16 %v1430_v53  ;;  %v1495_v32 = vunpack.c.l.b16 %v1431_v20  ;;  %v1539_v13 = vrot.slane %v1492_v10, 4 }
 0x1da   : > { %v1541_v21 = vrot.slane %v1493_v63, 3  ;;  %v1543_v8 = vrot.slane %v1494_v51, 2  ;;  %v1540_v2 = vsel %vm1522_vm6, %v1539_v13, %v1538_v46  ;;  %v1545_v14 = vrot.slane %v1495_v32, 1 }
 0x1dc   : > { %v1542_v27 = vsel %vm1525_vm7, %v1541_v21, %v1540_v2 }
 0x1dd   : > { %v1544_v16 = vsel %vm1528_vm8, %v1543_v8, %v1542_v27 }
 0x1de   : > { %v1546_v33 = vsel %vm1531_vm9, %v1545_v14, %v1544_v16 }
 0x1df   : > { %v1576_v23 = vpack.c.b16 %v1546_v33, %v1546_v33 }
 0x1e1   : > { %1584 = vst [vmem:[%s2691_s29 + $0x4] sm:$0xf] %v1576_v23 }
 0x1e2 PF: > { %s13_s16 = sadd.s32 1, %s2153_s16   ;;  %s2776_s12 = smov %s2145_s14 }
 0x1e3   : > { %p10_p7 = scmp.ge.s32.totalorder %s13_s16, 6   ;;  %s2777_s13 = smov %s2149_s15 }
 0x1e4   : > { %s2778_s14 = smov %s2781_s17  ;;  %s2779_s15 = smov %s2785_s18 }
 0x1e5   :  { %12 = sbr.rel (!%p10_p7) target bundleno = 3 (0x3), region = 71 }

// kernel: generalized_rcnn_forward.6
= control target key start
LH: loop header
LB: loop body
LE: loop exit
PB: predicated region body
PF: predicated region fallthrough
CT: control target
= control target key end

     0   :  { %s2806_s12 = smov 0   ;;  %s2808_s13 = smov 0   ;;  %s3526_s0 = inlined_call_operand.vmem [shape: bf16[2,10,10,128], index: 0, kind: input, shape index: {}]   ;;  %s3527_s1 = inlined_call_operand.vmem [shape: bf16[3,384,512], index: 1, kind: input, shape index: {}]   ;;  %s3528_s2 = inlined_call_operand.vmem [shape: f32[1,512], index: 2, kind: input, shape index: {}]   ;;  %s3529_s3 = inlined_call_operand.vmem [shape: bf16[2,8,8,512], index: 3, kind: output, shape index: {}]  }
   0x1   :  { %s2810_s14 = smov 0   ;;  %s2812_s15 = smov 0  }
   0x2   :  { %s2814_s16 = smov 0   ;;  %s2816_s17 = smov 0  }
   0x3   :  { %s2818_s18 = smov 0   ;;  %s2820_s19 = smov 0  }
   0x4   :  { %s2822_s20 = smov 0  }
   0x5 LB: > { %s2130_s21 = sadd.s32 4294967295, %s2784_s20   ;;  %s28_s22 = sadd.s32 1, %s2776_s18  ;;  %s2784_s20 = sphi %s2822_s20, %s13_s20   ;;  %s2780_s19 = sphi %s2820_s19, %s3538_s19   ;;  %s2776_s18 = sphi %s2818_s18, %s3537_s18   ;;  %s2772_s17 = sphi %s2816_s17, %s3536_s17   ;;  %s2768_s16 = sphi %s2814_s16, %s3535_s16   ;;  %s2764_s15 = sphi %s2812_s15, %s3534_s15   ;;  %s2760_s14 = sphi %s2810_s14, %s3533_s14   ;;  %s2756_s13 = sphi %s2808_s13, %s3532_s13   ;;  %s2752_s12 = sphi %s2806_s12, %s3531_s12  }
   0x6   : > { %p30_p0 = scmp.ge.s32.totalorder %s28_s22, 4  ;;  %s32_s23 = sadd.s32 1, %s2780_s19 }
   0x7   : > { %s65_s24 = sadd.s32 1, %s2764_s15  ;;  %p72_p1 = scmp.ne.s32.totalorder %s2764_s15, %s2760_s14 }
   0x8   : > { %s3540_s22 = smov (%p30_p0, %s28_s22), 0  ;;  %s3542_s23 = smov (!%p30_p0, %s32_s23), %s2780_s19 }
   0x9   : > { %s62_s25 = ssub.s32 %s2776_s18, %s3540_s22  ;;  %p73_p2 = scmp.eq.s32.totalorder %s2784_s20, 0 }
   0xa   : > { %p34_p3 = scmp.ge.s32.totalorder %s3542_s23, 2  ;;  %p63_p4 = scmp.eq.s32.totalorder %s62_s25, 0 }
   0xb   : > { %p74_p5 = por %p73_p2, %p72_p1  ;;  %s121_s26 = sadd.s32 1, %s2756_s13 }
   0xc   : > { %s3544_s23 = smov (%p34_p3, %s3542_s23), 0  ;;  %p131_p6 = scmp.ne.s32.totalorder %s2756_s13, %s2752_s12 }
   0xd   : > { %s2867_s27 = scalar_select %p63_p4, %s2764_s15, %s65_s24  }
   0xe   : > { %s114_s28 = ssub.s32 %s2780_s19, %s3544_s23  ;;  %p132_p7 = scmp.eq.s32.totalorder %s2130_s21, 7 }
   0xf   : > { %s118_s29 = sor.u32 %s114_s28, %s62_s25  ;;  %p2133_p10 = scmp.ge.s32.totalorder %s2784_s20, 8 }
  0x10   : > { %p119_p8 = scmp.eq.s32.totalorder %s118_s29, 0  ;;  %p2873_p9 = por %p132_p7, %p131_p6 }
  0x11   : > { %154 = sbr.rel (%p2133_p10) target bundleno = 170 (0xaa), region = 16 }
  0x12   : > { %s2878_s4 = scalar_select %p119_p8, %s2756_s13, %s121_s26  }
  0x16   : > { %165 = sbr.rel (!%p74_p5) target bundleno = 170 (0xaa), region = 24  ;;  %s167_s5 = sand.u32 (%p74_p5), 1, %s2764_s15  }
  0x17   : > { %s2134_s6 = sshll.u32 (%p74_p5), %s2776_s18, 2  ;;  %s2638_s7 = smul.u32 (%p74_p5), 576, %s167_s5 }
  0x18   : > { %s2886_s10 = scalar_lea.vmem (%p74_p5), %s3527_s1, %s2134_s6 }
  0x19   : > { %v188_v0 = vld [vmem:[%s2886_s10] sm:$0xf] (%p74_p5)  ;;  %v190_v1 = vld [vmem:[%s2886_s10 + $0x10] sm:$0xf] (%p74_p5)  ;;  %s2891_s11 = scalar_lea.vmem (%p74_p5), [#allocation2], %s2638_s7 }
  0x1a   : > { %v192_v2 = vld [vmem:[%s2886_s10 + $0x20] sm:$0xf] (%p74_p5)  ;;  %189 = vst [vmem:[%s2891_s11] sm:$0xf] (%p74_p5), %v188_v0  ;;  %v194_v3 = vld [vmem:[%s2886_s10 + $0x30] sm:$0xf] (%p74_p5) }
  0x1b   : > { %191 = vst [vmem:[%s2891_s11 + $0x4] sm:$0xf] %v190_v1  ;;  %v196_v4 = vld [vmem:[%s2886_s10 + $0x40] sm:$0xf]  ;;  %v198_v5 = vld [vmem:[%s2886_s10 + $0x50] sm:$0xf] }
  0x1c   : > { %193 = vst [vmem:[%s2891_s11 + $0x8] sm:$0xf] %v192_v2  ;;  %v200_v6 = vld [vmem:[%s2886_s10 + $0x60] sm:$0xf]  ;;  %v202_v7 = vld [vmem:[%s2886_s10 + $0x70] sm:$0xf] }
  0x1d   : > { %195 = vst [vmem:[%s2891_s11 + $0xc] sm:$0xf] %v194_v3  ;;  %v204_v8 = vld [vmem:[%s2886_s10 + $0x80] sm:$0xf]  ;;  %v206_v9 = vld [vmem:[%s2886_s10 + $0x90] sm:$0xf] }
  0x1e   : > { %197 = vst [vmem:[%s2891_s11 + $0x10] sm:$0xf] %v196_v4  ;;  %v208_v10 = vld [vmem:[%s2886_s10 + $0xa0] sm:$0xf]  ;;  %v210_v11 = vld [vmem:[%s2886_s10 + $0xb0] sm:$0xf] }
  0x1f   : > { %199 = vst [vmem:[%s2891_s11 + $0x14] sm:$0xf] %v198_v5  ;;  %v212_v12 = vld [vmem:[%s2886_s10 + $0xc0] sm:$0xf]  ;;  %v214_v13 = vld [vmem:[%s2886_s10 + $0xd0] sm:$0xf] }
  0x20   : > { %201 = vst [vmem:[%s2891_s11 + $0x18] sm:$0xf] %v200_v6  ;;  %v216_v14 = vld [vmem:[%s2886_s10 + $0xe0] sm:$0xf]  ;;  %v218_v15 = vld [vmem:[%s2886_s10 + $0xf0] sm:$0xf] }
  0x21   : > { %203 = vst [vmem:[%s2891_s11 + $0x1c] sm:$0xf] %v202_v7  ;;  %v220_v16 = vld [vmem:[%s2886_s10 + $0x100] sm:$0xf]  ;;  %v222_v17 = vld [vmem:[%s2886_s10 + $0x110] sm:$0xf] }
  0x22   : > { %205 = vst [vmem:[%s2891_s11 + $0x20] sm:$0xf] %v204_v8  ;;  %v224_v18 = vld [vmem:[%s2886_s10 + $0x120] sm:$0xf]  ;;  %v226_v19 = vld [vmem:[%s2886_s10 + $0x130] sm:$0xf] }
  0x23   : > { %207 = vst [vmem:[%s2891_s11 + $0x24] sm:$0xf] %v206_v9  ;;  %v228_v20 = vld [vmem:[%s2886_s10 + $0x140] sm:$0xf]  ;;  %v230_v21 = vld [vmem:[%s2886_s10 + $0x150] sm:$0xf] }
  0x24   : > { %209 = vst [vmem:[%s2891_s11 + $0x28] sm:$0xf] %v208_v10  ;;  %v232_v22 = vld [vmem:[%s2886_s10 + $0x160] sm:$0xf]  ;;  %v234_v23 = vld [vmem:[%s2886_s10 + $0x170] sm:$0xf] }
  0x25   : > { %211 = vst [vmem:[%s2891_s11 + $0x2c] sm:$0xf] %v210_v11  ;;  %v236_v24 = vld [vmem:[%s2886_s10 + $0x180] sm:$0xf]  ;;  %v238_v25 = vld [vmem:[%s2886_s10 + $0x190] sm:$0xf] }
  0x26   : > { %213 = vst [vmem:[%s2891_s11 + $0x30] sm:$0xf] %v212_v12  ;;  %v240_v26 = vld [vmem:[%s2886_s10 + $0x1a0] sm:$0xf]  ;;  %v242_v27 = vld [vmem:[%s2886_s10 + $0x1b0] sm:$0xf] }
  0x27   : > { %215 = vst [vmem:[%s2891_s11 + $0x34] sm:$0xf] %v214_v13  ;;  %v244_v28 = vld [vmem:[%s2886_s10 + $0x1c0] sm:$0xf]  ;;  %v246_v29 = vld [vmem:[%s2886_s10 + $0x1d0] sm:$0xf] }
  0x28   : > { %217 = vst [vmem:[%s2891_s11 + $0x38] sm:$0xf] %v216_v14  ;;  %v248_v30 = vld [vmem:[%s2886_s10 + $0x1e0] sm:$0xf]  ;;  %v250_v31 = vld [vmem:[%s2886_s10 + $0x1f0] sm:$0xf] }
  0x29   : > { %219 = vst [vmem:[%s2891_s11 + $0x3c] sm:$0xf] %v218_v15  ;;  %v252_v32 = vld [vmem:[%s2886_s10 + $0x200] sm:$0xf]  ;;  %v254_v33 = vld [vmem:[%s2886_s10 + $0x210] sm:$0xf] }
  0x2a   : > { %221 = vst [vmem:[%s2891_s11 + $0x40] sm:$0xf] %v220_v16  ;;  %v256_v34 = vld [vmem:[%s2886_s10 + $0x220] sm:$0xf]  ;;  %v258_v35 = vld [vmem:[%s2886_s10 + $0x230] sm:$0xf] }
  0x2b   : > { %223 = vst [vmem:[%s2891_s11 + $0x44] sm:$0xf] %v222_v17  ;;  %v260_v36 = vld [vmem:[%s2886_s10 + $0x240] sm:$0xf]  ;;  %v262_v37 = vld [vmem:[%s2886_s10 + $0x250] sm:$0xf] }
  0x2c   : > { %225 = vst [vmem:[%s2891_s11 + $0x48] sm:$0xf] %v224_v18  ;;  %v264_v38 = vld [vmem:[%s2886_s10 + $0x260] sm:$0xf]  ;;  %v266_v39 = vld [vmem:[%s2886_s10 + $0x270] sm:$0xf] }
  0x2d   : > { %227 = vst [vmem:[%s2891_s11 + $0x4c] sm:$0xf] %v226_v19  ;;  %v268_v40 = vld [vmem:[%s2886_s10 + $0x280] sm:$0xf]  ;;  %v270_v41 = vld [vmem:[%s2886_s10 + $0x290] sm:$0xf] }
  0x2e   : > { %229 = vst [vmem:[%s2891_s11 + $0x50] sm:$0xf] %v228_v20  ;;  %v272_v42 = vld [vmem:[%s2886_s10 + $0x2a0] sm:$0xf]  ;;  %v274_v43 = vld [vmem:[%s2886_s10 + $0x2b0] sm:$0xf] }
  0x2f   : > { %231 = vst [vmem:[%s2891_s11 + $0x54] sm:$0xf] %v230_v21  ;;  %v276_v44 = vld [vmem:[%s2886_s10 + $0x2c0] sm:$0xf]  ;;  %v278_v45 = vld [vmem:[%s2886_s10 + $0x2d0] sm:$0xf] }
  0x30   : > { %233 = vst [vmem:[%s2891_s11 + $0x58] sm:$0xf] %v232_v22  ;;  %v280_v46 = vld [vmem:[%s2886_s10 + $0x2e0] sm:$0xf]  ;;  %v282_v47 = vld [vmem:[%s2886_s10 + $0x2f0] sm:$0xf] }
  0x31   : > { %235 = vst [vmem:[%s2891_s11 + $0x5c] sm:$0xf] %v234_v23  ;;  %v284_v48 = vld [vmem:[%s2886_s10 + $0x300] sm:$0xf]  ;;  %v286_v49 = vld [vmem:[%s2886_s10 + $0x310] sm:$0xf] }
  0x32   : > { %237 = vst [vmem:[%s2891_s11 + $0x60] sm:$0xf] %v236_v24  ;;  %v288_v50 = vld [vmem:[%s2886_s10 + $0x320] sm:$0xf]  ;;  %v290_v51 = vld [vmem:[%s2886_s10 + $0x330] sm:$0xf] }
  0x33   : > { %239 = vst [vmem:[%s2891_s11 + $0x64] sm:$0xf] %v238_v25  ;;  %v292_v52 = vld [vmem:[%s2886_s10 + $0x340] sm:$0xf]  ;;  %v294_v53 = vld [vmem:[%s2886_s10 + $0x350] sm:$0xf] }
  0x34   : > { %241 = vst [vmem:[%s2891_s11 + $0x68] sm:$0xf] %v240_v26  ;;  %v296_v54 = vld [vmem:[%s2886_s10 + $0x360] sm:$0xf]  ;;  %v298_v55 = vld [vmem:[%s2886_s10 + $0x370] sm:$0xf] }
  0x35   : > { %243 = vst [vmem:[%s2891_s11 + $0x6c] sm:$0xf] %v242_v27  ;;  %v300_v56 = vld [vmem:[%s2886_s10 + $0x380] sm:$0xf]  ;;  %v302_v57 = vld [vmem:[%s2886_s10 + $0x390] sm:$0xf] }
  0x36   : > { %245 = vst [vmem:[%s2891_s11 + $0x70] sm:$0xf] %v244_v28  ;;  %v304_v58 = vld [vmem:[%s2886_s10 + $0x3a0] sm:$0xf]  ;;  %v306_v59 = vld [vmem:[%s2886_s10 + $0x3b0] sm:$0xf] }
  0x37   : > { %247 = vst [vmem:[%s2891_s11 + $0x74] sm:$0xf] %v246_v29  ;;  %v308_v60 = vld [vmem:[%s2886_s10 + $0x3c0] sm:$0xf]  ;;  %v310_v61 = vld [vmem:[%s2886_s10 + $0x3d0] sm:$0xf] }
  0x38   : > { %249 = vst [vmem:[%s2891_s11 + $0x78] sm:$0xf] %v248_v30  ;;  %v312_v62 = vld [vmem:[%s2886_s10 + $0x3e0] sm:$0xf]  ;;  %v314_v63 = vld [vmem:[%s2886_s10 + $0x3f0] sm:$0xf] }
  0x39   : > { %251 = vst [vmem:[%s2891_s11 + $0x7c] sm:$0xf] %v250_v31  ;;  %v316_v0 = vld [vmem:[%s2886_s10 + $0x400] sm:$0xf]  ;;  %v318_v1 = vld [vmem:[%s2886_s10 + $0x410] sm:$0xf] }
  0x3a   : > { %253 = vst [vmem:[%s2891_s11 + $0x80] sm:$0xf] %v252_v32  ;;  %v320_v2 = vld [vmem:[%s2886_s10 + $0x420] sm:$0xf]  ;;  %v322_v3 = vld [vmem:[%s2886_s10 + $0x430] sm:$0xf] }
  0x3b   : > { %255 = vst [vmem:[%s2891_s11 + $0x84] sm:$0xf] %v254_v33  ;;  %v324_v4 = vld [vmem:[%s2886_s10 + $0x440] sm:$0xf]  ;;  %v326_v5 = vld [vmem:[%s2886_s10 + $0x450] sm:$0xf] }
  0x3c   : > { %257 = vst [vmem:[%s2891_s11 + $0x88] sm:$0xf] %v256_v34  ;;  %v328_v6 = vld [vmem:[%s2886_s10 + $0x460] sm:$0xf]  ;;  %v330_v7 = vld [vmem:[%s2886_s10 + $0x470] sm:$0xf] }
  0x3d   : > { %259 = vst [vmem:[%s2891_s11 + $0x8c] sm:$0xf] %v258_v35  ;;  %v332_v8 = vld [vmem:[%s2886_s10 + $0x480] sm:$0xf]  ;;  %v334_v9 = vld [vmem:[%s2886_s10 + $0x490] sm:$0xf] }
  0x3e   : > { %261 = vst [vmem:[%s2891_s11 + $0x90] sm:$0xf] %v260_v36  ;;  %v336_v10 = vld [vmem:[%s2886_s10 + $0x4a0] sm:$0xf]  ;;  %v338_v11 = vld [vmem:[%s2886_s10 + $0x4b0] sm:$0xf] }
  0x3f   : > { %263 = vst [vmem:[%s2891_s11 + $0x94] sm:$0xf] %v262_v37  ;;  %v340_v12 = vld [vmem:[%s2886_s10 + $0x4c0] sm:$0xf]  ;;  %v342_v13 = vld [vmem:[%s2886_s10 + $0x4d0] sm:$0xf] }
  0x40   : > { %265 = vst [vmem:[%s2891_s11 + $0x98] sm:$0xf] %v264_v38  ;;  %v344_v14 = vld [vmem:[%s2886_s10 + $0x4e0] sm:$0xf]  ;;  %v346_v15 = vld [vmem:[%s2886_s10 + $0x4f0] sm:$0xf] }
  0x41   : > { %267 = vst [vmem:[%s2891_s11 + $0x9c] sm:$0xf] %v266_v39  ;;  %v348_v16 = vld [vmem:[%s2886_s10 + $0x500] sm:$0xf]  ;;  %v350_v17 = vld [vmem:[%s2886_s10 + $0x510] sm:$0xf] }
  0x42   : > { %269 = vst [vmem:[%s2891_s11 + $0xa0] sm:$0xf] %v268_v40  ;;  %v352_v18 = vld [vmem:[%s2886_s10 + $0x520] sm:$0xf]  ;;  %v354_v19 = vld [vmem:[%s2886_s10 + $0x530] sm:$0xf] }
  0x43   : > { %271 = vst [vmem:[%s2891_s11 + $0xa4] sm:$0xf] %v270_v41  ;;  %v356_v20 = vld [vmem:[%s2886_s10 + $0x540] sm:$0xf]  ;;  %v358_v21 = vld [vmem:[%s2886_s10 + $0x550] sm:$0xf] }
  0x44   : > { %273 = vst [vmem:[%s2891_s11 + $0xa8] sm:$0xf] %v272_v42  ;;  %v360_v22 = vld [vmem:[%s2886_s10 + $0x560] sm:$0xf]  ;;  %v362_v23 = vld [vmem:[%s2886_s10 + $0x570] sm:$0xf] }
  0x45   : > { %275 = vst [vmem:[%s2891_s11 + $0xac] sm:$0xf] %v274_v43  ;;  %v364_v24 = vld [vmem:[%s2886_s10 + $0x580] sm:$0xf]  ;;  %v366_v25 = vld [vmem:[%s2886_s10 + $0x590] sm:$0xf] }
  0x46   : > { %277 = vst [vmem:[%s2891_s11 + $0xb0] sm:$0xf] %v276_v44  ;;  %v368_v26 = vld [vmem:[%s2886_s10 + $0x5a0] sm:$0xf]  ;;  %v370_v27 = vld [vmem:[%s2886_s10 + $0x5b0] sm:$0xf] }
  0x47   : > { %279 = vst [vmem:[%s2891_s11 + $0xb4] sm:$0xf] %v278_v45  ;;  %v372_v28 = vld [vmem:[%s2886_s10 + $0x5c0] sm:$0xf]  ;;  %v374_v29 = vld [vmem:[%s2886_s10 + $0x5d0] sm:$0xf] }
  0x48   : > { %281 = vst [vmem:[%s2891_s11 + $0xb8] sm:$0xf] %v280_v46  ;;  %v376_v30 = vld [vmem:[%s2886_s10 + $0x5e0] sm:$0xf]  ;;  %v378_v31 = vld [vmem:[%s2886_s10 + $0x5f0] sm:$0xf] }
  0x49   : > { %283 = vst [vmem:[%s2891_s11 + $0xbc] sm:$0xf] %v282_v47  ;;  %v380_v32 = vld [vmem:[%s2886_s10 + $0x600] sm:$0xf]  ;;  %v382_v33 = vld [vmem:[%s2886_s10 + $0x610] sm:$0xf] }
  0x4a   : > { %285 = vst [vmem:[%s2891_s11 + $0xc0] sm:$0xf] %v284_v48  ;;  %v384_v34 = vld [vmem:[%s2886_s10 + $0x620] sm:$0xf]  ;;  %v386_v35 = vld [vmem:[%s2886_s10 + $0x630] sm:$0xf] }
  0x4b   : > { %287 = vst [vmem:[%s2891_s11 + $0xc4] sm:$0xf] %v286_v49  ;;  %v388_v36 = vld [vmem:[%s2886_s10 + $0x640] sm:$0xf]  ;;  %v390_v37 = vld [vmem:[%s2886_s10 + $0x650] sm:$0xf] }
  0x4c   : > { %289 = vst [vmem:[%s2891_s11 + $0xc8] sm:$0xf] %v288_v50  ;;  %v392_v38 = vld [vmem:[%s2886_s10 + $0x660] sm:$0xf]  ;;  %v394_v39 = vld [vmem:[%s2886_s10 + $0x670] sm:$0xf] }
  0x4d   : > { %291 = vst [vmem:[%s2891_s11 + $0xcc] sm:$0xf] %v290_v51  ;;  %v396_v40 = vld [vmem:[%s2886_s10 + $0x680] sm:$0xf]  ;;  %v398_v41 = vld [vmem:[%s2886_s10 + $0x690] sm:$0xf] }
  0x4e   : > { %293 = vst [vmem:[%s2891_s11 + $0xd0] sm:$0xf] %v292_v52  ;;  %v400_v42 = vld [vmem:[%s2886_s10 + $0x6a0] sm:$0xf]  ;;  %v402_v43 = vld [vmem:[%s2886_s10 + $0x6b0] sm:$0xf] }
  0x4f   : > { %295 = vst [vmem:[%s2891_s11 + $0xd4] sm:$0xf] %v294_v53  ;;  %v404_v44 = vld [vmem:[%s2886_s10 + $0x6c0] sm:$0xf]  ;;  %v406_v45 = vld [vmem:[%s2886_s10 + $0x6d0] sm:$0xf] }
  0x50   : > { %297 = vst [vmem:[%s2891_s11 + $0xd8] sm:$0xf] %v296_v54  ;;  %v408_v46 = vld [vmem:[%s2886_s10 + $0x6e0] sm:$0xf]  ;;  %v410_v47 = vld [vmem:[%s2886_s10 + $0x6f0] sm:$0xf] }
  0x51   : > { %299 = vst [vmem:[%s2891_s11 + $0xdc] sm:$0xf] %v298_v55  ;;  %v412_v48 = vld [vmem:[%s2886_s10 + $0x700] sm:$0xf]  ;;  %v414_v49 = vld [vmem:[%s2886_s10 + $0x710] sm:$0xf] }
  0x52   : > { %301 = vst [vmem:[%s2891_s11 + $0xe0] sm:$0xf] %v300_v56  ;;  %v416_v50 = vld [vmem:[%s2886_s10 + $0x720] sm:$0xf]  ;;  %v418_v51 = vld [vmem:[%s2886_s10 + $0x730] sm:$0xf] }
  0x53   : > { %303 = vst [vmem:[%s2891_s11 + $0xe4] sm:$0xf] %v302_v57  ;;  %v420_v52 = vld [vmem:[%s2886_s10 + $0x740] sm:$0xf]  ;;  %v422_v53 = vld [vmem:[%s2886_s10 + $0x750] sm:$0xf] }
  0x54   : > { %305 = vst [vmem:[%s2891_s11 + $0xe8] sm:$0xf] %v304_v58  ;;  %v424_v54 = vld [vmem:[%s2886_s10 + $0x760] sm:$0xf]  ;;  %v426_v55 = vld [vmem:[%s2886_s10 + $0x770] sm:$0xf] }
  0x55   : > { %307 = vst [vmem:[%s2891_s11 + $0xec] sm:$0xf] %v306_v59  ;;  %v428_v56 = vld [vmem:[%s2886_s10 + $0x780] sm:$0xf]  ;;  %v430_v57 = vld [vmem:[%s2886_s10 + $0x790] sm:$0xf] }
  0x56   : > { %309 = vst [vmem:[%s2891_s11 + $0xf0] sm:$0xf] %v308_v60  ;;  %v432_v58 = vld [vmem:[%s2886_s10 + $0x7a0] sm:$0xf]  ;;  %v434_v59 = vld [vmem:[%s2886_s10 + $0x7b0] sm:$0xf] }
  0x57   : > { %311 = vst [vmem:[%s2891_s11 + $0xf4] sm:$0xf] %v310_v61  ;;  %v436_v60 = vld [vmem:[%s2886_s10 + $0x7c0] sm:$0xf]  ;;  %v438_v61 = vld [vmem:[%s2886_s10 + $0x7d0] sm:$0xf] }
  0x58   : > { %313 = vst [vmem:[%s2891_s11 + $0xf8] sm:$0xf] %v312_v62  ;;  %v440_v62 = vld [vmem:[%s2886_s10 + $0x7e0] sm:$0xf] }
  0x59   : > { %315 = vst [vmem:[%s2891_s11 + $0xfc] sm:$0xf] %v314_v63  ;;  %v442_v63 = vld [vmem:[%s2886_s10 + $0x7f0] sm:$0xf] }
  0x5a   : > { %317 = vst [vmem:[%s2891_s11 + $0x100] sm:$0xf] %v316_v0  ;;  %v444_v0 = vld [vmem:[%s2886_s10 + $0x800] sm:$0xf] }
  0x5b   : > { %319 = vst [vmem:[%s2891_s11 + $0x104] sm:$0xf] %v318_v1  ;;  %v446_v1 = vld [vmem:[%s2886_s10 + $0x810] sm:$0xf] }
  0x5c   : > { %321 = vst [vmem:[%s2891_s11 + $0x108] sm:$0xf] %v320_v2  ;;  %v448_v2 = vld [vmem:[%s2886_s10 + $0x820] sm:$0xf] }
  0x5d   : > { %323 = vst [vmem:[%s2891_s11 + $0x10c] sm:$0xf] %v322_v3  ;;  %v450_v3 = vld [vmem:[%s2886_s10 + $0x830] sm:$0xf] }
  0x5e   : > { %325 = vst [vmem:[%s2891_s11 + $0x110] sm:$0xf] %v324_v4  ;;  %v452_v4 = vld [vmem:[%s2886_s10 + $0x840] sm:$0xf] }
  0x5f   : > { %327 = vst [vmem:[%s2891_s11 + $0x114] sm:$0xf] %v326_v5  ;;  %v454_v5 = vld [vmem:[%s2886_s10 + $0x850] sm:$0xf] }
  0x60   : > { %329 = vst [vmem:[%s2891_s11 + $0x118] sm:$0xf] %v328_v6  ;;  %v456_v6 = vld [vmem:[%s2886_s10 + $0x860] sm:$0xf] }
  0x61   : > { %331 = vst [vmem:[%s2891_s11 + $0x11c] sm:$0xf] %v330_v7  ;;  %v458_v7 = vld [vmem:[%s2886_s10 + $0x870] sm:$0xf] }
  0x62   : > { %333 = vst [vmem:[%s2891_s11 + $0x120] sm:$0xf] %v332_v8  ;;  %v460_v8 = vld [vmem:[%s2886_s10 + $0x880] sm:$0xf] }
  0x63   : > { %335 = vst [vmem:[%s2891_s11 + $0x124] sm:$0xf] %v334_v9  ;;  %v462_v9 = vld [vmem:[%s2886_s10 + $0x890] sm:$0xf] }
  0x64   : > { %337 = vst [vmem:[%s2891_s11 + $0x128] sm:$0xf] %v336_v10  ;;  %v464_v10 = vld [vmem:[%s2886_s10 + $0x8a0] sm:$0xf] }
  0x65   : > { %339 = vst [vmem:[%s2891_s11 + $0x12c] sm:$0xf] %v338_v11  ;;  %v466_v11 = vld [vmem:[%s2886_s10 + $0x8b0] sm:$0xf] }
  0x66   : > { %341 = vst [vmem:[%s2891_s11 + $0x130] sm:$0xf] %v340_v12  ;;  %v468_v12 = vld [vmem:[%s2886_s10 + $0x8c0] sm:$0xf] }
  0x67   : > { %343 = vst [vmem:[%s2891_s11 + $0x134] sm:$0xf] %v342_v13  ;;  %v470_v13 = vld [vmem:[%s2886_s10 + $0x8d0] sm:$0xf] }
  0x68   : > { %345 = vst [vmem:[%s2891_s11 + $0x138] sm:$0xf] %v344_v14  ;;  %v472_v14 = vld [vmem:[%s2886_s10 + $0x8e0] sm:$0xf] }
  0x69   : > { %347 = vst [vmem:[%s2891_s11 + $0x13c] sm:$0xf] %v346_v15  ;;  %v474_v15 = vld [vmem:[%s2886_s10 + $0x8f0] sm:$0xf] }
  0x6a   : > { %349 = vst [vmem:[%s2891_s11 + $0x140] sm:$0xf] %v348_v16 }
  0x6b   : > { %351 = vst [vmem:[%s2891_s11 + $0x144] sm:$0xf] %v350_v17 }
  0x6c   : > { %353 = vst [vmem:[%s2891_s11 + $0x148] sm:$0xf] %v352_v18 }
  0x6d   : > { %355 = vst [vmem:[%s2891_s11 + $0x14c] sm:$0xf] %v354_v19 }
  0x6e   : > { %357 = vst [vmem:[%s2891_s11 + $0x150] sm:$0xf] %v356_v20 }
  0x6f   : > { %359 = vst [vmem:[%s2891_s11 + $0x154] sm:$0xf] %v358_v21 }
  0x70   : > { %361 = vst [vmem:[%s2891_s11 + $0x158] sm:$0xf] %v360_v22 }
  0x71   : > { %363 = vst [vmem:[%s2891_s11 + $0x15c] sm:$0xf] %v362_v23 }
  0x72   : > { %365 = vst [vmem:[%s2891_s11 + $0x160] sm:$0xf] %v364_v24 }
  0x73   : > { %367 = vst [vmem:[%s2891_s11 + $0x164] sm:$0xf] %v366_v25 }
  0x74   : > { %369 = vst [vmem:[%s2891_s11 + $0x168] sm:$0xf] %v368_v26 }
  0x75   : > { %371 = vst [vmem:[%s2891_s11 + $0x16c] sm:$0xf] %v370_v27 }
  0x76   : > { %373 = vst [vmem:[%s2891_s11 + $0x170] sm:$0xf] %v372_v28 }
  0x77   : > { %375 = vst [vmem:[%s2891_s11 + $0x174] sm:$0xf] %v374_v29 }
  0x78   : > { %377 = vst [vmem:[%s2891_s11 + $0x178] sm:$0xf] %v376_v30 }
  0x79   : > { %379 = vst [vmem:[%s2891_s11 + $0x17c] sm:$0xf] %v378_v31 }
  0x7a   : > { %381 = vst [vmem:[%s2891_s11 + $0x180] sm:$0xf] %v380_v32 }
  0x7b   : > { %383 = vst [vmem:[%s2891_s11 + $0x184] sm:$0xf] %v382_v33 }
  0x7c   : > { %385 = vst [vmem:[%s2891_s11 + $0x188] sm:$0xf] %v384_v34 }
  0x7d   : > { %387 = vst [vmem:[%s2891_s11 + $0x18c] sm:$0xf] %v386_v35 }
  0x7e   : > { %389 = vst [vmem:[%s2891_s11 + $0x190] sm:$0xf] %v388_v36 }
  0x7f   : > { %391 = vst [vmem:[%s2891_s11 + $0x194] sm:$0xf] %v390_v37 }
  0x80   : > { %393 = vst [vmem:[%s2891_s11 + $0x198] sm:$0xf] %v392_v38 }
  0x81   : > { %395 = vst [vmem:[%s2891_s11 + $0x19c] sm:$0xf] %v394_v39 }
  0x82   : > { %397 = vst [vmem:[%s2891_s11 + $0x1a0] sm:$0xf] %v396_v40 }
  0x83   : > { %399 = vst [vmem:[%s2891_s11 + $0x1a4] sm:$0xf] %v398_v41 }
  0x84   : > { %401 = vst [vmem:[%s2891_s11 + $0x1a8] sm:$0xf] %v400_v42 }
  0x85   : > { %403 = vst [vmem:[%s2891_s11 + $0x1ac] sm:$0xf] %v402_v43 }
  0x86   : > { %405 = vst [vmem:[%s2891_s11 + $0x1b0] sm:$0xf] %v404_v44 }
  0x87   : > { %407 = vst [vmem:[%s2891_s11 + $0x1b4] sm:$0xf] %v406_v45 }
  0x88   : > { %409 = vst [vmem:[%s2891_s11 + $0x1b8] sm:$0xf] %v408_v46 }
  0x89   : > { %411 = vst [vmem:[%s2891_s11 + $0x1bc] sm:$0xf] %v410_v47 }
  0x8a   : > { %413 = vst [vmem:[%s2891_s11 + $0x1c0] sm:$0xf] %v412_v48 }
  0x8b   : > { %415 = vst [vmem:[%s2891_s11 + $0x1c4] sm:$0xf] %v414_v49 }
  0x8c   : > { %417 = vst [vmem:[%s2891_s11 + $0x1c8] sm:$0xf] %v416_v50 }
  0x8d   : > { %419 = vst [vmem:[%s2891_s11 + $0x1cc] sm:$0xf] %v418_v51 }
  0x8e   : > { %421 = vst [vmem:[%s2891_s11 + $0x1d0] sm:$0xf] %v420_v52 }
  0x8f   : > { %423 = vst [vmem:[%s2891_s11 + $0x1d4] sm:$0xf] %v422_v53 }
  0x90   : > { %425 = vst [vmem:[%s2891_s11 + $0x1d8] sm:$0xf] %v424_v54 }
  0x91   : > { %427 = vst [vmem:[%s2891_s11 + $0x1dc] sm:$0xf] %v426_v55 }
  0x92   : > { %429 = vst [vmem:[%s2891_s11 + $0x1e0] sm:$0xf] %v428_v56 }
  0x93   : > { %431 = vst [vmem:[%s2891_s11 + $0x1e4] sm:$0xf] %v430_v57 }
  0x94   : > { %433 = vst [vmem:[%s2891_s11 + $0x1e8] sm:$0xf] %v432_v58 }
  0x95   : > { %435 = vst [vmem:[%s2891_s11 + $0x1ec] sm:$0xf] %v434_v59 }
  0x96   : > { %437 = vst [vmem:[%s2891_s11 + $0x1f0] sm:$0xf] %v436_v60 }
  0x97   : > { %439 = vst [vmem:[%s2891_s11 + $0x1f4] sm:$0xf] %v438_v61 }
  0x98   : > { %441 = vst [vmem:[%s2891_s11 + $0x1f8] sm:$0xf] %v440_v62 }
  0x99   : > { %443 = vst [vmem:[%s2891_s11 + $0x1fc] sm:$0xf] %v442_v63 }
  0x9a   : > { %445 = vst [vmem:[%s2891_s11 + $0x200] sm:$0xf] %v444_v0 }
  0x9b   : > { %447 = vst [vmem:[%s2891_s11 + $0x204] sm:$0xf] %v446_v1 }
  0x9c   : > { %449 = vst [vmem:[%s2891_s11 + $0x208] sm:$0xf] %v448_v2 }
  0x9d   : > { %451 = vst [vmem:[%s2891_s11 + $0x20c] sm:$0xf] %v450_v3 }
  0x9e   : > { %453 = vst [vmem:[%s2891_s11 + $0x210] sm:$0xf] %v452_v4 }
  0x9f   : > { %455 = vst [vmem:[%s2891_s11 + $0x214] sm:$0xf] %v454_v5 }
  0xa0   : > { %457 = vst [vmem:[%s2891_s11 + $0x218] sm:$0xf] %v456_v6 }
  0xa1   : > { %459 = vst [vmem:[%s2891_s11 + $0x21c] sm:$0xf] %v458_v7 }
  0xa2   : > { %461 = vst [vmem:[%s2891_s11 + $0x220] sm:$0xf] %v460_v8 }
  0xa3   : > { %463 = vst [vmem:[%s2891_s11 + $0x224] sm:$0xf] %v462_v9 }
  0xa4   : > { %465 = vst [vmem:[%s2891_s11 + $0x228] sm:$0xf] %v464_v10 }
  0xa5   : > { %467 = vst [vmem:[%s2891_s11 + $0x22c] sm:$0xf] %v466_v11 }
  0xa6   : > { %469 = vst [vmem:[%s2891_s11 + $0x230] sm:$0xf] %v468_v12 }
  0xa7   : > { %471 = vst [vmem:[%s2891_s11 + $0x234] sm:$0xf] %v470_v13 }
  0xa8   : > { %473 = vst [vmem:[%s2891_s11 + $0x238] sm:$0xf] %v472_v14 }
  0xa9   : > { %475 = vst [vmem:[%s2891_s11 + $0x23c] sm:$0xf] %v474_v15 }
  0xaa PF: > { %p2135_p11 = scmp.ge.s32.totalorder %s2784_s20, 1  ;;  %p792_p12 = scmp.lt.s32.totalorder %s2784_s20, 9 }
  0xac   : > { %p793_p13 = pnand %p2135_p11, %p792_p12 }
  0xad   : > { %s799_s21 = sand.u32 (!%p793_p13), 1, %s2760_s14   ;;  %p829_p0 = scmp.lt.s32.totalorder (!%p793_p13), %s2772_s17, 1 }
  0xae   : > { %796 = sbr.rel (%p793_p13) target bundleno = 510 (0x1fe), region = 69  ;;  %p834_p1 = scmp.lt.s32.totalorder (!%p793_p13), %s2768_s16, 3 }
  0xaf   : > { %s2639_s24 = smul.u32 (!%p793_p13), 576, %s799_s21  ;;  %s826_s21 = sand.u32 (!%p793_p13), 1, %s2752_s12  }
  0xb1   : > { %s3183_s26 = scalar_lea.vmem (!%p793_p13), [#allocation2], %s2639_s24  ;;  %s2136_s24 = sshll.u32 (!%p793_p13), %s826_s21, 5 }
  0xb3   : > { %s830_s25 = scalar_select %p829_p0, %s2772_s17, 1  ;;  %v2558_v16 = vld [vmem:[%s3183_s26 + $0xf8] sm:$0xff]  ;;  %v2557_v19 = vld [vmem:[%s3183_s26 + $0xf0] sm:$0xff]  ;;  %v2556_v22 = vld [vmem:[%s3183_s26 + $0xe8] sm:$0xff] }
  0xb4   : > { %v2574_v17 = vld [vmem:[%s3183_s26 + $0x178] sm:$0xff]  ;;  %1275 = vmatpush.bf16.msra.mxu0 %v2558_v16  ;;  %2622 = vmatpush.bf16.msra.mxu1 %v2558_v16  ;;  %v2573_v20 = vld [vmem:[%s3183_s26 + $0x170] sm:$0xff]  ;;  %v2572_v23 = vld [vmem:[%s3183_s26 + $0x168] sm:$0xff]  ;;  %s3411_s6 = scalar_select %p834_p1, %s2768_s16, 3 }
  0xb5   : > { %v2534_v18 = vld [vmem:[%s3183_s26 + $0x38] sm:$0xff]  ;;  %s2640_s28 = smul.u32 80, %s830_s25  ;;  %1333 = vmatpush.bf16.msra.mxu2 %v2574_v17  ;;  %v2533_v21 = vld [vmem:[%s3183_s26 + $0x30] sm:$0xff]  ;;  %v2532_v24 = vld [vmem:[%s3183_s26 + $0x28] sm:$0xff]  ;;  %s3462_s25 = scalar_lea.vmem [#allocation3], %s2136_s24 }
  0xb6   : > { %1530 = vmatpush.bf16.msra.mxu3 %v2534_v18  ;;  %v2555_v26 = vld [vmem:[%s3183_s26 + $0xe0] sm:$0xff]  ;;  %v2554_v35 = vld [vmem:[%s3183_s26 + $0xd8] sm:$0xff]  ;;  %v2553_v44 = vld [vmem:[%s3183_s26 + $0xd0] sm:$0xff]  ;;  %s836_s9 = scalar_lea.vmem %s3528_s2, %s3411_s6  ;;  %s2523_s12 = sshll.u32 (%p2873_p9), %s2772_s17, 5 }
  0xb7   : > { %s3194_s5 = scalar_lea.vmem %s3526_s0, %s2640_s28  ;;  %v2571_v27 = vld [vmem:[%s3183_s26 + $0x160] sm:$0xff]  ;;  %v2570_v40 = vld [vmem:[%s3183_s26 + $0x158] sm:$0xff]  ;;  %v2569_v48 = vld [vmem:[%s3183_s26 + $0x150] sm:$0xff] }
  0xb8   : > { %1276 = vmatpush.bf16.msra.mxu0 %v2557_v19  ;;  %2623 = vmatpush.bf16.msra.mxu1 %v2557_v19  ;;  %v846_v25 = vld [vmem:[%s3194_s5 + $0x10] sm:$0xf]  ;;  %v847_v29 = vld [vmem:[%s3194_s5 + $0x14] sm:$0x1]  ;;  %v2531_v30 = vld [vmem:[%s3183_s26 + $0x20] sm:$0xff] }
  0xb9   : > { %1334 = vmatpush.bf16.msra.mxu2 %v2573_v20  ;;  %v3202_v28 = vunpack.c.l.b16 %v846_v25  ;;  %v844_v31 = vld [vmem:[%s3194_s5 + $0x8] sm:$0xf]  ;;  %v845_v32 = vld [vmem:[%s3194_s5 + $0xc] sm:$0x1]  ;;  %v887_v33 = vunpack.c.l.b16 %v847_v29  ;;  %v848_v34 = vld [vmem:[%s3194_s5 + $0x18] sm:$0xf] }
  0xba   : > { %1531 = vmatpush.bf16.msra.mxu3 %v2533_v21  ;;  %v3210_v36 = vunpack.c.l.b16 %v844_v31  ;;  %v885_v37 = vunpack.c.l.b16 %v845_v32  ;;  %v3215_v39 = vunpack.c.l.b16 %v848_v34  ;;  %v2530_v41 = vld [vmem:[%s3183_s26 + $0x18] sm:$0xff]  ;;  %v2529_v49 = vld [vmem:[%s3183_s26 + $0x10] sm:$0xff]  ;;  %v2552_v51 = vld [vmem:[%s3183_s26 + $0xc8] sm:$0xff] }
  0xbb   : > { %v3213_v38 = vpack.c.b16 %v887_v33, %v3202_v28  ;;  %v849_v42 = vld [vmem:[%s3194_s5 + $0x1c] sm:$0x1]  ;;  %v852_v52 = vld [vmem:[%s3194_s5 + $0x28] sm:$0xf]  ;;  %v854_v53 = vld [vmem:[%s3194_s5 + $0x30] sm:$0xf] }
  0xbc   : > { %1277 = vmatpush.bf16.msra.mxu0 %v2556_v22  ;;  %2624 = vmatpush.bf16.msra.mxu1 %v2556_v22  ;;  %v889_v43 = vunpack.c.l.b16 %v849_v42  ;;  %v3222_v45 = vpack.c.b16 %v885_v37, %v3210_v36  ;;  %v2568_v57 = vld [vmem:[%s3183_s26 + $0x148] sm:$0xff]  ;;  %v842_v59 = vld [vmem:[%s3194_s5] sm:$0xf]  ;;  %v3243_v61 = vunpack.c.l.b16 %v852_v52  ;;  %v3245_v62 = vunpack.c.l.b16 %v854_v53  ;;  %v851_v5 = vld [vmem:[%s3194_s5 + $0x24] sm:$0x1] }
  0xbd   : > { %1335 = vmatpush.bf16.msra.mxu2 %v2572_v23  ;;  %v984_v46 = vrot.slane %v3213_v38, 1  ;;  %v2528_v58 = vld [vmem:[%s3183_s26 + $0x8] sm:$0xff]  ;;  %v2551_v63 = vld [vmem:[%s3183_s26 + $0xc0] sm:$0xff]  ;;  %v882_v2 = vunpack.c.l.b16 %v842_v59  ;;  %v2566_v6 = vld [vmem:[%s3183_s26 + $0x138] sm:$0xff]  ;;  %v1107_v8 = vpack.c.b16 %v3202_v28, %v3210_v36  ;;  %v891_v13 = vunpack.c.l.b16 %v851_v5 }
  0xbe   : > { %1532 = vmatpush.bf16.msra.mxu3 %v2532_v24  ;;  %v3226_v47 = vpack.c.b16 %v889_v43, %v3215_v39  ;;  %v983_v54 = vrot.slane %v3222_v45, 1  ;;  %v2567_v0 = vld [vmem:[%s3183_s26 + $0x140] sm:$0xff]  ;;  %v2542_v7 = vld [vmem:[%s3183_s26 + $0x78] sm:$0xff]  ;;  %v1113_v9 = vpack.c.b16 %v3245_v62, %v3243_v61  ;;  %v2565_v16 = vld [vmem:[%s3183_s26 + $0x130] sm:$0xff]  ;;  %v3308_v53 = vpack.c.b16 %v3215_v39, %v3202_v28 }
  0xbf   : > { %v997_v55 = vunpack.c.l.b16 %v984_v46  ;;  %v2527_v3 = vld [vmem:[%s3183_s26] sm:$0xff]  ;;  %v1362_v11 = vpack.c.b16 %v3210_v36, %v882_v2  ;;  %v2582_v14 = vld [vmem:[%s3183_s26 + $0x1b8] sm:$0xff]  ;;  %v2541_v17 = vld [vmem:[%s3183_s26 + $0x70] sm:$0xff]  ;;  %v922_v46 = vshll.u32 %v3222_v45, 16  ;;  %v927_v28 = vshrl.u32 %v3213_v38, 16 }
  0xc0   : > { %1278 = vmatpush.bf16.msra.mxu0 %v2555_v26  ;;  %2625 = vmatpush.bf16.msra.mxu1 %v2555_v26  ;;  %v985_v50 = vrot.slane %v3226_v47, 1  ;;  %v3249_v1 = vunpack.c.l.b16 %v983_v54  ;;  %v850_v4 = vld [vmem:[%s3194_s5 + $0x20] sm:$0xf]  ;;  %v2590_v15 = vld [vmem:[%s3183_s26 + $0x1f8] sm:$0xff]  ;;  %v843_v18 = vld [vmem:[%s3194_s5 + $0x4] sm:$0x1] }
  0xc1   : > { %1336 = vmatpush.bf16.msra.mxu2 %v2571_v27  ;;  %v3262_v12 = vunpack.c.l.b16 %v850_v4  ;;  %v2581_v20 = vld [vmem:[%s3183_s26 + $0x1b0] sm:$0xff]  ;;  %v2564_v22 = vld [vmem:[%s3183_s26 + $0x128] sm:$0xff]  ;;  %v883_v24 = vunpack.c.l.b16 %v843_v18  ;;  %v856_v25 = vld [vmem:[%s3194_s5 + $0x38] sm:$0xf] }
  0xc2   : > { %1533 = vmatpush.bf16.msra.mxu3 %v2531_v30  ;;  %v3235_v56 = vunpack.c.l.b16 %v985_v50  ;;  %v1109_v10 = vpack.c.b16 %v997_v55, %v3249_v1  ;;  %v2589_v21 = vld [vmem:[%s3183_s26 + $0x1f0] sm:$0xff]  ;;  %v2540_v23 = vld [vmem:[%s3183_s26 + $0x68] sm:$0xff]  ;;  %v858_v26 = vld [vmem:[%s3194_s5 + $0x40] sm:$0xf]  ;;  %v3285_v34 = vunpack.c.l.b16 %v856_v25  ;;  %v929_v50 = vshll.u32 %v3213_v38, 16 }
  0xc3   : > { %v3270_v19 = vpack.c.b16 %v891_v13, %v3262_v12  ;;  %v2580_v29 = vld [vmem:[%s3183_s26 + $0x1a8] sm:$0xff]  ;;  %v2563_v31 = vld [vmem:[%s3183_s26 + $0x120] sm:$0xff]  ;;  %v3283_v33 = vpack.c.b16 %v883_v24, %v882_v2  ;;  %v2562_v43 = vld [vmem:[%s3183_s26 + $0x118] sm:$0xff] }
  0xc4   : > { %1279 = vmatpush.bf16.msra.mxu0 %v2554_v35  ;;  %2626 = vmatpush.bf16.msra.mxu1 %v2554_v35  ;;  %v3241_v60 = vpack.c.b16 %v3235_v56, %v997_v55  ;;  %v2588_v30 = vld [vmem:[%s3183_s26 + $0x1e8] sm:$0xff]  ;;  %v2539_v32 = vld [vmem:[%s3183_s26 + $0x60] sm:$0xff]  ;;  %v3287_v35 = vunpack.c.l.b16 %v858_v26  ;;  %v2537_v59 = vld [vmem:[%s3183_s26 + $0x50] sm:$0xff] }
  0xc5   : > { %1337 = vmatpush.bf16.msra.mxu2 %v2570_v40  ;;  %v986_v27 = vrot.slane %v3270_v19, 1  ;;  %v853_v37 = vld [vmem:[%s3194_s5 + $0x2c] sm:$0x1]  ;;  %v855_v40 = vld [vmem:[%s3194_s5 + $0x34] sm:$0x1]  ;;  %v2587_v42 = vld [vmem:[%s3183_s26 + $0x1e0] sm:$0xff] }
  0xc6   : > { %1534 = vmatpush.bf16.msra.mxu3 %v2530_v41  ;;  %v2579_v41 = vld [vmem:[%s3183_s26 + $0x1a0] sm:$0xff]  ;;  %v893_v54 = vunpack.c.l.b16 %v853_v37  ;;  %v895_v55 = vunpack.c.l.b16 %v855_v40  ;;  %v2577_v4 = vld [vmem:[%s3183_s26 + $0x190] sm:$0xff]  ;;  %v2586_v5 = vld [vmem:[%s3183_s26 + $0x1d8] sm:$0xff]  ;;  %v943_v37 = vshll.u32 %v3270_v19, 16 }
  0xc7   : > { %v3289_v36 = vunpack.c.l.b16 %v986_v27  ;;  %v2560_v38 = vld [vmem:[%s3183_s26 + $0x108] sm:$0xff]  ;;  %v857_v26 = vld [vmem:[%s3194_s5 + $0x3c] sm:$0x1]  ;;  %v859_v27 = vld [vmem:[%s3194_s5 + $0x44] sm:$0x1] }
  0xc8   : > { %1280 = vmatpush.bf16.msra.mxu0 %v2553_v44  ;;  %2627 = vmatpush.bf16.msra.mxu1 %v2553_v44  ;;  %v2538_v44 = vld [vmem:[%s3183_s26 + $0x58] sm:$0xff]  ;;  %v2584_v25 = vld [vmem:[%s3183_s26 + $0x1c8] sm:$0xff] }
  0xc9   : > { %1338 = vmatpush.bf16.msra.mxu2 %v2569_v48  ;;  %v1110_v48 = vpack.c.b16 %v3262_v12, %v3215_v39  ;;  %v1112_v52 = vpack.c.b16 %v3289_v36, %v3235_v56  ;;  %v931_v39 = vrot.slane %v929_v50, 1  ;;  %v913_v56 = vshrl.u32 %v3283_v33, 16 }
  0xca   : > { %1535 = vmatpush.bf16.msra.mxu3 %v2529_v49  ;;  %v1116_v49 = vpack.c.b16 %v3287_v35, %v3285_v34 }
  0xcc   : > { %1281 = vmatpush.bf16.msra.mxu0 %v2552_v51  ;;  %2628 = vmatpush.bf16.msra.mxu1 %v2552_v51  ;;  %v915_v51 = vshll.u32 %v3283_v33, 16 }
  0xcd   : > { %1339 = vmatpush.bf16.msra.mxu2 %v2568_v57  ;;  %v2578_v57 = vld [vmem:[%s3183_s26 + $0x198] sm:$0xff] }
  0xce   : > { %1536 = vmatpush.bf16.msra.mxu3 %v2528_v58  ;;  %v2561_v58 = vld [vmem:[%s3183_s26 + $0x110] sm:$0xff]  ;;  %v917_v2 = vrot.slane %v915_v51, 1  ;;  %v941_v51 = vshrl.u32 %v3270_v19, 16 }
  0xd0   : > { %1282 = vmatpush.bf16.msra.mxu0 %v2551_v63  ;;  %2629 = vmatpush.bf16.msra.mxu1 %v2551_v63  ;;  %v920_v63 = vshrl.u32 %v3222_v45, 16  ;;  %v3321_v45 = vpack.c.b16 %v895_v55, %v3245_v62  ;;  %v2596_v55 = vld [vmem:[%s3183_s26 + $0x228] sm:$0xff] }
  0xd1   : > { %1340 = vmatpush.bf16.msra.mxu2 %v2567_v0  ;;  %v924_v0 = vrot.slane %v922_v46, 1  ;;  %v2597_v46 = vld [vmem:[%s3183_s26 + $0x230] sm:$0xff] }
  0xd2   : > { %1537 = vmatpush.bf16.msra.mxu3 %v2527_v3  ;;  %v3318_v3 = vpack.c.b16 %v893_v54, %v3243_v61  ;;  %v988_v13 = vrot.slane %v3321_v45, 1  ;;  %v2548_v54 = vld [vmem:[%s3183_s26 + $0xa8] sm:$0xff] }
  0xd3   : > { %1283 = vmatmul.bf16.vlgmr.msra.gmra.mxu0 %v1107_v8  ;;  %1293 = vmatmul.bf16.vlgmr.msra.gmra.mxu1 %v1113_v9  ;;  %v3327_v8 = vor.u32 %v931_v39, %v927_v28  ;;  %v918_v9 = vor.u32 %v917_v2, %v913_v56  ;;  %v2546_v2 = vld [vmem:[%s3183_s26 + $0x98] sm:$0xff] }
  0xd4   : > { %1304 = vmatpush.bf16.msrb.mxu1 %v2566_v6  ;;  %1559 = vmatpush.bf16.msrb.mxu0 %v2542_v7  ;;  %v2536_v6 = vld [vmem:[%s3183_s26 + $0x48] sm:$0xff]  ;;  %v925_v7 = vor.u32 %v924_v0, %v920_v63  ;;  %v3340_v24 = vunpack.c.l.b16 %v988_v13  ;;  %v2595_v63 = vld [vmem:[%s3183_s26 + $0x220] sm:$0xff]  ;;  %v955_v13 = vshrl.u32 %v3321_v45, 16 }
  0xd5   : > { %1341 = vmatmul.bf16.vlgmr.msra.gmra.mxu2 %v1109_v10  ;;  %1538 = vmatmul.bf16.vlgmr.msra.gmra.mxu3 %v1362_v11  ;;  %v2585_v10 = vld [vmem:[%s3183_s26 + $0x1d0] sm:$0xff]  ;;  %v987_v11 = vrot.slane %v3318_v3, 1  ;;  %v996_v18 = vunpack.c.l.b16 %v3327_v8  ;;  %v948_v8 = vshrl.u32 %v3318_v3, 16 }
  0xd6   : > { %1818 = vmatpush.bf16.msrb.mxu2 %v2582_v14  ;;  %1847 = vmatpush.bf16.msrb.mxu3 %v2590_v15  ;;  %v2576_v14 = vld [vmem:[%s3183_s26 + $0x188] sm:$0xff]  ;;  %v2559_v15 = vld [vmem:[%s3183_s26 + $0x100] sm:$0xff] }
  0xd8   : > { %1305 = vmatpush.bf16.msrb.mxu1 %v2565_v16  ;;  %1560 = vmatpush.bf16.msrb.mxu0 %v2541_v17  ;;  %v2535_v16 = vld [vmem:[%s3183_s26 + $0x40] sm:$0xff]  ;;  %v994_v17 = vunpack.c.l.b16 %v925_v7 }
  0xda   : > { %1819 = vmatpush.bf16.msrb.mxu2 %v2581_v20  ;;  %1848 = vmatpush.bf16.msrb.mxu3 %v2589_v21  ;;  %v992_v20 = vunpack.c.l.b16 %v918_v9  ;;  %v2550_v21 = vld [vmem:[%s3183_s26 + $0xb8] sm:$0xff]  ;;  %v3387_v9 = vpack.c.b16 %v3285_v34, %v3245_v62  ;;  %v2544_v62 = vld [vmem:[%s3183_s26 + $0x88] sm:$0xff] }
  0xdc   : > { %1306 = vmatpush.bf16.msrb.mxu1 %v2564_v22  ;;  %1561 = vmatpush.bf16.msrb.mxu0 %v2540_v23  ;;  %v2598_v22 = vld [vmem:[%s3183_s26 + $0x238] sm:$0xff]  ;;  %v3338_v23 = vunpack.c.l.b16 %v987_v11 }
  0xde   : > { %1820 = vmatpush.bf16.msrb.mxu2 %v2580_v29  ;;  %1849 = vmatpush.bf16.msrb.mxu3 %v2588_v30  ;;  %v2575_v29 = vld [vmem:[%s3183_s26 + $0x180] sm:$0xff]  ;;  %v1108_v30 = vpack.c.b16 %v996_v18, %v994_v17  ;;  %v1115_v40 = vpack.c.b16 %v3340_v24, %v3338_v23 }
  0xe0   : > { %1307 = vmatpush.bf16.msrb.mxu1 %v2563_v31  ;;  %1562 = vmatpush.bf16.msrb.mxu0 %v2539_v32  ;;  %v1363_v31 = vpack.c.b16 %v994_v17, %v992_v20  ;;  %v936_v32 = vshll.u32 %v3226_v47, 16 }
  0xe2   : > { %1821 = vmatpush.bf16.msrb.mxu2 %v2579_v41  ;;  %1850 = vmatpush.bf16.msrb.mxu3 %v2587_v42  ;;  %v3354_v41 = vpack.c.b16 %v3243_v61, %v3262_v12  ;;  %v897_v42 = vunpack.c.l.b16 %v857_v26  ;;  %v938_v50 = vrot.slane %v936_v32, 1 }
  0xe3   : > { %1288 = vmatmul.bf16.gmra.mxu0 %v1110_v48  ;;  %1298 = vmatmul.bf16.gmra.mxu1 %v1116_v49  ;;  %v2583_v48 = vld [vmem:[%s3183_s26 + $0x1c0] sm:$0xff]  ;;  %v934_v49 = vshrl.u32 %v3226_v47, 16 }
  0xe4   : > { %1308 = vmatpush.bf16.msrb.mxu1 %v2562_v43  ;;  %1563 = vmatpush.bf16.msrb.mxu0 %v2538_v44  ;;  %v899_v43 = vunpack.c.l.b16 %v859_v27  ;;  %v2549_v44 = vld [vmem:[%s3183_s26 + $0xb0] sm:$0xff]  ;;  %v3363_v61 = vpack.c.b16 %v897_v42, %v3285_v34 }
  0xe5   : > { %1346 = vmatmul.bf16.gmra.mxu2 %v1112_v52  ;;  %1543 = vmatmul.bf16.gmra.mxu3 %v3308_v53  ;;  %v945_v52 = vrot.slane %v943_v37, 1  ;;  %v939_v47 = vor.u32 %v938_v50, %v934_v49  ;;  %v2593_v34 = vld [vmem:[%s3183_s26 + $0x210] sm:$0xff]  ;;  %v861_v49 = vld [vmem:[%s3194_s5 + $0x4c] sm:$0x1]  ;;  %v982_v50 = vrot.slane %v3283_v33, 1 }
  0xe6   : > { %1822 = vmatpush.bf16.msrb.mxu2 %v2578_v57  ;;  %1851 = vmatpush.bf16.msrb.mxu3 %v2586_v5  ;;  %v3366_v12 = vpack.c.b16 %v899_v43, %v3287_v35  ;;  %v989_v57 = vrot.slane %v3363_v61, 1  ;;  %v964_v26 = vshll.u32 %v3363_v61, 16 }
  0xe7   : > { %v946_v19 = vor.u32 %v945_v52, %v941_v51  ;;  %v998_v0 = vunpack.c.l.b16 %v939_v47  ;;  %v993_v52 = vunpack.c.l.b16 %v982_v50 }
  0xe8   : > { %1309 = vmatpush.bf16.msrb.mxu1 %v2561_v58  ;;  %1564 = vmatpush.bf16.msrb.mxu0 %v2537_v59  ;;  %v990_v58 = vrot.slane %v3366_v12, 1  ;;  %v2547_v59 = vld [vmem:[%s3183_s26 + $0xa0] sm:$0xff]  ;;  %v3374_v39 = vunpack.c.l.b16 %v989_v57  ;;  %v971_v27 = vshll.u32 %v3366_v12, 16 }
  0xe9   : > { %v1000_v28 = vunpack.c.l.b16 %v946_v19  ;;  %v1366_v5 = vpack.c.b16 %v998_v0, %v996_v18  ;;  %v2592_v18 = vld [vmem:[%s3183_s26 + $0x208] sm:$0xff] }
  0xea   : > { %1823 = vmatpush.bf16.msrb.mxu2 %v2577_v4  ;;  %1852 = vmatpush.bf16.msrb.mxu3 %v2585_v10  ;;  %v3376_v56 = vunpack.c.l.b16 %v990_v58  ;;  %v2545_v10 = vld [vmem:[%s3183_s26 + $0x90] sm:$0xff]  ;;  %v973_v32 = vrot.slane %v971_v27, 1 }
  0xeb   : > { %v1111_v4 = vpack.c.b16 %v1000_v28, %v998_v0 }
  0xec   : > { %1310 = vmatpush.bf16.msrb.mxu1 %v2560_v38  ;;  %1565 = vmatpush.bf16.msrb.mxu0 %v2536_v6  ;;  %v950_v38 = vshll.u32 %v3318_v3, 16  ;;  %v957_v6 = vshll.u32 %v3321_v45, 16  ;;  %v1118_v7 = vpack.c.b16 %v3376_v56, %v3374_v39  ;;  %v2543_v3 = vld [vmem:[%s3183_s26 + $0x80] sm:$0xff] }
  0xee   : > { %1824 = vmatpush.bf16.msrb.mxu2 %v2576_v14  ;;  %1853 = vmatpush.bf16.msrb.mxu3 %v2584_v25  ;;  %v952_v11 = vrot.slane %v950_v38, 1  ;;  %v959_v14 = vrot.slane %v957_v6, 1 }
  0xf0   : > { %1311 = vmatpush.bf16.msrb.mxu1 %v2559_v15  ;;  %1566 = vmatpush.bf16.msrb.mxu0 %v2535_v16  ;;  %v2594_v15 = vld [vmem:[%s3183_s26 + $0x218] sm:$0xff]  ;;  %v953_v16 = vor.u32 %v952_v11, %v948_v8  ;;  %v960_v17 = vor.u32 %v959_v14, %v955_v13 }
  0xf2   : > { %1825 = vmatpush.bf16.msrb.mxu2 %v2575_v29  ;;  %1854 = vmatpush.bf16.msrb.mxu3 %v2583_v48  ;;  %v1002_v20 = vunpack.c.l.b16 %v953_v16  ;;  %v1004_v45 = vunpack.c.l.b16 %v960_v17  ;;  %v962_v29 = vshrl.u32 %v3363_v61, 16  ;;  %v860_v48 = vld [vmem:[%s3194_s5 + $0x48] sm:$0xf] }
  0xf3   : > { %1312 = vmatmul.bf16.vlgmr.msrb.gmra.mxu1 %v1108_v30  ;;  %1567 = vmatmul.bf16.vlgmr.msrb.gmra.mxu0 %v1363_v31  ;;  %v966_v30 = vrot.slane %v964_v26, 1  ;;  %v969_v31 = vshrl.u32 %v3366_v12, 16  ;;  %v900_v51 = vunpack.c.l.b16 %v860_v48  ;;  %v1364_v12 = vpack.c.b16 %v3249_v1, %v993_v52 }
  0xf4   : > { %1588 = vmatpush.bf16.msra.mxu1 %v2550_v21  ;;  %1876 = vmatpush.bf16.msra.mxu0 %v2598_v22  ;;  %v2591_v21 = vld [vmem:[%s3183_s26 + $0x200] sm:$0xff]  ;;  %v1369_v25 = vpack.c.b16 %v1002_v20, %v1000_v28  ;;  %v1370_v1 = vpack.c.b16 %v3338_v23, %v3289_v36  ;;  %s1960_s26 = sadd.s32 (%p2873_p9), %s2768_s16, %s2523_s12 }
  0xf5   : > { %1351 = vmatmul.bf16.gmra.mxu2 %v1115_v40  ;;  %1548 = vmatmul.bf16.gmra.mxu3 %v3354_v41  ;;  %v967_v37 = vor.u32 %v966_v30, %v962_v29  ;;  %v974_v40 = vor.u32 %v973_v32, %v969_v31  ;;  %v1668_v19 = vpack.c.b16 %v900_v51, %v3287_v35  ;;  %s2524_s28 = sshll.u32 (%p2873_p9), %s1960_s26, 2 }
  0xf6   : > { %2630 = vmatpush.bf16.msra.mxu2 %v2598_v22  ;;  %v1114_v22 = vpack.c.b16 %v1004_v45, %v1002_v20  ;;  %s1962_s30 = scalar_lea.vmem (%p2873_p9), %s3529_s3, %s2524_s28 }
  0xf7   : > { %v1006_v42 = vunpack.c.l.b16 %v967_v37  ;;  %v1056_v43 = vunpack.c.l.b16 %v974_v40 }
  0xf8   : > { %1589 = vmatpush.bf16.msra.mxu1 %v2549_v44  ;;  %1877 = vmatpush.bf16.msra.mxu0 %v2597_v46 }
  0xf9   : > { %v1117_v44 = vpack.c.b16 %v1056_v43, %v1006_v42 }
  0xfa   : > { %2631 = vmatpush.bf16.msra.mxu2 %v2597_v46  ;;  %v1372_v46 = vpack.c.b16 %v1006_v42, %v1004_v45 }
  0xfc   : > { %1590 = vmatpush.bf16.msra.mxu1 %v2548_v54  ;;  %1878 = vmatpush.bf16.msra.mxu0 %v2596_v55 }
  0xfe   : > { %2632 = vmatpush.bf16.msra.mxu2 %v2596_v55 }
 0x100   : > { %1591 = vmatpush.bf16.msra.mxu1 %v2547_v59  ;;  %1879 = vmatpush.bf16.msra.mxu0 %v2595_v63 }
 0x102   : > { %2633 = vmatpush.bf16.msra.mxu2 %v2595_v63  ;;  %v1373_v63 = vpack.c.b16 %v3374_v39, %v3340_v24 }
 0x103   : > { %1317 = vmatmul.bf16.gmra.mxu1 %v1111_v4  ;;  %1572 = vmatmul.bf16.gmra.mxu0 %v1366_v5 }
 0x104   : > { %1592 = vmatpush.bf16.msra.mxu1 %v2546_v2  ;;  %1880 = vmatpush.bf16.msra.mxu0 %v2594_v15 }
 0x105   : > { %1356 = vmatmul.bf16.gmra.mxu2 %v1118_v7  ;;  %1553 = vmatmul.bf16.gmra.mxu3 %v3387_v9 }
 0x106   : > { %2634 = vmatpush.bf16.msra.mxu2 %v2594_v15 }
 0x108   : > { %1593 = vmatpush.bf16.msra.mxu1 %v2545_v10  ;;  %1881 = vmatpush.bf16.msra.mxu0 %v2593_v34 }
 0x10a   : > { %2635 = vmatpush.bf16.msra.mxu2 %v2593_v34 }
 0x10c   : > { %1594 = vmatpush.bf16.msra.mxu1 %v2544_v62  ;;  %1882 = vmatpush.bf16.msra.mxu0 %v2592_v18 }
 0x10e   : > { %2636 = vmatpush.bf16.msra.mxu2 %v2592_v18 }
 0x110   : > { %1595 = vmatpush.bf16.msra.mxu1 %v2543_v3  ;;  %1883 = vmatpush.bf16.msra.mxu0 %v2591_v21 }
 0x112   : > { %2637 = vmatpush.bf16.msra.mxu2 %v2591_v21 }
 0x113   : > { %1322 = vmatmul.bf16.gmra.mxu1 %v1114_v22  ;;  %1577 = vmatmul.bf16.gmra.mxu0 %v1369_v25 }
 0x115   : > { %1826 = vmatmul.bf16.vlgmr.msrb.gmra.mxu2 %v3308_v53  ;;  %1855 = vmatmul.bf16.vlgmr.msrb.gmra.mxu3 %v1366_v5  ;;  %v901_v53 = vunpack.c.l.b16 %v861_v49 }
 0x117   : > { %v911_v61 = vpack.c.b16 %v901_v53, %v900_v51 }
 0x119   : > { %v978_v54 = vshll.u32 %v911_v61, 16  ;;  %v976_v33 = vshrl.u32 %v911_v61, 16  ;;  %v991_v58 = vrot.slane %v911_v61, 1 }
 0x11b   : > { %v1618_v59 = vunpack.c.l.b16 %v991_v58 }
 0x11d   : > { %v1670_v2 = vpack.c.b16 %v1618_v59, %v3376_v56 }
 0x123   : > { %1327 = vmatmul.bf16.gmra.mxu1 %v1117_v44  ;;  %1582 = vmatmul.bf16.gmra.mxu0 %v1372_v46 }
 0x125   : > { %1831 = vmatmul.bf16.gmra.mxu2 %v3354_v41  ;;  %1860 = vmatmul.bf16.gmra.mxu3 %v1369_v25  ;;  %v980_v41 = vrot.slane %v978_v54, 1 }
 0x127   : > { %v981_v55 = vor.u32 %v980_v41, %v976_v33 }
 0x129   : > { %v1617_v47 = vunpack.c.l.b16 %v981_v55 }
 0x12b   : > { %v1669_v57 = vpack.c.b16 %v1617_v47, %v1056_v43 }
 0x133   : > { %1596 = vmatmul.bf16.vlgmr.msra.gmra.mxu1 %v1364_v12  ;;  %1884 = vmatmul.bf16.vlgmr.msra.gmra.mxu0 %v3241_v60 }
 0x135   : > { %1836 = vmatmul.bf16.gmra.mxu2 %v3387_v9  ;;  %1865 = vmatmul.bf16.gmra.mxu3 %v1372_v46 }
 0x143   : > { %1601 = vmatmul.bf16.gmra.mxu1 %v3241_v60  ;;  %1889 = vmatmul.bf16.gmra.mxu0 %v1370_v1 }
 0x145   : > { %1841 = vmatmul.bf16.gmra.mxu2 %v1668_v19  ;;  %1870 = vmatmul.bf16.gmra.mxu3 %v1669_v57 }
 0x150   : > { %v1284_v0 = vpop.f32.mrf.mxu0  ;;  %v1294_v28 = vpop.f32.mrf.mxu1 }
 0x153   : > { %1606 = vmatmul.bf16.gmra.mxu1 %v1370_v1  ;;  %1894 = vmatmul.bf16.gmra.mxu0 %v1373_v63 }
 0x155   : > { %1899 = vmatmul.bf16.vlgmr.msra.gmra.mxu2 %v1670_v2 }
 0x158   : > { %v1342_v36 = vpop.f32.mrf.mxu2  ;;  %v1539_v35 = vpop.f32.mrf.mxu3 }
 0x159   : > { %v1286_v23 = vpop.f32.mrf.mxu0  ;;  %v1296_v4 = vpop.f32.mrf.mxu1 }
 0x160   : > { %v1344_v60 = vpop.f32.mrf.mxu2  ;;  %v3426_v5 = vpop.f32.mrf.mxu3 }
 0x161   : > { %v1289_v38 = vpop.f32.mrf.mxu0  ;;  %v1299_v6 = vpop.f32.mrf.mxu1 }
 0x163   : > { %1611 = vmatmul.bf16.gmra.mxu1 %v1373_v63 }
 0x168   : > { %v1347_v7 = vpop.f32.mrf.mxu2  ;;  %v1544_v9 = vpop.f32.mrf.mxu3 }
 0x169   : > { %v1291_v24 = vpop.f32.mrf.mxu0  ;;  %v1301_v39 = vpop.f32.mrf.mxu1 }
 0x170   : > { %v1349_v10 = vpop.f32.mrf.mxu2  ;;  %v3428_v8 = vpop.f32.mrf.mxu3 }
 0x171   : > { %v1313_v56 = vpop.f32.mrf.mxu1  ;;  %v1568_v11 = vpop.f32.mrf.mxu0 }
 0x172   : > { %v1314_v13 = vadd.f32 %v1313_v56, %v1284_v0 }
 0x174   : > { %v1343_v14 = vadd.f32 %v1342_v36, %v1314_v13 }
 0x176   : > { %v1540_v15 = vadd.f32 %v1539_v35, %v1343_v14 }
 0x178   : > { %v1569_v62 = vadd.f32 %v1568_v11, %v1540_v15  ;;  %v1352_v34 = vpop.f32.mrf.mxu2  ;;  %v1549_v16 = vpop.f32.mrf.mxu3 }
 0x179   : > { %v1315_v17 = vpop.f32.mrf.mxu1  ;;  %v1570_v3 = vpop.f32.mrf.mxu0 }
 0x17a   : > { %v1316_v18 = vadd.f32 %v1315_v17, %v1286_v23 }
 0x17c   : > { %v1345_v20 = vadd.f32 %v1344_v60, %v1316_v18 }
 0x180   : > { %v1354_v45 = vpop.f32.mrf.mxu2  ;;  %v3430_v21 = vpop.f32.mrf.mxu3 }
 0x181   : > { %v1318_v22 = vpop.f32.mrf.mxu1  ;;  %v1573_v25 = vpop.f32.mrf.mxu0 }
 0x182   : > { %v1319_v26 = vadd.f32 %v1318_v22, %v1289_v38 }
 0x184   : > { %v1348_v27 = vadd.f32 %v1347_v7, %v1319_v26 }
 0x186   : > { %v1545_v29 = vadd.f32 %v1544_v9, %v1348_v27 }
 0x188   : > { %v3432_v30 = vadd.f32 %v1573_v25, %v1545_v29  ;;  %v1357_v31 = vpop.f32.mrf.mxu2  ;;  %v1554_v42 = vpop.f32.mrf.mxu3 }
 0x189   : > { %v1320_v32 = vpop.f32.mrf.mxu1  ;;  %v3434_v37 = vpop.f32.mrf.mxu0 }
 0x18a   : > { %v1321_v40 = vadd.f32 %v1320_v32, %v1291_v24 }
 0x18c   : > { %v1350_v43 = vadd.f32 %v1349_v10, %v1321_v40 }
 0x190   : > { %v1359_v44 = vpop.f32.mrf.mxu2  ;;  %v3436_v51 = vpop.f32.mrf.mxu3 }
 0x191   : > { %v1323_v46 = vpop.f32.mrf.mxu1  ;;  %v1578_v48 = vpop.f32.mrf.mxu0 }
 0x192   : > { %v1324_v49 = vadd.f32 %v1323_v46, %v1294_v28 }
 0x194   : > { %v1353_v50 = vadd.f32 %v1352_v34, %v1324_v49 }
 0x196   : > { %v1550_v53 = vadd.f32 %v1549_v16, %v1353_v50 }
 0x198   : > { %v3438_v52 = vadd.f32 %v1578_v48, %v1550_v53  ;;  %v1827_v61 = vpop.f32.mrf.mxu2  ;;  %v1856_v55 = vpop.f32.mrf.mxu3 }
 0x199   : > { %v1325_v12 = vpop.f32.mrf.mxu1  ;;  %v3440_v54 = vpop.f32.mrf.mxu0  ;;  %v1857_v7 = vadd.f32 %v1856_v55, %v1827_v61 }
 0x19a   : > { %v1326_v33 = vadd.f32 %v1325_v12, %v1296_v4 }
 0x19c   : > { %v3442_v41 = vadd.f32 %v1354_v45, %v1326_v33 }
 0x1a0   : > { %v1829_v47 = vpop.f32.mrf.mxu2  ;;  %v1858_v0 = vpop.f32.mrf.mxu3 }
 0x1a1   : > { %v1328_v1 = vpop.f32.mrf.mxu1  ;;  %v1583_v19 = vpop.f32.mrf.mxu0  ;;  %v1859_v11 = vadd.f32 %v1858_v0, %v1829_v47 }
 0x1a2   : > { %v1329_v57 = vadd.f32 %v1328_v1, %v1299_v6  ;;  %v1542_v6 = vadd.f32 %v3426_v5, %v1345_v20 }
 0x1a4   : > { %v1358_v58 = vadd.f32 %v1357_v31, %v1329_v57  ;;  %v1571_v56 = vadd.f32 %v1570_v3, %v1542_v6  ;;  %v1547_v31 = vadd.f32 %v3428_v8, %v1350_v43 }
 0x1a6   : > { %v1555_v59 = vadd.f32 %v1554_v42, %v1358_v58 }
 0x1a8   : > { %v3444_v63 = vadd.f32 %v1583_v19, %v1555_v59  ;;  %v1832_v28 = vpop.f32.mrf.mxu2  ;;  %v1861_v9 = vpop.f32.mrf.mxu3  ;;  %v1552_v59 = vadd.f32 %v3430_v21, %v3442_v41 }
 0x1a9   : > { %v1330_v2 = vpop.f32.mrf.mxu1  ;;  %v3446_v36 = vpop.f32.mrf.mxu0  ;;  %v1862_v27 = vadd.f32 %v1861_v9, %v1832_v28 }
 0x1aa   : > { %v1331_v35 = vadd.f32 %v1330_v2, %v1301_v39  ;;  %v3456_v39 = vld [vmem:[%s836_s9] ss:$0 sm:$0xff]  ;;  %v1581_v2 = vadd.f32 %v3440_v54, %v1552_v59 }
 0x1ac   : > { %v3448_v23 = vadd.f32 %v1359_v44, %v1331_v35  ;;  %v1576_v44 = vadd.f32 %v3434_v37, %v1547_v31 }
 0x1ae   : > { %v1557_v54 = vadd.f32 %v3436_v51, %v3448_v23 }
 0x1b0   : > { %v1834_v4 = vpop.f32.mrf.mxu2  ;;  %v1863_v18 = vpop.f32.mrf.mxu3 }
 0x1b1   : > { %v1597_v60 = vpop.f32.mrf.mxu1  ;;  %v1885_v38 = vpop.f32.mrf.mxu0  ;;  %v1864_v46 = vadd.f32 %v1863_v18, %v1834_v4  ;;  %v1586_v18 = vadd.f32 %v3446_v36, %v1557_v54 }
 0x1b2   : > { %v1598_v24 = vadd.f32 %v1597_v60, %v1569_v62  ;;  %v1886_v10 = vadd.f32 %v1885_v38, %v1857_v7 }
 0x1b4   : > { %v1905_v13 = vadd.f32 %v1886_v10, %v1598_v24 }
 0x1b6   : > { %v1917_v5 = vadd.f32 %v3456_v39, %v1905_v13 }
 0x1b8   : > { %v1837_v14 = vpop.f32.mrf.mxu2  ;;  %v1925_v20 = vmax.f32 %v1917_v5, 0.0  ;;  %v1866_v42 = vpop.f32.mrf.mxu3 }
 0x1b9   : > { %v1599_v15 = vpop.f32.mrf.mxu1  ;;  %v1887_v34 = vpop.f32.mrf.mxu0  ;;  %v1867_v57 = vadd.f32 %v1866_v42, %v1837_v14 }
 0x1ba   : > { %v1600_v16 = vadd.f32 %v1599_v15, %v1571_v56  ;;  %v1888_v17 = vadd.f32 %v1887_v34, %v1859_v11 }
 0x1bc   : > { %v1906_v62 = vadd.f32 %v1888_v17, %v1600_v16 }
 0x1be   : > { %v1918_v3 = vadd.f32 %v3456_v39, %v1906_v62 }
 0x1c0   : > { %v1926_v45 = vmax.f32 %v1918_v3, 0.0  ;;  %v1839_v22 = vpop.f32.mrf.mxu2  ;;  %v1868_v55 = vpop.f32.mrf.mxu3 }
 0x1c1   : > { %v1602_v25 = vpop.f32.mrf.mxu1  ;;  %v1890_v26 = vpop.f32.mrf.mxu0  ;;  %v1869_v35 = vadd.f32 %v1868_v55, %v1839_v22 }
 0x1c2   : > { %v2602_v29 = vpack.c.bf16 %v1926_v45, %v1925_v20  ;;  %v1603_v32 = vadd.f32 %v1602_v25, %v3432_v30  ;;  %v1891_v40 = vadd.f32 %v1890_v26, %v1862_v27 }
 0x1c4   : > { %2603 = vst [vmem:[%s3462_s25] sm:$0xff] %v2602_v29   ;;  %v1907_v48 = vadd.f32 %v1891_v40, %v1603_v32 }
 0x1c6   : > { %v1919_v8 = vadd.f32 %v3456_v39, %v1907_v48 }
 0x1c8   : > { %v1842_v49 = vpop.f32.mrf.mxu2  ;;  %v1927_v47 = vmax.f32 %v1919_v8, 0.0  ;;  %v1871_v6 = vpop.f32.mrf.mxu3 }
 0x1c9   : > { %v1604_v50 = vpop.f32.mrf.mxu1  ;;  %v1892_v53 = vpop.f32.mrf.mxu0  ;;  %v1872_v14 = vadd.f32 %v1871_v6, %v1842_v49 }
 0x1ca   : > { %v1605_v61 = vadd.f32 %v1604_v50, %v1576_v44  ;;  %v1893_v12 = vadd.f32 %v1892_v53, %v1864_v46 }
 0x1cb   : > { %v1981_v36 = vld [vmem:[%s3462_s25 + $0x4] sm:$0xf] (%p2873_p9) }
 0x1cc   : > { %v1908_v43 = vadd.f32 %v1893_v12, %v1605_v61  ;;  %1982 = vst [vmem:[%s1962_s30 + $0x10] sm:$0xf] (%p2873_p9), %v1981_v36 }
 0x1ce   : > { %v1920_v33 = vadd.f32 %v3456_v39, %v1908_v43 }
 0x1d0   : > { %v1928_v30 = vmax.f32 %v1920_v33, 0.0  ;;  %v1844_v58 = vpop.f32.mrf.mxu2  ;;  %v1873_v34 = vpop.f32.mrf.mxu3 }
 0x1d1   : > { %v1607_v1 = vpop.f32.mrf.mxu1  ;;  %v1895_v19 = vpop.f32.mrf.mxu0  ;;  %v1874_v5 = vadd.f32 %v1873_v34, %v1844_v58 }
 0x1d2   : > { %v2607_v37 = vpack.c.bf16 %v1928_v30, %v1927_v47  ;;  %v1608_v0 = vadd.f32 %v1607_v1, %v3438_v52  ;;  %v1896_v28 = vadd.f32 %v1895_v19, %v1867_v57 }
 0x1d4   : > { %2619 = vst [vmem:[%s3462_s25 + $0x8] sm:$0xff] %v2607_v37   ;;  %v1909_v4 = vadd.f32 %v1896_v28, %v1608_v0 }
 0x1d6   : > { %v1921_v24 = vadd.f32 %v3456_v39, %v1909_v4 }
 0x1d8   : > { %v1900_v56 = vpop.f32.mrf.mxu2  ;;  %v1929_v41 = vmax.f32 %v1921_v24, 0.0 }
 0x1d9   : > { %v1609_v60 = vpop.f32.mrf.mxu1  ;;  %v1897_v38 = vpop.f32.mrf.mxu0  ;;  %v1901_v16 = vadd.f32 %v1900_v56, %v1872_v14 }
 0x1da   : > { %v1610_v7 = vadd.f32 %v1609_v60, %v1581_v2  ;;  %v1898_v9 = vadd.f32 %v1897_v38, %v1869_v35 }
 0x1db   : > { %v1985_v29 = vld [vmem:[%s3462_s25 + $0xc] sm:$0xf] (%p2873_p9) }
 0x1dc   : > { %v1910_v10 = vadd.f32 %v1898_v9, %v1610_v7  ;;  %1986 = vst [vmem:[%s1962_s30 + $0x30] sm:$0xf] (%p2873_p9), %v1985_v29 }
 0x1de   : > { %v1922_v21 = vadd.f32 %v3456_v39, %v1910_v10 }
 0x1e0   : > { %v1930_v11 = vmax.f32 %v1922_v21, 0.0  ;;  %v1902_v17 = vpop.f32.mrf.mxu2 }
 0x1e1   : > { %v1612_v52 = vpop.f32.mrf.mxu1  ;;  %v1903_v20 = vadd.f32 %v1902_v17, %v1874_v5 }
 0x1e2   : > { %v2612_v13 = vpack.c.bf16 %v1930_v11, %v1929_v41  ;;  %v1613_v15 = vadd.f32 %v1612_v52, %v3444_v63  ;;  %v1979_v63 = vld [vmem:[%s3462_s25] sm:$0xf] (%p2873_p9) }
 0x1e3   : > { %1980 = vst [vmem:[%s1962_s30] sm:$0xf] (%p2873_p9), %v1979_v63 }
 0x1e4   : > { %2620 = vst [vmem:[%s3462_s25 + $0x10] sm:$0xff] %v2612_v13   ;;  %v1911_v62 = vadd.f32 %v1901_v16, %v1613_v15 }
 0x1e6   : > { %v1923_v22 = vadd.f32 %v3456_v39, %v1911_v62 }
 0x1e8   : > { %v1931_v23 = vmax.f32 %v1923_v22, 0.0 }
 0x1e9   : > { %v1614_v3 = vpop.f32.mrf.mxu1 }
 0x1ea   : > { %v1615_v45 = vadd.f32 %v1614_v3, %v1586_v18 }
 0x1eb   : > { %v1987_v31 = vld [vmem:[%s3462_s25 + $0x10] sm:$0xf] (%p2873_p9)  ;;  %v1989_v32 = vld [vmem:[%s3462_s25 + $0x14] sm:$0xf] (%p2873_p9) }
 0x1ec   : > { %v1912_v25 = vadd.f32 %v1903_v20, %v1615_v45  ;;  %1988 = vst [vmem:[%s1962_s30 + $0x40] sm:$0xf] (%p2873_p9), %v1987_v31 }
 0x1ed   : > { %1990 = vst [vmem:[%s1962_s30 + $0x50] sm:$0xf] (%p2873_p9), %v1989_v32 }
 0x1ee   : > { %v1924_v51 = vadd.f32 %v3456_v39, %v1912_v25  ;;  %v1983_v39 = vld [vmem:[%s3462_s25 + $0x8] sm:$0xf] (%p2873_p9) }
 0x1ef   : > { %1984 = vst [vmem:[%s1962_s30 + $0x20] sm:$0xf] (%p2873_p9), %v1983_v39 }
 0x1f0   : > { %v1932_v26 = vmax.f32 %v1924_v51, 0.0  ;;  %1955 = sbr.rel (!%p2873_p9) target bundleno = 510 (0x1fe), region = 77 }
 0x1f2   : > { %v2617_v27 = vpack.c.bf16 %v1932_v26, %v1931_v23 }
 0x1f4   : > { %2621 = vst [vmem:[%s3462_s25 + $0x18] sm:$0xff] %v2617_v27  }
 0x1fb   : > { %v1991_v40 = vld [vmem:[%s3462_s25 + $0x18] sm:$0xf]  ;;  %v1993_v42 = vld [vmem:[%s3462_s25 + $0x1c] sm:$0xf] }
 0x1fc   : > { %1992 = vst [vmem:[%s1962_s30 + $0x60] sm:$0xf] %v1991_v40 }
 0x1fd   : > { %1994 = vst [vmem:[%s1962_s30 + $0x70] sm:$0xf] %v1993_v42 }
 0x1fe PF: > { %s13_s20 = sadd.s32 1, %s2784_s20   ;;  %s3531_s12 = smov %s2756_s13 }
 0x1ff   : > { %p10_p2 = scmp.ge.s32.totalorder %s13_s20, 10   ;;  %s3532_s13 = smov %s2878_s4 }
 0x200   : > { %s3533_s14 = smov %s2764_s15  ;;  %s3534_s15 = smov %s2867_s27 }
 0x201   : > { %s3535_s16 = smov %s2776_s18  ;;  %s3536_s17 = smov %s2780_s19 }
 0x202   : > { %s3537_s18 = smov %s3540_s22  ;;  %s3538_s19 = smov %s3544_s23 }
 0x203   :  { %12 = sbr.rel (!%p10_p2) target bundleno = 5 (0x5), region = 158 }

// kernel: generalized_rcnn_forward.7
= control target key start
LH: loop header
LB: loop body
LE: loop exit
PB: predicated region body
PF: predicated region fallthrough
CT: control target
= control target key end

     0   :  { %s10660_s0 = inlined_call_operand.vmem [shape: bf16[2,4,8192], index: 0, kind: input, shape index: {}]   ;;  %s10661_s1 = inlined_call_operand.vmem [shape: bf16[8192,128], index: 1, kind: input, shape index: {}]   ;;  %s10662_s2 = inlined_call_operand.vmem [shape: f32[1,128], index: 2, kind: input, shape index: {}]   ;;  %s10663_s3 = inlined_call_operand.vmem [shape: bf16[128,128], index: 3, kind: input, shape index: {}]   ;;  %s10664_s4 = inlined_call_operand.vmem [shape: f32[1,128], index: 4, kind: input, shape index: {}]   ;;  %s10665_s5 = inlined_call_operand.vmem [shape: bf16[128,128], index: 5, kind: input, shape index: {}]   ;;  %s10666_s6 = inlined_call_operand.vmem [shape: f32[1,128], index: 6, kind: input, shape index: {}]   ;;  %s10667_s7 = inlined_call_operand.vmem [shape: bf16[128,128], index: 7, kind: input, shape index: {}]   ;;  %s10668_s8 = inlined_call_operand.vmem [shape: f32[1,128], index: 8, kind: input, shape index: {}]   ;;  %s10669_s9 = inlined_call_operand.hbm [shape: f32[2,4,128], index: 9, kind: output, shape index: {0}]   ;;  %s10670_s10 = inlined_call_operand.hbm [shape: f32[2,1,128], index: 10, kind: output, shape index: {1}]  }
   0x1   :  { %10671 = sst [smem:[#allocation9_spill]] %s10660_s0 }
   0x2   :  { %16 = vsyncpa [#allocation3], 0 }
   0x3   :  { %18 = vsyncpa [#allocation3 + $0x1], 0 }
   0x4   :  { %19 = vsyncpa [#allocation5], 0 }
   0x5   :  { %21 = vsyncpa [#allocation5 + $0x1], 0  ;;  %s8810_s13 = smov 0   ;;  %s8812_s14 = smov 0  }
   0x6   :  { %s8814_s15 = smov 0   ;;  %s8816_s16 = smov 0  }
   0x7 LB: > { %s8831_s17 = sadd.s32 4294967295, %s8753_s16   ;;  %s5911_s18 = sadd.s32 4294967294, %s8753_s16   ;;  %s8753_s16 = sphi %s8816_s16, %s10680_s16   ;;  %s8749_s15 = sphi %s8814_s15, %s10679_s15   ;;  %s8745_s14 = sphi %s8812_s14, %s10678_s14   ;;  %s8741_s13 = sphi %s8810_s13, %s10677_s13  }
   0x8   : > { %s8835_s19 = sadd.s32 1, %s8753_s16   ;;  %s228_s20 = sadd.s32 1, %s8749_s15 }
   0x9   : > { %s225_s21 = ssub.s32 %s8753_s16, %s8835_s19  ;;  %p238_p0 = scmp.ne.s32.totalorder %s8749_s15, %s8745_s14 }
   0xa   : > { %p226_p1 = scmp.eq.s32.totalorder %s225_s21, 0  ;;  %p239_p2 = scmp.eq.s32.totalorder %s8831_s17, 1 }
   0xb   : > { %p244_p3 = scmp.ne.s32.totalorder %s8745_s14, %s8741_s13  ;;  %p245_p4 = scmp.eq.s32.totalorder %s5911_s18, 1 }
   0xc   : > { %s8846_s22 = scalar_select %p226_p1, %s8749_s15, %s228_s20  }
   0xd   : > { %p8848_p5 = por %p239_p2, %p238_p0  ;;  %p8852_p6 = por %p245_p4, %p244_p3 }
   0xe   : > { %10672 = sst [smem:[#allocation8_spill]] %s8846_s22  ;;  %p5914_p7 = scmp.ge.s32.totalorder %s8753_s16, 1 }
   0xf   : > { %p321_p8 = scmp.lt.s32.totalorder %s8753_s16, 3 }
  0x11   : > { %p322_p9 = pnand %p5914_p7, %p321_p8 }
  0x12   : > { %p363_p10 = scmp.lt.s32.totalorder (!%p322_p9), %s8831_s17, 1  ;;  %s10675_s0 = sld [smem:[#allocation9_spill]] (!%p322_p9) }
  0x13   : > { %325 = sbr.rel (%p322_p9) target bundleno = 1222 (0x4c6), region = 56  ;;  %s10608_s20 = sand.u32 (!%p322_p9), 1, %s8745_s14  }
  0x14   : > { %s8063_s21 = sshll.u32 (!%p322_p9), %s8831_s17, 2  ;;  %s5915_s26 = sshll.u32 (!%p322_p9), %s10608_s20, 2 }
  0x15   : > { %s356_s29 = scalar_lea.vmem (!%p322_p9), [#allocation2], %s5915_s26  ;;  %s8679_s26 = scalar_lea.hbm (!%p322_p9), %s10669_s9, 8 }
  0x16   : > { %s5808_s30 = sshll.u32 (!%p322_p9), %s356_s29, 4  ;;  %s5809_s30 = int_to_ptr.vmem [resolvable:$true] %s5808_s30 }
  0x18   : > { %v8074_v0 = vld [vmem:[%s10661_s1 + $0x38] sm:$0xff]  ;;  %v8073_v4 = vld [vmem:[%s10661_s1 + $0x30] sm:$0xff]  ;;  %v8072_v8 = vld [vmem:[%s10661_s1 + $0x28] sm:$0xff]  ;;  %s364_s27 = scalar_select %p363_p10, %s8831_s17, 1  ;;  %vm5724_vm0 = vcmask 1043456  }
  0x19   : > { %v8082_v1 = vld [vmem:[%s10661_s1 + $0x78] sm:$0xff]  ;;  %4645 = vmatpush.bf16.msra.mxu0 %v8074_v0  ;;  %v8081_v5 = vld [vmem:[%s10661_s1 + $0x70] sm:$0xff]  ;;  %v8080_v9 = vld [vmem:[%s10661_s1 + $0x68] sm:$0xff] }
  0x1a   : > { %v8090_v2 = vld [vmem:[%s10661_s1 + $0xb8] sm:$0xff]  ;;  %4658 = vmatpush.bf16.msra.mxu1 %v8082_v1  ;;  %v8089_v6 = vld [vmem:[%s10661_s1 + $0xb0] sm:$0xff]  ;;  %v8088_v10 = vld [vmem:[%s10661_s1 + $0xa8] sm:$0xff]  ;;  %s8066_s25 = sshll.u32 %s364_s27, 7 }
  0x1b   : > { %v8098_v3 = vld [vmem:[%s10661_s1 + $0xf8] sm:$0xff]  ;;  %4671 = vmatpush.bf16.msra.mxu2 %v8090_v2  ;;  %v8097_v7 = vld [vmem:[%s10661_s1 + $0xf0] sm:$0xff]  ;;  %v8096_v11 = vld [vmem:[%s10661_s1 + $0xe8] sm:$0xff]  ;;  %s8917_s12 = scalar_lea.vmem %s10675_s0, %s8066_s25  ;;  %s5806_s0 = scalar_lea.hbm %s10669_s9, %s8063_s21 }
  0x1c   : > { %4684 = vmatpush.bf16.msra.mxu3 %v8098_v3  ;;  %v8071_v12 = vld [vmem:[%s10661_s1 + $0x20] sm:$0xff]  ;;  %v8070_v16 = vld [vmem:[%s10661_s1 + $0x18] sm:$0xff]  ;;  %v8069_v20 = vld [vmem:[%s10661_s1 + $0x10] sm:$0xff]  ;;  %s5810_s22 = sshll.u32 %s5806_s0, 4  ;;  %s5792_s25 = scalar_lea.sflag [#allocation3], %s10608_s20  ;;  %s5811_s22 = int_to_ptr.hbm [resolvable:$true] %s5810_s22 }
  0x1d   : > { %4646 = vmatpush.bf16.msra.mxu0 %v8073_v4  ;;  %v8079_v13 = vld [vmem:[%s10661_s1 + $0x60] sm:$0xff]  ;;  %v8078_v17 = vld [vmem:[%s10661_s1 + $0x58] sm:$0xff]  ;;  %v8077_v21 = vld [vmem:[%s10661_s1 + $0x50] sm:$0xff]  ;;  %s8673_s11 = sshra.s32 %s5811_s22, 4  ;;  %s8674_s11 = int_to_ptr.hbm [resolvable:$true] %s8673_s11 }
  0x1e   : > { %4659 = vmatpush.bf16.msra.mxu1 %v8081_v5  ;;  %v8087_v14 = vld [vmem:[%s10661_s1 + $0xa0] sm:$0xff]  ;;  %v8086_v18 = vld [vmem:[%s10661_s1 + $0x98] sm:$0xff]  ;;  %v8085_v23 = vld [vmem:[%s10661_s1 + $0x90] sm:$0xff]  ;;  %s8675_s18 = scalar_lea.hbm %s8674_s11, 4  ;;  %p8680_p0 = scmp.lt.s32.totalorder %s8674_s11, %s10669_s9 }
  0x1f   : > { %4672 = vmatpush.bf16.msra.mxu2 %v8089_v6  ;;  %v8095_v15 = vld [vmem:[%s10661_s1 + $0xe0] sm:$0xff]  ;;  %v8094_v19 = vld [vmem:[%s10661_s1 + $0xd8] sm:$0xff]  ;;  %v8093_v24 = vld [vmem:[%s10661_s1 + $0xd0] sm:$0xff]  ;;  %p8676_p11 = scmp.ne.s32.totalorder %s8674_s11, %s8675_s18  ;;  %p8681_p1 = scmp.lt.s32.totalorder %s8679_s26, %s8675_s18 }
  0x20   : > { %4685 = vmatpush.bf16.msra.mxu3 %v8097_v7  ;;  %v368_v22 = vld [vmem:[%s8917_s12] sm:$0xff]  ;;  %v8068_v25 = vld [vmem:[%s10661_s1 + $0x8] sm:$0xff]  ;;  %v370_v35 = vld [vmem:[%s8917_s12 + $0x10] sm:$0xff] }
  0x21   : > { %4647 = vmatpush.bf16.msra.mxu0 %v8072_v8  ;;  %1413 = vst [vmem:[#allocation1] ss:$4 sm:$0xff] %v368_v22  ;;  %v8076_v26 = vld [vmem:[%s10661_s1 + $0x48] sm:$0xff]  ;;  %v8067_v29 = vld [vmem:[%s10661_s1] sm:$0xff]  ;;  %v8106_v38 = vld [vmem:[%s10661_s1 + $0x138] sm:$0xff]  ;;  %p8677_p12 = pnand %p8676_p11, %p8848_p5  ;;  %p8682_p2 = por %p8681_p1, %p8680_p0 }
  0x22   : > { %4660 = vmatpush.bf16.msra.mxu1 %v8080_v9  ;;  %v8084_v27 = vld [vmem:[%s10661_s1 + $0x88] sm:$0xff]  ;;  %v8075_v30 = vld [vmem:[%s10661_s1 + $0x40] sm:$0xff]  ;;  %v8114_v39 = vld [vmem:[%s10661_s1 + $0x178] sm:$0xff] }
  0x23   : > { %4673 = vmatpush.bf16.msra.mxu2 %v8088_v10  ;;  %v8092_v28 = vld [vmem:[%s10661_s1 + $0xc8] sm:$0xff]  ;;  %v8083_v31 = vld [vmem:[%s10661_s1 + $0x80] sm:$0xff]  ;;  %v8122_v40 = vld [vmem:[%s10661_s1 + $0x1b8] sm:$0xff]  ;;  %p8678_p13 = pneg %p8677_p12 }
  0x24   : > { %4686 = vmatpush.bf16.msra.mxu3 %v8096_v11  ;;  %v8091_v33 = vld [vmem:[%s10661_s1 + $0xc0] sm:$0xff]  ;;  %v8130_v41 = vld [vmem:[%s10661_s1 + $0x1f8] sm:$0xff]  ;;  %v369_v42 = vld [vmem:[%s8917_s12 + $0x8] sm:$0xff] }
  0x25   : > { %4648 = vmatpush.bf16.msra.mxu0 %v8071_v12  ;;  %1416 = vst [vmem:[#allocation1 + $0x20] ss:$4 sm:$0xff] %v369_v42  ;;  %v8105_v43 = vld [vmem:[%s10661_s1 + $0x130] sm:$0xff]  ;;  %v8104_v47 = vld [vmem:[%s10661_s1 + $0x128] sm:$0xff]  ;;  %v8103_v51 = vld [vmem:[%s10661_s1 + $0x120] sm:$0xff]  ;;  %p8683_p3 = pnand %p8682_p2, %p8678_p13 }
  0x26   : > { %4661 = vmatpush.bf16.msra.mxu1 %v8079_v13  ;;  %v8113_v44 = vld [vmem:[%s10661_s1 + $0x170] sm:$0xff]  ;;  %v8112_v48 = vld [vmem:[%s10661_s1 + $0x168] sm:$0xff]  ;;  %v8111_v55 = vld [vmem:[%s10661_s1 + $0x160] sm:$0xff] }
  0x27   : > { %4674 = vmatpush.bf16.msra.mxu2 %v8087_v14  ;;  %v8121_v45 = vld [vmem:[%s10661_s1 + $0x1b0] sm:$0xff]  ;;  %v8120_v49 = vld [vmem:[%s10661_s1 + $0x1a8] sm:$0xff]  ;;  %v371_v56 = vld [vmem:[%s8917_s12 + $0x18] sm:$0xff] }
  0x28   : > { %4687 = vmatpush.bf16.msra.mxu3 %v8095_v15  ;;  %v1419_v32 = vld.sshfl [vmem:[#allocation1 + $0x10] sm:$0xff pattern:$0x73625140]  ;;  %v1417_v34 = vld.sshfl [vmem:[#allocation1] sm:$0xff pattern:$0x73625140] }
  0x29   : > { %4649 = vmatpush.bf16.msra.mxu0 %v8070_v16  ;;  %v1420_v36 = vld.sshfl [vmem:[#allocation1 + $0x18] sm:$0xff pattern:$0x73625140]  ;;  %v1418_v37 = vld.sshfl [vmem:[#allocation1 + $0x8] sm:$0xff pattern:$0x73625140] }
  0x2a   : > { %4662 = vmatpush.bf16.msra.mxu1 %v8078_v17  ;;  %1426 = vst [vmem:[#allocation1] ss:$4 sm:$0xff] %v370_v35  ;;  %v8129_v46 = vld [vmem:[%s10661_s1 + $0x1f0] sm:$0xff]  ;;  %v8128_v50 = vld [vmem:[%s10661_s1 + $0x1e8] sm:$0xff]  ;;  %v8119_v58 = vld [vmem:[%s10661_s1 + $0x1a0] sm:$0xff] }
  0x2b   : > { %4675 = vmatpush.bf16.msra.mxu2 %v8086_v18  ;;  %v8127_v59 = vld [vmem:[%s10661_s1 + $0x1e0] sm:$0xff]  ;;  %v8102_v60 = vld [vmem:[%s10661_s1 + $0x118] sm:$0xff]  ;;  %v8101_v0 = vld [vmem:[%s10661_s1 + $0x110] sm:$0xff] }
  0x2c   : > { %4688 = vmatpush.bf16.msra.mxu3 %v8094_v19  ;;  %v9003_v52 = vld.sshfl [vmem:[#allocation1 + $0x30] sm:$0xff pattern:$0x73625140]  ;;  %v9005_v53 = vld.sshfl [vmem:[#allocation1 + $0x20] sm:$0xff pattern:$0x73625140] }
  0x2d   : > { %4650 = vmatpush.bf16.msra.mxu0 %v8069_v20  ;;  %v9007_v54 = vld.sshfl [vmem:[#allocation1 + $0x38] sm:$0xff pattern:$0x73625140]  ;;  %v1422_v57 = vld.sshfl [vmem:[#allocation1 + $0x28] sm:$0xff pattern:$0x73625140] }
  0x2e   : > { %4663 = vmatpush.bf16.msra.mxu1 %v8077_v21  ;;  %1428 = vst [vmem:[#allocation1 + $0x20] ss:$4 sm:$0xff] %v371_v56  ;;  %v8110_v61 = vld [vmem:[%s10661_s1 + $0x158] sm:$0xff]  ;;  %v8109_v1 = vld [vmem:[%s10661_s1 + $0x150] sm:$0xff]  ;;  %v8100_v4 = vld [vmem:[%s10661_s1 + $0x108] sm:$0xff] }
  0x2f   : > { %4676 = vmatpush.bf16.msra.mxu2 %v8085_v23  ;;  %v8118_v62 = vld [vmem:[%s10661_s1 + $0x198] sm:$0xff]  ;;  %v8117_v2 = vld [vmem:[%s10661_s1 + $0x190] sm:$0xff]  ;;  %v8108_v5 = vld [vmem:[%s10661_s1 + $0x148] sm:$0xff] }
  0x30   : > { %4689 = vmatpush.bf16.msra.mxu3 %v8093_v24  ;;  %v8126_v63 = vld [vmem:[%s10661_s1 + $0x1d8] sm:$0xff]  ;;  %v8125_v3 = vld [vmem:[%s10661_s1 + $0x1d0] sm:$0xff]  ;;  %v8116_v6 = vld [vmem:[%s10661_s1 + $0x188] sm:$0xff] }
  0x31   : > { %4651 = vmatpush.bf16.msra.mxu0 %v8068_v25  ;;  %v8124_v7 = vld [vmem:[%s10661_s1 + $0x1c8] sm:$0xff]  ;;  %v8099_v8 = vld [vmem:[%s10661_s1 + $0x100] sm:$0xff]  ;;  %v8138_v12 = vld [vmem:[%s10661_s1 + $0x238] sm:$0xff] }
  0x32   : > { %4664 = vmatpush.bf16.msra.mxu1 %v8076_v26  ;;  %v8107_v9 = vld [vmem:[%s10661_s1 + $0x140] sm:$0xff]  ;;  %v8146_v13 = vld [vmem:[%s10661_s1 + $0x278] sm:$0xff]  ;;  %v8137_v16 = vld [vmem:[%s10661_s1 + $0x230] sm:$0xff] }
  0x33   : > { %4677 = vmatpush.bf16.msra.mxu2 %v8084_v27  ;;  %v8115_v10 = vld [vmem:[%s10661_s1 + $0x180] sm:$0xff]  ;;  %v8154_v14 = vld [vmem:[%s10661_s1 + $0x2b8] sm:$0xff]  ;;  %v8145_v17 = vld [vmem:[%s10661_s1 + $0x270] sm:$0xff] }
  0x34   : > { %4690 = vmatpush.bf16.msra.mxu3 %v8092_v28  ;;  %v8123_v11 = vld [vmem:[%s10661_s1 + $0x1c0] sm:$0xff]  ;;  %v8162_v15 = vld [vmem:[%s10661_s1 + $0x2f8] sm:$0xff]  ;;  %v8153_v18 = vld [vmem:[%s10661_s1 + $0x2b0] sm:$0xff] }
  0x35   : > { %4652 = vmatpush.bf16.msra.mxu0 %v8067_v29  ;;  %v9088_v19 = vld.sshfl [vmem:[#allocation1] sm:$0xff pattern:$0x73625140]  ;;  %v9090_v20 = vld.sshfl [vmem:[#allocation1 + $0x10] sm:$0xff pattern:$0x73625140] }
  0x36   : > { %4665 = vmatpush.bf16.msra.mxu1 %v8075_v30  ;;  %v9092_v21 = vld.sshfl [vmem:[#allocation1 + $0x8] sm:$0xff pattern:$0x73625140]  ;;  %v8161_v22 = vld [vmem:[%s10661_s1 + $0x2f0] sm:$0xff]  ;;  %v372_v23 = vld [vmem:[%s8917_s12 + $0x20] sm:$0xff] }
  0x37   : > { %4678 = vmatpush.bf16.msra.mxu2 %v8083_v31  ;;  %v9098_v24 = vld.sshfl [vmem:[#allocation1 + $0x18] sm:$0xff pattern:$0x73625140]  ;;  %v8136_v25 = vld [vmem:[%s10661_s1 + $0x228] sm:$0xff]  ;;  %v8135_v29 = vld [vmem:[%s10661_s1 + $0x220] sm:$0xff] }
  0x38   : > { %4691 = vmatpush.bf16.msra.mxu3 %v8091_v33  ;;  %4653 = vmatmul.bf16.vlgmr.msra.gmra.mxu0 %v1417_v34  ;;  %1438 = vst [vmem:[#allocation1] ss:$4 sm:$0xff] %v372_v23  ;;  %v8144_v26 = vld [vmem:[%s10661_s1 + $0x268] sm:$0xff]  ;;  %v8143_v30 = vld [vmem:[%s10661_s1 + $0x260] sm:$0xff]  ;;  %v8134_v33 = vld [vmem:[%s10661_s1 + $0x218] sm:$0xff] }
  0x39   : > { %4697 = vmatpush.bf16.msrb.mxu0 %v8106_v38  ;;  %4666 = vmatmul.bf16.vlgmr.msra.gmra.mxu1 %v1418_v37  ;;  %v8152_v27 = vld [vmem:[%s10661_s1 + $0x2a8] sm:$0xff]  ;;  %v8151_v31 = vld [vmem:[%s10661_s1 + $0x2a0] sm:$0xff]  ;;  %v8142_v34 = vld [vmem:[%s10661_s1 + $0x258] sm:$0xff] }
  0x3a   : > { %4710 = vmatpush.bf16.msrb.mxu1 %v8114_v39  ;;  %4679 = vmatmul.bf16.vlgmr.msra.gmra.mxu2 %v1419_v32  ;;  %v8160_v28 = vld [vmem:[%s10661_s1 + $0x2e8] sm:$0xff]  ;;  %v8159_v32 = vld [vmem:[%s10661_s1 + $0x2e0] sm:$0xff]  ;;  %v8150_v35 = vld [vmem:[%s10661_s1 + $0x298] sm:$0xff] }
  0x3b   : > { %4723 = vmatpush.bf16.msrb.mxu2 %v8122_v40  ;;  %4692 = vmatmul.bf16.vlgmr.msra.gmra.mxu3 %v1420_v36  ;;  %v8158_v36 = vld [vmem:[%s10661_s1 + $0x2d8] sm:$0xff]  ;;  %v8133_v37 = vld [vmem:[%s10661_s1 + $0x210] sm:$0xff]  ;;  %v8140_v42 = vld [vmem:[%s10661_s1 + $0x248] sm:$0xff] }
  0x3c   : > { %4736 = vmatpush.bf16.msrb.mxu3 %v8130_v41  ;;  %v8141_v38 = vld [vmem:[%s10661_s1 + $0x250] sm:$0xff]  ;;  %v8132_v41 = vld [vmem:[%s10661_s1 + $0x208] sm:$0xff]  ;;  %v9196_v56 = vld.sshfl [vmem:[#allocation1 + $0x20] sm:$0xff pattern:$0x73625140] }
  0x3d   : > { %4698 = vmatpush.bf16.msrb.mxu0 %v8105_v43  ;;  %v8149_v39 = vld [vmem:[%s10661_s1 + $0x290] sm:$0xff]  ;;  %v8148_v43 = vld [vmem:[%s10661_s1 + $0x288] sm:$0xff]  ;;  %v8210_v23 = vld [vmem:[%s10661_s1 + $0x478] sm:$0xff] }
  0x3e   : > { %4711 = vmatpush.bf16.msrb.mxu1 %v8113_v44  ;;  %v8157_v40 = vld [vmem:[%s10661_s1 + $0x2d0] sm:$0xff]  ;;  %v8156_v44 = vld [vmem:[%s10661_s1 + $0x2c8] sm:$0xff] }
  0x3f   : > { %4724 = vmatpush.bf16.msrb.mxu2 %v8121_v45  ;;  %v8131_v45 = vld [vmem:[%s10661_s1 + $0x200] sm:$0xff] }
  0x40   : > { %4737 = vmatpush.bf16.msrb.mxu3 %v8129_v46  ;;  %v8139_v46 = vld [vmem:[%s10661_s1 + $0x240] sm:$0xff] }
  0x41   : > { %4699 = vmatpush.bf16.msrb.mxu0 %v8104_v47  ;;  %v8147_v47 = vld [vmem:[%s10661_s1 + $0x280] sm:$0xff] }
  0x42   : > { %4712 = vmatpush.bf16.msrb.mxu1 %v8112_v48  ;;  %v8155_v48 = vld [vmem:[%s10661_s1 + $0x2c0] sm:$0xff] }
  0x43   : > { %4725 = vmatpush.bf16.msrb.mxu2 %v8120_v49  ;;  %v8170_v49 = vld [vmem:[%s10661_s1 + $0x338] sm:$0xff] }
  0x44   : > { %4738 = vmatpush.bf16.msrb.mxu3 %v8128_v50  ;;  %v8178_v50 = vld [vmem:[%s10661_s1 + $0x378] sm:$0xff] }
  0x45   : > { %4700 = vmatpush.bf16.msrb.mxu0 %v8103_v51  ;;  %v8186_v51 = vld [vmem:[%s10661_s1 + $0x3b8] sm:$0xff] }
  0x46   : > { %4713 = vmatpush.bf16.msrb.mxu1 %v8111_v55  ;;  %v8185_v55 = vld [vmem:[%s10661_s1 + $0x3b0] sm:$0xff] }
  0x47   : > { %4726 = vmatpush.bf16.msrb.mxu2 %v8119_v58  ;;  %v9200_v58 = vld.sshfl [vmem:[#allocation1 + $0x28] sm:$0xff pattern:$0x73625140] }
  0x48   : > { %4739 = vmatpush.bf16.msrb.mxu3 %v8127_v59  ;;  %v8193_v59 = vld [vmem:[%s10661_s1 + $0x3f0] sm:$0xff] }
  0x49   : > { %4701 = vmatpush.bf16.msrb.mxu0 %v8102_v60  ;;  %v373_v60 = vld [vmem:[%s8917_s12 + $0x28] sm:$0xff] }
  0x4a   : > { %4714 = vmatpush.bf16.msrb.mxu1 %v8110_v61  ;;  %v9206_v61 = vld.sshfl [vmem:[#allocation1 + $0x38] sm:$0xff pattern:$0x73625140] }
  0x4b   : > { %4727 = vmatpush.bf16.msrb.mxu2 %v8118_v62  ;;  %v8168_v62 = vld [vmem:[%s10661_s1 + $0x328] sm:$0xff] }
  0x4c   : > { %4740 = vmatpush.bf16.msrb.mxu3 %v8126_v63  ;;  %v8176_v63 = vld [vmem:[%s10661_s1 + $0x368] sm:$0xff] }
  0x4d   : > { %4702 = vmatpush.bf16.msrb.mxu0 %v8101_v0  ;;  %v8184_v0 = vld [vmem:[%s10661_s1 + $0x3a8] sm:$0xff] }
  0x4e   : > { %4715 = vmatpush.bf16.msrb.mxu1 %v8109_v1  ;;  %v8192_v1 = vld [vmem:[%s10661_s1 + $0x3e8] sm:$0xff] }
  0x4f   : > { %4728 = vmatpush.bf16.msrb.mxu2 %v8117_v2  ;;  %v8167_v2 = vld [vmem:[%s10661_s1 + $0x320] sm:$0xff] }
  0x50   : > { %4741 = vmatpush.bf16.msrb.mxu3 %v8125_v3  ;;  %v8175_v3 = vld [vmem:[%s10661_s1 + $0x360] sm:$0xff] }
  0x51   : > { %4703 = vmatpush.bf16.msrb.mxu0 %v8100_v4  ;;  %v8183_v4 = vld [vmem:[%s10661_s1 + $0x3a0] sm:$0xff] }
  0x52   : > { %4716 = vmatpush.bf16.msrb.mxu1 %v8108_v5  ;;  %v8191_v5 = vld [vmem:[%s10661_s1 + $0x3e0] sm:$0xff] }
  0x53   : > { %4729 = vmatpush.bf16.msrb.mxu2 %v8116_v6  ;;  %v8166_v6 = vld [vmem:[%s10661_s1 + $0x318] sm:$0xff] }
  0x54   : > { %4742 = vmatpush.bf16.msrb.mxu3 %v8124_v7  ;;  %v8174_v7 = vld [vmem:[%s10661_s1 + $0x358] sm:$0xff] }
  0x55   : > { %4704 = vmatpush.bf16.msrb.mxu0 %v8099_v8  ;;  %v8182_v8 = vld [vmem:[%s10661_s1 + $0x398] sm:$0xff] }
  0x56   : > { %4717 = vmatpush.bf16.msrb.mxu1 %v8107_v9  ;;  %v8190_v9 = vld [vmem:[%s10661_s1 + $0x3d8] sm:$0xff] }
  0x57   : > { %4730 = vmatpush.bf16.msrb.mxu2 %v8115_v10  ;;  %v8165_v10 = vld [vmem:[%s10661_s1 + $0x310] sm:$0xff] }
  0x58   : > { %4743 = vmatpush.bf16.msrb.mxu3 %v8123_v11  ;;  %4705 = vmatmul.bf16.vlgmr.msrb.gmra.mxu0 %v9005_v53  ;;  %v8169_v53 = vld [vmem:[%s10661_s1 + $0x330] sm:$0xff] }
  0x59   : > { %4749 = vmatpush.bf16.msra.mxu0 %v8138_v12  ;;  %4718 = vmatmul.bf16.vlgmr.msrb.gmra.mxu1 %v1422_v57  ;;  %v9198_v57 = vld.sshfl [vmem:[#allocation1 + $0x30] sm:$0xff pattern:$0x73625140] }
  0x5a   : > { %4762 = vmatpush.bf16.msra.mxu1 %v8146_v13  ;;  %4731 = vmatmul.bf16.vlgmr.msrb.gmra.mxu2 %v9003_v52  ;;  %v8194_v52 = vld [vmem:[%s10661_s1 + $0x3f8] sm:$0xff]  ;;  %1440 = vst [vmem:[#allocation1 + $0x20] ss:$4 sm:$0xff] %v373_v60  ;;  %v8173_v11 = vld [vmem:[%s10661_s1 + $0x350] sm:$0xff] }
  0x5b   : > { %4775 = vmatpush.bf16.msra.mxu2 %v8154_v14  ;;  %4744 = vmatmul.bf16.vlgmr.msrb.gmra.mxu3 %v9007_v54  ;;  %v8177_v54 = vld [vmem:[%s10661_s1 + $0x370] sm:$0xff]  ;;  %v8164_v14 = vld [vmem:[%s10661_s1 + $0x308] sm:$0xff] }
  0x5c   : > { %4788 = vmatpush.bf16.msra.mxu3 %v8162_v15  ;;  %v8181_v12 = vld [vmem:[%s10661_s1 + $0x390] sm:$0xff]  ;;  %v8172_v15 = vld [vmem:[%s10661_s1 + $0x348] sm:$0xff] }
  0x5d   : > { %4750 = vmatpush.bf16.msra.mxu0 %v8137_v16  ;;  %v8189_v13 = vld [vmem:[%s10661_s1 + $0x3d0] sm:$0xff]  ;;  %v8180_v16 = vld [vmem:[%s10661_s1 + $0x388] sm:$0xff] }
  0x5e   : > { %4763 = vmatpush.bf16.msra.mxu1 %v8145_v17  ;;  %v8188_v17 = vld [vmem:[%s10661_s1 + $0x3c8] sm:$0xff] }
  0x5f   : > { %4776 = vmatpush.bf16.msra.mxu2 %v8153_v18  ;;  %v8163_v18 = vld [vmem:[%s10661_s1 + $0x300] sm:$0xff]  ;;  %v1442_v60 = vld.sshfl [vmem:[#allocation1 + $0x8] sm:$0xff pattern:$0x73625140] }
  0x60   : > { %4789 = vmatpush.bf16.msra.mxu3 %v8161_v22  ;;  %v8202_v22 = vld [vmem:[%s10661_s1 + $0x438] sm:$0xff] }
  0x61   : > { %4751 = vmatpush.bf16.msra.mxu0 %v8136_v25  ;;  %v8226_v25 = vld [vmem:[%s10661_s1 + $0x4f8] sm:$0xff] }
  0x62   : > { %4764 = vmatpush.bf16.msra.mxu1 %v8144_v26  ;;  %v8201_v26 = vld [vmem:[%s10661_s1 + $0x430] sm:$0xff] }
  0x63   : > { %4777 = vmatpush.bf16.msra.mxu2 %v8152_v27  ;;  %v8209_v27 = vld [vmem:[%s10661_s1 + $0x470] sm:$0xff] }
  0x64   : > { %4790 = vmatpush.bf16.msra.mxu3 %v8160_v28  ;;  %v8217_v28 = vld [vmem:[%s10661_s1 + $0x4b0] sm:$0xff] }
  0x65   : > { %4752 = vmatpush.bf16.msra.mxu0 %v8135_v29  ;;  %v8225_v29 = vld [vmem:[%s10661_s1 + $0x4f0] sm:$0xff] }
  0x66   : > { %4765 = vmatpush.bf16.msra.mxu1 %v8143_v30  ;;  %v8200_v30 = vld [vmem:[%s10661_s1 + $0x428] sm:$0xff] }
  0x67   : > { %4778 = vmatpush.bf16.msra.mxu2 %v8151_v31  ;;  %v8208_v31 = vld [vmem:[%s10661_s1 + $0x468] sm:$0xff] }
  0x68   : > { %4791 = vmatpush.bf16.msra.mxu3 %v8159_v32  ;;  %v8216_v32 = vld [vmem:[%s10661_s1 + $0x4a8] sm:$0xff] }
  0x69   : > { %4753 = vmatpush.bf16.msra.mxu0 %v8134_v33  ;;  %v8224_v33 = vld [vmem:[%s10661_s1 + $0x4e8] sm:$0xff] }
  0x6a   : > { %4766 = vmatpush.bf16.msra.mxu1 %v8142_v34  ;;  %v8199_v34 = vld [vmem:[%s10661_s1 + $0x420] sm:$0xff] }
  0x6b   : > { %4779 = vmatpush.bf16.msra.mxu2 %v8150_v35  ;;  %v8207_v35 = vld [vmem:[%s10661_s1 + $0x460] sm:$0xff] }
  0x6c   : > { %4792 = vmatpush.bf16.msra.mxu3 %v8158_v36  ;;  %v8215_v36 = vld [vmem:[%s10661_s1 + $0x4a0] sm:$0xff] }
  0x6d   : > { %4754 = vmatpush.bf16.msra.mxu0 %v8133_v37  ;;  %v8223_v37 = vld [vmem:[%s10661_s1 + $0x4e0] sm:$0xff] }
  0x6e   : > { %4767 = vmatpush.bf16.msra.mxu1 %v8141_v38  ;;  %v8198_v38 = vld [vmem:[%s10661_s1 + $0x418] sm:$0xff] }
  0x6f   : > { %4780 = vmatpush.bf16.msra.mxu2 %v8149_v39  ;;  %v8206_v39 = vld [vmem:[%s10661_s1 + $0x458] sm:$0xff] }
  0x70   : > { %4793 = vmatpush.bf16.msra.mxu3 %v8157_v40  ;;  %v8214_v40 = vld [vmem:[%s10661_s1 + $0x498] sm:$0xff] }
  0x71   : > { %4755 = vmatpush.bf16.msra.mxu0 %v8132_v41  ;;  %v8222_v41 = vld [vmem:[%s10661_s1 + $0x4d8] sm:$0xff] }
  0x72   : > { %4768 = vmatpush.bf16.msra.mxu1 %v8140_v42  ;;  %v8197_v42 = vld [vmem:[%s10661_s1 + $0x410] sm:$0xff] }
  0x73   : > { %4781 = vmatpush.bf16.msra.mxu2 %v8148_v43  ;;  %v8205_v43 = vld [vmem:[%s10661_s1 + $0x450] sm:$0xff] }
  0x74   : > { %4794 = vmatpush.bf16.msra.mxu3 %v8156_v44  ;;  %v8213_v44 = vld [vmem:[%s10661_s1 + $0x490] sm:$0xff] }
  0x75   : > { %4756 = vmatpush.bf16.msra.mxu0 %v8131_v45  ;;  %v8221_v45 = vld [vmem:[%s10661_s1 + $0x4d0] sm:$0xff] }
  0x76   : > { %4769 = vmatpush.bf16.msra.mxu1 %v8139_v46  ;;  %v8196_v46 = vld [vmem:[%s10661_s1 + $0x408] sm:$0xff] }
  0x77   : > { %4782 = vmatpush.bf16.msra.mxu2 %v8147_v47  ;;  %v8204_v47 = vld [vmem:[%s10661_s1 + $0x448] sm:$0xff] }
  0x78   : > { %4795 = vmatpush.bf16.msra.mxu3 %v8155_v48  ;;  %4757 = vmatmul.bf16.vlgmr.msra.gmra.mxu0 %v9088_v19  ;;  %v8171_v19 = vld [vmem:[%s10661_s1 + $0x340] sm:$0xff]  ;;  %v8212_v48 = vld [vmem:[%s10661_s1 + $0x488] sm:$0xff] }
  0x79   : > { %4801 = vmatpush.bf16.msrb.mxu0 %v8170_v49  ;;  %4770 = vmatmul.bf16.vlgmr.msra.gmra.mxu1 %v9092_v21  ;;  %v8187_v21 = vld [vmem:[%s10661_s1 + $0x3c0] sm:$0xff]  ;;  %v8220_v49 = vld [vmem:[%s10661_s1 + $0x4c8] sm:$0xff] }
  0x7a   : > { %4814 = vmatpush.bf16.msrb.mxu1 %v8178_v50  ;;  %4783 = vmatmul.bf16.vlgmr.msra.gmra.mxu2 %v9090_v20  ;;  %v8179_v20 = vld [vmem:[%s10661_s1 + $0x380] sm:$0xff] }
  0x7b   : > { %4827 = vmatpush.bf16.msrb.mxu2 %v8186_v51  ;;  %4796 = vmatmul.bf16.vlgmr.msra.gmra.mxu3 %v9098_v24  ;;  %v8218_v24 = vld [vmem:[%s10661_s1 + $0x4b8] sm:$0xff]  ;;  %v8195_v50 = vld [vmem:[%s10661_s1 + $0x400] sm:$0xff] }
  0x7c   : > { %4840 = vmatpush.bf16.msrb.mxu3 %v8194_v52  ;;  %v8203_v51 = vld [vmem:[%s10661_s1 + $0x440] sm:$0xff] }
  0x7d   : > { %4802 = vmatpush.bf16.msrb.mxu0 %v8169_v53  ;;  %v8211_v52 = vld [vmem:[%s10661_s1 + $0x480] sm:$0xff] }
  0x7e   : > { %4815 = vmatpush.bf16.msrb.mxu1 %v8177_v54  ;;  %v8219_v53 = vld [vmem:[%s10661_s1 + $0x4c0] sm:$0xff]  ;;  %v8234_v54 = vld [vmem:[%s10661_s1 + $0x538] sm:$0xff] }
  0x7f   : > { %4828 = vmatpush.bf16.msrb.mxu2 %v8185_v55  ;;  %v8242_v55 = vld [vmem:[%s10661_s1 + $0x578] sm:$0xff] }
  0x80   : > { %4841 = vmatpush.bf16.msrb.mxu3 %v8193_v59  ;;  %v1443_v59 = vld.sshfl [vmem:[#allocation1 + $0x10] sm:$0xff pattern:$0x73625140] }
  0x81   : > { %4803 = vmatpush.bf16.msrb.mxu0 %v8168_v62  ;;  %v8233_v62 = vld [vmem:[%s10661_s1 + $0x530] sm:$0xff] }
  0x82   : > { %4816 = vmatpush.bf16.msrb.mxu1 %v8176_v63  ;;  %v8241_v63 = vld [vmem:[%s10661_s1 + $0x570] sm:$0xff] }
  0x83   : > { %4829 = vmatpush.bf16.msrb.mxu2 %v8184_v0  ;;  %v8249_v0 = vld [vmem:[%s10661_s1 + $0x5b0] sm:$0xff] }
  0x84   : > { %4842 = vmatpush.bf16.msrb.mxu3 %v8192_v1  ;;  %v8257_v1 = vld [vmem:[%s10661_s1 + $0x5f0] sm:$0xff] }
  0x85   : > { %4804 = vmatpush.bf16.msrb.mxu0 %v8167_v2  ;;  %v8232_v2 = vld [vmem:[%s10661_s1 + $0x528] sm:$0xff] }
  0x86   : > { %4817 = vmatpush.bf16.msrb.mxu1 %v8175_v3  ;;  %v8240_v3 = vld [vmem:[%s10661_s1 + $0x568] sm:$0xff] }
  0x87   : > { %4830 = vmatpush.bf16.msrb.mxu2 %v8183_v4  ;;  %v8647_v4 = vld [vmem:[%s10662_s2] ss:$0 sm:$0xff] }
  0x88   : > { %4843 = vmatpush.bf16.msrb.mxu3 %v8191_v5  ;;  %v8248_v5 = vld [vmem:[%s10661_s1 + $0x5a8] sm:$0xff] }
  0x89   : > { %4805 = vmatpush.bf16.msrb.mxu0 %v8166_v6  ;;  %v8256_v6 = vld [vmem:[%s10661_s1 + $0x5e8] sm:$0xff] }
  0x8a   : > { %4818 = vmatpush.bf16.msrb.mxu1 %v8174_v7 }
  0x8b   : > { %4831 = vmatpush.bf16.msrb.mxu2 %v8182_v8  ;;  %v8231_v8 = vld [vmem:[%s10661_s1 + $0x520] sm:$0xff] }
  0x8c   : > { %4844 = vmatpush.bf16.msrb.mxu3 %v8190_v9  ;;  %v8239_v9 = vld [vmem:[%s10661_s1 + $0x560] sm:$0xff] }
  0x8d   : > { %4806 = vmatpush.bf16.msrb.mxu0 %v8165_v10 }
  0x8e   : > { %4819 = vmatpush.bf16.msrb.mxu1 %v8173_v11 }
  0x8f   : > { %4832 = vmatpush.bf16.msrb.mxu2 %v8181_v12  ;;  %v8247_v12 = vld [vmem:[%s10661_s1 + $0x5a0] sm:$0xff] }
  0x90   : > { %4845 = vmatpush.bf16.msrb.mxu3 %v8189_v13  ;;  %v8255_v13 = vld [vmem:[%s10661_s1 + $0x5e0] sm:$0xff] }
  0x91   : > { %4807 = vmatpush.bf16.msrb.mxu0 %v8164_v14 }
  0x92   : > { %4820 = vmatpush.bf16.msrb.mxu1 %v8172_v15  ;;  %v8230_v15 = vld [vmem:[%s10661_s1 + $0x518] sm:$0xff] }
  0x93   : > { %4833 = vmatpush.bf16.msrb.mxu2 %v8180_v16  ;;  %v8238_v16 = vld [vmem:[%s10661_s1 + $0x558] sm:$0xff] }
  0x94   : > { %4846 = vmatpush.bf16.msrb.mxu3 %v8188_v17  ;;  %v8246_v17 = vld [vmem:[%s10661_s1 + $0x598] sm:$0xff] }
  0x95   : > { %4808 = vmatpush.bf16.msrb.mxu0 %v8163_v18  ;;  %v8254_v18 = vld [vmem:[%s10661_s1 + $0x5d8] sm:$0xff] }
  0x96   : > { %4821 = vmatpush.bf16.msrb.mxu1 %v8171_v19 }
  0x97   : > { %4834 = vmatpush.bf16.msrb.mxu2 %v8179_v20 }
  0x98   : > { %4847 = vmatpush.bf16.msrb.mxu3 %v8187_v21  ;;  %4809 = vmatmul.bf16.vlgmr.msrb.gmra.mxu0 %v9196_v56  ;;  %v8250_v56 = vld [vmem:[%s10661_s1 + $0x5b8] sm:$0xff] }
  0x99   : > { %4853 = vmatpush.bf16.msra.mxu0 %v8202_v22  ;;  %4822 = vmatmul.bf16.vlgmr.msrb.gmra.mxu1 %v9200_v58  ;;  %v1441_v58 = vld.sshfl [vmem:[#allocation1] sm:$0xff pattern:$0x73625140] }
  0x9a   : > { %4866 = vmatpush.bf16.msra.mxu1 %v8210_v23  ;;  %4835 = vmatmul.bf16.vlgmr.msrb.gmra.mxu2 %v9198_v57  ;;  %v8258_v57 = vld [vmem:[%s10661_s1 + $0x5f8] sm:$0xff]  ;;  %v8229_v23 = vld [vmem:[%s10661_s1 + $0x510] sm:$0xff] }
  0x9b   : > { %4879 = vmatpush.bf16.msra.mxu2 %v8218_v24  ;;  %4848 = vmatmul.bf16.vlgmr.msrb.gmra.mxu3 %v9206_v61  ;;  %v1444_v61 = vld.sshfl [vmem:[#allocation1 + $0x18] sm:$0xff pattern:$0x73625140]  ;;  %v8237_v24 = vld [vmem:[%s10661_s1 + $0x550] sm:$0xff] }
  0x9c   : > { %4892 = vmatpush.bf16.msra.mxu3 %v8226_v25 }
  0x9d   : > { %4854 = vmatpush.bf16.msra.mxu0 %v8201_v26 }
  0x9e   : > { %4867 = vmatpush.bf16.msra.mxu1 %v8209_v27  ;;  %v8245_v27 = vld [vmem:[%s10661_s1 + $0x590] sm:$0xff] }
  0x9f   : > { %4880 = vmatpush.bf16.msra.mxu2 %v8217_v28  ;;  %v8253_v28 = vld [vmem:[%s10661_s1 + $0x5d0] sm:$0xff] }
  0xa0   : > { %4893 = vmatpush.bf16.msra.mxu3 %v8225_v29  ;;  %v8228_v29 = vld [vmem:[%s10661_s1 + $0x508] sm:$0xff] }
  0xa1   : > { %4855 = vmatpush.bf16.msra.mxu0 %v8200_v30  ;;  %v8236_v30 = vld [vmem:[%s10661_s1 + $0x548] sm:$0xff] }
  0xa2   : > { %4868 = vmatpush.bf16.msra.mxu1 %v8208_v31  ;;  %v8244_v31 = vld [vmem:[%s10661_s1 + $0x588] sm:$0xff] }
  0xa3   : > { %4881 = vmatpush.bf16.msra.mxu2 %v8216_v32  ;;  %v8252_v32 = vld [vmem:[%s10661_s1 + $0x5c8] sm:$0xff] }
  0xa4   : > { %4894 = vmatpush.bf16.msra.mxu3 %v8224_v33 }
  0xa5   : > { %4856 = vmatpush.bf16.msra.mxu0 %v8199_v34 }
  0xa6   : > { %4869 = vmatpush.bf16.msra.mxu1 %v8207_v35  ;;  %v374_v35 = vld [vmem:[%s8917_s12 + $0x30] sm:$0xff] }
  0xa7   : > { %4882 = vmatpush.bf16.msra.mxu2 %v8215_v36  ;;  %1450 = vst [vmem:[#allocation1] ss:$4 sm:$0xff] %v374_v35  ;;  %v8227_v36 = vld [vmem:[%s10661_s1 + $0x500] sm:$0xff]  ;;  %v8313_v35 = vld [vmem:[%s10661_s1 + $0x7b0] sm:$0xff] }
  0xa8   : > { %4895 = vmatpush.bf16.msra.mxu3 %v8223_v37  ;;  %v8235_v37 = vld [vmem:[%s10661_s1 + $0x540] sm:$0xff] }
  0xa9   : > { %4857 = vmatpush.bf16.msra.mxu0 %v8198_v38  ;;  %v8243_v38 = vld [vmem:[%s10661_s1 + $0x580] sm:$0xff] }
  0xaa   : > { %4870 = vmatpush.bf16.msra.mxu1 %v8206_v39  ;;  %v8251_v39 = vld [vmem:[%s10661_s1 + $0x5c0] sm:$0xff] }
  0xab   : > { %4883 = vmatpush.bf16.msra.mxu2 %v8214_v40  ;;  %v8266_v40 = vld [vmem:[%s10661_s1 + $0x638] sm:$0xff] }
  0xac   : > { %4896 = vmatpush.bf16.msra.mxu3 %v8222_v41  ;;  %v8274_v41 = vld [vmem:[%s10661_s1 + $0x678] sm:$0xff] }
  0xad   : > { %4858 = vmatpush.bf16.msra.mxu0 %v8197_v42  ;;  %v8282_v42 = vld [vmem:[%s10661_s1 + $0x6b8] sm:$0xff] }
  0xae   : > { %4871 = vmatpush.bf16.msra.mxu1 %v8205_v43  ;;  %v8290_v43 = vld [vmem:[%s10661_s1 + $0x6f8] sm:$0xff] }
  0xaf   : > { %4884 = vmatpush.bf16.msra.mxu2 %v8213_v44  ;;  %v1445_v44 = vld.sshfl [vmem:[#allocation1 + $0x20] sm:$0xff pattern:$0x73625140] }
  0xb0   : > { %4897 = vmatpush.bf16.msra.mxu3 %v8221_v45  ;;  %v1447_v45 = vld.sshfl [vmem:[#allocation1 + $0x30] sm:$0xff pattern:$0x73625140] }
  0xb1   : > { %4859 = vmatpush.bf16.msra.mxu0 %v8196_v46  ;;  %v1446_v46 = vld.sshfl [vmem:[#allocation1 + $0x28] sm:$0xff pattern:$0x73625140] }
  0xb2   : > { %4872 = vmatpush.bf16.msra.mxu1 %v8204_v47  ;;  %v1448_v47 = vld.sshfl [vmem:[#allocation1 + $0x38] sm:$0xff pattern:$0x73625140] }
  0xb3   : > { %4885 = vmatpush.bf16.msra.mxu2 %v8212_v48  ;;  %v8265_v48 = vld [vmem:[%s10661_s1 + $0x630] sm:$0xff] }
  0xb4   : > { %4898 = vmatpush.bf16.msra.mxu3 %v8220_v49  ;;  %v8273_v49 = vld [vmem:[%s10661_s1 + $0x670] sm:$0xff] }
  0xb5   : > { %4860 = vmatpush.bf16.msra.mxu0 %v8195_v50  ;;  %v4654_v7 = vpop.f32.mrf.mxu0  ;;  %v8281_v50 = vld [vmem:[%s10661_s1 + $0x6b0] sm:$0xff] }
  0xb6   : > { %4873 = vmatpush.bf16.msra.mxu1 %v8203_v51  ;;  %v4655_v10 = vadd.f32 %v8647_v4, %v4654_v7  ;;  %v4667_v11 = vpop.f32.mrf.mxu1  ;;  %v8289_v51 = vld [vmem:[%s10661_s1 + $0x6f0] sm:$0xff] }
  0xb7   : > { %4886 = vmatpush.bf16.msra.mxu2 %v8211_v52  ;;  %v8264_v52 = vld [vmem:[%s10661_s1 + $0x628] sm:$0xff] }
  0xb8   : > { %4899 = vmatpush.bf16.msra.mxu3 %v8219_v53  ;;  %4861 = vmatmul.bf16.vlgmr.msra.gmra.mxu0 %v1441_v58  ;;  %v4668_v14 = vadd.f32 %v4667_v11, %v4655_v10  ;;  %v8272_v53 = vld [vmem:[%s10661_s1 + $0x668] sm:$0xff]  ;;  %v8271_v58 = vld [vmem:[%s10661_s1 + $0x660] sm:$0xff] }
  0xb9   : > { %4905 = vmatpush.bf16.msrb.mxu0 %v8234_v54  ;;  %4874 = vmatmul.bf16.vlgmr.msra.gmra.mxu1 %v1442_v60  ;;  %v8280_v54 = vld [vmem:[%s10661_s1 + $0x6a8] sm:$0xff] }
  0xba   : > { %4918 = vmatpush.bf16.msrb.mxu1 %v8242_v55  ;;  %4887 = vmatmul.bf16.vlgmr.msra.gmra.mxu2 %v1443_v59  ;;  %v8288_v55 = vld [vmem:[%s10661_s1 + $0x6e8] sm:$0xff] }
  0xbb   : > { %4931 = vmatpush.bf16.msrb.mxu2 %v8250_v56  ;;  %4900 = vmatmul.bf16.vlgmr.msra.gmra.mxu3 %v1444_v61  ;;  %v8279_v61 = vld [vmem:[%s10661_s1 + $0x6a0] sm:$0xff] }
  0xbc   : > { %4944 = vmatpush.bf16.msrb.mxu3 %v8258_v57  ;;  %v8263_v57 = vld [vmem:[%s10661_s1 + $0x620] sm:$0xff] }
  0xbd   : > { %4906 = vmatpush.bf16.msrb.mxu0 %v8233_v62  ;;  %v4680_v19 = vpop.f32.mrf.mxu2  ;;  %v4656_v22 = vpop.f32.mrf.mxu0  ;;  %v8287_v62 = vld [vmem:[%s10661_s1 + $0x6e0] sm:$0xff] }
  0xbe   : > { %4919 = vmatpush.bf16.msrb.mxu1 %v8241_v63  ;;  %v4681_v20 = vadd.f32 %v4680_v19, %v4668_v14  ;;  %v4693_v21 = vpop.f32.mrf.mxu3  ;;  %v4669_v26 = vpop.f32.mrf.mxu1  ;;  %v8260_v14 = vld [vmem:[%s10661_s1 + $0x608] sm:$0xff]  ;;  %v8267_v22 = vld [vmem:[%s10661_s1 + $0x640] sm:$0xff] }
  0xbf   : > { %4932 = vmatpush.bf16.msrb.mxu2 %v8249_v0  ;;  %v8262_v0 = vld [vmem:[%s10661_s1 + $0x618] sm:$0xff] }
  0xc0   : > { %4945 = vmatpush.bf16.msrb.mxu3 %v8257_v1  ;;  %v9453_v25 = vadd.f32 %v4693_v21, %v4681_v20  ;;  %v8270_v1 = vld [vmem:[%s10661_s1 + $0x658] sm:$0xff]  ;;  %v8259_v21 = vld [vmem:[%s10661_s1 + $0x600] sm:$0xff] }
  0xc1   : > { %4907 = vmatpush.bf16.msrb.mxu0 %v8232_v2  ;;  %v8278_v2 = vld [vmem:[%s10661_s1 + $0x698] sm:$0xff] }
  0xc2   : > { %4920 = vmatpush.bf16.msrb.mxu1 %v8240_v3  ;;  %v8286_v3 = vld [vmem:[%s10661_s1 + $0x6d8] sm:$0xff] }
  0xc3   : > { %4933 = vmatpush.bf16.msrb.mxu2 %v8248_v5  ;;  %v375_v20 = vld [vmem:[%s8917_s12 + $0x38] sm:$0xff] }
  0xc4   : > { %4946 = vmatpush.bf16.msrb.mxu3 %v8256_v6  ;;  %1452 = vst [vmem:[#allocation1 + $0x20] ss:$4 sm:$0xff] %v375_v20  ;;  %v8306_v26 = vld [vmem:[%s10661_s1 + $0x778] sm:$0xff]  ;;  %v8345_v20 = vld [vmem:[%s10661_s1 + $0x8b0] sm:$0xff] }
  0xc5   : > { %4908 = vmatpush.bf16.msrb.mxu0 %v8231_v8  ;;  %v4682_v33 = vpop.f32.mrf.mxu2  ;;  %v8261_v8 = vld [vmem:[%s10661_s1 + $0x610] sm:$0xff] }
  0xc6   : > { %4921 = vmatpush.bf16.msrb.mxu1 %v8239_v9  ;;  %v4695_v34 = vpop.f32.mrf.mxu3  ;;  %v8269_v9 = vld [vmem:[%s10661_s1 + $0x650] sm:$0xff] }
  0xc7   : > { %4934 = vmatpush.bf16.msrb.mxu2 %v8247_v12  ;;  %v8277_v12 = vld [vmem:[%s10661_s1 + $0x690] sm:$0xff] }
  0xc8   : > { %4947 = vmatpush.bf16.msrb.mxu3 %v8255_v13  ;;  %v8285_v13 = vld [vmem:[%s10661_s1 + $0x6d0] sm:$0xff] }
  0xc9   : > { %4909 = vmatpush.bf16.msrb.mxu0 %v8230_v15  ;;  %v8268_v15 = vld [vmem:[%s10661_s1 + $0x648] sm:$0xff]  ;;  %v8297_v33 = vld [vmem:[%s10661_s1 + $0x730] sm:$0xff] }
  0xca   : > { %4922 = vmatpush.bf16.msrb.mxu1 %v8238_v16  ;;  %v8276_v16 = vld [vmem:[%s10661_s1 + $0x688] sm:$0xff]  ;;  %v8305_v34 = vld [vmem:[%s10661_s1 + $0x770] sm:$0xff] }
  0xcb   : > { %4935 = vmatpush.bf16.msrb.mxu2 %v8246_v17  ;;  %v8284_v17 = vld [vmem:[%s10661_s1 + $0x6c8] sm:$0xff] }
  0xcc   : > { %4948 = vmatpush.bf16.msrb.mxu3 %v8254_v18 }
  0xcd   : > { %4910 = vmatpush.bf16.msrb.mxu0 %v8229_v23  ;;  %v8275_v23 = vld [vmem:[%s10661_s1 + $0x680] sm:$0xff] }
  0xce   : > { %4923 = vmatpush.bf16.msrb.mxu1 %v8237_v24  ;;  %v8283_v24 = vld [vmem:[%s10661_s1 + $0x6c0] sm:$0xff] }
  0xcf   : > { %4936 = vmatpush.bf16.msrb.mxu2 %v8245_v27  ;;  %v8314_v27 = vld [vmem:[%s10661_s1 + $0x7b8] sm:$0xff] }
  0xd0   : > { %4949 = vmatpush.bf16.msrb.mxu3 %v8253_v28  ;;  %v8322_v28 = vld [vmem:[%s10661_s1 + $0x7f8] sm:$0xff] }
  0xd1   : > { %4911 = vmatpush.bf16.msrb.mxu0 %v8228_v29  ;;  %v1453_v29 = vld.sshfl [vmem:[#allocation1] sm:$0xff pattern:$0x73625140] }
  0xd2   : > { %4924 = vmatpush.bf16.msrb.mxu1 %v8236_v30  ;;  %v1455_v30 = vld.sshfl [vmem:[#allocation1 + $0x10] sm:$0xff pattern:$0x73625140] }
  0xd3   : > { %4937 = vmatpush.bf16.msrb.mxu2 %v8244_v31  ;;  %v1454_v31 = vld.sshfl [vmem:[#allocation1 + $0x8] sm:$0xff pattern:$0x73625140] }
  0xd4   : > { %4950 = vmatpush.bf16.msrb.mxu3 %v8252_v32  ;;  %v1456_v32 = vld.sshfl [vmem:[#allocation1 + $0x18] sm:$0xff pattern:$0x73625140] }
  0xd5   : > { %4912 = vmatpush.bf16.msrb.mxu0 %v8227_v36  ;;  %v4706_v56 = vpop.f32.mrf.mxu0  ;;  %v8321_v36 = vld [vmem:[%s10661_s1 + $0x7f0] sm:$0xff] }
  0xd6   : > { %4925 = vmatpush.bf16.msrb.mxu1 %v8235_v37  ;;  %v4707_v59 = vadd.f32 %v4706_v56, %v9453_v25  ;;  %v4719_v60 = vpop.f32.mrf.mxu1  ;;  %v8298_v25 = vld [vmem:[%s10661_s1 + $0x738] sm:$0xff]  ;;  %v8296_v37 = vld [vmem:[%s10661_s1 + $0x728] sm:$0xff] }
  0xd7   : > { %4938 = vmatpush.bf16.msrb.mxu2 %v8243_v38  ;;  %v8304_v38 = vld [vmem:[%s10661_s1 + $0x768] sm:$0xff] }
  0xd8   : > { %4951 = vmatpush.bf16.msrb.mxu3 %v8251_v39  ;;  %4913 = vmatmul.bf16.vlgmr.msrb.gmra.mxu0 %v1445_v44  ;;  %v4720_v63 = vadd.f32 %v4719_v60, %v4707_v59  ;;  %v8312_v39 = vld [vmem:[%s10661_s1 + $0x7a8] sm:$0xff]  ;;  %v8303_v44 = vld [vmem:[%s10661_s1 + $0x760] sm:$0xff]  ;;  %v8301_v59 = vld [vmem:[%s10661_s1 + $0x750] sm:$0xff] }
  0xd9   : > { %4957 = vmatpush.bf16.msra.mxu0 %v8266_v40  ;;  %4926 = vmatmul.bf16.vlgmr.msrb.gmra.mxu1 %v1446_v46  ;;  %v8320_v40 = vld [vmem:[%s10661_s1 + $0x7e8] sm:$0xff]  ;;  %v8311_v46 = vld [vmem:[%s10661_s1 + $0x7a0] sm:$0xff] }
  0xda   : > { %4970 = vmatpush.bf16.msra.mxu1 %v8274_v41  ;;  %4939 = vmatmul.bf16.vlgmr.msrb.gmra.mxu2 %v1447_v45 }
  0xdb   : > { %4983 = vmatpush.bf16.msra.mxu2 %v8282_v42  ;;  %4952 = vmatmul.bf16.vlgmr.msrb.gmra.mxu3 %v1448_v47  ;;  %v8319_v47 = vld [vmem:[%s10661_s1 + $0x7e0] sm:$0xff] }
  0xdc   : > { %4996 = vmatpush.bf16.msra.mxu3 %v8290_v43  ;;  %v8295_v43 = vld [vmem:[%s10661_s1 + $0x720] sm:$0xff] }
  0xdd   : > { %4958 = vmatpush.bf16.msra.mxu0 %v8265_v48  ;;  %v4732_v4 = vpop.f32.mrf.mxu2  ;;  %v4708_v7 = vpop.f32.mrf.mxu0 }
  0xde   : > { %4971 = vmatpush.bf16.msra.mxu1 %v8273_v49  ;;  %v4733_v5 = vadd.f32 %v4732_v4, %v4720_v63  ;;  %v4745_v6 = vpop.f32.mrf.mxu3  ;;  %v4721_v11 = vpop.f32.mrf.mxu1  ;;  %v8294_v49 = vld [vmem:[%s10661_s1 + $0x718] sm:$0xff]  ;;  %v8292_v63 = vld [vmem:[%s10661_s1 + $0x708] sm:$0xff]  ;;  %v8299_v7 = vld [vmem:[%s10661_s1 + $0x740] sm:$0xff] }
  0xdf   : > { %4984 = vmatpush.bf16.msra.mxu2 %v8281_v50  ;;  %v8302_v50 = vld [vmem:[%s10661_s1 + $0x758] sm:$0xff] }
  0xe0   : > { %4997 = vmatpush.bf16.msra.mxu3 %v8289_v51  ;;  %v4746_v10 = vadd.f32 %v4745_v6, %v4733_v5  ;;  %v8310_v51 = vld [vmem:[%s10661_s1 + $0x798] sm:$0xff]  ;;  %v376_v5 = vld [vmem:[%s8917_s12 + $0x40] sm:$0xff] }
  0xe1   : > { %4959 = vmatpush.bf16.msra.mxu0 %v8264_v52  ;;  %v8318_v52 = vld [vmem:[%s10661_s1 + $0x7d8] sm:$0xff]  ;;  %1462 = vst [vmem:[#allocation1] ss:$4 sm:$0xff] %v376_v5  ;;  %v8291_v6 = vld [vmem:[%s10661_s1 + $0x700] sm:$0xff]  ;;  %v8377_v5 = vld [vmem:[%s10661_s1 + $0x9b0] sm:$0xff] }
  0xe2   : > { %4972 = vmatpush.bf16.msra.mxu1 %v8272_v53  ;;  %v8338_v11 = vld [vmem:[%s10661_s1 + $0x878] sm:$0xff] }
  0xe3   : > { %4985 = vmatpush.bf16.msra.mxu2 %v8280_v54 }
  0xe4   : > { %4998 = vmatpush.bf16.msra.mxu3 %v8288_v55 }
  0xe5   : > { %4960 = vmatpush.bf16.msra.mxu0 %v8263_v57  ;;  %v4734_v18 = vpop.f32.mrf.mxu2 }
  0xe6   : > { %4973 = vmatpush.bf16.msra.mxu1 %v8271_v58  ;;  %v4747_v19 = vpop.f32.mrf.mxu3  ;;  %v8293_v58 = vld [vmem:[%s10661_s1 + $0x710] sm:$0xff] }
  0xe7   : > { %4986 = vmatpush.bf16.msra.mxu2 %v8279_v61  ;;  %v8309_v61 = vld [vmem:[%s10661_s1 + $0x790] sm:$0xff] }
  0xe8   : > { %4999 = vmatpush.bf16.msra.mxu3 %v8287_v62  ;;  %v8317_v62 = vld [vmem:[%s10661_s1 + $0x7d0] sm:$0xff] }
  0xe9   : > { %4961 = vmatpush.bf16.msra.mxu0 %v8262_v0  ;;  %v8300_v0 = vld [vmem:[%s10661_s1 + $0x748] sm:$0xff]  ;;  %v8329_v18 = vld [vmem:[%s10661_s1 + $0x830] sm:$0xff] }
  0xea   : > { %4974 = vmatpush.bf16.msra.mxu1 %v8270_v1  ;;  %v8308_v1 = vld [vmem:[%s10661_s1 + $0x788] sm:$0xff]  ;;  %v8337_v19 = vld [vmem:[%s10661_s1 + $0x870] sm:$0xff] }
  0xeb   : > { %4987 = vmatpush.bf16.msra.mxu2 %v8278_v2  ;;  %v8316_v2 = vld [vmem:[%s10661_s1 + $0x7c8] sm:$0xff] }
  0xec   : > { %5000 = vmatpush.bf16.msra.mxu3 %v8286_v3 }
  0xed   : > { %4962 = vmatpush.bf16.msra.mxu0 %v8261_v8  ;;  %v8307_v8 = vld [vmem:[%s10661_s1 + $0x780] sm:$0xff] }
  0xee   : > { %4975 = vmatpush.bf16.msra.mxu1 %v8269_v9  ;;  %v8315_v9 = vld [vmem:[%s10661_s1 + $0x7c0] sm:$0xff] }
  0xef   : > { %4988 = vmatpush.bf16.msra.mxu2 %v8277_v12  ;;  %v8346_v12 = vld [vmem:[%s10661_s1 + $0x8b8] sm:$0xff] }
  0xf0   : > { %5001 = vmatpush.bf16.msra.mxu3 %v8285_v13  ;;  %v8354_v13 = vld [vmem:[%s10661_s1 + $0x8f8] sm:$0xff] }
  0xf1   : > { %4963 = vmatpush.bf16.msra.mxu0 %v8260_v14  ;;  %v1457_v14 = vld.sshfl [vmem:[#allocation1 + $0x20] sm:$0xff pattern:$0x73625140] }
  0xf2   : > { %4976 = vmatpush.bf16.msra.mxu1 %v8268_v15  ;;  %v1459_v15 = vld.sshfl [vmem:[#allocation1 + $0x30] sm:$0xff pattern:$0x73625140] }
  0xf3   : > { %4989 = vmatpush.bf16.msra.mxu2 %v8276_v16  ;;  %v1458_v16 = vld.sshfl [vmem:[#allocation1 + $0x28] sm:$0xff pattern:$0x73625140] }
  0xf4   : > { %5002 = vmatpush.bf16.msra.mxu3 %v8284_v17  ;;  %v1460_v17 = vld.sshfl [vmem:[#allocation1 + $0x38] sm:$0xff pattern:$0x73625140] }
  0xf5   : > { %4964 = vmatpush.bf16.msra.mxu0 %v8259_v21  ;;  %v4758_v41 = vpop.f32.mrf.mxu0  ;;  %v8353_v21 = vld [vmem:[%s10661_s1 + $0x8f0] sm:$0xff] }
  0xf6   : > { %4977 = vmatpush.bf16.msra.mxu1 %v8267_v22  ;;  %v4759_v42 = vadd.f32 %v4758_v41, %v4746_v10  ;;  %v4771_v45 = vpop.f32.mrf.mxu1  ;;  %v8330_v10 = vld [vmem:[%s10661_s1 + $0x838] sm:$0xff]  ;;  %v8328_v22 = vld [vmem:[%s10661_s1 + $0x828] sm:$0xff] }
  0xf7   : > { %4990 = vmatpush.bf16.msra.mxu2 %v8275_v23  ;;  %v8336_v23 = vld [vmem:[%s10661_s1 + $0x868] sm:$0xff] }
  0xf8   : > { %5003 = vmatpush.bf16.msra.mxu3 %v8283_v24  ;;  %4965 = vmatmul.bf16.vlgmr.msra.gmra.mxu0 %v1453_v29  ;;  %v4772_v48 = vadd.f32 %v4771_v45, %v4759_v42  ;;  %v8344_v24 = vld [vmem:[%s10661_s1 + $0x8a8] sm:$0xff]  ;;  %v8335_v29 = vld [vmem:[%s10661_s1 + $0x860] sm:$0xff] }
  0xf9   : > { %5009 = vmatpush.bf16.msrb.mxu0 %v8298_v25  ;;  %4978 = vmatmul.bf16.vlgmr.msra.gmra.mxu1 %v1454_v31  ;;  %v8352_v25 = vld [vmem:[%s10661_s1 + $0x8e8] sm:$0xff]  ;;  %v8343_v31 = vld [vmem:[%s10661_s1 + $0x8a0] sm:$0xff] }
  0xfa   : > { %5022 = vmatpush.bf16.msrb.mxu1 %v8306_v26  ;;  %4991 = vmatmul.bf16.vlgmr.msra.gmra.mxu2 %v1455_v30 }
  0xfb   : > { %5035 = vmatpush.bf16.msrb.mxu2 %v8314_v27  ;;  %5004 = vmatmul.bf16.vlgmr.msra.gmra.mxu3 %v1456_v32  ;;  %v8351_v32 = vld [vmem:[%s10661_s1 + $0x8e0] sm:$0xff] }
  0xfc   : > { %5048 = vmatpush.bf16.msrb.mxu3 %v8322_v28  ;;  %v8327_v28 = vld [vmem:[%s10661_s1 + $0x820] sm:$0xff] }
  0xfd   : > { %5010 = vmatpush.bf16.msrb.mxu0 %v8297_v33  ;;  %v4784_v53 = vpop.f32.mrf.mxu2  ;;  %v4760_v56 = vpop.f32.mrf.mxu0 }
  0xfe   : > { %5023 = vmatpush.bf16.msrb.mxu1 %v8305_v34  ;;  %v4785_v54 = vadd.f32 %v4784_v53, %v4772_v48  ;;  %v4797_v55 = vpop.f32.mrf.mxu3  ;;  %v4773_v60 = vpop.f32.mrf.mxu1  ;;  %v8326_v34 = vld [vmem:[%s10661_s1 + $0x818] sm:$0xff]  ;;  %v8324_v48 = vld [vmem:[%s10661_s1 + $0x808] sm:$0xff]  ;;  %v8331_v56 = vld [vmem:[%s10661_s1 + $0x840] sm:$0xff] }
  0xff   : > { %5036 = vmatpush.bf16.msrb.mxu2 %v8313_v35  ;;  %v8334_v35 = vld [vmem:[%s10661_s1 + $0x858] sm:$0xff] }
 0x100   : > { %5049 = vmatpush.bf16.msrb.mxu3 %v8321_v36  ;;  %v9644_v57 = vadd.f32 %v4797_v55, %v4785_v54  ;;  %v8342_v36 = vld [vmem:[%s10661_s1 + $0x898] sm:$0xff]  ;;  %v377_v54 = vld [vmem:[%s8917_s12 + $0x48] sm:$0xff]  ;;  %v8323_v55 = vld [vmem:[%s10661_s1 + $0x800] sm:$0xff] }
 0x101   : > { %5011 = vmatpush.bf16.msrb.mxu0 %v8296_v37  ;;  %v8350_v37 = vld [vmem:[%s10661_s1 + $0x8d8] sm:$0xff]  ;;  %1464 = vst [vmem:[#allocation1 + $0x20] ss:$4 sm:$0xff] %v377_v54  ;;  %v8401_v54 = vld [vmem:[%s10661_s1 + $0xa70] sm:$0xff] }
 0x102   : > { %5024 = vmatpush.bf16.msrb.mxu1 %v8304_v38  ;;  %v8370_v60 = vld [vmem:[%s10661_s1 + $0x978] sm:$0xff] }
 0x103   : > { %5037 = vmatpush.bf16.msrb.mxu2 %v8312_v39 }
 0x104   : > { %5050 = vmatpush.bf16.msrb.mxu3 %v8320_v40 }
 0x105   : > { %5012 = vmatpush.bf16.msrb.mxu0 %v8295_v43  ;;  %v4786_v3 = vpop.f32.mrf.mxu2  ;;  %v8325_v43 = vld [vmem:[%s10661_s1 + $0x810] sm:$0xff] }
 0x106   : > { %5025 = vmatpush.bf16.msrb.mxu1 %v8303_v44  ;;  %v4799_v4 = vpop.f32.mrf.mxu3  ;;  %v8333_v44 = vld [vmem:[%s10661_s1 + $0x850] sm:$0xff] }
 0x107   : > { %5038 = vmatpush.bf16.msrb.mxu2 %v8311_v46  ;;  %v8341_v46 = vld [vmem:[%s10661_s1 + $0x890] sm:$0xff] }
 0x108   : > { %5051 = vmatpush.bf16.msrb.mxu3 %v8319_v47  ;;  %v8349_v47 = vld [vmem:[%s10661_s1 + $0x8d0] sm:$0xff] }
 0x109   : > { %5013 = vmatpush.bf16.msrb.mxu0 %v8294_v49  ;;  %v8332_v49 = vld [vmem:[%s10661_s1 + $0x848] sm:$0xff]  ;;  %v8361_v3 = vld [vmem:[%s10661_s1 + $0x930] sm:$0xff] }
 0x10a   : > { %5026 = vmatpush.bf16.msrb.mxu1 %v8302_v50  ;;  %v8340_v50 = vld [vmem:[%s10661_s1 + $0x888] sm:$0xff]  ;;  %v8369_v4 = vld [vmem:[%s10661_s1 + $0x970] sm:$0xff] }
 0x10b   : > { %5039 = vmatpush.bf16.msrb.mxu2 %v8310_v51  ;;  %v8348_v51 = vld [vmem:[%s10661_s1 + $0x8c8] sm:$0xff] }
 0x10c   : > { %5052 = vmatpush.bf16.msrb.mxu3 %v8318_v52 }
 0x10d   : > { %5014 = vmatpush.bf16.msrb.mxu0 %v8293_v58  ;;  %v8347_v58 = vld [vmem:[%s10661_s1 + $0x8c0] sm:$0xff] }
 0x10e   : > { %5027 = vmatpush.bf16.msrb.mxu1 %v8301_v59  ;;  %v8362_v59 = vld [vmem:[%s10661_s1 + $0x938] sm:$0xff] }
 0x10f   : > { %5040 = vmatpush.bf16.msrb.mxu2 %v8309_v61  ;;  %v8378_v61 = vld [vmem:[%s10661_s1 + $0x9b8] sm:$0xff] }
 0x110   : > { %5053 = vmatpush.bf16.msrb.mxu3 %v8317_v62  ;;  %v8386_v62 = vld [vmem:[%s10661_s1 + $0x9f8] sm:$0xff] }
 0x111   : > { %5015 = vmatpush.bf16.msrb.mxu0 %v8292_v63  ;;  %v1465_v63 = vld.sshfl [vmem:[#allocation1] sm:$0xff pattern:$0x73625140] }
 0x112   : > { %5028 = vmatpush.bf16.msrb.mxu1 %v8300_v0  ;;  %v1467_v0 = vld.sshfl [vmem:[#allocation1 + $0x10] sm:$0xff pattern:$0x73625140] }
 0x113   : > { %5041 = vmatpush.bf16.msrb.mxu2 %v8308_v1  ;;  %v1466_v1 = vld.sshfl [vmem:[#allocation1 + $0x8] sm:$0xff pattern:$0x73625140] }
 0x114   : > { %5054 = vmatpush.bf16.msrb.mxu3 %v8316_v2  ;;  %v1468_v2 = vld.sshfl [vmem:[#allocation1 + $0x18] sm:$0xff pattern:$0x73625140] }
 0x115   : > { %5016 = vmatpush.bf16.msrb.mxu0 %v8291_v6  ;;  %v4810_v26 = vpop.f32.mrf.mxu0  ;;  %v8385_v6 = vld [vmem:[%s10661_s1 + $0x9f0] sm:$0xff] }
 0x116   : > { %5029 = vmatpush.bf16.msrb.mxu1 %v8299_v7  ;;  %v4811_v27 = vadd.f32 %v4810_v26, %v9644_v57  ;;  %v4823_v30 = vpop.f32.mrf.mxu1  ;;  %v8339_v57 = vld [vmem:[%s10661_s1 + $0x880] sm:$0xff]  ;;  %v8360_v7 = vld [vmem:[%s10661_s1 + $0x928] sm:$0xff] }
 0x117   : > { %5042 = vmatpush.bf16.msrb.mxu2 %v8307_v8  ;;  %v8368_v8 = vld [vmem:[%s10661_s1 + $0x968] sm:$0xff] }
 0x118   : > { %5055 = vmatpush.bf16.msrb.mxu3 %v8315_v9  ;;  %5017 = vmatmul.bf16.vlgmr.msrb.gmra.mxu0 %v1457_v14  ;;  %v4824_v33 = vadd.f32 %v4823_v30, %v4811_v27  ;;  %v8376_v9 = vld [vmem:[%s10661_s1 + $0x9a8] sm:$0xff]  ;;  %v8367_v14 = vld [vmem:[%s10661_s1 + $0x960] sm:$0xff] }
 0x119   : > { %5061 = vmatpush.bf16.msra.mxu0 %v8330_v10  ;;  %5030 = vmatmul.bf16.vlgmr.msrb.gmra.mxu1 %v1458_v16  ;;  %v8384_v10 = vld [vmem:[%s10661_s1 + $0x9e8] sm:$0xff]  ;;  %v8375_v16 = vld [vmem:[%s10661_s1 + $0x9a0] sm:$0xff] }
 0x11a   : > { %5074 = vmatpush.bf16.msra.mxu1 %v8338_v11  ;;  %5043 = vmatmul.bf16.vlgmr.msrb.gmra.mxu2 %v1459_v15 }
 0x11b   : > { %5087 = vmatpush.bf16.msra.mxu2 %v8346_v12  ;;  %5056 = vmatmul.bf16.vlgmr.msrb.gmra.mxu3 %v1460_v17  ;;  %v8383_v17 = vld [vmem:[%s10661_s1 + $0x9e0] sm:$0xff] }
 0x11c   : > { %5100 = vmatpush.bf16.msra.mxu3 %v8354_v13  ;;  %v8359_v13 = vld [vmem:[%s10661_s1 + $0x920] sm:$0xff] }
 0x11d   : > { %5062 = vmatpush.bf16.msra.mxu0 %v8329_v18  ;;  %v4836_v38 = vpop.f32.mrf.mxu2  ;;  %v4812_v41 = vpop.f32.mrf.mxu0 }
 0x11e   : > { %5075 = vmatpush.bf16.msra.mxu1 %v8337_v19  ;;  %v4837_v39 = vadd.f32 %v4836_v38, %v4824_v33  ;;  %v4849_v40 = vpop.f32.mrf.mxu3  ;;  %v4825_v45 = vpop.f32.mrf.mxu1  ;;  %v8358_v19 = vld [vmem:[%s10661_s1 + $0x918] sm:$0xff]  ;;  %v8356_v33 = vld [vmem:[%s10661_s1 + $0x908] sm:$0xff]  ;;  %v8363_v41 = vld [vmem:[%s10661_s1 + $0x940] sm:$0xff] }
 0x11f   : > { %5088 = vmatpush.bf16.msra.mxu2 %v8345_v20  ;;  %v8366_v20 = vld [vmem:[%s10661_s1 + $0x958] sm:$0xff] }
 0x120   : > { %5101 = vmatpush.bf16.msra.mxu3 %v8353_v21  ;;  %v9744_v42 = vadd.f32 %v4849_v40, %v4837_v39  ;;  %v8374_v21 = vld [vmem:[%s10661_s1 + $0x998] sm:$0xff]  ;;  %v378_v39 = vld [vmem:[%s8917_s12 + $0x50] sm:$0xff]  ;;  %v8355_v40 = vld [vmem:[%s10661_s1 + $0x900] sm:$0xff] }
 0x121   : > { %5063 = vmatpush.bf16.msra.mxu0 %v8328_v22  ;;  %v8382_v22 = vld [vmem:[%s10661_s1 + $0x9d8] sm:$0xff]  ;;  %1474 = vst [vmem:[#allocation1] ss:$4 sm:$0xff] %v378_v39  ;;  %v8425_v39 = vld [vmem:[%s10661_s1 + $0xb30] sm:$0xff] }
 0x122   : > { %5076 = vmatpush.bf16.msra.mxu1 %v8336_v23  ;;  %v8402_v45 = vld [vmem:[%s10661_s1 + $0xa78] sm:$0xff] }
 0x123   : > { %5089 = vmatpush.bf16.msra.mxu2 %v8344_v24 }
 0x124   : > { %5102 = vmatpush.bf16.msra.mxu3 %v8352_v25 }
 0x125   : > { %5064 = vmatpush.bf16.msra.mxu0 %v8327_v28  ;;  %v4838_v52 = vpop.f32.mrf.mxu2  ;;  %v8357_v28 = vld [vmem:[%s10661_s1 + $0x910] sm:$0xff] }
 0x126   : > { %5077 = vmatpush.bf16.msra.mxu1 %v8335_v29  ;;  %v4851_v53 = vpop.f32.mrf.mxu3  ;;  %v8365_v29 = vld [vmem:[%s10661_s1 + $0x950] sm:$0xff]  ;;  %v1472_v52 = vld.sshfl [vmem:[#allocation1 + $0x38] sm:$0xff pattern:$0x73625140] }
 0x127   : > { %5090 = vmatpush.bf16.msra.mxu2 %v8343_v31  ;;  %v8373_v31 = vld [vmem:[%s10661_s1 + $0x990] sm:$0xff] }
 0x128   : > { %5103 = vmatpush.bf16.msra.mxu3 %v8351_v32  ;;  %v8381_v32 = vld [vmem:[%s10661_s1 + $0x9d0] sm:$0xff] }
 0x129   : > { %5065 = vmatpush.bf16.msra.mxu0 %v8326_v34  ;;  %v8364_v34 = vld [vmem:[%s10661_s1 + $0x948] sm:$0xff]  ;;  %v8393_v53 = vld [vmem:[%s10661_s1 + $0xa30] sm:$0xff] }
 0x12a   : > { %5078 = vmatpush.bf16.msra.mxu1 %v8334_v35  ;;  %v8372_v35 = vld [vmem:[%s10661_s1 + $0x988] sm:$0xff] }
 0x12b   : > { %5091 = vmatpush.bf16.msra.mxu2 %v8342_v36  ;;  %v8380_v36 = vld [vmem:[%s10661_s1 + $0x9c8] sm:$0xff] }
 0x12c   : > { %5104 = vmatpush.bf16.msra.mxu3 %v8350_v37 }
 0x12d   : > { %5066 = vmatpush.bf16.msra.mxu0 %v8325_v43  ;;  %v8379_v43 = vld [vmem:[%s10661_s1 + $0x9c0] sm:$0xff] }
 0x12e   : > { %5079 = vmatpush.bf16.msra.mxu1 %v8333_v44  ;;  %v8394_v44 = vld [vmem:[%s10661_s1 + $0xa38] sm:$0xff] }
 0x12f   : > { %5092 = vmatpush.bf16.msra.mxu2 %v8341_v46  ;;  %v8410_v46 = vld [vmem:[%s10661_s1 + $0xab8] sm:$0xff] }
 0x130   : > { %5105 = vmatpush.bf16.msra.mxu3 %v8349_v47  ;;  %v8418_v47 = vld [vmem:[%s10661_s1 + $0xaf8] sm:$0xff] }
 0x131   : > { %5067 = vmatpush.bf16.msra.mxu0 %v8324_v48  ;;  %v1469_v48 = vld.sshfl [vmem:[#allocation1 + $0x20] sm:$0xff pattern:$0x73625140] }
 0x132   : > { %5080 = vmatpush.bf16.msra.mxu1 %v8332_v49  ;;  %v1471_v49 = vld.sshfl [vmem:[#allocation1 + $0x30] sm:$0xff pattern:$0x73625140] }
 0x133   : > { %5093 = vmatpush.bf16.msra.mxu2 %v8340_v50  ;;  %v380_v50 = vld [vmem:[%s8917_s12 + $0x60] sm:$0xff] }
 0x134   : > { %5106 = vmatpush.bf16.msra.mxu3 %v8348_v51  ;;  %v1470_v51 = vld.sshfl [vmem:[#allocation1 + $0x28] sm:$0xff pattern:$0x73625140] }
 0x135   : > { %5068 = vmatpush.bf16.msra.mxu0 %v8323_v55  ;;  %v4862_v11 = vpop.f32.mrf.mxu0  ;;  %v8409_v55 = vld [vmem:[%s10661_s1 + $0xab0] sm:$0xff] }
 0x136   : > { %5081 = vmatpush.bf16.msra.mxu1 %v8331_v56  ;;  %v4863_v12 = vadd.f32 %v4862_v11, %v9744_v42  ;;  %v4875_v15 = vpop.f32.mrf.mxu1  ;;  %v8371_v42 = vld [vmem:[%s10661_s1 + $0x980] sm:$0xff]  ;;  %v8417_v56 = vld [vmem:[%s10661_s1 + $0xaf0] sm:$0xff]  ;;  %v8406_v11 = vld [vmem:[%s10661_s1 + $0xa98] sm:$0xff] }
 0x137   : > { %5094 = vmatpush.bf16.msra.mxu2 %v8339_v57  ;;  %v9908_v57 = vld.sshfl [vmem:[#allocation1] sm:$0xff pattern:$0x73625140] }
 0x138   : > { %5107 = vmatpush.bf16.msra.mxu3 %v8347_v58  ;;  %5069 = vmatmul.bf16.vlgmr.msra.gmra.mxu0 %v1465_v63  ;;  %v4876_v18 = vadd.f32 %v4875_v15, %v4863_v12  ;;  %v9910_v58 = vld.sshfl [vmem:[#allocation1 + $0x10] sm:$0xff pattern:$0x73625140]  ;;  %v8408_v63 = vld [vmem:[%s10661_s1 + $0xaa8] sm:$0xff]  ;;  %v8414_v12 = vld [vmem:[%s10661_s1 + $0xad8] sm:$0xff] }
 0x139   : > { %5113 = vmatpush.bf16.msrb.mxu0 %v8362_v59  ;;  %5082 = vmatmul.bf16.vlgmr.msra.gmra.mxu1 %v1466_v1  ;;  %v9912_v59 = vld.sshfl [vmem:[#allocation1 + $0x8] sm:$0xff pattern:$0x73625140] }
 0x13a   : > { %5126 = vmatpush.bf16.msrb.mxu1 %v8370_v60  ;;  %5095 = vmatmul.bf16.vlgmr.msra.gmra.mxu2 %v1467_v0  ;;  %v9914_v60 = vld.sshfl [vmem:[#allocation1 + $0x18] sm:$0xff pattern:$0x73625140]  ;;  %v8416_v0 = vld [vmem:[%s10661_s1 + $0xae8] sm:$0xff] }
 0x13b   : > { %5139 = vmatpush.bf16.msrb.mxu2 %v8378_v61  ;;  %5108 = vmatmul.bf16.vlgmr.msra.gmra.mxu3 %v1468_v2  ;;  %1486 = vst [vmem:[#allocation1] ss:$4 sm:$0xff] %v380_v50  ;;  %v8392_v61 = vld [vmem:[%s10661_s1 + $0xa28] sm:$0xff] }
 0x13c   : > { %5152 = vmatpush.bf16.msrb.mxu3 %v8386_v62  ;;  %v8400_v62 = vld [vmem:[%s10661_s1 + $0xa68] sm:$0xff] }
 0x13d   : > { %5114 = vmatpush.bf16.msrb.mxu0 %v8361_v3  ;;  %v4888_v23 = vpop.f32.mrf.mxu2  ;;  %v4864_v26 = vpop.f32.mrf.mxu0  ;;  %v8391_v3 = vld [vmem:[%s10661_s1 + $0xa20] sm:$0xff]  ;;  %v8448_v50 = vld [vmem:[%s10661_s1 + $0xbe8] sm:$0xff] }
 0x13e   : > { %5127 = vmatpush.bf16.msrb.mxu1 %v8369_v4  ;;  %v4889_v24 = vadd.f32 %v4888_v23, %v4876_v18  ;;  %v4901_v25 = vpop.f32.mrf.mxu3  ;;  %v4877_v30 = vpop.f32.mrf.mxu1  ;;  %v8399_v4 = vld [vmem:[%s10661_s1 + $0xa60] sm:$0xff]  ;;  %v8389_v18 = vld [vmem:[%s10661_s1 + $0xa10] sm:$0xff]  ;;  %v8388_v23 = vld [vmem:[%s10661_s1 + $0xa08] sm:$0xff] }
 0x13f   : > { %5140 = vmatpush.bf16.msrb.mxu2 %v8377_v5  ;;  %v8412_v26 = vld [vmem:[%s10661_s1 + $0xac8] sm:$0xff]  ;;  %v8387_v30 = vld [vmem:[%s10661_s1 + $0xa00] sm:$0xff] }
 0x140   : > { %5153 = vmatpush.bf16.msrb.mxu3 %v8385_v6  ;;  %v9844_v27 = vadd.f32 %v4901_v25, %v4889_v24  ;;  %v8407_v6 = vld [vmem:[%s10661_s1 + $0xaa0] sm:$0xff]  ;;  %v8396_v24 = vld [vmem:[%s10661_s1 + $0xa48] sm:$0xff] }
 0x141   : > { %5115 = vmatpush.bf16.msrb.mxu0 %v8360_v7  ;;  %v8415_v7 = vld [vmem:[%s10661_s1 + $0xae0] sm:$0xff]  ;;  %v8404_v25 = vld [vmem:[%s10661_s1 + $0xa88] sm:$0xff] }
 0x142   : > { %5128 = vmatpush.bf16.msrb.mxu1 %v8368_v8 }
 0x143   : > { %5141 = vmatpush.bf16.msrb.mxu2 %v8376_v9  ;;  %v8390_v9 = vld [vmem:[%s10661_s1 + $0xa18] sm:$0xff] }
 0x144   : > { %5154 = vmatpush.bf16.msrb.mxu3 %v8384_v10  ;;  %v8398_v10 = vld [vmem:[%s10661_s1 + $0xa58] sm:$0xff] }
 0x145   : > { %5116 = vmatpush.bf16.msrb.mxu0 %v8359_v13  ;;  %v4890_v37 = vpop.f32.mrf.mxu2 }
 0x146   : > { %5129 = vmatpush.bf16.msrb.mxu1 %v8367_v14  ;;  %v4903_v38 = vpop.f32.mrf.mxu3  ;;  %v8450_v37 = vld [vmem:[%s10661_s1 + $0xbf8] sm:$0xff] }
 0x147   : > { %5142 = vmatpush.bf16.msrb.mxu2 %v8375_v16  ;;  %v381_v38 = vld [vmem:[%s8917_s12 + $0x68] sm:$0xff] }
 0x148   : > { %5155 = vmatpush.bf16.msrb.mxu3 %v8383_v17 }
 0x149   : > { %5117 = vmatpush.bf16.msrb.mxu0 %v8358_v19  ;;  %v8397_v19 = vld [vmem:[%s10661_s1 + $0xa50] sm:$0xff] }
 0x14a   : > { %5130 = vmatpush.bf16.msrb.mxu1 %v8366_v20 }
 0x14b   : > { %5143 = vmatpush.bf16.msrb.mxu2 %v8374_v21  ;;  %v8405_v21 = vld [vmem:[%s10661_s1 + $0xa90] sm:$0xff] }
 0x14c   : > { %5156 = vmatpush.bf16.msrb.mxu3 %v8382_v22  ;;  %v8413_v22 = vld [vmem:[%s10661_s1 + $0xad0] sm:$0xff] }
 0x14d   : > { %5118 = vmatpush.bf16.msrb.mxu0 %v8357_v28 }
 0x14e   : > { %5131 = vmatpush.bf16.msrb.mxu1 %v8365_v29  ;;  %v379_v29 = vld [vmem:[%s8917_s12 + $0x58] sm:$0xff] }
 0x14f   : > { %5144 = vmatpush.bf16.msrb.mxu2 %v8373_v31  ;;  %1476 = vst [vmem:[#allocation1 + $0x20] ss:$4 sm:$0xff] %v379_v29  ;;  %v8395_v31 = vld [vmem:[%s10661_s1 + $0xa40] sm:$0xff]  ;;  %v10131_v29 = vld.sshfl [vmem:[#allocation1 + $0x10] sm:$0xff pattern:$0x73625140] }
 0x150   : > { %5157 = vmatpush.bf16.msrb.mxu3 %v8381_v32  ;;  %v8403_v32 = vld [vmem:[%s10661_s1 + $0xa80] sm:$0xff] }
 0x151   : > { %5119 = vmatpush.bf16.msrb.mxu0 %v8356_v33  ;;  %v8411_v33 = vld [vmem:[%s10661_s1 + $0xac0] sm:$0xff] }
 0x152   : > { %5132 = vmatpush.bf16.msrb.mxu1 %v8364_v34  ;;  %v8426_v34 = vld [vmem:[%s10661_s1 + $0xb38] sm:$0xff] }
 0x153   : > { %5145 = vmatpush.bf16.msrb.mxu2 %v8372_v35  ;;  %v8434_v35 = vld [vmem:[%s10661_s1 + $0xb78] sm:$0xff] }
 0x154   : > { %5158 = vmatpush.bf16.msrb.mxu3 %v8380_v36  ;;  %v8442_v36 = vld [vmem:[%s10661_s1 + $0xbb8] sm:$0xff] }
 0x155   : > { %5120 = vmatpush.bf16.msrb.mxu0 %v8355_v40  ;;  %v4914_v1 = vpop.f32.mrf.mxu0  ;;  %v8433_v40 = vld [vmem:[%s10661_s1 + $0xb70] sm:$0xff] }
 0x156   : > { %5133 = vmatpush.bf16.msrb.mxu1 %v8363_v41  ;;  %v4915_v2 = vadd.f32 %v4914_v1, %v9844_v27  ;;  %v4927_v5 = vpop.f32.mrf.mxu1  ;;  %v8441_v41 = vld [vmem:[%s10661_s1 + $0xbb0] sm:$0xff] }
 0x157   : > { %5146 = vmatpush.bf16.msrb.mxu2 %v8371_v42  ;;  %v8449_v42 = vld [vmem:[%s10661_s1 + $0xbf0] sm:$0xff] }
 0x158   : > { %5159 = vmatpush.bf16.msrb.mxu3 %v8379_v43  ;;  %5121 = vmatmul.bf16.vlgmr.msrb.gmra.mxu0 %v1469_v48  ;;  %v4928_v8 = vadd.f32 %v4927_v5, %v4915_v2  ;;  %v10017_v43 = vld.sshfl [vmem:[#allocation1 + $0x20] sm:$0xff pattern:$0x73625140]  ;;  %v8432_v48 = vld [vmem:[%s10661_s1 + $0xb68] sm:$0xff]  ;;  %v8429_v5 = vld [vmem:[%s10661_s1 + $0xb50] sm:$0xff] }
 0x159   : > { %5165 = vmatpush.bf16.msra.mxu0 %v8394_v44  ;;  %5134 = vmatmul.bf16.vlgmr.msrb.gmra.mxu1 %v1470_v51  ;;  %v10019_v44 = vld.sshfl [vmem:[#allocation1 + $0x30] sm:$0xff pattern:$0x73625140] }
 0x15a   : > { %5178 = vmatpush.bf16.msra.mxu1 %v8402_v45  ;;  %5147 = vmatmul.bf16.vlgmr.msrb.gmra.mxu2 %v1471_v49  ;;  %v10021_v45 = vld.sshfl [vmem:[#allocation1 + $0x28] sm:$0xff pattern:$0x73625140] }
 0x15b   : > { %5191 = vmatpush.bf16.msra.mxu2 %v8410_v46  ;;  %5160 = vmatmul.bf16.vlgmr.msrb.gmra.mxu3 %v1472_v52  ;;  %v10023_v46 = vld.sshfl [vmem:[#allocation1 + $0x38] sm:$0xff pattern:$0x73625140]  ;;  %v8440_v49 = vld [vmem:[%s10661_s1 + $0xba8] sm:$0xff] }
 0x15c   : > { %5204 = vmatpush.bf16.msra.mxu3 %v8418_v47  ;;  %1488 = vst [vmem:[#allocation1 + $0x20] ss:$4 sm:$0xff] %v381_v38  ;;  %v8424_v47 = vld [vmem:[%s10661_s1 + $0xb28] sm:$0xff]  ;;  %v8455_v38 = vld [vmem:[%s10661_s1 + $0xc20] sm:$0xff] }
 0x15d   : > { %5166 = vmatpush.bf16.msra.mxu0 %v8393_v53  ;;  %v4940_v13 = vpop.f32.mrf.mxu2  ;;  %v4916_v16 = vpop.f32.mrf.mxu0  ;;  %v8423_v53 = vld [vmem:[%s10661_s1 + $0xb20] sm:$0xff] }
 0x15e   : > { %5179 = vmatpush.bf16.msra.mxu1 %v8401_v54  ;;  %v4941_v14 = vadd.f32 %v4940_v13, %v4928_v8  ;;  %v4953_v15 = vpop.f32.mrf.mxu3  ;;  %v4929_v20 = vpop.f32.mrf.mxu1  ;;  %v8431_v54 = vld [vmem:[%s10661_s1 + $0xb60] sm:$0xff]  ;;  %v8445_v8 = vld [vmem:[%s10661_s1 + $0xbd0] sm:$0xff] }
 0x15f   : > { %5192 = vmatpush.bf16.msra.mxu2 %v8409_v55  ;;  %v8427_v16 = vld [vmem:[%s10661_s1 + $0xb40] sm:$0xff]  ;;  %v8466_v20 = vld [vmem:[%s10661_s1 + $0xc78] sm:$0xff] }
 0x160   : > { %5205 = vmatpush.bf16.msra.mxu3 %v8417_v56  ;;  %v9953_v17 = vadd.f32 %v4953_v15, %v4941_v14  ;;  %v8439_v56 = vld [vmem:[%s10661_s1 + $0xba0] sm:$0xff] }
 0x161   : > { %5167 = vmatpush.bf16.msra.mxu0 %v8392_v61  ;;  %v8438_v61 = vld [vmem:[%s10661_s1 + $0xb98] sm:$0xff]  ;;  %v8419_v15 = vld [vmem:[%s10661_s1 + $0xb00] sm:$0xff] }
 0x162   : > { %5180 = vmatpush.bf16.msra.mxu1 %v8400_v62  ;;  %v8446_v62 = vld [vmem:[%s10661_s1 + $0xbd8] sm:$0xff] }
 0x163   : > { %5193 = vmatpush.bf16.msra.mxu2 %v8408_v63 }
 0x164   : > { %5206 = vmatpush.bf16.msra.mxu3 %v8416_v0 }
 0x165   : > { %5168 = vmatpush.bf16.msra.mxu0 %v8391_v3  ;;  %v4942_v27 = vpop.f32.mrf.mxu2 }
 0x166   : > { %5181 = vmatpush.bf16.msra.mxu1 %v8399_v4  ;;  %v4955_v28 = vpop.f32.mrf.mxu3  ;;  %v8421_v4 = vld [vmem:[%s10661_s1 + $0xb10] sm:$0xff] }
 0x167   : > { %5194 = vmatpush.bf16.msra.mxu2 %v8407_v6  ;;  %v8481_v27 = vld [vmem:[%s10661_s1 + $0xcf0] sm:$0xff]  ;;  %v10129_v28 = vld.sshfl [vmem:[#allocation1] sm:$0xff pattern:$0x73625140] }
 0x168   : > { %5207 = vmatpush.bf16.msra.mxu3 %v8415_v7  ;;  %v8437_v7 = vld [vmem:[%s10661_s1 + $0xb90] sm:$0xff] }
 0x169   : > { %5169 = vmatpush.bf16.msra.mxu0 %v8390_v9  ;;  %v8420_v9 = vld [vmem:[%s10661_s1 + $0xb08] sm:$0xff] }
 0x16a   : > { %5182 = vmatpush.bf16.msra.mxu1 %v8398_v10  ;;  %v8428_v10 = vld [vmem:[%s10661_s1 + $0xb48] sm:$0xff] }
 0x16b   : > { %5195 = vmatpush.bf16.msra.mxu2 %v8406_v11  ;;  %v8436_v11 = vld [vmem:[%s10661_s1 + $0xb88] sm:$0xff] }
 0x16c   : > { %5208 = vmatpush.bf16.msra.mxu3 %v8414_v12  ;;  %v8444_v12 = vld [vmem:[%s10661_s1 + $0xbc8] sm:$0xff] }
 0x16d   : > { %5170 = vmatpush.bf16.msra.mxu0 %v8389_v18  ;;  %v8443_v18 = vld [vmem:[%s10661_s1 + $0xbc0] sm:$0xff] }
 0x16e   : > { %5183 = vmatpush.bf16.msra.mxu1 %v8397_v19  ;;  %v8458_v19 = vld [vmem:[%s10661_s1 + $0xc38] sm:$0xff] }
 0x16f   : > { %5196 = vmatpush.bf16.msra.mxu2 %v8405_v21  ;;  %v8474_v21 = vld [vmem:[%s10661_s1 + $0xcb8] sm:$0xff] }
 0x170   : > { %5209 = vmatpush.bf16.msra.mxu3 %v8413_v22  ;;  %v8482_v22 = vld [vmem:[%s10661_s1 + $0xcf8] sm:$0xff] }
 0x171   : > { %5171 = vmatpush.bf16.msra.mxu0 %v8388_v23  ;;  %v382_v23 = vld [vmem:[%s8917_s12 + $0x70] sm:$0xff] }
 0x172   : > { %5184 = vmatpush.bf16.msra.mxu1 %v8396_v24  ;;  %v8457_v24 = vld [vmem:[%s10661_s1 + $0xc30] sm:$0xff] }
 0x173   : > { %5197 = vmatpush.bf16.msra.mxu2 %v8404_v25  ;;  %v8465_v25 = vld [vmem:[%s10661_s1 + $0xc70] sm:$0xff] }
 0x174   : > { %5210 = vmatpush.bf16.msra.mxu3 %v8412_v26  ;;  %v8473_v26 = vld [vmem:[%s10661_s1 + $0xcb0] sm:$0xff] }
 0x175   : > { %5172 = vmatpush.bf16.msra.mxu0 %v8387_v30  ;;  %v4966_v51 = vpop.f32.mrf.mxu0  ;;  %v10133_v30 = vld.sshfl [vmem:[#allocation1 + $0x8] sm:$0xff pattern:$0x73625140] }
 0x176   : > { %5185 = vmatpush.bf16.msra.mxu1 %v8395_v31  ;;  %v4967_v52 = vadd.f32 %v4966_v51, %v9953_v17  ;;  %v4979_v55 = vpop.f32.mrf.mxu1  ;;  %v8435_v17 = vld [vmem:[%s10661_s1 + $0xb80] sm:$0xff]  ;;  %v10135_v31 = vld.sshfl [vmem:[#allocation1 + $0x18] sm:$0xff pattern:$0x73625140] }
 0x177   : > { %5198 = vmatpush.bf16.msra.mxu2 %v8403_v32  ;;  %1498 = vst [vmem:[#allocation1] ss:$4 sm:$0xff] %v382_v23  ;;  %v8456_v32 = vld [vmem:[%s10661_s1 + $0xc28] sm:$0xff]  ;;  %v8487_v23 = vld [vmem:[%s10661_s1 + $0xd20] sm:$0xff] }
 0x178   : > { %5211 = vmatpush.bf16.msra.mxu3 %v8411_v33  ;;  %5173 = vmatmul.bf16.vlgmr.msra.gmra.mxu0 %v9908_v57  ;;  %v8447_v57 = vld [vmem:[%s10661_s1 + $0xbe0] sm:$0xff]  ;;  %v8464_v33 = vld [vmem:[%s10661_s1 + $0xc68] sm:$0xff] }
 0x179   : > { %5217 = vmatpush.bf16.msrb.mxu0 %v8426_v34  ;;  %5186 = vmatmul.bf16.vlgmr.msra.gmra.mxu1 %v9912_v59  ;;  %v8422_v59 = vld [vmem:[%s10661_s1 + $0xb18] sm:$0xff]  ;;  %v8472_v34 = vld [vmem:[%s10661_s1 + $0xca8] sm:$0xff] }
 0x17a   : > { %5230 = vmatpush.bf16.msrb.mxu1 %v8434_v35  ;;  %5199 = vmatmul.bf16.vlgmr.msra.gmra.mxu2 %v9910_v58  ;;  %v4980_v58 = vadd.f32 %v4979_v55, %v4967_v52  ;;  %v8480_v35 = vld [vmem:[%s10661_s1 + $0xce8] sm:$0xff] }
 0x17b   : > { %5243 = vmatpush.bf16.msrb.mxu2 %v8442_v36  ;;  %5212 = vmatmul.bf16.vlgmr.msra.gmra.mxu3 %v9914_v60  ;;  %v8430_v60 = vld [vmem:[%s10661_s1 + $0xb58] sm:$0xff] }
 0x17c   : > { %5256 = vmatpush.bf16.msrb.mxu3 %v8450_v37 }
 0x17d   : > { %5218 = vmatpush.bf16.msrb.mxu0 %v8425_v39  ;;  %v4992_v63 = vpop.f32.mrf.mxu2  ;;  %v4968_v2 = vpop.f32.mrf.mxu0  ;;  %v8463_v39 = vld [vmem:[%s10661_s1 + $0xc60] sm:$0xff] }
 0x17e   : > { %5231 = vmatpush.bf16.msrb.mxu1 %v8433_v40  ;;  %v4993_v0 = vadd.f32 %v4992_v63, %v4980_v58  ;;  %v5005_v1 = vpop.f32.mrf.mxu3  ;;  %v4981_v6 = vpop.f32.mrf.mxu1  ;;  %v8452_v58 = vld [vmem:[%s10661_s1 + $0xc08] sm:$0xff]  ;;  %v8467_v2 = vld [vmem:[%s10661_s1 + $0xc80] sm:$0xff] }
 0x17f   : > { %5244 = vmatpush.bf16.msrb.mxu2 %v8441_v41  ;;  %v8471_v41 = vld [vmem:[%s10661_s1 + $0xca0] sm:$0xff]  ;;  %v8506_v6 = vld [vmem:[%s10661_s1 + $0xdb8] sm:$0xff] }
 0x180   : > { %5257 = vmatpush.bf16.msrb.mxu3 %v8449_v42  ;;  %v10066_v3 = vadd.f32 %v5005_v1, %v4993_v0  ;;  %v8479_v42 = vld [vmem:[%s10661_s1 + $0xce0] sm:$0xff] }
 0x181   : > { %5219 = vmatpush.bf16.msrb.mxu0 %v8424_v47  ;;  %v8478_v47 = vld [vmem:[%s10661_s1 + $0xcd8] sm:$0xff]  ;;  %v8451_v0 = vld [vmem:[%s10661_s1 + $0xc00] sm:$0xff] }
 0x182   : > { %5232 = vmatpush.bf16.msrb.mxu1 %v8432_v48  ;;  %v8459_v1 = vld [vmem:[%s10661_s1 + $0xc40] sm:$0xff] }
 0x183   : > { %5245 = vmatpush.bf16.msrb.mxu2 %v8440_v49 }
 0x184   : > { %5258 = vmatpush.bf16.msrb.mxu3 %v8448_v50 }
 0x185   : > { %5220 = vmatpush.bf16.msrb.mxu0 %v8423_v53  ;;  %v4994_v13 = vpop.f32.mrf.mxu2  ;;  %v8453_v53 = vld [vmem:[%s10661_s1 + $0xc10] sm:$0xff] }
 0x186   : > { %5233 = vmatpush.bf16.msrb.mxu1 %v8431_v54  ;;  %v5007_v14 = vpop.f32.mrf.mxu3  ;;  %v8461_v54 = vld [vmem:[%s10661_s1 + $0xc50] sm:$0xff]  ;;  %v10241_v13 = vld.sshfl [vmem:[#allocation1 + $0x20] sm:$0xff pattern:$0x73625140] }
 0x187   : > { %5246 = vmatpush.bf16.msrb.mxu2 %v8439_v56  ;;  %v8469_v56 = vld [vmem:[%s10661_s1 + $0xc90] sm:$0xff] }
 0x188   : > { %5259 = vmatpush.bf16.msrb.mxu3 %v8447_v57  ;;  %v8477_v57 = vld [vmem:[%s10661_s1 + $0xcd0] sm:$0xff] }
 0x189   : > { %5221 = vmatpush.bf16.msrb.mxu0 %v8422_v59  ;;  %v8460_v59 = vld [vmem:[%s10661_s1 + $0xc48] sm:$0xff]  ;;  %v10243_v14 = vld.sshfl [vmem:[#allocation1 + $0x30] sm:$0xff pattern:$0x73625140] }
 0x18a   : > { %5234 = vmatpush.bf16.msrb.mxu1 %v8430_v60  ;;  %v8468_v60 = vld [vmem:[%s10661_s1 + $0xc88] sm:$0xff] }
 0x18b   : > { %5247 = vmatpush.bf16.msrb.mxu2 %v8438_v61  ;;  %v8476_v61 = vld [vmem:[%s10661_s1 + $0xcc8] sm:$0xff] }
 0x18c   : > { %5260 = vmatpush.bf16.msrb.mxu3 %v8446_v62 }
 0x18d   : > { %5222 = vmatpush.bf16.msrb.mxu0 %v8421_v4  ;;  %v8490_v4 = vld [vmem:[%s10661_s1 + $0xd38] sm:$0xff] }
 0x18e   : > { %5235 = vmatpush.bf16.msrb.mxu1 %v8429_v5  ;;  %v8498_v5 = vld [vmem:[%s10661_s1 + $0xd78] sm:$0xff] }
 0x18f   : > { %5248 = vmatpush.bf16.msrb.mxu2 %v8437_v7  ;;  %v8514_v7 = vld [vmem:[%s10661_s1 + $0xdf8] sm:$0xff] }
 0x190   : > { %5261 = vmatpush.bf16.msrb.mxu3 %v8445_v8  ;;  %v383_v8 = vld [vmem:[%s8917_s12 + $0x78] sm:$0xff] }
 0x191   : > { %5223 = vmatpush.bf16.msrb.mxu0 %v8420_v9  ;;  %v8489_v9 = vld [vmem:[%s10661_s1 + $0xd30] sm:$0xff] }
 0x192   : > { %5236 = vmatpush.bf16.msrb.mxu1 %v8428_v10  ;;  %v8497_v10 = vld [vmem:[%s10661_s1 + $0xd70] sm:$0xff] }
 0x193   : > { %5249 = vmatpush.bf16.msrb.mxu2 %v8436_v11  ;;  %v8505_v11 = vld [vmem:[%s10661_s1 + $0xdb0] sm:$0xff] }
 0x194   : > { %5262 = vmatpush.bf16.msrb.mxu3 %v8444_v12  ;;  %v8513_v12 = vld [vmem:[%s10661_s1 + $0xdf0] sm:$0xff] }
 0x195   : > { %5224 = vmatpush.bf16.msrb.mxu0 %v8419_v15  ;;  %v5018_v36 = vpop.f32.mrf.mxu0  ;;  %v10245_v15 = vld.sshfl [vmem:[#allocation1 + $0x28] sm:$0xff pattern:$0x73625140] }
 0x196   : > { %5237 = vmatpush.bf16.msrb.mxu1 %v8427_v16  ;;  %v5019_v37 = vadd.f32 %v5018_v36, %v10066_v3  ;;  %v5031_v40 = vpop.f32.mrf.mxu1  ;;  %v8475_v3 = vld [vmem:[%s10661_s1 + $0xcc0] sm:$0xff]  ;;  %v10247_v16 = vld.sshfl [vmem:[#allocation1 + $0x38] sm:$0xff pattern:$0x73625140] }
 0x197   : > { %5250 = vmatpush.bf16.msrb.mxu2 %v8435_v17  ;;  %1500 = vst [vmem:[#allocation1 + $0x20] ss:$4 sm:$0xff] %v383_v8  ;;  %v8488_v17 = vld [vmem:[%s10661_s1 + $0xd28] sm:$0xff] }
 0x198   : > { %5263 = vmatpush.bf16.msrb.mxu3 %v8443_v18  ;;  %5225 = vmatmul.bf16.vlgmr.msrb.gmra.mxu0 %v10017_v43  ;;  %v5032_v43 = vadd.f32 %v5031_v40, %v5019_v37  ;;  %v8496_v18 = vld [vmem:[%s10661_s1 + $0xd68] sm:$0xff] }
 0x199   : > { %5269 = vmatpush.bf16.msra.mxu0 %v8458_v19  ;;  %5238 = vmatmul.bf16.vlgmr.msrb.gmra.mxu1 %v10021_v45  ;;  %v8462_v45 = vld [vmem:[%s10661_s1 + $0xc58] sm:$0xff]  ;;  %v8504_v19 = vld [vmem:[%s10661_s1 + $0xda8] sm:$0xff] }
 0x19a   : > { %5282 = vmatpush.bf16.msra.mxu1 %v8466_v20  ;;  %5251 = vmatmul.bf16.vlgmr.msrb.gmra.mxu2 %v10019_v44  ;;  %v8454_v44 = vld [vmem:[%s10661_s1 + $0xc18] sm:$0xff]  ;;  %v8512_v20 = vld [vmem:[%s10661_s1 + $0xde8] sm:$0xff] }
 0x19b   : > { %5295 = vmatpush.bf16.msra.mxu2 %v8474_v21  ;;  %5264 = vmatmul.bf16.vlgmr.msrb.gmra.mxu3 %v10023_v46  ;;  %v8470_v46 = vld [vmem:[%s10661_s1 + $0xc98] sm:$0xff] }
 0x19c   : > { %5308 = vmatpush.bf16.msra.mxu3 %v8482_v22 }
 0x19d   : > { %5270 = vmatpush.bf16.msra.mxu0 %v8457_v24  ;;  %v5044_v48 = vpop.f32.mrf.mxu2  ;;  %v5020_v51 = vpop.f32.mrf.mxu0  ;;  %v8495_v24 = vld [vmem:[%s10661_s1 + $0xd60] sm:$0xff] }
 0x19e   : > { %5283 = vmatpush.bf16.msra.mxu1 %v8465_v25  ;;  %v5045_v49 = vadd.f32 %v5044_v48, %v5032_v43  ;;  %v5057_v50 = vpop.f32.mrf.mxu3  ;;  %v5033_v55 = vpop.f32.mrf.mxu1  ;;  %v8484_v43 = vld [vmem:[%s10661_s1 + $0xd08] sm:$0xff]  ;;  %v8499_v51 = vld [vmem:[%s10661_s1 + $0xd80] sm:$0xff] }
 0x19f   : > { %5296 = vmatpush.bf16.msra.mxu2 %v8473_v26  ;;  %v8503_v26 = vld [vmem:[%s10661_s1 + $0xda0] sm:$0xff]  ;;  %v8538_v55 = vld [vmem:[%s10661_s1 + $0xeb8] sm:$0xff] }
 0x1a0   : > { %5309 = vmatpush.bf16.msra.mxu3 %v8481_v27  ;;  %v10178_v52 = vadd.f32 %v5057_v50, %v5045_v49  ;;  %v8511_v27 = vld [vmem:[%s10661_s1 + $0xde0] sm:$0xff] }
 0x1a1   : > { %5271 = vmatpush.bf16.msra.mxu0 %v8456_v32  ;;  %v8510_v32 = vld [vmem:[%s10661_s1 + $0xdd8] sm:$0xff]  ;;  %v8483_v49 = vld [vmem:[%s10661_s1 + $0xd00] sm:$0xff] }
 0x1a2   : > { %5284 = vmatpush.bf16.msra.mxu1 %v8464_v33  ;;  %v8491_v50 = vld [vmem:[%s10661_s1 + $0xd40] sm:$0xff] }
 0x1a3   : > { %5297 = vmatpush.bf16.msra.mxu2 %v8472_v34 }
 0x1a4   : > { %5310 = vmatpush.bf16.msra.mxu3 %v8480_v35 }
 0x1a5   : > { %5272 = vmatpush.bf16.msra.mxu0 %v8455_v38  ;;  %v5046_v62 = vpop.f32.mrf.mxu2  ;;  %v8485_v38 = vld [vmem:[%s10661_s1 + $0xd10] sm:$0xff] }
 0x1a6   : > { %5285 = vmatpush.bf16.msra.mxu1 %v8463_v39  ;;  %v5059_v63 = vpop.f32.mrf.mxu3  ;;  %v8493_v39 = vld [vmem:[%s10661_s1 + $0xd50] sm:$0xff]  ;;  %v8528_v62 = vld [vmem:[%s10661_s1 + $0xe68] sm:$0xff] }
 0x1a7   : > { %5298 = vmatpush.bf16.msra.mxu2 %v8471_v41  ;;  %v8501_v41 = vld [vmem:[%s10661_s1 + $0xd90] sm:$0xff]  ;;  %v8536_v63 = vld [vmem:[%s10661_s1 + $0xea8] sm:$0xff] }
 0x1a8   : > { %5311 = vmatpush.bf16.msra.mxu3 %v8479_v42  ;;  %v8509_v42 = vld [vmem:[%s10661_s1 + $0xdd0] sm:$0xff] }
 0x1a9   : > { %5273 = vmatpush.bf16.msra.mxu0 %v8454_v44  ;;  %v8492_v44 = vld [vmem:[%s10661_s1 + $0xd48] sm:$0xff] }
 0x1aa   : > { %5286 = vmatpush.bf16.msra.mxu1 %v8462_v45  ;;  %v8500_v45 = vld [vmem:[%s10661_s1 + $0xd88] sm:$0xff] }
 0x1ab   : > { %5299 = vmatpush.bf16.msra.mxu2 %v8470_v46  ;;  %v8508_v46 = vld [vmem:[%s10661_s1 + $0xdc8] sm:$0xff] }
 0x1ac   : > { %5312 = vmatpush.bf16.msra.mxu3 %v8478_v47 }
 0x1ad   : > { %5274 = vmatpush.bf16.msra.mxu0 %v8453_v53  ;;  %v8522_v53 = vld [vmem:[%s10661_s1 + $0xe38] sm:$0xff] }
 0x1ae   : > { %5287 = vmatpush.bf16.msra.mxu1 %v8461_v54  ;;  %v8530_v54 = vld [vmem:[%s10661_s1 + $0xe78] sm:$0xff] }
 0x1af   : > { %5300 = vmatpush.bf16.msra.mxu2 %v8469_v56  ;;  %v8546_v56 = vld [vmem:[%s10661_s1 + $0xef8] sm:$0xff] }
 0x1b0   : > { %5313 = vmatpush.bf16.msra.mxu3 %v8477_v57  ;;  %v8521_v57 = vld [vmem:[%s10661_s1 + $0xe30] sm:$0xff] }
 0x1b1   : > { %5275 = vmatpush.bf16.msra.mxu0 %v8452_v58  ;;  %v8529_v58 = vld [vmem:[%s10661_s1 + $0xe70] sm:$0xff] }
 0x1b2   : > { %5288 = vmatpush.bf16.msra.mxu1 %v8460_v59  ;;  %v8537_v59 = vld [vmem:[%s10661_s1 + $0xeb0] sm:$0xff] }
 0x1b3   : > { %5301 = vmatpush.bf16.msra.mxu2 %v8468_v60  ;;  %v8545_v60 = vld [vmem:[%s10661_s1 + $0xef0] sm:$0xff] }
 0x1b4   : > { %5314 = vmatpush.bf16.msra.mxu3 %v8476_v61  ;;  %v8520_v61 = vld [vmem:[%s10661_s1 + $0xe28] sm:$0xff] }
 0x1b5   : > { %5276 = vmatpush.bf16.msra.mxu0 %v8451_v0  ;;  %v5070_v21 = vpop.f32.mrf.mxu0  ;;  %v8544_v0 = vld [vmem:[%s10661_s1 + $0xee8] sm:$0xff] }
 0x1b6   : > { %5289 = vmatpush.bf16.msra.mxu1 %v8459_v1  ;;  %v5071_v22 = vadd.f32 %v5070_v21, %v10178_v52  ;;  %v5083_v25 = vpop.f32.mrf.mxu1  ;;  %v8507_v52 = vld [vmem:[%s10661_s1 + $0xdc0] sm:$0xff]  ;;  %v8533_v21 = vld [vmem:[%s10661_s1 + $0xe90] sm:$0xff] }
 0x1b7   : > { %5302 = vmatpush.bf16.msra.mxu2 %v8467_v2 }
 0x1b8   : > { %5315 = vmatpush.bf16.msra.mxu3 %v8475_v3  ;;  %5277 = vmatmul.bf16.vlgmr.msra.gmra.mxu0 %v10129_v28  ;;  %v5084_v28 = vadd.f32 %v5083_v25, %v5071_v22  ;;  %v8519_v3 = vld [vmem:[%s10661_s1 + $0xe20] sm:$0xff]  ;;  %v8541_v22 = vld [vmem:[%s10661_s1 + $0xed0] sm:$0xff]  ;;  %v8532_v25 = vld [vmem:[%s10661_s1 + $0xe88] sm:$0xff] }
 0x1b9   : > { %5321 = vmatpush.bf16.msrb.mxu0 %v8490_v4  ;;  %5290 = vmatmul.bf16.vlgmr.msra.gmra.mxu1 %v10133_v30  ;;  %v8494_v30 = vld [vmem:[%s10661_s1 + $0xd58] sm:$0xff]  ;;  %v8527_v4 = vld [vmem:[%s10661_s1 + $0xe60] sm:$0xff] }
 0x1ba   : > { %5334 = vmatpush.bf16.msrb.mxu1 %v8498_v5  ;;  %5303 = vmatmul.bf16.vlgmr.msra.gmra.mxu2 %v10131_v29  ;;  %v8486_v29 = vld [vmem:[%s10661_s1 + $0xd18] sm:$0xff] }
 0x1bb   : > { %5347 = vmatpush.bf16.msrb.mxu2 %v8506_v6  ;;  %5316 = vmatmul.bf16.vlgmr.msra.gmra.mxu3 %v10135_v31  ;;  %v8502_v31 = vld [vmem:[%s10661_s1 + $0xd98] sm:$0xff]  ;;  %v8535_v6 = vld [vmem:[%s10661_s1 + $0xea0] sm:$0xff] }
 0x1bc   : > { %5360 = vmatpush.bf16.msrb.mxu3 %v8514_v7  ;;  %v8543_v7 = vld [vmem:[%s10661_s1 + $0xee0] sm:$0xff] }
 0x1bd   : > { %5322 = vmatpush.bf16.msrb.mxu0 %v8489_v9  ;;  %v5096_v33 = vpop.f32.mrf.mxu2  ;;  %v5072_v36 = vpop.f32.mrf.mxu0  ;;  %v8518_v9 = vld [vmem:[%s10661_s1 + $0xe18] sm:$0xff] }
 0x1be   : > { %5335 = vmatpush.bf16.msrb.mxu1 %v8497_v10  ;;  %v5097_v34 = vadd.f32 %v5096_v33, %v5084_v28  ;;  %v5109_v35 = vpop.f32.mrf.mxu3  ;;  %v5085_v40 = vpop.f32.mrf.mxu1  ;;  %v8526_v10 = vld [vmem:[%s10661_s1 + $0xe58] sm:$0xff] }
 0x1bf   : > { %5348 = vmatpush.bf16.msrb.mxu2 %v8505_v11  ;;  %v8534_v11 = vld [vmem:[%s10661_s1 + $0xe98] sm:$0xff] }
 0x1c0   : > { %5361 = vmatpush.bf16.msrb.mxu3 %v8513_v12  ;;  %v5110_v37 = vadd.f32 %v5109_v35, %v5097_v34  ;;  %v8542_v12 = vld [vmem:[%s10661_s1 + $0xed8] sm:$0xff] }
 0x1c1   : > { %5323 = vmatpush.bf16.msrb.mxu0 %v8488_v17  ;;  %v8554_v33 = vld [vmem:[%s10661_s1 + $0xf38] sm:$0xff] }
 0x1c2   : > { %5336 = vmatpush.bf16.msrb.mxu1 %v8496_v18  ;;  %v8517_v18 = vld [vmem:[%s10661_s1 + $0xe10] sm:$0xff]  ;;  %v8562_v34 = vld [vmem:[%s10661_s1 + $0xf78] sm:$0xff] }
 0x1c3   : > { %5349 = vmatpush.bf16.msrb.mxu2 %v8504_v19  ;;  %v8525_v19 = vld [vmem:[%s10661_s1 + $0xe50] sm:$0xff]  ;;  %v8570_v35 = vld [vmem:[%s10661_s1 + $0xfb8] sm:$0xff] }
 0x1c4   : > { %5362 = vmatpush.bf16.msrb.mxu3 %v8512_v20  ;;  %v8578_v36 = vld [vmem:[%s10661_s1 + $0xff8] sm:$0xff] }
 0x1c5   : > { %5324 = vmatpush.bf16.msrb.mxu0 %v8487_v23  ;;  %v5098_v47 = vpop.f32.mrf.mxu2  ;;  %v8516_v23 = vld [vmem:[%s10661_s1 + $0xe08] sm:$0xff]  ;;  %v1504_v40 = vld.sshfl [vmem:[#allocation1 + $0x18] sm:$0xff pattern:$0x73625140] }
 0x1c6   : > { %5337 = vmatpush.bf16.msrb.mxu1 %v8495_v24  ;;  %v5111_v48 = vpop.f32.mrf.mxu3  ;;  %v8524_v24 = vld [vmem:[%s10661_s1 + $0xe48] sm:$0xff] }
 0x1c7   : > { %5350 = vmatpush.bf16.msrb.mxu2 %v8503_v26  ;;  %v8540_v26 = vld [vmem:[%s10661_s1 + $0xec8] sm:$0xff] }
 0x1c8   : > { %5363 = vmatpush.bf16.msrb.mxu3 %v8511_v27  ;;  %v8568_v47 = vld [vmem:[%s10661_s1 + $0xfa8] sm:$0xff] }
 0x1c9   : > { %5325 = vmatpush.bf16.msrb.mxu0 %v8486_v29  ;;  %v8515_v29 = vld [vmem:[%s10661_s1 + $0xe00] sm:$0xff]  ;;  %v8576_v48 = vld [vmem:[%s10661_s1 + $0xfe8] sm:$0xff] }
 0x1ca   : > { %5338 = vmatpush.bf16.msrb.mxu1 %v8494_v30  ;;  %v8523_v30 = vld [vmem:[%s10661_s1 + $0xe40] sm:$0xff] }
 0x1cb   : > { %5351 = vmatpush.bf16.msrb.mxu2 %v8502_v31  ;;  %v8531_v31 = vld [vmem:[%s10661_s1 + $0xe80] sm:$0xff] }
 0x1cc   : > { %5364 = vmatpush.bf16.msrb.mxu3 %v8510_v32  ;;  %v8539_v32 = vld [vmem:[%s10661_s1 + $0xec0] sm:$0xff] }
 0x1cd   : > { %5326 = vmatpush.bf16.msrb.mxu0 %v8485_v38  ;;  %v1503_v38 = vld.sshfl [vmem:[#allocation1 + $0x10] sm:$0xff pattern:$0x73625140] }
 0x1ce   : > { %5339 = vmatpush.bf16.msrb.mxu1 %v8493_v39  ;;  %v1502_v39 = vld.sshfl [vmem:[#allocation1 + $0x8] sm:$0xff pattern:$0x73625140] }
 0x1cf   : > { %5352 = vmatpush.bf16.msrb.mxu2 %v8501_v41  ;;  %v8553_v41 = vld [vmem:[%s10661_s1 + $0xf30] sm:$0xff] }
 0x1d0   : > { %5365 = vmatpush.bf16.msrb.mxu3 %v8509_v42  ;;  %v8561_v42 = vld [vmem:[%s10661_s1 + $0xf70] sm:$0xff] }
 0x1d1   : > { %5327 = vmatpush.bf16.msrb.mxu0 %v8484_v43  ;;  %v8569_v43 = vld [vmem:[%s10661_s1 + $0xfb0] sm:$0xff] }
 0x1d2   : > { %5340 = vmatpush.bf16.msrb.mxu1 %v8492_v44  ;;  %v8577_v44 = vld [vmem:[%s10661_s1 + $0xff0] sm:$0xff] }
 0x1d3   : > { %5353 = vmatpush.bf16.msrb.mxu2 %v8500_v45  ;;  %v8552_v45 = vld [vmem:[%s10661_s1 + $0xf28] sm:$0xff] }
 0x1d4   : > { %5366 = vmatpush.bf16.msrb.mxu3 %v8508_v46  ;;  %v8560_v46 = vld [vmem:[%s10661_s1 + $0xf68] sm:$0xff] }
 0x1d5   : > { %5328 = vmatpush.bf16.msrb.mxu0 %v8483_v49  ;;  %v5122_v1 = vpop.f32.mrf.mxu0 }
 0x1d6   : > { %5341 = vmatpush.bf16.msrb.mxu1 %v8491_v50  ;;  %v5123_v2 = vadd.f32 %v5122_v1, %v5110_v37  ;;  %v5135_v5 = vpop.f32.mrf.mxu1  ;;  %v1501_v37 = vld.sshfl [vmem:[#allocation1] sm:$0xff pattern:$0x73625140] }
 0x1d7   : > { %5354 = vmatpush.bf16.msrb.mxu2 %v8499_v51  ;;  %v8551_v51 = vld [vmem:[%s10661_s1 + $0xf20] sm:$0xff] }
 0x1d8   : > { %5367 = vmatpush.bf16.msrb.mxu3 %v8507_v52  ;;  %5329 = vmatmul.bf16.vlgmr.msrb.gmra.mxu0 %v10241_v13  ;;  %v5136_v8 = vadd.f32 %v5135_v5, %v5123_v2  ;;  %v8559_v52 = vld [vmem:[%s10661_s1 + $0xf60] sm:$0xff]  ;;  %v8549_v2 = vld [vmem:[%s10661_s1 + $0xf10] sm:$0xff] }
 0x1d9   : > { %5373 = vmatpush.bf16.msra.mxu0 %v8522_v53  ;;  %5342 = vmatmul.bf16.vlgmr.msrb.gmra.mxu1 %v10245_v15  ;;  %v8565_v5 = vld [vmem:[%s10661_s1 + $0xf90] sm:$0xff] }
 0x1da   : > { %5386 = vmatpush.bf16.msra.mxu1 %v8530_v54  ;;  %5355 = vmatmul.bf16.vlgmr.msrb.gmra.mxu2 %v10243_v14  ;;  %v8567_v54 = vld [vmem:[%s10661_s1 + $0xfa0] sm:$0xff] }
 0x1db   : > { %5399 = vmatpush.bf16.msra.mxu2 %v8538_v55  ;;  %5368 = vmatmul.bf16.vlgmr.msrb.gmra.mxu3 %v10247_v16  ;;  %v8575_v55 = vld [vmem:[%s10661_s1 + $0xfe0] sm:$0xff] }
 0x1dc   : > { %5412 = vmatpush.bf16.msra.mxu3 %v8546_v56 }
 0x1dd   : > { %5374 = vmatpush.bf16.msra.mxu0 %v8521_v57  ;;  %v5148_v13 = vpop.f32.mrf.mxu2  ;;  %v5124_v16 = vpop.f32.mrf.mxu0  ;;  %v8550_v57 = vld [vmem:[%s10661_s1 + $0xf18] sm:$0xff] }
 0x1de   : > { %5387 = vmatpush.bf16.msra.mxu1 %v8529_v58  ;;  %v5149_v14 = vadd.f32 %v5148_v13, %v5136_v8  ;;  %v5161_v15 = vpop.f32.mrf.mxu3  ;;  %v5137_v20 = vpop.f32.mrf.mxu1  ;;  %v8558_v58 = vld [vmem:[%s10661_s1 + $0xf58] sm:$0xff]  ;;  %v8556_v8 = vld [vmem:[%s10661_s1 + $0xf48] sm:$0xff]  ;;  %v8547_v13 = vld [vmem:[%s10661_s1 + $0xf00] sm:$0xff] }
 0x1df   : > { %5400 = vmatpush.bf16.msra.mxu2 %v8537_v59  ;;  %v8566_v59 = vld [vmem:[%s10661_s1 + $0xf98] sm:$0xff]  ;;  %v8571_v16 = vld [vmem:[%s10661_s1 + $0xfc0] sm:$0xff] }
 0x1e0   : > { %5413 = vmatpush.bf16.msra.mxu3 %v8545_v60  ;;  %v5162_v17 = vadd.f32 %v5161_v15, %v5149_v14  ;;  %v8574_v60 = vld [vmem:[%s10661_s1 + $0xfd8] sm:$0xff]  ;;  %v8555_v14 = vld [vmem:[%s10661_s1 + $0xf40] sm:$0xff] }
 0x1e1   : > { %5375 = vmatpush.bf16.msra.mxu0 %v8520_v61  ;;  %v8563_v15 = vld [vmem:[%s10661_s1 + $0xf80] sm:$0xff]  ;;  %v1508_v20 = vld.sshfl [vmem:[#allocation1 + $0x38] sm:$0xff pattern:$0x73625140] }
 0x1e2   : > { %5388 = vmatpush.bf16.msra.mxu1 %v8528_v62 }
 0x1e3   : > { %5401 = vmatpush.bf16.msra.mxu2 %v8536_v63 }
 0x1e4   : > { %5414 = vmatpush.bf16.msra.mxu3 %v8544_v0 }
 0x1e5   : > { %5376 = vmatpush.bf16.msra.mxu0 %v8519_v3  ;;  %v5150_v27 = vpop.f32.mrf.mxu2  ;;  %v8557_v3 = vld [vmem:[%s10661_s1 + $0xf50] sm:$0xff] }
 0x1e6   : > { %5389 = vmatpush.bf16.msra.mxu1 %v8527_v4  ;;  %v5163_v28 = vpop.f32.mrf.mxu3 }
 0x1e7   : > { %5402 = vmatpush.bf16.msra.mxu2 %v8535_v6  ;;  %v8573_v6 = vld [vmem:[%s10661_s1 + $0xfd0] sm:$0xff] }
 0x1e8   : > { %5415 = vmatpush.bf16.msra.mxu3 %v8543_v7  ;;  %v8548_v7 = vld [vmem:[%s10661_s1 + $0xf08] sm:$0xff] }
 0x1e9   : > { %5377 = vmatpush.bf16.msra.mxu0 %v8518_v9  ;;  %v8564_v9 = vld [vmem:[%s10661_s1 + $0xf88] sm:$0xff] }
 0x1ea   : > { %5390 = vmatpush.bf16.msra.mxu1 %v8526_v10  ;;  %v8572_v10 = vld [vmem:[%s10661_s1 + $0xfc8] sm:$0xff] }
 0x1eb   : > { %5403 = vmatpush.bf16.msra.mxu2 %v8534_v11 }
 0x1ec   : > { %5416 = vmatpush.bf16.msra.mxu3 %v8542_v12 }
 0x1ed   : > { %5378 = vmatpush.bf16.msra.mxu0 %v8517_v18  ;;  %v1506_v18 = vld.sshfl [vmem:[#allocation1 + $0x28] sm:$0xff pattern:$0x73625140] }
 0x1ee   : > { %5391 = vmatpush.bf16.msra.mxu1 %v8525_v19  ;;  %v1507_v19 = vld.sshfl [vmem:[#allocation1 + $0x30] sm:$0xff pattern:$0x73625140] }
 0x1ef   : > { %5404 = vmatpush.bf16.msra.mxu2 %v8533_v21 }
 0x1f0   : > { %5417 = vmatpush.bf16.msra.mxu3 %v8541_v22 }
 0x1f1   : > { %5379 = vmatpush.bf16.msra.mxu0 %v8516_v23 }
 0x1f2   : > { %5392 = vmatpush.bf16.msra.mxu1 %v8524_v24 }
 0x1f3   : > { %5405 = vmatpush.bf16.msra.mxu2 %v8532_v25 }
 0x1f4   : > { %5418 = vmatpush.bf16.msra.mxu3 %v8540_v26 }
 0x1f5   : > { %5380 = vmatpush.bf16.msra.mxu0 %v8515_v29  ;;  %v5174_v49 = vpop.f32.mrf.mxu0 }
 0x1f6   : > { %5393 = vmatpush.bf16.msra.mxu1 %v8523_v30  ;;  %v5175_v50 = vadd.f32 %v5174_v49, %v5162_v17  ;;  %v5187_v53 = vpop.f32.mrf.mxu1  ;;  %v1505_v17 = vld.sshfl [vmem:[#allocation1 + $0x20] sm:$0xff pattern:$0x73625140]  ;;  %v8586_v49 = vld [vmem:[%s10663_s3 + $0x38] sm:$0xff] }
 0x1f7   : > { %5406 = vmatpush.bf16.msra.mxu2 %v8531_v31 }
 0x1f8   : > { %5419 = vmatpush.bf16.msra.mxu3 %v8539_v32  ;;  %5381 = vmatmul.bf16.vlgmr.msra.gmra.mxu0 %v1501_v37  ;;  %v5188_v56 = vadd.f32 %v5187_v53, %v5175_v50  ;;  %v8584_v53 = vld [vmem:[%s10663_s3 + $0x28] sm:$0xff] }
 0x1f9   : > { %5425 = vmatpush.bf16.msrb.mxu0 %v8554_v33  ;;  %5394 = vmatmul.bf16.vlgmr.msra.gmra.mxu1 %v1502_v39 }
 0x1fa   : > { %5438 = vmatpush.bf16.msrb.mxu1 %v8562_v34  ;;  %5407 = vmatmul.bf16.vlgmr.msra.gmra.mxu2 %v1503_v38 }
 0x1fb   : > { %5451 = vmatpush.bf16.msrb.mxu2 %v8570_v35  ;;  %5420 = vmatmul.bf16.vlgmr.msra.gmra.mxu3 %v1504_v40 }
 0x1fc   : > { %5464 = vmatpush.bf16.msrb.mxu3 %v8578_v36 }
 0x1fd   : > { %5426 = vmatpush.bf16.msrb.mxu0 %v8553_v41  ;;  %v5200_v61 = vpop.f32.mrf.mxu2  ;;  %v5176_v0 = vpop.f32.mrf.mxu0 }
 0x1fe   : > { %5439 = vmatpush.bf16.msrb.mxu1 %v8561_v42  ;;  %v5201_v62 = vadd.f32 %v5200_v61, %v5188_v56  ;;  %v5213_v63 = vpop.f32.mrf.mxu3  ;;  %v5189_v4 = vpop.f32.mrf.mxu1  ;;  %v8583_v56 = vld [vmem:[%s10663_s3 + $0x20] sm:$0xff]  ;;  %v8580_v61 = vld [vmem:[%s10663_s3 + $0x8] sm:$0xff] }
 0x1ff   : > { %5452 = vmatpush.bf16.msrb.mxu2 %v8569_v43 }
 0x200   : > { %5465 = vmatpush.bf16.msrb.mxu3 %v8577_v44  ;;  %v5214_v1 = vadd.f32 %v5213_v63, %v5201_v62 }
 0x201   : > { %5427 = vmatpush.bf16.msrb.mxu0 %v8552_v45 }
 0x202   : > { %5440 = vmatpush.bf16.msrb.mxu1 %v8560_v46 }
 0x203   : > { %5453 = vmatpush.bf16.msrb.mxu2 %v8568_v47 }
 0x204   : > { %5466 = vmatpush.bf16.msrb.mxu3 %v8576_v48 }
 0x205   : > { %5428 = vmatpush.bf16.msrb.mxu0 %v8551_v51  ;;  %v5202_v11 = vpop.f32.mrf.mxu2 }
 0x206   : > { %5441 = vmatpush.bf16.msrb.mxu1 %v8559_v52  ;;  %v5215_v12 = vpop.f32.mrf.mxu3  ;;  %v8585_v52 = vld [vmem:[%s10663_s3 + $0x30] sm:$0xff] }
 0x207   : > { %5454 = vmatpush.bf16.msrb.mxu2 %v8567_v54  ;;  %v8601_v11 = vld [vmem:[%s10667_s7 + $0x30] sm:$0xff] }
 0x208   : > { %5467 = vmatpush.bf16.msrb.mxu3 %v8575_v55 }
 0x209   : > { %5429 = vmatpush.bf16.msrb.mxu0 %v8550_v57  ;;  %v8582_v57 = vld [vmem:[%s10663_s3 + $0x18] sm:$0xff] }
 0x20a   : > { %5442 = vmatpush.bf16.msrb.mxu1 %v8558_v58 }
 0x20b   : > { %5455 = vmatpush.bf16.msrb.mxu2 %v8566_v59  ;;  %v8581_v59 = vld [vmem:[%s10663_s3 + $0x10] sm:$0xff] }
 0x20c   : > { %5468 = vmatpush.bf16.msrb.mxu3 %v8574_v60 }
 0x20d   : > { %5430 = vmatpush.bf16.msrb.mxu0 %v8549_v2  ;;  %v8579_v2 = vld [vmem:[%s10663_s3] sm:$0xff] }
 0x20e   : > { %5443 = vmatpush.bf16.msrb.mxu1 %v8557_v3 }
 0x20f   : > { %5456 = vmatpush.bf16.msrb.mxu2 %v8565_v5 }
 0x210   : > { %5469 = vmatpush.bf16.msrb.mxu3 %v8573_v6  ;;  %v8594_v6 = vld [vmem:[%s10665_s5 + $0x38] sm:$0xff] }
 0x211   : > { %5431 = vmatpush.bf16.msrb.mxu0 %v8548_v7  ;;  %v8602_v7 = vld [vmem:[%s10667_s7 + $0x38] sm:$0xff] }
 0x212   : > { %5444 = vmatpush.bf16.msrb.mxu1 %v8556_v8 }
 0x213   : > { %5457 = vmatpush.bf16.msrb.mxu2 %v8564_v9 }
 0x214   : > { %5470 = vmatpush.bf16.msrb.mxu3 %v8572_v10  ;;  %v8593_v10 = vld [vmem:[%s10665_s5 + $0x30] sm:$0xff] }
 0x215   : > { %5432 = vmatpush.bf16.msrb.mxu0 %v8547_v13  ;;  %v5226_v21 = vpop.f32.mrf.mxu0 }
 0x216   : > { %5445 = vmatpush.bf16.msrb.mxu1 %v8555_v14  ;;  %v5227_v22 = vadd.f32 %v5226_v21, %v5214_v1  ;;  %v5239_v23 = vpop.f32.mrf.mxu1  ;;  %v8592_v14 = vld [vmem:[%s10665_s5 + $0x28] sm:$0xff]  ;;  %v8598_v21 = vld [vmem:[%s10667_s7 + $0x18] sm:$0xff] }
 0x217   : > { %5458 = vmatpush.bf16.msrb.mxu2 %v8563_v15  ;;  %v8600_v15 = vld [vmem:[%s10667_s7 + $0x28] sm:$0xff] }
 0x218   : > { %5471 = vmatpush.bf16.msrb.mxu3 %v8571_v16  ;;  %5433 = vmatmul.bf16.vlgmr.msrb.gmra.mxu0 %v1505_v17  ;;  %v5240_v24 = vadd.f32 %v5239_v23, %v5227_v22  ;;  %v8591_v17 = vld [vmem:[%s10665_s5 + $0x20] sm:$0xff] }
 0x219   : > { %5446 = vmatmul.bf16.vlgmr.msrb.gmra.mxu1 %v1506_v18  ;;  %5547 = vmatpush.bf16.msra.mxu0 %v8586_v49  ;;  %v8599_v18 = vld [vmem:[%s10667_s7 + $0x20] sm:$0xff] }
 0x21a   : > { %5459 = vmatmul.bf16.vlgmr.msrb.gmra.mxu2 %v1507_v19  ;;  %5630 = vmatpush.bf16.msra.mxu1 %v8594_v6  ;;  %v8649_v49 = vld [vmem:[%s10666_s6] ss:$0 sm:$0xff] }
 0x21b   : > { %5472 = vmatmul.bf16.vlgmr.msrb.gmra.mxu3 %v1508_v20  ;;  %5711 = vmatpush.bf16.msra.mxu2 %v8602_v7  ;;  %v8590_v20 = vld [vmem:[%s10665_s5 + $0x18] sm:$0xff] }
 0x21d   : > { %v5252_v25 = vpop.f32.mrf.mxu2  ;;  %v5228_v28 = vpop.f32.mrf.mxu0  ;;  %5548 = vmatpush.bf16.msra.mxu0 %v8585_v52 }
 0x21e   : > { %v5253_v26 = vadd.f32 %v5252_v25, %v5240_v24  ;;  %v5265_v27 = vpop.f32.mrf.mxu3  ;;  %v5241_v30 = vpop.f32.mrf.mxu1  ;;  %5631 = vmatpush.bf16.msra.mxu1 %v8593_v10 }
 0x21f   : > { %5712 = vmatpush.bf16.msra.mxu2 %v8601_v11 }
 0x220   : > { %v5266_v29 = vadd.f32 %v5265_v27, %v5253_v26  ;;  %v8589_v26 = vld [vmem:[%s10665_s5 + $0x10] sm:$0xff] }
 0x221   : > { %5549 = vmatpush.bf16.msra.mxu0 %v8584_v53  ;;  %v8597_v27 = vld [vmem:[%s10667_s7 + $0x10] sm:$0xff] }
 0x222   : > { %5632 = vmatpush.bf16.msra.mxu1 %v8592_v14 }
 0x223   : > { %5713 = vmatpush.bf16.msra.mxu2 %v8600_v15 }
 0x225   : > { %v5254_v31 = vpop.f32.mrf.mxu2  ;;  %5550 = vmatpush.bf16.msra.mxu0 %v8583_v56 }
 0x226   : > { %v5267_v32 = vpop.f32.mrf.mxu3  ;;  %5633 = vmatpush.bf16.msra.mxu1 %v8591_v17 }
 0x227   : > { %5714 = vmatpush.bf16.msra.mxu2 %v8599_v18 }
 0x229   : > { %5551 = vmatpush.bf16.msra.mxu0 %v8582_v57 }
 0x22a   : > { %5634 = vmatpush.bf16.msra.mxu1 %v8590_v20 }
 0x22b   : > { %5715 = vmatpush.bf16.msra.mxu2 %v8598_v21 }
 0x22d   : > { %5552 = vmatpush.bf16.msra.mxu0 %v8581_v59 }
 0x22e   : > { %5635 = vmatpush.bf16.msra.mxu1 %v8589_v26 }
 0x22f   : > { %5716 = vmatpush.bf16.msra.mxu2 %v8597_v27 }
 0x231   : > { %5553 = vmatpush.bf16.msra.mxu0 %v8580_v61  ;;  %v8650_v61 = vld [vmem:[%s10668_s8] ss:$0 sm:$0xff] }
 0x235   : > { %v5278_v33 = vpop.f32.mrf.mxu0  ;;  %5554 = vmatpush.bf16.msra.mxu0 %v8579_v2 }
 0x236   : > { %v5279_v34 = vadd.f32 %v5278_v33, %v5266_v29  ;;  %v5291_v35 = vpop.f32.mrf.mxu1 }
 0x238   : > { %v5292_v36 = vadd.f32 %v5291_v35, %v5279_v34 }
 0x23d   : > { %v5304_v37 = vpop.f32.mrf.mxu2  ;;  %v5280_v40 = vpop.f32.mrf.mxu0 }
 0x23e   : > { %v5305_v38 = vadd.f32 %v5304_v37, %v5292_v36  ;;  %v5317_v39 = vpop.f32.mrf.mxu3  ;;  %v5293_v42 = vpop.f32.mrf.mxu1  ;;  %v8596_v40 = vld [vmem:[%s10667_s7 + $0x8] sm:$0xff] }
 0x23f   : > { %5717 = vmatpush.bf16.msra.mxu2 %v8596_v40  ;;  %v8595_v42 = vld [vmem:[%s10667_s7] sm:$0xff] }
 0x240   : > { %v5318_v41 = vadd.f32 %v5317_v39, %v5305_v38  ;;  %v8588_v39 = vld [vmem:[%s10665_s5 + $0x8] sm:$0xff] }
 0x241   : > { %5636 = vmatpush.bf16.msra.mxu1 %v8588_v39 }
 0x243   : > { %5718 = vmatpush.bf16.msra.mxu2 %v8595_v42 }
 0x245   : > { %v5306_v43 = vpop.f32.mrf.mxu2 }
 0x246   : > { %v5319_v44 = vpop.f32.mrf.mxu3  ;;  %v8648_v43 = vld [vmem:[%s10664_s4] ss:$0 sm:$0xff] }
 0x255   : > { %v5330_v45 = vpop.f32.mrf.mxu0 }
 0x256   : > { %v5343_v46 = vpop.f32.mrf.mxu1  ;;  %v5331_v63 = vadd.f32 %v5330_v45, %v5318_v41  ;;  %v8587_v41 = vld [vmem:[%s10665_s5] sm:$0xff] }
 0x257   : > { %5637 = vmatpush.bf16.msra.mxu1 %v8587_v41 }
 0x258   : > { %v5344_v4 = vadd.f32 %v5343_v46, %v5331_v63 }
 0x25d   : > { %v5356_v47 = vpop.f32.mrf.mxu2  ;;  %v5332_v50 = vpop.f32.mrf.mxu0 }
 0x25e   : > { %v5369_v48 = vpop.f32.mrf.mxu3  ;;  %v5345_v51 = vpop.f32.mrf.mxu1  ;;  %v5357_v5 = vadd.f32 %v5356_v47, %v5344_v4 }
 0x260   : > { %v5370_v12 = vadd.f32 %v5369_v48, %v5357_v5 }
 0x265   : > { %v5358_v54 = vpop.f32.mrf.mxu2 }
 0x266   : > { %v5371_v55 = vpop.f32.mrf.mxu3 }
 0x275   : > { %v5382_v58 = vpop.f32.mrf.mxu0 }
 0x276   : > { %v5395_v60 = vpop.f32.mrf.mxu1  ;;  %v5383_v13 = vadd.f32 %v5382_v58, %v5370_v12 }
 0x278   : > { %v5396_v16 = vadd.f32 %v5395_v60, %v5383_v13 }
 0x27d   : > { %v5408_v62 = vpop.f32.mrf.mxu2  ;;  %v5384_v1 = vpop.f32.mrf.mxu0 }
 0x27e   : > { %v5421_v0 = vpop.f32.mrf.mxu3  ;;  %v5397_v3 = vpop.f32.mrf.mxu1  ;;  %v5409_v19 = vadd.f32 %v5408_v62, %v5396_v16 }
 0x280   : > { %v5422_v22 = vadd.f32 %v5421_v0, %v5409_v19 }
 0x285   : > { %v5410_v8 = vpop.f32.mrf.mxu2 }
 0x286   : > { %v5423_v9 = vpop.f32.mrf.mxu3 }
 0x295   : > { %v5434_v23 = vpop.f32.mrf.mxu0 }
 0x296   : > { %v5447_v24 = vpop.f32.mrf.mxu1  ;;  %v5435_v25 = vadd.f32 %v5434_v23, %v5422_v22 }
 0x298   : > { %v5448_v28 = vadd.f32 %v5447_v24, %v5435_v25 }
 0x29d   : > { %v5460_v29 = vpop.f32.mrf.mxu2  ;;  %v5436_v32 = vpop.f32.mrf.mxu0 }
 0x29e   : > { %v5473_v30 = vpop.f32.mrf.mxu3  ;;  %v5461_v31 = vadd.f32 %v5460_v29, %v5448_v28  ;;  %v5449_v33 = vpop.f32.mrf.mxu1 }
 0x2a0   : > { %v5474_v34 = vadd.f32 %v5473_v30, %v5461_v31 }
 0x2a2   : > { %v5477_v35 = vmax.f32 %v5474_v34, 0.0 }
 0x2a4   : > { %v5478_v36 = vpack.c.bf16 %v5477_v35, %v5477_v35 }
 0x2a5   : > { %v5462_v37 = vpop.f32.mrf.mxu2 }
 0x2a6   : > { %v5475_v38 = vpop.f32.mrf.mxu3  ;;  %5555 = vmatmul.bf16.vlgmr.msra.gmra.mxu0 %v5478_v36 }
 0x323   : > { %v5556_v44 = vpop.f32.mrf.mxu0 }
 0x324   : > { %v5557_v45 = vadd.f32 %v8648_v43, %v5556_v44 }
 0x326   : > { %v5560_v46 = vmax.f32 %v5557_v45, 0.0 }
 0x328   : > { %v5561_v47 = vpack.c.bf16 %v5560_v46, %v5560_v46 }
 0x32a   : > { %5638 = vmatmul.bf16.vlgmr.msra.gmra.mxu1 %v5561_v47  ;;  %5719 = vmatmul.bf16.vlgmr.msra.gmra.mxu2 %v5561_v47 }
 0x32b   : > { %v5558_v48 = vpop.f32.mrf.mxu0 }
 0x3a7   : > { %v5639_v50 = vpop.f32.mrf.mxu1 }
 0x3a8   : > { %v5640_v51 = vadd.f32 %v8649_v49, %v5639_v50 }
 0x3aa   : > { %v5725_v52 = vsel %vm5724_vm0, %v5640_v51, -inf }
 0x3ab   : > { %5726 = vmax.xlane.f32.xlu0 %v5725_v52 }
 0x3ad   : > { %v5720_v53 = vpop.f32.mrf.mxu2 }
 0x3ae   : > { %v5721_v62 = vadd.f32 %v8650_v61, %v5720_v53 }
 0x3af   : > { %v5641_v54 = vpop.f32.mrf.mxu1 }
 0x3b0   : > { %v5749_v63 = vsel %vm5724_vm0, %v5721_v62, -inf }
 0x3b1   : > { %v5750_v0 = vrot.slane %v5749_v63, 4 }
 0x3b3   : > { %v5751_v1 = vmax.f32 %v5749_v63, %v5750_v0 }
 0x3b5   : > { %v5722_v55 = vpop.f32.mrf.mxu2  ;;  %v5752_v2 = vrot.slane %v5751_v1, 2 }
 0x3b7   : > { %v5753_v3 = vmax.f32 %v5751_v1, %v5752_v2 }
 0x3b9   : > { %v5754_v4 = vrot.slane %v5753_v3, 1 }
 0x3bb   : > { %v5755_v5 = vmax.f32 %v5753_v3, %v5754_v4 }
 0x3bd   : > { %v5756_v6 = vsub.f32 %v5721_v62, %v5755_v5 }
 0x3bf   : > { %v5757_v7 = vmul.f32 1.442695, %v5756_v6 }
 0x41e   : > { %v5727_v56 = vpop.xlane.xlu0 %5726 }
 0x41f   : > { %v5728_v57 = vsub.f32 %v5640_v51, %v5727_v56 }
 0x421   : > { %v5729_v58 = vmul.f32 1.442695, %v5728_v57 }
 0x423   : > { %8651 = vpow2.f32 %v5729_v58 }
 0x424   : > { %8653 = vpow2.f32 %v5757_v7 }
 0x429   : > { %v8652_v59 = vpop.eup %8651 }
 0x42a   : > { %v5731_v60 = vsel %vm5724_vm0, %v8652_v59, 0.0  ;;  %v8654_v8 = vpop.eup %8653 }
 0x42b   : > { %5732 = vadd.xlane.f32.xlu0 %v5731_v60  ;;  %v5759_v9 = vsel %vm5724_vm0, %v8654_v8, 0.0 }
 0x42c   : > { %v5760_v10 = vrot.slane %v5759_v9, 4 }
 0x42e   : > { %v5761_v11 = vadd.f32 %v5760_v10, %v5759_v9 }
 0x430   : > { %v5762_v12 = vrot.slane %v5761_v11, 2 }
 0x432   : > { %v5763_v13 = vadd.f32 %v5762_v12, %v5761_v11 }
 0x434   : > { %v5764_v14 = vrot.slane %v5763_v13, 1 }
 0x436   : > { %v5765_v15 = vadd.f32 %v5764_v14, %v5763_v13 }
 0x438   : > { %8655 = vrcp.f32 %v5765_v15  ;;  %v5777_v24 = vand.u32 2147483648, %v5765_v15  ;;  %vm5771_vm2 = vweird.f32 %v5765_v15  ;;  %v5775_v26 = vand.u32 2147483647, %v5765_v15 }
 0x43a   : > { %v5778_v31 = vor.u32 1.1754944e-38, %v5777_v24  ;;  %vm5776_vm6 = vcmp.eq.f32.partialorder %v5775_v26, 8.507059e+37 }
 0x43e   : > { %v8656_v16 = vpop.eup %8655 }
 0x43f   : > { %v5767_v17 = vmul.f32 %v8656_v16, %v5765_v15  ;;  %vm5772_vm1 = vweird.f32 %v8656_v16 }
 0x440   : > { %vm5773_vm3 = vmor %vm5771_vm2, %vm5772_vm1 }
 0x441   : > { %v5768_v19 = vsub.f32 1.0, %v5767_v17 }
 0x443   : > { %v5769_v20 = vmul.f32 %v8656_v16, %v5768_v19 }
 0x445   : > { %v5770_v23 = vadd.f32 %v8656_v16, %v5769_v20 }
 0x447   : > { %v5774_v30 = vsel %vm5773_vm3, %v8656_v16, %v5770_v23 }
 0x448   : > { %v5779_v34 = vsel %vm5776_vm6, %v5778_v31, %v5774_v30 }
 0x449   : > { %v5780_v38 = vmul.f32 %v8654_v8, %v5779_v34 }
 0x49e   : > { %v5733_v18 = vpop.xlane.xlu0 %5732 }
 0x49f   : > { %8657 = vrcp.f32 %v5733_v18  ;;  %v5745_v27 = vand.u32 2147483648, %v5733_v18  ;;  %v5743_v29 = vand.u32 2147483647, %v5733_v18  ;;  %vm5739_vm5 = vweird.f32 %v5733_v18 }
 0x4a1   : > { %v5746_v33 = vor.u32 1.1754944e-38, %v5745_v27  ;;  %vm5744_vm8 = vcmp.eq.f32.partialorder %v5743_v29, 8.507059e+37 }
 0x4a5   : > { %v8658_v21 = vpop.eup %8657 }
 0x4a6   : > { %v5735_v22 = vmul.f32 %v8658_v21, %v5733_v18  ;;  %vm5740_vm4 = vweird.f32 %v8658_v21 }
 0x4a7   : > { %vm5741_vm7 = vmor %vm5739_vm5, %vm5740_vm4 }
 0x4a8   : > { %v5736_v25 = vsub.f32 1.0, %v5735_v22 }
 0x4aa   : > { %v5737_v28 = vmul.f32 %v8658_v21, %v5736_v25 }
 0x4ac   : > { %v5738_v32 = vadd.f32 %v8658_v21, %v5737_v28 }
 0x4ae   : > { %v5742_v35 = vsel %vm5741_vm7, %v8658_v21, %v5738_v32 }
 0x4af   : > { %v5747_v36 = vsel %vm5744_vm8, %v5746_v33, %v5742_v35 }
 0x4b0   : > { %v5748_v37 = vmul.f32 %v8652_v59, %v5747_v36 }
 0x4b2   : > { %v5781_v39 = vmul.f32 %v5780_v38, %v5748_v37 }
 0x4b4   : > { %5782 = vst [vmem:[%s356_s29] sm:$0xf] %v5781_v39  ;;  %v5783_v40 = vsel %vm5724_vm0, %v5781_v39, 0.0 }
 0x4b5   : > { %v5784_v41 = vrot.slane %v5783_v40, 4 }
 0x4b6   : > { %8686 = shalt.err (!%p8683_p3)
}
 0x4b7   : > { %8603 = dma.vmem_to_hbm [thread:$0]  (%p8848_p5), %s5809_s30, 64, %s5811_s22, %s5792_s25   ;;  %v5785_v42 = vadd.f32 %v5784_v41, %v5783_v40 }
 0x4b8   : > { %s5819_s27 = scalar_lea.hbm %s10670_s10, %s8831_s17  ;;  %s362_s21 = scalar_lea.vmem [#allocation4], %s10608_s20 }
 0x4b9   : > { %v5786_v43 = vrot.slane %v5785_v42, 2  ;;  %s5821_s11 = sshll.u32 %s362_s21, 4  ;;  %s5823_s18 = sshll.u32 %s5819_s27, 4  ;;  %s5822_s11 = int_to_ptr.vmem [resolvable:$true] %s5821_s11  ;;  %s5824_s18 = int_to_ptr.hbm [resolvable:$true] %s5823_s18 }
 0x4ba   : > { %s5797_s26 = scalar_lea.sflag [#allocation5], %s10608_s20  ;;  %s8701_s28 = sshra.s32 %s5824_s18, 4  ;;  %s8702_s28 = int_to_ptr.hbm [resolvable:$true] %s8701_s28 }
 0x4bb   : > { %v5787_v44 = vadd.f32 %v5786_v43, %v5785_v42  ;;  %s8703_s30 = scalar_lea.hbm %s8702_s28, 1  ;;  %s8707_s17 = scalar_lea.hbm %s10670_s10, 2 }
 0x4bc   : > { %p8704_p4 = scmp.ne.s32.totalorder %s8702_s28, %s8703_s30  ;;  %p8708_p9 = scmp.lt.s32.totalorder %s8702_s28, %s10670_s10 }
 0x4bd   : > { %v5788_v45 = vrot.slane %v5787_v44, 1  ;;  %p8709_p10 = scmp.lt.s32.totalorder %s8707_s17, %s8703_s30 }
 0x4be   : > { %p8705_p7 = pnand %p8704_p4, %p8848_p5 }
 0x4bf   : > { %v5789_v46 = vadd.f32 %v5788_v45, %v5787_v44  ;;  %p8710_p11 = por %p8709_p10, %p8708_p9 }
 0x4c0   : > { %p8706_p8 = pneg %p8705_p7 }
 0x4c1   : > { %5790 = vst [vmem:[%s362_s21] sm:$0x1] %v5789_v46 }
 0x4c2   : > { %p8711_p12 = pnand %p8710_p11, %p8706_p8 }
 0x4c4   : > { %8714 = shalt.err (!%p8711_p12)
}
 0x4c5   : > { %8604 = dma.vmem_to_hbm [thread:$0]  (%p8848_p5), %s5822_s11, 16, %s5824_s18, %s5797_s26  }
 0x4c6 PF: > { %p8614_p13 = scmp.ge.s32.totalorder %s8753_s16, 2  ;;  %s5835_s20 = sand.u32 1, %s8741_s13  }
 0x4c7   : > { %s5836_s29 = scalar_lea.sflag [#allocation3], %s5835_s20 }
 0x4c8   : > { %p8608_p0 = pnand %p8614_p13, %p8852_p6 }
 0x4ca   : > { %p8609_p1 = pneg %p8608_p0 }
 0x4cc   : > { %8732 = dma.done.wait (%p8609_p1), %s5836_s29, 64  }
 0x4cd   : > { %8734 = vsyncadd (%p8609_p1), %s5836_s29, 4294967232  ;;  %s5846_s27 = scalar_lea.sflag [#allocation5], %s5835_s20 }
 0x4ce   : > { %8736 = dma.done.wait (%p8609_p1), %s5846_s27, 16  }
 0x4cf   : > { %8738 = vsyncadd (%p8609_p1), %s5846_s27, 4294967280  ;;  %s10676_s23 = sld [smem:[#allocation8_spill]]  ;;  %p24_p5 = scmp.ge.s32.totalorder %s8835_s19, 4  }
 0x4d0   : > { %s10677_s13 = smov %s8745_s14  ;;  %s10678_s14 = smov %s8749_s15 }
 0x4d1   : > { %s10680_s16 = smov %s8835_s19  ;;  %26 = sbr.rel (!%p24_p5) target bundleno = 7 (0x7), region = 109 }
 0x4d5   : > { %s10679_s15 = smov %s10676_s23 }
 0x4d6   :  { %5851 = vsyncpa [#allocation3], 1 }
 0x4d7   :  { %5853 = vsyncpa [#allocation3 + $0x1], 1 }
 0x4d8   :  { %5854 = vsyncpa [#allocation5], 1 }
 0x4d9   :  { %5856 = vsyncpa [#allocation5 + $0x1], 1 }

</bundles_post_ra>
